<compile_context>
chip_gen: v7x
topology: tpu7x:2x2x1
jax: 0.10.0
libtpu: 0.0.40
codegen_flags: <defaults>
</compile_context>

<pallas_src>
import functools

import jax
import jax.numpy as jnp
from jax.experimental import pallas as pl
from jax.experimental.pallas import tpu as pltpu

LN_EPS = 1e-5  # PyTorch nn.LayerNorm default


# ----------------------------- Pallas kernels ------------------------------ #

def _matmul_bias_kernel(x_ref, w_ref, b_ref, o_ref):
    o_ref[...] = (jnp.dot(x_ref[...].astype(jnp.float32),
                          w_ref[...].astype(jnp.float32),
                          preferred_element_type=jnp.float32)
                  + b_ref[...].astype(jnp.float32)).astype(o_ref.dtype)


def matmul_bias(x, w, b):
    """out = x @ w + b with x [M, K], w [K, N], b [N]; single VMEM block."""
    M, K = x.shape
    N = w.shape[1]
    return pl.pallas_call(
        _matmul_bias_kernel,
        out_shape=jax.ShapeDtypeStruct((M, N), x.dtype),
        grid=(1,),
        in_specs=[pl.BlockSpec((M, K), lambda i: (0, 0)),
                  pl.BlockSpec((K, N), lambda i: (0, 0)),
                  pl.BlockSpec((1, N), lambda i: (0, 0))],
        out_specs=pl.BlockSpec((M, N), lambda i: (0, 0)),
    )(x, w, b.reshape(1, N))


def _fused_mha_kernel(xq_ref, xkv_ref,
                      lnq_w_ref, lnq_b_ref, lnkv_w_ref, lnkv_b_ref,
                      wq_ref, bq_ref, wk_ref, bk_ref, wv_ref, bv_ref,
                      kr_ref, qrt_ref, wo_ref, bo_ref,
                      o_ref,
                      xqn_ref, xkvn_ref, *, scale):
    """Fused LN + QKV + relative attention + out-proj + residual.

    Grid: (nhead,).  Per step h the kernel sees this head's projection /
    out-proj weight slices and relative-position tensors; the [M, C] output
    block and the LayerNormed activations (VMEM scratch) stay resident.
    """
    h = pl.program_id(0)
    M, C = xq_ref.shape
    W, _, Dh = kr_ref.shape
    B = M // W

    @pl.when(h == 0)
    def _init():
        def ln(x_r, w_r, b_r):
            x = x_r[...].astype(jnp.float32)
            mu = jnp.mean(x, axis=-1, keepdims=True)
            var = jnp.mean(jnp.square(x - mu), axis=-1, keepdims=True)
            return ((x - mu) * jax.lax.rsqrt(var + LN_EPS)
                    * w_r[...].astype(jnp.float32)
                    + b_r[...].astype(jnp.float32))

        xqn_ref[...] = ln(xq_ref, lnq_w_ref, lnq_b_ref)
        xkvn_ref[...] = ln(xkv_ref, lnkv_w_ref, lnkv_b_ref)
        # residual (raw query-side features) + out-proj bias, added exactly once
        o_ref[...] = (xq_ref[...].astype(jnp.float32)
                      + bo_ref[...].astype(jnp.float32)).astype(o_ref.dtype)

    # per-head Q/K/V projections on the MXU (LN'd activations from scratch)
    xqn = xqn_ref[...]
    xkvn = xkvn_ref[...]
    q2 = (jnp.dot(xqn, wq_ref[...].astype(jnp.float32),
                  preferred_element_type=jnp.float32)
          + bq_ref[...].astype(jnp.float32))
    k2 = (jnp.dot(xkvn, wk_ref[...].astype(jnp.float32),
                  preferred_element_type=jnp.float32)
          + bk_ref[...].astype(jnp.float32))
    v2 = (jnp.dot(xkvn, wv_ref[...].astype(jnp.float32),
                  preferred_element_type=jnp.float32)
          + bv_ref[...].astype(jnp.float32))
    q3 = q2.reshape(B, W, Dh)
    k3 = k2.reshape(B, W, Dh)
    v3 = v2.reshape(B, W, Dh)

    kr = kr_ref[...].astype(jnp.float32)     # [Wq, Wk, Dh]
    qrt = qrt_ref[...].astype(jnp.float32)   # [Wk, Wq, Dh] (pre-transposed)

    # feat-feat scores, batched over rows: [B, Wq, Wk]  (MXU)
    s = jax.lax.dot_general(q3, k3, (((2,), (2,)), ((0,), (0,))),
                            preferred_element_type=jnp.float32)

    # relative-position terms as MXU contractions over Dh, built per batch row
    # (B is small & static) so every dot_general keeps a leading batch dim and
    # no cross-vreg relayout of the score tensor is needed.
    fp_rows, pf_rows = [], []
    for b in range(B):
        qb = q3[b]                       # [Wq, Dh]
        kb = k3[b]                       # [Wk, Dh]
        # attn_feat_pos: fp[w, v] = sum_d q[w, d] * k_r[w, v, d]
        fp = jax.lax.dot_general(qb[:, None, :], kr,
                                 (((2,), (2,)), ((0,), (0,))),
                                 preferred_element_type=jnp.float32)  # [Wq,1,Wk]
        # attn_pos_feat: pf[w, v] = sum_d k[v, d] * q_r[w, v, d]
        pf = jax.lax.dot_general(kb[:, None, :], qrt,
                                 (((2,), (2,)), ((0,), (0,))),
                                 preferred_element_type=jnp.float32)  # [Wk,1,Wq]
        fp_rows.append(fp.reshape(W, W).reshape(1, W, W))
        pf_rows.append(pf.reshape(W, W).T.reshape(1, W, W))
    s = s + jnp.concatenate(fp_rows, axis=0) + jnp.concatenate(pf_rows, axis=0)
    # single scale of the scores (== scaling q and q_r by Dh**-0.5)
    s = s * scale

    # softmax over keys; the divide goes to the EUP via approximate reciprocal
    s = s - jnp.max(s, axis=-1, keepdims=True)
    p = jnp.exp(s)
    p = p * pl.reciprocal(jnp.sum(p, axis=-1, keepdims=True), approx=True)

    # P @ V and this head's slice of the output projection, accumulated into
    # the resident output block across the head grid axis.
    ov = jax.lax.dot_general(p, v3, (((2,), (1,)), ((0,), (0,))),
                             preferred_element_type=jnp.float32)      # [B,Wq,Dh]
    partial = jnp.dot(ov.reshape(B * W, Dh), wo_ref[...].astype(jnp.float32),
                      preferred_element_type=jnp.float32)             # [M, C]
    o_ref[...] = o_ref[...] + partial.astype(o_ref.dtype)


def fused_mha(attn_p, ln_q, ln_kv, x_q, x_kv, kr_h, qrt_h, nhead):
    """One MultiheadAttentionRelative call (incl. pre-LN and residual add).

    x_q, x_kv: [B, W, C] raw (pre-LN) features; returns x_q + attn(...) with
    the query side normed by ln_q and the key/value side by ln_kv.
    """
    B, W_, C = x_q.shape
    H = nhead
    Dh = C // H
    M = B * W_
    scale = float(Dh) ** -0.5

    xq2 = x_q.reshape(M, C)
    xkv2 = x_kv.reshape(M, C)

    in_w, in_b = attn_p["in_w"], attn_p["in_b"]          # [3C, C], [3C]
    wq_h = in_w[:C].T.reshape(C, H, Dh).transpose(1, 0, 2)          # [H, C, Dh]
    wk_h = in_w[C:2 * C].T.reshape(C, H, Dh).transpose(1, 0, 2)
    wv_h = in_w[2 * C:].T.reshape(C, H, Dh).transpose(1, 0, 2)
    bq_h = in_b[:C].reshape(H, 1, Dh)
    bk_h = in_b[C:2 * C].reshape(H, 1, Dh)
    bv_h = in_b[2 * C:].reshape(H, 1, Dh)
    wo_h = attn_p["out_w"].T.reshape(H, Dh, C)                      # [H, Dh, C]
    bo = attn_p["out_b"].reshape(1, C)

    gq, bq = ln_q
    gkv, bkv = ln_kv

    vec_spec = pl.BlockSpec((1, C), lambda h: (0, 0))
    full_spec = pl.BlockSpec((M, C), lambda h: (0, 0))
    wproj_spec = pl.BlockSpec((None, C, Dh), lambda h: (h, 0, 0))
    bproj_spec = pl.BlockSpec((None, 1, Dh), lambda h: (h, 0, 0))
    pos_spec = pl.BlockSpec((None, W_, W_, Dh), lambda h: (h, 0, 0, 0))

    out = pl.pallas_call(
        functools.partial(_fused_mha_kernel, scale=scale),
        out_shape=jax.ShapeDtypeStruct((M, C), x_q.dtype),
        grid=(H,),
        in_specs=[
            full_spec,                     # xq (also the residual)
            full_spec,                     # xkv
            vec_spec, vec_spec,            # LN (query side)
            vec_spec, vec_spec,            # LN (key/value side)
            wproj_spec, bproj_spec,        # q projection (per head)
            wproj_spec, bproj_spec,        # k projection (per head)
            wproj_spec, bproj_spec,        # v projection (per head)
            pos_spec,                      # k_r  [H, Wq, Wk, Dh]
            pos_spec,                      # q_r^T [H, Wk, Wq, Dh]
            pl.BlockSpec((None, Dh, C), lambda h: (h, 0, 0)),   # out-proj slice
            vec_spec,                      # out-proj bias
        ],
        out_specs=full_spec,
        scratch_shapes=[pltpu.VMEM((M, C), jnp.float32),
                        pltpu.VMEM((M, C), jnp.float32)],
        compiler_params=pltpu.CompilerParams(
            dimension_semantics=("arbitrary",)),   # heads: output accumulator
    )(xq2, xkv2,
      gq.reshape(1, C), bq.reshape(1, C), gkv.reshape(1, C), bkv.reshape(1, C),
      wq_h, bq_h, wk_h, bk_h, wv_h, bv_h, kr_h, qrt_h, wo_h, bo)
    return out.reshape(B, W_, C)


# ------------------------- module-level forward glue ------------------------ #

def make_pos_heads(attn_p, pos_enc, pos_indexes, w, nhead):
    """Hoisted positional projection -> per-head (k_r, q_r^T) tensors."""
    C = attn_p["in_w"].shape[1]
    H, Dh = nhead, C // nhead
    if pos_enc is None:
        z = jnp.zeros((H, w, w, Dh), jnp.float32)
        return z, z
    pos_sel = jnp.take(pos_enc, pos_indexes, axis=0)                 # [W*W, C]
    proj = matmul_bias(pos_sel, attn_p["in_w"][:2 * C].T,
                       attn_p["in_b"][:2 * C])                       # [W*W, 2C]
    q_r = proj[:, :C].reshape(w, w, C)
    k_r = proj[:, C:].reshape(w, w, C)
    kr_h = k_r.reshape(w, w, H, Dh).transpose(2, 0, 1, 3)            # [H,Wq,Wk,Dh]
    qrt_h = q_r.reshape(w, w, H, Dh).transpose(2, 1, 0, 3)           # [H,Wk,Wq,Dh]
    return kr_h, qrt_h


def self_attn_layer(p, feat, pos_heads, nhead):
    kr_h, qrt_h = pos_heads
    n1 = (p["n1_w"], p["n1_b"])
    return fused_mha(p["attn"], n1, n1, feat, feat, kr_h, qrt_h, nhead)


def cross_attn_layer(p, feat_left, feat_right, pos_heads_flipped, pos_heads,
                     nhead):
    attn = p["attn"]
    n1 = (p["n1_w"], p["n1_b"])
    n2 = (p["n2_w"], p["n2_b"])
    kr_f, qrt_f = pos_heads_flipped
    kr_u, qrt_u = pos_heads
    # right image update: query = norm1(right), key/value = norm1(left),
    # positional table flipped (reference flips the table, not the indexes)
    feat_right = fused_mha(attn, n1, n1, feat_right, feat_left,
                           kr_f, qrt_f, nhead)
    # left image update: query = norm1(original left),
    # key/value = norm2(updated right)
    feat_left = fused_mha(attn, n1, n2, feat_left, feat_right,
                          kr_u, qrt_u, nhead)
    return jnp.concatenate([feat_left, feat_right], axis=0)


def sttm_complex_forward(params, feat_left, feat_right, pos_enc, *,
                         nhead, num_attn_layers):
    bs, c, hn, w = feat_left.shape
    # NCHW -> [HN*bs, W, C] row-major batch layout (B index hn-major, bs-minor,
    # equivalent to the reference permute(1,3,2,0).flatten(2).permute(1,2,0)
    # up to a final [W, B] <-> [B, W] transpose, restored at the end).
    fl = jnp.transpose(feat_left, (2, 0, 3, 1)).reshape(hn * bs, w, c)
    fr = jnp.transpose(feat_right, (2, 0, 3, 1)).reshape(hn * bs, w, c)

    if pos_enc is not None:
        idx = jnp.arange(w)
        pos_indexes = ((w - 1 - idx)[:, None] + idx[None, :]).reshape(-1)
    else:
        pos_indexes = None

    # Positional projections hoisted out of the layer loop: all clone layers
    # share identical params at init (get_clones deepcopy), so only 3 distinct
    # (in_proj, pos table) combinations exist for the whole network.
    ph_self = make_pos_heads(params["self_layer"]["attn"], pos_enc,
                             pos_indexes, w, nhead)
    ph_cross = make_pos_heads(params["cross_layer"]["attn"], pos_enc,
                              pos_indexes, w, nhead)
    pos_flipped = jnp.flip(pos_enc, axis=0) if pos_enc is not None else None
    ph_cross_flip = make_pos_heads(params["cross_layer"]["attn"], pos_flipped,
                                   pos_indexes, w, nhead)

    feat = jnp.concatenate([fl, fr], axis=0)           # [2*HN*bs, W, C]
    for _ in range(num_attn_layers):
        feat = self_attn_layer(params["self_layer"], feat, ph_self, nhead)
        # reference splits the concatenated batch at `hn` (exact for bs == 1)
        feat = cross_attn_layer(params["cross_layer"], feat[:hn], feat[hn:],
                                ph_cross_flip, ph_cross, nhead)

    # back to the reference output layout [W, 2*HN, C]
    return jnp.transpose(feat, (1, 0, 2))


# ------------------------------ parameter init ------------------------------ #

def init_params(key, hidden_dim):
    C = hidden_dim
    ks = jax.random.split(key, 4)

    def attn_params(k1, k2):
        s = 1.0 / jnp.sqrt(jnp.float32(C))
        return {
            "in_w": jax.random.normal(k1, (3 * C, C), jnp.float32) * s,
            "in_b": jnp.zeros((3 * C,), jnp.float32),
            "out_w": jax.random.normal(k2, (C, C), jnp.float32) * s,
            "out_b": jnp.zeros((C,), jnp.float32),
        }

    self_layer = {
        "n1_w": jnp.ones((C,), jnp.float32),
        "n1_b": jnp.zeros((C,), jnp.float32),
        "attn": attn_params(ks[0], ks[1]),
    }
    cross_layer = {
        "n1_w": jnp.ones((C,), jnp.float32),
        "n1_b": jnp.zeros((C,), jnp.float32),
        "n2_w": jnp.ones((C,), jnp.float32),
        "n2_b": jnp.zeros((C,), jnp.float32),
        "attn": attn_params(ks[2], ks[3]),
    }
    return {"self_layer": self_layer, "cross_layer": cross_layer}


# ----------------------------------- main ----------------------------------- #

if __name__ == "__main__":
    bs, hidden_dim, hn, w = 1, 32, 4, 8       # bs=1 mirrors the reference usage
    nhead, num_attn_layers = 4, 2

    key = jax.random.PRNGKey(0)
    k_par, k_l, k_r, k_e = jax.random.split(key, 4)

    params = init_params(k_par, hidden_dim)
    feat_left = jax.random.normal(k_l, (bs, hidden_dim, hn, w), jnp.float32)
    feat_right = jax.random.normal(k_r, (bs, hidden_dim, hn, w), jnp.float32)
    pos_enc = jax.random.normal(k_e, (2 * w - 1, hidden_dim), jnp.float32)

    fwd = jax.jit(functools.partial(sttm_complex_forward,
                                    nhead=nhead,
                                    num_attn_layers=num_attn_layers))
    out = fwd(params, feat_left, feat_right, pos_enc)
    out = jax.block_until_ready(out)

    assert out.shape == (w, 2 * hn * bs, hidden_dim), out.shape
    assert bool(jnp.all(jnp.isfinite(out)))
    print("KERNEL_OK")
</pallas_src>

<mosaic_0001>
module attributes {stable_mosaic.version = 11 : i64} {
  func.func @_matmul_bias_kernel(%arg0: i32, %arg1: memref<64x32xf32, #tpu.memory_space<vmem>>, %arg2: memref<32x64xf32, #tpu.memory_space<vmem>>, %arg3: memref<1x64xf32, #tpu.memory_space<vmem>>, %arg4: memref<64x64xf32, #tpu.memory_space<vmem>>) attributes {dimension_semantics = [#tpu.dimension_semantics<arbitrary>], iteration_bounds = array<i64: 1>, scalar_prefetch = 0 : i64, scratch_operands = 0 : i64, tpu.core_type = #tpu.core_type<tc>, window_params = [{pipeline_mode = #tpu.pipeline_mode<synchronous>, transform_indices = @transform_0, window_bounds = array<i64: 64, 32>}, {pipeline_mode = #tpu.pipeline_mode<synchronous>, transform_indices = @transform_1, window_bounds = array<i64: 32, 64>}, {pipeline_mode = #tpu.pipeline_mode<synchronous>, transform_indices = @transform_2, window_bounds = array<i64: 1, 64>}, {pipeline_mode = #tpu.pipeline_mode<synchronous>, transform_indices = @transform_3, window_bounds = array<i64: 64, 64>}]} {
    %c0 = arith.constant 0 : index
    %c0_0 = arith.constant 0 : index
    %0 = vector.load %arg1[%c0, %c0_0] : memref<64x32xf32, #tpu.memory_space<vmem>>, vector<64x32xf32>
    %c0_1 = arith.constant 0 : index
    %c0_2 = arith.constant 0 : index
    %1 = vector.load %arg2[%c0_1, %c0_2] : memref<32x64xf32, #tpu.memory_space<vmem>>, vector<32x64xf32>
    %cst = arith.constant dense<0.000000e+00> : vector<64x64xf32>
    %2 = tpu.matmul %0, %1, %cst {dimension_numbers = #tpu.dot_dimension_numbers<[1], [0], [0], [1], [0, 0, 1, 1], [], []>} : vector<64x32xf32>, vector<32x64xf32>, vector<64x64xf32> -> vector<64x64xf32>
    %c0_3 = arith.constant 0 : index
    %c0_4 = arith.constant 0 : index
    %3 = vector.load %arg3[%c0_3, %c0_4] : memref<1x64xf32, #tpu.memory_space<vmem>>, vector<1x64xf32>
    %4 = vector.broadcast %3 : vector<1x64xf32> to vector<64x64xf32>
    %5 = arith.addf %2, %4 : vector<64x64xf32>
    %c0_5 = arith.constant 0 : index
    %c0_6 = arith.constant 0 : index
    %6 = vector.load %arg4[%c0_5, %c0_6] : memref<64x64xf32, #tpu.memory_space<vmem>>, vector<64x64xf32>
    tpu.vector_store %arg4[%c0_5, %c0_6], %5 {strides = array<i32>} : memref<64x64xf32, #tpu.memory_space<vmem>>, vector<64x64xf32>,
    return
  }
  func.func @transform_0(%arg0: i32) -> (i32, i32) {
    %c0_i32 = arith.constant 0 : i32
    %c0_i32_0 = arith.constant 0 : i32
    %c0_i32_1 = arith.constant 0 : i32
    return %c0_i32, %c0_i32_0 : i32, i32
  }
  func.func @transform_1(%arg0: i32) -> (i32, i32) {
    %c0_i32 = arith.constant 0 : i32
    %c0_i32_0 = arith.constant 0 : i32
    %c0_i32_1 = arith.constant 0 : i32
    return %c0_i32, %c0_i32_0 : i32, i32
  }
  func.func @transform_2(%arg0: i32) -> (i32, i32) {
    %c0_i32 = arith.constant 0 : i32
    %c0_i32_0 = arith.constant 0 : i32
    %c0_i32_1 = arith.constant 0 : i32
    return %c0_i32, %c0_i32_0 : i32, i32
  }
  func.func @transform_3(%arg0: i32) -> (i32, i32) {
    %c0_i32 = arith.constant 0 : i32
    %c0_i32_0 = arith.constant 0 : i32
    %c0_i32_1 = arith.constant 0 : i32
    return %c0_i32, %c0_i32_0 : i32, i32
  }
}

module attributes {stable_mosaic.version = 11 : i64} {
  func.func @_fused_mha_kernel(%arg0: i32, %arg1: memref<64x32xf32, #tpu.memory_space<vmem>>, %arg2: memref<64x32xf32, #tpu.memory_space<vmem>>, %arg3: memref<1x32xf32, #tpu.memory_space<vmem>>, %arg4: memref<1x32xf32, #tpu.memory_space<vmem>>, %arg5: memref<1x32xf32, #tpu.memory_space<vmem>>, %arg6: memref<1x32xf32, #tpu.memory_space<vmem>>, %arg7: memref<1x32x8xf32, #tpu.memory_space<vmem>>, %arg8: memref<1x1x8xf32, #tpu.memory_space<vmem>>, %arg9: memref<1x32x8xf32, #tpu.memory_space<vmem>>, %arg10: memref<1x1x8xf32, #tpu.memory_space<vmem>>, %arg11: memref<1x32x8xf32, #tpu.memory_space<vmem>>, %arg12: memref<1x1x8xf32, #tpu.memory_space<vmem>>, %arg13: memref<1x8x8x8xf32, #tpu.memory_space<vmem>>, %arg14: memref<1x8x8x8xf32, #tpu.memory_space<vmem>>, %arg15: memref<1x8x32xf32, #tpu.memory_space<vmem>>, %arg16: memref<1x32xf32, #tpu.memory_space<vmem>>, %arg17: memref<64x32xf32, #tpu.memory_space<vmem>>, %arg18: memref<64x32xf32, #tpu.memory_space<vmem>>, %arg19: memref<64x32xf32, #tpu.memory_space<vmem>>) attributes {dimension_semantics = [#tpu.dimension_semantics<arbitrary>], iteration_bounds = array<i64: 4>, scalar_prefetch = 0 : i64, scratch_operands = 2 : i64, tpu.core_type = #tpu.core_type<tc>, window_params = [{pipeline_mode = #tpu.pipeline_mode<synchronous>, transform_indices = @transform_0, window_bounds = array<i64: 64, 32>}, {pipeline_mode = #tpu.pipeline_mode<synchronous>, transform_indices = @transform_1, window_bounds = array<i64: 64, 32>}, {pipeline_mode = #tpu.pipeline_mode<synchronous>, transform_indices = @transform_2, window_bounds = array<i64: 1, 32>}, {pipeline_mode = #tpu.pipeline_mode<synchronous>, transform_indices = @transform_3, window_bounds = array<i64: 1, 32>}, {pipeline_mode = #tpu.pipeline_mode<synchronous>, transform_indices = @transform_4, window_bounds = array<i64: 1, 32>}, {pipeline_mode = #tpu.pipeline_mode<synchronous>, transform_indices = @transform_5, window_bounds = array<i64: 1, 32>}, {transform_indices = @transform_6, window_bounds = array<i64: 1, 32, 8>}, {transform_indices = @transform_7, window_bounds = array<i64: 1, 1, 8>}, {transform_indices = @transform_8, window_bounds = array<i64: 1, 32, 8>}, {transform_indices = @transform_9, window_bounds = array<i64: 1, 1, 8>}, {transform_indices = @transform_10, window_bounds = array<i64: 1, 32, 8>}, {transform_indices = @transform_11, window_bounds = array<i64: 1, 1, 8>}, {transform_indices = @transform_12, window_bounds = array<i64: 1, 8, 8, 8>}, {transform_indices = @transform_13, window_bounds = array<i64: 1, 8, 8, 8>}, {transform_indices = @transform_14, window_bounds = array<i64: 1, 8, 32>}, {pipeline_mode = #tpu.pipeline_mode<synchronous>, transform_indices = @transform_15, window_bounds = array<i64: 1, 32>}, {pipeline_mode = #tpu.pipeline_mode<synchronous>, transform_indices = @transform_16, window_bounds = array<i64: 64, 32>}]} {
    %c0_i32 = arith.constant 0 : i32
    %0 = arith.cmpi eq, %arg0, %c0_i32 : i32
    %1 = arith.extui %0 : i1 to i32
    %c0_i32_0 = arith.constant 0 : i32
    %2 = arith.cmpi ne, %1, %c0_i32_0 : i32
    scf.if %2 {
      %c0_61 = arith.constant 0 : index
      %c0_62 = arith.constant 0 : index
      %162 = vector.load %arg1[%c0_61, %c0_62] : memref<64x32xf32, #tpu.memory_space<vmem>>, vector<64x32xf32>
      %cst_63 = arith.constant dense<0.000000e+00> : vector<64xf32>
      %163 = vector.multi_reduction <add>, %162, %cst_63 [1] : vector<64x32xf32> to vector<64xf32>
      %164 = vector.shape_cast %163 : vector<64xf32> to vector<64x1xf32>
      %cst_64 = arith.constant 3.200000e+01 : f32
      %165 = vector.broadcast %cst_64 : f32 to vector<64x1xf32>
      %166 = arith.divf %164, %165 : vector<64x1xf32>
      %167 = vector.broadcast %166 : vector<64x1xf32> to vector<64x32xf32>
      %168 = arith.subf %162, %167 : vector<64x32xf32>
      %169 = arith.mulf %168, %168 : vector<64x32xf32>
      %cst_65 = arith.constant dense<0.000000e+00> : vector<64xf32>
      %170 = vector.multi_reduction <add>, %169, %cst_65 [1] : vector<64x32xf32> to vector<64xf32>
      %171 = vector.shape_cast %170 : vector<64xf32> to vector<64x1xf32>
      %cst_66 = arith.constant 3.200000e+01 : f32
      %172 = vector.broadcast %cst_66 : f32 to vector<64x1xf32>
      %173 = arith.divf %171, %172 : vector<64x1xf32>
      %174 = vector.broadcast %166 : vector<64x1xf32> to vector<64x32xf32>
      %175 = arith.subf %162, %174 : vector<64x32xf32>
      %cst_67 = arith.constant 9.99999974E-6 : f32
      %176 = vector.broadcast %cst_67 : f32 to vector<64x1xf32>
      %177 = arith.addf %173, %176 : vector<64x1xf32>
      %178 = math.rsqrt %177 : vector<64x1xf32>
      %179 = vector.broadcast %178 : vector<64x1xf32> to vector<64x32xf32>
      %180 = arith.mulf %175, %179 : vector<64x32xf32>
      %c0_68 = arith.constant 0 : index
      %c0_69 = arith.constant 0 : index
      %181 = vector.load %arg3[%c0_68, %c0_69] : memref<1x32xf32, #tpu.memory_space<vmem>>, vector<1x32xf32>
      %182 = vector.broadcast %181 : vector<1x32xf32> to vector<64x32xf32>
      %183 = arith.mulf %180, %182 : vector<64x32xf32>
      %c0_70 = arith.constant 0 : index
      %c0_71 = arith.constant 0 : index
      %184 = vector.load %arg4[%c0_70, %c0_71] : memref<1x32xf32, #tpu.memory_space<vmem>>, vector<1x32xf32>
      %185 = vector.broadcast %184 : vector<1x32xf32> to vector<64x32xf32>
      %186 = arith.addf %183, %185 : vector<64x32xf32>
      %c0_72 = arith.constant 0 : index
      %c0_73 = arith.constant 0 : index
      %187 = vector.load %arg18[%c0_72, %c0_73] : memref<64x32xf32, #tpu.memory_space<vmem>>, vector<64x32xf32>
      tpu.vector_store %arg18[%c0_72, %c0_73], %186 {strides = array<i32>} : memref<64x32xf32, #tpu.memory_space<vmem>>, vector<64x32xf32>,
      %c0_74 = arith.constant 0 : index
      %c0_75 = arith.constant 0 : index
      %188 = vector.load %arg2[%c0_74, %c0_75] : memref<64x32xf32, #tpu.memory_space<vmem>>, vector<64x32xf32>
      %cst_76 = arith.constant dense<0.000000e+00> : vector<64xf32>
      %189 = vector.multi_reduction <add>, %188, %cst_76 [1] : vector<64x32xf32> to vector<64xf32>
      %190 = vector.shape_cast %189 : vector<64xf32> to vector<64x1xf32>
      %cst_77 = arith.constant 3.200000e+01 : f32
      %191 = vector.broadcast %cst_77 : f32 to vector<64x1xf32>
      %192 = arith.divf %190, %191 : vector<64x1xf32>
      %193 = vector.broadcast %192 : vector<64x1xf32> to vector<64x32xf32>
      %194 = arith.subf %188, %193 : vector<64x32xf32>
      %195 = arith.mulf %194, %194 : vector<64x32xf32>
      %cst_78 = arith.constant dense<0.000000e+00> : vector<64xf32>
      %196 = vector.multi_reduction <add>, %195, %cst_78 [1] : vector<64x32xf32> to vector<64xf32>
      %197 = vector.shape_cast %196 : vector<64xf32> to vector<64x1xf32>
      %cst_79 = arith.constant 3.200000e+01 : f32
      %198 = vector.broadcast %cst_79 : f32 to vector<64x1xf32>
      %199 = arith.divf %197, %198 : vector<64x1xf32>
      %200 = vector.broadcast %192 : vector<64x1xf32> to vector<64x32xf32>
      %201 = arith.subf %188, %200 : vector<64x32xf32>
      %cst_80 = arith.constant 9.99999974E-6 : f32
      %202 = vector.broadcast %cst_80 : f32 to vector<64x1xf32>
      %203 = arith.addf %199, %202 : vector<64x1xf32>
      %204 = math.rsqrt %203 : vector<64x1xf32>
      %205 = vector.broadcast %204 : vector<64x1xf32> to vector<64x32xf32>
      %206 = arith.mulf %201, %205 : vector<64x32xf32>
      %c0_81 = arith.constant 0 : index
      %c0_82 = arith.constant 0 : index
      %207 = vector.load %arg5[%c0_81, %c0_82] : memref<1x32xf32, #tpu.memory_space<vmem>>, vector<1x32xf32>
      %208 = vector.broadcast %207 : vector<1x32xf32> to vector<64x32xf32>
      %209 = arith.mulf %206, %208 : vector<64x32xf32>
      %c0_83 = arith.constant 0 : index
      %c0_84 = arith.constant 0 : index
      %210 = vector.load %arg6[%c0_83, %c0_84] : memref<1x32xf32, #tpu.memory_space<vmem>>, vector<1x32xf32>
      %211 = vector.broadcast %210 : vector<1x32xf32> to vector<64x32xf32>
      %212 = arith.addf %209, %211 : vector<64x32xf32>
      %c0_85 = arith.constant 0 : index
      %c0_86 = arith.constant 0 : index
      %213 = vector.load %arg19[%c0_85, %c0_86] : memref<64x32xf32, #tpu.memory_space<vmem>>, vector<64x32xf32>
      tpu.vector_store %arg19[%c0_85, %c0_86], %212 {strides = array<i32>} : memref<64x32xf32, #tpu.memory_space<vmem>>, vector<64x32xf32>,
      %c0_87 = arith.constant 0 : index
      %c0_88 = arith.constant 0 : index
      %214 = vector.load %arg1[%c0_87, %c0_88] : memref<64x32xf32, #tpu.memory_space<vmem>>, vector<64x32xf32>
      %c0_89 = arith.constant 0 : index
      %c0_90 = arith.constant 0 : index
      %215 = vector.load %arg16[%c0_89, %c0_90] : memref<1x32xf32, #tpu.memory_space<vmem>>, vector<1x32xf32>
      %216 = vector.broadcast %215 : vector<1x32xf32> to vector<64x32xf32>
      %217 = arith.addf %214, %216 : vector<64x32xf32>
      %c0_91 = arith.constant 0 : index
      %c0_92 = arith.constant 0 : index
      %218 = vector.load %arg17[%c0_91, %c0_92] : memref<64x32xf32, #tpu.memory_space<vmem>>, vector<64x32xf32>
      tpu.vector_store %arg17[%c0_91, %c0_92], %217 {strides = array<i32>} : memref<64x32xf32, #tpu.memory_space<vmem>>, vector<64x32xf32>,
    } else {
    }
    %c0 = arith.constant 0 : index
    %c0_1 = arith.constant 0 : index
    %3 = vector.load %arg18[%c0, %c0_1] : memref<64x32xf32, #tpu.memory_space<vmem>>, vector<64x32xf32>
    %c0_2 = arith.constant 0 : index
    %c0_3 = arith.constant 0 : index
    %4 = vector.load %arg19[%c0_2, %c0_3] : memref<64x32xf32, #tpu.memory_space<vmem>>, vector<64x32xf32>
    %c0_4 = arith.constant 0 : index
    %c0_5 = arith.constant 0 : index
    %c0_6 = arith.constant 0 : index
    %5 = vector.load %arg7[%c0_4, %c0_5, %c0_6] : memref<1x32x8xf32, #tpu.memory_space<vmem>>, vector<1x32x8xf32>
    %6 = vector.shape_cast %5 : vector<1x32x8xf32> to vector<32x8xf32>
    %cst = arith.constant dense<0.000000e+00> : vector<64x8xf32>
    %7 = tpu.matmul %3, %6, %cst {dimension_numbers = #tpu.dot_dimension_numbers<[1], [0], [0], [1], [0, 0, 1, 1], [], []>} : vector<64x32xf32>, vector<32x8xf32>, vector<64x8xf32> -> vector<64x8xf32>
    %c0_7 = arith.constant 0 : index
    %c0_8 = arith.constant 0 : index
    %c0_9 = arith.constant 0 : index
    %8 = vector.load %arg8[%c0_7, %c0_8, %c0_9] : memref<1x1x8xf32, #tpu.memory_space<vmem>>, vector<1x1x8xf32>
    %9 = vector.shape_cast %8 : vector<1x1x8xf32> to vector<1x8xf32>
    %10 = vector.broadcast %9 : vector<1x8xf32> to vector<64x8xf32>
    %11 = arith.addf %7, %10 : vector<64x8xf32>
    %c0_10 = arith.constant 0 : index
    %c0_11 = arith.constant 0 : index
    %c0_12 = arith.constant 0 : index
    %12 = vector.load %arg9[%c0_10, %c0_11, %c0_12] : memref<1x32x8xf32, #tpu.memory_space<vmem>>, vector<1x32x8xf32>
    %13 = vector.shape_cast %12 : vector<1x32x8xf32> to vector<32x8xf32>
    %cst_13 = arith.constant dense<0.000000e+00> : vector<64x8xf32>
    %14 = tpu.matmul %4, %13, %cst_13 {dimension_numbers = #tpu.dot_dimension_numbers<[1], [0], [0], [1], [0, 0, 1, 1], [], []>} : vector<64x32xf32>, vector<32x8xf32>, vector<64x8xf32> -> vector<64x8xf32>
    %c0_14 = arith.constant 0 : index
    %c0_15 = arith.constant 0 : index
    %c0_16 = arith.constant 0 : index
    %15 = vector.load %arg10[%c0_14, %c0_15, %c0_16] : memref<1x1x8xf32, #tpu.memory_space<vmem>>, vector<1x1x8xf32>
    %16 = vector.shape_cast %15 : vector<1x1x8xf32> to vector<1x8xf32>
    %17 = vector.broadcast %16 : vector<1x8xf32> to vector<64x8xf32>
    %18 = arith.addf %14, %17 : vector<64x8xf32>
    %c0_17 = arith.constant 0 : index
    %c0_18 = arith.constant 0 : index
    %c0_19 = arith.constant 0 : index
    %19 = vector.load %arg11[%c0_17, %c0_18, %c0_19] : memref<1x32x8xf32, #tpu.memory_space<vmem>>, vector<1x32x8xf32>
    %20 = vector.shape_cast %19 : vector<1x32x8xf32> to vector<32x8xf32>
    %cst_20 = arith.constant dense<0.000000e+00> : vector<64x8xf32>
    %21 = tpu.matmul %4, %20, %cst_20 {dimension_numbers = #tpu.dot_dimension_numbers<[1], [0], [0], [1], [0, 0, 1, 1], [], []>} : vector<64x32xf32>, vector<32x8xf32>, vector<64x8xf32> -> vector<64x8xf32>
    %c0_21 = arith.constant 0 : index
    %c0_22 = arith.constant 0 : index
    %c0_23 = arith.constant 0 : index
    %22 = vector.load %arg12[%c0_21, %c0_22, %c0_23] : memref<1x1x8xf32, #tpu.memory_space<vmem>>, vector<1x1x8xf32>
    %23 = vector.shape_cast %22 : vector<1x1x8xf32> to vector<1x8xf32>
    %24 = vector.broadcast %23 : vector<1x8xf32> to vector<64x8xf32>
    %25 = arith.addf %21, %24 : vector<64x8xf32>
    %26 = vector.shape_cast %11 : vector<64x8xf32> to vector<8x8x8xf32>
    %27 = vector.shape_cast %18 : vector<64x8xf32> to vector<8x8x8xf32>
    %28 = vector.shape_cast %25 : vector<64x8xf32> to vector<8x8x8xf32>
    %c0_24 = arith.constant 0 : index
    %c0_25 = arith.constant 0 : index
    %c0_26 = arith.constant 0 : index
    %c0_27 = arith.constant 0 : index
    %29 = vector.load %arg13[%c0_24, %c0_25, %c0_26, %c0_27] : memref<1x8x8x8xf32, #tpu.memory_space<vmem>>, vector<1x8x8x8xf32>
    %30 = vector.shape_cast %29 : vector<1x8x8x8xf32> to vector<8x8x8xf32>
    %c0_28 = arith.constant 0 : index
    %c0_29 = arith.constant 0 : index
    %c0_30 = arith.constant 0 : index
    %c0_31 = arith.constant 0 : index
    %31 = vector.load %arg14[%c0_28, %c0_29, %c0_30, %c0_31] : memref<1x8x8x8xf32, #tpu.memory_space<vmem>>, vector<1x8x8x8xf32>
    %32 = vector.shape_cast %31 : vector<1x8x8x8xf32> to vector<8x8x8xf32>
    %cst_32 = arith.constant dense<0.000000e+00> : vector<8x8x8xf32>
    %33 = tpu.matmul %26, %27, %cst_32 {dimension_numbers = #tpu.dot_dimension_numbers<[2], [2], [1], [1], [0, 0, 0, 1, 1, 1], [0], [0]>} : vector<8x8x8xf32>, vector<8x8x8xf32>, vector<8x8x8xf32> -> vector<8x8x8xf32>
    %34 = vector.extract_strided_slice %26 {offsets = [0, 0, 0], sizes = [1, 8, 8], strides = [1, 1, 1]} : vector<8x8x8xf32> to vector<1x8x8xf32>
    %35 = vector.shape_cast %34 : vector<1x8x8xf32> to vector<8x8xf32>
    %36 = vector.extract_strided_slice %27 {offsets = [0, 0, 0], sizes = [1, 8, 8], strides = [1, 1, 1]} : vector<8x8x8xf32> to vector<1x8x8xf32>
    %37 = vector.shape_cast %36 : vector<1x8x8xf32> to vector<8x8xf32>
    %38 = vector.shape_cast %35 : vector<8x8xf32> to vector<8x1x8xf32>
    %cst_33 = arith.constant dense<0.000000e+00> : vector<8x1x8xf32>
    %39 = tpu.matmul %38, %30, %cst_33 {dimension_numbers = #tpu.dot_dimension_numbers<[2], [2], [1], [1], [0, 0, 0, 1, 1, 1], [0], [0]>} : vector<8x1x8xf32>, vector<8x8x8xf32>, vector<8x1x8xf32> -> vector<8x1x8xf32>
    %40 = vector.shape_cast %37 : vector<8x8xf32> to vector<8x1x8xf32>
    %cst_34 = arith.constant dense<0.000000e+00> : vector<8x1x8xf32>
    %41 = tpu.matmul %40, %32, %cst_34 {dimension_numbers = #tpu.dot_dimension_numbers<[2], [2], [1], [1], [0, 0, 0, 1, 1, 1], [0], [0]>} : vector<8x1x8xf32>, vector<8x8x8xf32>, vector<8x1x8xf32> -> vector<8x1x8xf32>
    %42 = vector.shape_cast %39 : vector<8x1x8xf32> to vector<8x8xf32>
    %43 = vector.shape_cast %42 : vector<8x8xf32> to vector<1x8x8xf32>
    %44 = vector.shape_cast %41 : vector<8x1x8xf32> to vector<8x8xf32>
    %45 = tpu.transpose %44, [1, 0] : vector<8x8xf32> -> vector<8x8xf32>
    %46 = vector.shape_cast %45 : vector<8x8xf32> to vector<1x8x8xf32>
    %47 = vector.extract_strided_slice %26 {offsets = [1, 0, 0], sizes = [1, 8, 8], strides = [1, 1, 1]} : vector<8x8x8xf32> to vector<1x8x8xf32>
    %48 = vector.shape_cast %47 : vector<1x8x8xf32> to vector<8x8xf32>
    %49 = vector.extract_strided_slice %27 {offsets = [1, 0, 0], sizes = [1, 8, 8], strides = [1, 1, 1]} : vector<8x8x8xf32> to vector<1x8x8xf32>
    %50 = vector.shape_cast %49 : vector<1x8x8xf32> to vector<8x8xf32>
    %51 = vector.shape_cast %48 : vector<8x8xf32> to vector<8x1x8xf32>
    %cst_35 = arith.constant dense<0.000000e+00> : vector<8x1x8xf32>
    %52 = tpu.matmul %51, %30, %cst_35 {dimension_numbers = #tpu.dot_dimension_numbers<[2], [2], [1], [1], [0, 0, 0, 1, 1, 1], [0], [0]>} : vector<8x1x8xf32>, vector<8x8x8xf32>, vector<8x1x8xf32> -> vector<8x1x8xf32>
    %53 = vector.shape_cast %50 : vector<8x8xf32> to vector<8x1x8xf32>
    %cst_36 = arith.constant dense<0.000000e+00> : vector<8x1x8xf32>
    %54 = tpu.matmul %53, %32, %cst_36 {dimension_numbers = #tpu.dot_dimension_numbers<[2], [2], [1], [1], [0, 0, 0, 1, 1, 1], [0], [0]>} : vector<8x1x8xf32>, vector<8x8x8xf32>, vector<8x1x8xf32> -> vector<8x1x8xf32>
    %55 = vector.shape_cast %52 : vector<8x1x8xf32> to vector<8x8xf32>
    %56 = vector.shape_cast %55 : vector<8x8xf32> to vector<1x8x8xf32>
    %57 = vector.shape_cast %54 : vector<8x1x8xf32> to vector<8x8xf32>
    %58 = tpu.transpose %57, [1, 0] : vector<8x8xf32> -> vector<8x8xf32>
    %59 = vector.shape_cast %58 : vector<8x8xf32> to vector<1x8x8xf32>
    %60 = vector.extract_strided_slice %26 {offsets = [2, 0, 0], sizes = [1, 8, 8], strides = [1, 1, 1]} : vector<8x8x8xf32> to vector<1x8x8xf32>
    %61 = vector.shape_cast %60 : vector<1x8x8xf32> to vector<8x8xf32>
    %62 = vector.extract_strided_slice %27 {offsets = [2, 0, 0], sizes = [1, 8, 8], strides = [1, 1, 1]} : vector<8x8x8xf32> to vector<1x8x8xf32>
    %63 = vector.shape_cast %62 : vector<1x8x8xf32> to vector<8x8xf32>
    %64 = vector.shape_cast %61 : vector<8x8xf32> to vector<8x1x8xf32>
    %cst_37 = arith.constant dense<0.000000e+00> : vector<8x1x8xf32>
    %65 = tpu.matmul %64, %30, %cst_37 {dimension_numbers = #tpu.dot_dimension_numbers<[2], [2], [1], [1], [0, 0, 0, 1, 1, 1], [0], [0]>} : vector<8x1x8xf32>, vector<8x8x8xf32>, vector<8x1x8xf32> -> vector<8x1x8xf32>
    %66 = vector.shape_cast %63 : vector<8x8xf32> to vector<8x1x8xf32>
    %cst_38 = arith.constant dense<0.000000e+00> : vector<8x1x8xf32>
    %67 = tpu.matmul %66, %32, %cst_38 {dimension_numbers = #tpu.dot_dimension_numbers<[2], [2], [1], [1], [0, 0, 0, 1, 1, 1], [0], [0]>} : vector<8x1x8xf32>, vector<8x8x8xf32>, vector<8x1x8xf32> -> vector<8x1x8xf32>
    %68 = vector.shape_cast %65 : vector<8x1x8xf32> to vector<8x8xf32>
    %69 = vector.shape_cast %68 : vector<8x8xf32> to vector<1x8x8xf32>
    %70 = vector.shape_cast %67 : vector<8x1x8xf32> to vector<8x8xf32>
    %71 = tpu.transpose %70, [1, 0] : vector<8x8xf32> -> vector<8x8xf32>
    %72 = vector.shape_cast %71 : vector<8x8xf32> to vector<1x8x8xf32>
    %73 = vector.extract_strided_slice %26 {offsets = [3, 0, 0], sizes = [1, 8, 8], strides = [1, 1, 1]} : vector<8x8x8xf32> to vector<1x8x8xf32>
    %74 = vector.shape_cast %73 : vector<1x8x8xf32> to vector<8x8xf32>
    %75 = vector.extract_strided_slice %27 {offsets = [3, 0, 0], sizes = [1, 8, 8], strides = [1, 1, 1]} : vector<8x8x8xf32> to vector<1x8x8xf32>
    %76 = vector.shape_cast %75 : vector<1x8x8xf32> to vector<8x8xf32>
    %77 = vector.shape_cast %74 : vector<8x8xf32> to vector<8x1x8xf32>
    %cst_39 = arith.constant dense<0.000000e+00> : vector<8x1x8xf32>
    %78 = tpu.matmul %77, %30, %cst_39 {dimension_numbers = #tpu.dot_dimension_numbers<[2], [2], [1], [1], [0, 0, 0, 1, 1, 1], [0], [0]>} : vector<8x1x8xf32>, vector<8x8x8xf32>, vector<8x1x8xf32> -> vector<8x1x8xf32>
    %79 = vector.shape_cast %76 : vector<8x8xf32> to vector<8x1x8xf32>
    %cst_40 = arith.constant dense<0.000000e+00> : vector<8x1x8xf32>
    %80 = tpu.matmul %79, %32, %cst_40 {dimension_numbers = #tpu.dot_dimension_numbers<[2], [2], [1], [1], [0, 0, 0, 1, 1, 1], [0], [0]>} : vector<8x1x8xf32>, vector<8x8x8xf32>, vector<8x1x8xf32> -> vector<8x1x8xf32>
    %81 = vector.shape_cast %78 : vector<8x1x8xf32> to vector<8x8xf32>
    %82 = vector.shape_cast %81 : vector<8x8xf32> to vector<1x8x8xf32>
    %83 = vector.shape_cast %80 : vector<8x1x8xf32> to vector<8x8xf32>
    %84 = tpu.transpose %83, [1, 0] : vector<8x8xf32> -> vector<8x8xf32>
    %85 = vector.shape_cast %84 : vector<8x8xf32> to vector<1x8x8xf32>
    %86 = vector.extract_strided_slice %26 {offsets = [4, 0, 0], sizes = [1, 8, 8], strides = [1, 1, 1]} : vector<8x8x8xf32> to vector<1x8x8xf32>
    %87 = vector.shape_cast %86 : vector<1x8x8xf32> to vector<8x8xf32>
    %88 = vector.extract_strided_slice %27 {offsets = [4, 0, 0], sizes = [1, 8, 8], strides = [1, 1, 1]} : vector<8x8x8xf32> to vector<1x8x8xf32>
    %89 = vector.shape_cast %88 : vector<1x8x8xf32> to vector<8x8xf32>
    %90 = vector.shape_cast %87 : vector<8x8xf32> to vector<8x1x8xf32>
    %cst_41 = arith.constant dense<0.000000e+00> : vector<8x1x8xf32>
    %91 = tpu.matmul %90, %30, %cst_41 {dimension_numbers = #tpu.dot_dimension_numbers<[2], [2], [1], [1], [0, 0, 0, 1, 1, 1], [0], [0]>} : vector<8x1x8xf32>, vector<8x8x8xf32>, vector<8x1x8xf32> -> vector<8x1x8xf32>
    %92 = vector.shape_cast %89 : vector<8x8xf32> to vector<8x1x8xf32>
    %cst_42 = arith.constant dense<0.000000e+00> : vector<8x1x8xf32>
    %93 = tpu.matmul %92, %32, %cst_42 {dimension_numbers = #tpu.dot_dimension_numbers<[2], [2], [1], [1], [0, 0, 0, 1, 1, 1], [0], [0]>} : vector<8x1x8xf32>, vector<8x8x8xf32>, vector<8x1x8xf32> -> vector<8x1x8xf32>
    %94 = vector.shape_cast %91 : vector<8x1x8xf32> to vector<8x8xf32>
    %95 = vector.shape_cast %94 : vector<8x8xf32> to vector<1x8x8xf32>
    %96 = vector.shape_cast %93 : vector<8x1x8xf32> to vector<8x8xf32>
    %97 = tpu.transpose %96, [1, 0] : vector<8x8xf32> -> vector<8x8xf32>
    %98 = vector.shape_cast %97 : vector<8x8xf32> to vector<1x8x8xf32>
    %99 = vector.extract_strided_slice %26 {offsets = [5, 0, 0], sizes = [1, 8, 8], strides = [1, 1, 1]} : vector<8x8x8xf32> to vector<1x8x8xf32>
    %100 = vector.shape_cast %99 : vector<1x8x8xf32> to vector<8x8xf32>
    %101 = vector.extract_strided_slice %27 {offsets = [5, 0, 0], sizes = [1, 8, 8], strides = [1, 1, 1]} : vector<8x8x8xf32> to vector<1x8x8xf32>
    %102 = vector.shape_cast %101 : vector<1x8x8xf32> to vector<8x8xf32>
    %103 = vector.shape_cast %100 : vector<8x8xf32> to vector<8x1x8xf32>
    %cst_43 = arith.constant dense<0.000000e+00> : vector<8x1x8xf32>
    %104 = tpu.matmul %103, %30, %cst_43 {dimension_numbers = #tpu.dot_dimension_numbers<[2], [2], [1], [1], [0, 0, 0, 1, 1, 1], [0], [0]>} : vector<8x1x8xf32>, vector<8x8x8xf32>, vector<8x1x8xf32> -> vector<8x1x8xf32>
    %105 = vector.shape_cast %102 : vector<8x8xf32> to vector<8x1x8xf32>
    %cst_44 = arith.constant dense<0.000000e+00> : vector<8x1x8xf32>
    %106 = tpu.matmul %105, %32, %cst_44 {dimension_numbers = #tpu.dot_dimension_numbers<[2], [2], [1], [1], [0, 0, 0, 1, 1, 1], [0], [0]>} : vector<8x1x8xf32>, vector<8x8x8xf32>, vector<8x1x8xf32> -> vector<8x1x8xf32>
    %107 = vector.shape_cast %104 : vector<8x1x8xf32> to vector<8x8xf32>
    %108 = vector.shape_cast %107 : vector<8x8xf32> to vector<1x8x8xf32>
    %109 = vector.shape_cast %106 : vector<8x1x8xf32> to vector<8x8xf32>
    %110 = tpu.transpose %109, [1, 0] : vector<8x8xf32> -> vector<8x8xf32>
    %111 = vector.shape_cast %110 : vector<8x8xf32> to vector<1x8x8xf32>
    %112 = vector.extract_strided_slice %26 {offsets = [6, 0, 0], sizes = [1, 8, 8], strides = [1, 1, 1]} : vector<8x8x8xf32> to vector<1x8x8xf32>
    %113 = vector.shape_cast %112 : vector<1x8x8xf32> to vector<8x8xf32>
    %114 = vector.extract_strided_slice %27 {offsets = [6, 0, 0], sizes = [1, 8, 8], strides = [1, 1, 1]} : vector<8x8x8xf32> to vector<1x8x8xf32>
    %115 = vector.shape_cast %114 : vector<1x8x8xf32> to vector<8x8xf32>
    %116 = vector.shape_cast %113 : vector<8x8xf32> to vector<8x1x8xf32>
    %cst_45 = arith.constant dense<0.000000e+00> : vector<8x1x8xf32>
    %117 = tpu.matmul %116, %30, %cst_45 {dimension_numbers = #tpu.dot_dimension_numbers<[2], [2], [1], [1], [0, 0, 0, 1, 1, 1], [0], [0]>} : vector<8x1x8xf32>, vector<8x8x8xf32>, vector<8x1x8xf32> -> vector<8x1x8xf32>
    %118 = vector.shape_cast %115 : vector<8x8xf32> to vector<8x1x8xf32>
    %cst_46 = arith.constant dense<0.000000e+00> : vector<8x1x8xf32>
    %119 = tpu.matmul %118, %32, %cst_46 {dimension_numbers = #tpu.dot_dimension_numbers<[2], [2], [1], [1], [0, 0, 0, 1, 1, 1], [0], [0]>} : vector<8x1x8xf32>, vector<8x8x8xf32>, vector<8x1x8xf32> -> vector<8x1x8xf32>
    %120 = vector.shape_cast %117 : vector<8x1x8xf32> to vector<8x8xf32>
    %121 = vector.shape_cast %120 : vector<8x8xf32> to vector<1x8x8xf32>
    %122 = vector.shape_cast %119 : vector<8x1x8xf32> to vector<8x8xf32>
    %123 = tpu.transpose %122, [1, 0] : vector<8x8xf32> -> vector<8x8xf32>
    %124 = vector.shape_cast %123 : vector<8x8xf32> to vector<1x8x8xf32>
    %125 = vector.extract_strided_slice %26 {offsets = [7, 0, 0], sizes = [1, 8, 8], strides = [1, 1, 1]} : vector<8x8x8xf32> to vector<1x8x8xf32>
    %126 = vector.shape_cast %125 : vector<1x8x8xf32> to vector<8x8xf32>
    %127 = vector.extract_strided_slice %27 {offsets = [7, 0, 0], sizes = [1, 8, 8], strides = [1, 1, 1]} : vector<8x8x8xf32> to vector<1x8x8xf32>
    %128 = vector.shape_cast %127 : vector<1x8x8xf32> to vector<8x8xf32>
    %129 = vector.shape_cast %126 : vector<8x8xf32> to vector<8x1x8xf32>
    %cst_47 = arith.constant dense<0.000000e+00> : vector<8x1x8xf32>
    %130 = tpu.matmul %129, %30, %cst_47 {dimension_numbers = #tpu.dot_dimension_numbers<[2], [2], [1], [1], [0, 0, 0, 1, 1, 1], [0], [0]>} : vector<8x1x8xf32>, vector<8x8x8xf32>, vector<8x1x8xf32> -> vector<8x1x8xf32>
    %131 = vector.shape_cast %128 : vector<8x8xf32> to vector<8x1x8xf32>
    %cst_48 = arith.constant dense<0.000000e+00> : vector<8x1x8xf32>
    %132 = tpu.matmul %131, %32, %cst_48 {dimension_numbers = #tpu.dot_dimension_numbers<[2], [2], [1], [1], [0, 0, 0, 1, 1, 1], [0], [0]>} : vector<8x1x8xf32>, vector<8x8x8xf32>, vector<8x1x8xf32> -> vector<8x1x8xf32>
    %133 = vector.shape_cast %130 : vector<8x1x8xf32> to vector<8x8xf32>
    %134 = vector.shape_cast %133 : vector<8x8xf32> to vector<1x8x8xf32>
    %135 = vector.shape_cast %132 : vector<8x1x8xf32> to vector<8x8xf32>
    %136 = tpu.transpose %135, [1, 0] : vector<8x8xf32> -> vector<8x8xf32>
    %137 = vector.shape_cast %136 : vector<8x8xf32> to vector<1x8x8xf32>
    %138 = tpu.concatenate %43, %56, %69, %82, %95, %108, %121, %134 in 0 : vector<1x8x8xf32>, vector<1x8x8xf32>, vector<1x8x8xf32>, vector<1x8x8xf32>, vector<1x8x8xf32>, vector<1x8x8xf32>, vector<1x8x8xf32>, vector<1x8x8xf32> -> vector<8x8x8xf32>
    %139 = arith.addf %33, %138 : vector<8x8x8xf32>
    %140 = tpu.concatenate %46, %59, %72, %85, %98, %111, %124, %137 in 0 : vector<1x8x8xf32>, vector<1x8x8xf32>, vector<1x8x8xf32>, vector<1x8x8xf32>, vector<1x8x8xf32>, vector<1x8x8xf32>, vector<1x8x8xf32>, vector<1x8x8xf32> -> vector<8x8x8xf32>
    %141 = arith.addf %139, %140 : vector<8x8x8xf32>
    %cst_49 = arith.constant 0.353553385 : f32
    %142 = vector.broadcast %cst_49 : f32 to vector<8x8x8xf32>
    %143 = arith.mulf %141, %142 : vector<8x8x8xf32>
    %cst_50 = arith.constant dense<0xFF800000> : vector<8x8xf32>
    %144 = vector.multi_reduction <maximumf>, %143, %cst_50 [2] : vector<8x8x8xf32> to vector<8x8xf32>
    %145 = vector.shape_cast %144 : vector<8x8xf32> to vector<8x8x1xf32>
    %146 = vector.broadcast %145 : vector<8x8x1xf32> to vector<8x8x8xf32>
    %147 = arith.subf %143, %146 : vector<8x8x8xf32>
    %148 = math.exp %147 : vector<8x8x8xf32>
    %cst_51 = arith.constant dense<0.000000e+00> : vector<8x8xf32>
    %149 = vector.multi_reduction <add>, %148, %cst_51 [2] : vector<8x8x8xf32> to vector<8x8xf32>
    %150 = vector.shape_cast %149 : vector<8x8xf32> to vector<8x8x1xf32>
    %151 = tpu.reciprocal %150 {approx = true} : vector<8x8x1xf32> -> vector<8x8x1xf32>
    %152 = vector.broadcast %151 : vector<8x8x1xf32> to vector<8x8x8xf32>
    %153 = arith.mulf %148, %152 : vector<8x8x8xf32>
    %cst_52 = arith.constant dense<0.000000e+00> : vector<8x8x8xf32>
    %154 = tpu.matmul %153, %28, %cst_52 {dimension_numbers = #tpu.dot_dimension_numbers<[2], [1], [1], [2], [0, 0, 0, 1, 1, 2], [0], [0]>} : vector<8x8x8xf32>, vector<8x8x8xf32>, vector<8x8x8xf32> -> vector<8x8x8xf32>
    %155 = vector.shape_cast %154 : vector<8x8x8xf32> to vector<64x8xf32>
    %c0_53 = arith.constant 0 : index
    %c0_54 = arith.constant 0 : index
    %c0_55 = arith.constant 0 : index
    %156 = vector.load %arg15[%c0_53, %c0_54, %c0_55] : memref<1x8x32xf32, #tpu.memory_space<vmem>>, vector<1x8x32xf32>
    %157 = vector.shape_cast %156 : vector<1x8x32xf32> to vector<8x32xf32>
    %cst_56 = arith.constant dense<0.000000e+00> : vector<64x32xf32>
    %158 = tpu.matmul %155, %157, %cst_56 {dimension_numbers = #tpu.dot_dimension_numbers<[1], [0], [0], [1], [0, 0, 1, 1], [], []>} : vector<64x8xf32>, vector<8x32xf32>, vector<64x32xf32> -> vector<64x32xf32>
    %c0_57 = arith.constant 0 : index
    %c0_58 = arith.constant 0 : index
    %159 = vector.load %arg17[%c0_57, %c0_58] : memref<64x32xf32, #tpu.memory_space<vmem>>, vector<64x32xf32>
    %160 = arith.addf %159, %158 : vector<64x32xf32>
    %c0_59 = arith.constant 0 : index
    %c0_60 = arith.constant 0 : index
    %161 = vector.load %arg17[%c0_59, %c0_60] : memref<64x32xf32, #tpu.memory_space<vmem>>, vector<64x32xf32>
    tpu.vector_store %arg17[%c0_59, %c0_60], %160 {strides = array<i32>} : memref<64x32xf32, #tpu.memory_space<vmem>>, vector<64x32xf32>,
    return
  }
  func.func @transform_0(%arg0: i32) -> (i32, i32) {
    %c0_i32 = arith.constant 0 : i32
    %c0_i32_0 = arith.constant 0 : i32
    %c0_i32_1 = arith.constant 0 : i32
    return %c0_i32, %c0_i32_0 : i32, i32
  }
  func.func @transform_1(%arg0: i32) -> (i32, i32) {
    %c0_i32 = arith.constant 0 : i32
    %c0_i32_0 = arith.constant 0 : i32
    %c0_i32_1 = arith.constant 0 : i32
    return %c0_i32, %c0_i32_0 : i32, i32
  }
  func.func @transform_2(%arg0: i32) -> (i32, i32) {
    %c0_i32 = arith.constant 0 : i32
    %c0_i32_0 = arith.constant 0 : i32
    %c0_i32_1 = arith.constant 0 : i32
    return %c0_i32, %c0_i32_0 : i32, i32
  }
  func.func @transform_3(%arg0: i32) -> (i32, i32) {
    %c0_i32 = arith.constant 0 : i32
    %c0_i32_0 = arith.constant 0 : i32
    %c0_i32_1 = arith.constant 0 : i32
    return %c0_i32, %c0_i32_0 : i32, i32
  }
  func.func @transform_4(%arg0: i32) -> (i32, i32) {
    %c0_i32 = arith.constant 0 : i32
    %c0_i32_0 = arith.constant 0 : i32
    %c0_i32_1 = arith.constant 0 : i32
    return %c0_i32, %c0_i32_0 : i32, i32
  }
  func.func @transform_5(%arg0: i32) -> (i32, i32) {
    %c0_i32 = arith.constant 0 : i32
    %c0_i32_0 = arith.constant 0 : i32
    %c0_i32_1 = arith.constant 0 : i32
    return %c0_i32, %c0_i32_0 : i32, i32
  }
  func.func @transform_6(%arg0: i32) -> (i32, i32, i32) {
    %c0_i32 = arith.constant 0 : i32
    %c0_i32_0 = arith.constant 0 : i32
    %c0_i32_1 = arith.constant 0 : i32
    return %arg0, %c0_i32, %c0_i32_0 : i32, i32, i32
  }
  func.func @transform_7(%arg0: i32) -> (i32, i32, i32) {
    %c0_i32 = arith.constant 0 : i32
    %c0_i32_0 = arith.constant 0 : i32
    %c0_i32_1 = arith.constant 0 : i32
    return %arg0, %c0_i32, %c0_i32_0 : i32, i32, i32
  }
  func.func @transform_8(%arg0: i32) -> (i32, i32, i32) {
    %c0_i32 = arith.constant 0 : i32
    %c0_i32_0 = arith.constant 0 : i32
    %c0_i32_1 = arith.constant 0 : i32
    return %arg0, %c0_i32, %c0_i32_0 : i32, i32, i32
  }
  func.func @transform_9(%arg0: i32) -> (i32, i32, i32) {
    %c0_i32 = arith.constant 0 : i32
    %c0_i32_0 = arith.constant 0 : i32
    %c0_i32_1 = arith.constant 0 : i32
    return %arg0, %c0_i32, %c0_i32_0 : i32, i32, i32
  }
  func.func @transform_10(%arg0: i32) -> (i32, i32, i32) {
    %c0_i32 = arith.constant 0 : i32
    %c0_i32_0 = arith.constant 0 : i32
    %c0_i32_1 = arith.constant 0 : i32
    return %arg0, %c0_i32, %c0_i32_0 : i32, i32, i32
  }
  func.func @transform_11(%arg0: i32) -> (i32, i32, i32) {
    %c0_i32 = arith.constant 0 : i32
    %c0_i32_0 = arith.constant 0 : i32
    %c0_i32_1 = arith.constant 0 : i32
    return %arg0, %c0_i32, %c0_i32_0 : i32, i32, i32
  }
  func.func @transform_12(%arg0: i32) -> (i32, i32, i32, i32) {
    %c0_i32 = arith.constant 0 : i32
    %c0_i32_0 = arith.constant 0 : i32
    %c0_i32_1 = arith.constant 0 : i32
    %c0_i32_2 = arith.constant 0 : i32
    return %arg0, %c0_i32, %c0_i32_0, %c0_i32_1 : i32, i32, i32, i32
  }
  func.func @transform_13(%arg0: i32) -> (i32, i32, i32, i32) {
    %c0_i32 = arith.constant 0 : i32
    %c0_i32_0 = arith.constant 0 : i32
    %c0_i32_1 = arith.constant 0 : i32
    %c0_i32_2 = arith.constant 0 : i32
    return %arg0, %c0_i32, %c0_i32_0, %c0_i32_1 : i32, i32, i32, i32
  }
  func.func @transform_14(%arg0: i32) -> (i32, i32, i32) {
    %c0_i32 = arith.constant 0 : i32
    %c0_i32_0 = arith.constant 0 : i32
    %c0_i32_1 = arith.constant 0 : i32
    return %arg0, %c0_i32, %c0_i32_0 : i32, i32, i32
  }
  func.func @transform_15(%arg0: i32) -> (i32, i32) {
    %c0_i32 = arith.constant 0 : i32
    %c0_i32_0 = arith.constant 0 : i32
    %c0_i32_1 = arith.constant 0 : i32
    return %c0_i32, %c0_i32_0 : i32, i32
  }
  func.func @transform_16(%arg0: i32) -> (i32, i32) {
    %c0_i32 = arith.constant 0 : i32
    %c0_i32_0 = arith.constant 0 : i32
    %c0_i32_1 = arith.constant 0 : i32
    return %c0_i32, %c0_i32_0 : i32, i32
  }
}

module attributes {stable_mosaic.version = 11 : i64} {
  func.func @_fused_mha_kernel(%arg0: i32, %arg1: memref<32x32xf32, #tpu.memory_space<vmem>>, %arg2: memref<32x32xf32, #tpu.memory_space<vmem>>, %arg3: memref<1x32xf32, #tpu.memory_space<vmem>>, %arg4: memref<1x32xf32, #tpu.memory_space<vmem>>, %arg5: memref<1x32xf32, #tpu.memory_space<vmem>>, %arg6: memref<1x32xf32, #tpu.memory_space<vmem>>, %arg7: memref<1x32x8xf32, #tpu.memory_space<vmem>>, %arg8: memref<1x1x8xf32, #tpu.memory_space<vmem>>, %arg9: memref<1x32x8xf32, #tpu.memory_space<vmem>>, %arg10: memref<1x1x8xf32, #tpu.memory_space<vmem>>, %arg11: memref<1x32x8xf32, #tpu.memory_space<vmem>>, %arg12: memref<1x1x8xf32, #tpu.memory_space<vmem>>, %arg13: memref<1x8x8x8xf32, #tpu.memory_space<vmem>>, %arg14: memref<1x8x8x8xf32, #tpu.memory_space<vmem>>, %arg15: memref<1x8x32xf32, #tpu.memory_space<vmem>>, %arg16: memref<1x32xf32, #tpu.memory_space<vmem>>, %arg17: memref<32x32xf32, #tpu.memory_space<vmem>>, %arg18: memref<32x32xf32, #tpu.memory_space<vmem>>, %arg19: memref<32x32xf32, #tpu.memory_space<vmem>>) attributes {dimension_semantics = [#tpu.dimension_semantics<arbitrary>], iteration_bounds = array<i64: 4>, scalar_prefetch = 0 : i64, scratch_operands = 2 : i64, tpu.core_type = #tpu.core_type<tc>, window_params = [{pipeline_mode = #tpu.pipeline_mode<synchronous>, transform_indices = @transform_0, window_bounds = array<i64: 32, 32>}, {pipeline_mode = #tpu.pipeline_mode<synchronous>, transform_indices = @transform_1, window_bounds = array<i64: 32, 32>}, {pipeline_mode = #tpu.pipeline_mode<synchronous>, transform_indices = @transform_2, window_bounds = array<i64: 1, 32>}, {pipeline_mode = #tpu.pipeline_mode<synchronous>, transform_indices = @transform_3, window_bounds = array<i64: 1, 32>}, {pipeline_mode = #tpu.pipeline_mode<synchronous>, transform_indices = @transform_4, window_bounds = array<i64: 1, 32>}, {pipeline_mode = #tpu.pipeline_mode<synchronous>, transform_indices = @transform_5, window_bounds = array<i64: 1, 32>}, {transform_indices = @transform_6, window_bounds = array<i64: 1, 32, 8>}, {transform_indices = @transform_7, window_bounds = array<i64: 1, 1, 8>}, {transform_indices = @transform_8, window_bounds = array<i64: 1, 32, 8>}, {transform_indices = @transform_9, window_bounds = array<i64: 1, 1, 8>}, {transform_indices = @transform_10, window_bounds = array<i64: 1, 32, 8>}, {transform_indices = @transform_11, window_bounds = array<i64: 1, 1, 8>}, {transform_indices = @transform_12, window_bounds = array<i64: 1, 8, 8, 8>}, {transform_indices = @transform_13, window_bounds = array<i64: 1, 8, 8, 8>}, {transform_indices = @transform_14, window_bounds = array<i64: 1, 8, 32>}, {pipeline_mode = #tpu.pipeline_mode<synchronous>, transform_indices = @transform_15, window_bounds = array<i64: 1, 32>}, {pipeline_mode = #tpu.pipeline_mode<synchronous>, transform_indices = @transform_16, window_bounds = array<i64: 32, 32>}]} {
    %c0_i32 = arith.constant 0 : i32
    %0 = arith.cmpi eq, %arg0, %c0_i32 : i32
    %1 = arith.extui %0 : i1 to i32
    %c0_i32_0 = arith.constant 0 : i32
    %2 = arith.cmpi ne, %1, %c0_i32_0 : i32
    scf.if %2 {
      %c0_53 = arith.constant 0 : index
      %c0_54 = arith.constant 0 : index
      %110 = vector.load %arg1[%c0_53, %c0_54] : memref<32x32xf32, #tpu.memory_space<vmem>>, vector<32x32xf32>
      %cst_55 = arith.constant dense<0.000000e+00> : vector<32xf32>
      %111 = vector.multi_reduction <add>, %110, %cst_55 [1] : vector<32x32xf32> to vector<32xf32>
      %112 = vector.shape_cast %111 : vector<32xf32> to vector<32x1xf32>
      %cst_56 = arith.constant 3.200000e+01 : f32
      %113 = vector.broadcast %cst_56 : f32 to vector<32x1xf32>
      %114 = arith.divf %112, %113 : vector<32x1xf32>
      %115 = vector.broadcast %114 : vector<32x1xf32> to vector<32x32xf32>
      %116 = arith.subf %110, %115 : vector<32x32xf32>
      %117 = arith.mulf %116, %116 : vector<32x32xf32>
      %cst_57 = arith.constant dense<0.000000e+00> : vector<32xf32>
      %118 = vector.multi_reduction <add>, %117, %cst_57 [1] : vector<32x32xf32> to vector<32xf32>
      %119 = vector.shape_cast %118 : vector<32xf32> to vector<32x1xf32>
      %cst_58 = arith.constant 3.200000e+01 : f32
      %120 = vector.broadcast %cst_58 : f32 to vector<32x1xf32>
      %121 = arith.divf %119, %120 : vector<32x1xf32>
      %122 = vector.broadcast %114 : vector<32x1xf32> to vector<32x32xf32>
      %123 = arith.subf %110, %122 : vector<32x32xf32>
      %cst_59 = arith.constant 9.99999974E-6 : f32
      %124 = vector.broadcast %cst_59 : f32 to vector<32x1xf32>
      %125 = arith.addf %121, %124 : vector<32x1xf32>
      %126 = math.rsqrt %125 : vector<32x1xf32>
      %127 = vector.broadcast %126 : vector<32x1xf32> to vector<32x32xf32>
      %128 = arith.mulf %123, %127 : vector<32x32xf32>
      %c0_60 = arith.constant 0 : index
      %c0_61 = arith.constant 0 : index
      %129 = vector.load %arg3[%c0_60, %c0_61] : memref<1x32xf32, #tpu.memory_space<vmem>>, vector<1x32xf32>
      %130 = vector.broadcast %129 : vector<1x32xf32> to vector<32x32xf32>
      %131 = arith.mulf %128, %130 : vector<32x32xf32>
      %c0_62 = arith.constant 0 : index
      %c0_63 = arith.constant 0 : index
      %132 = vector.load %arg4[%c0_62, %c0_63] : memref<1x32xf32, #tpu.memory_space<vmem>>, vector<1x32xf32>
      %133 = vector.broadcast %132 : vector<1x32xf32> to vector<32x32xf32>
      %134 = arith.addf %131, %133 : vector<32x32xf32>
      %c0_64 = arith.constant 0 : index
      %c0_65 = arith.constant 0 : index
      %135 = vector.load %arg18[%c0_64, %c0_65] : memref<32x32xf32, #tpu.memory_space<vmem>>, vector<32x32xf32>
      tpu.vector_store %arg18[%c0_64, %c0_65], %134 {strides = array<i32>} : memref<32x32xf32, #tpu.memory_space<vmem>>, vector<32x32xf32>,
      %c0_66 = arith.constant 0 : index
      %c0_67 = arith.constant 0 : index
      %136 = vector.load %arg2[%c0_66, %c0_67] : memref<32x32xf32, #tpu.memory_space<vmem>>, vector<32x32xf32>
      %cst_68 = arith.constant dense<0.000000e+00> : vector<32xf32>
      %137 = vector.multi_reduction <add>, %136, %cst_68 [1] : vector<32x32xf32> to vector<32xf32>
      %138 = vector.shape_cast %137 : vector<32xf32> to vector<32x1xf32>
      %cst_69 = arith.constant 3.200000e+01 : f32
      %139 = vector.broadcast %cst_69 : f32 to vector<32x1xf32>
      %140 = arith.divf %138, %139 : vector<32x1xf32>
      %141 = vector.broadcast %140 : vector<32x1xf32> to vector<32x32xf32>
      %142 = arith.subf %136, %141 : vector<32x32xf32>
      %143 = arith.mulf %142, %142 : vector<32x32xf32>
      %cst_70 = arith.constant dense<0.000000e+00> : vector<32xf32>
      %144 = vector.multi_reduction <add>, %143, %cst_70 [1] : vector<32x32xf32> to vector<32xf32>
      %145 = vector.shape_cast %144 : vector<32xf32> to vector<32x1xf32>
      %cst_71 = arith.constant 3.200000e+01 : f32
      %146 = vector.broadcast %cst_71 : f32 to vector<32x1xf32>
      %147 = arith.divf %145, %146 : vector<32x1xf32>
      %148 = vector.broadcast %140 : vector<32x1xf32> to vector<32x32xf32>
      %149 = arith.subf %136, %148 : vector<32x32xf32>
      %cst_72 = arith.constant 9.99999974E-6 : f32
      %150 = vector.broadcast %cst_72 : f32 to vector<32x1xf32>
      %151 = arith.addf %147, %150 : vector<32x1xf32>
      %152 = math.rsqrt %151 : vector<32x1xf32>
      %153 = vector.broadcast %152 : vector<32x1xf32> to vector<32x32xf32>
      %154 = arith.mulf %149, %153 : vector<32x32xf32>
      %c0_73 = arith.constant 0 : index
      %c0_74 = arith.constant 0 : index
      %155 = vector.load %arg5[%c0_73, %c0_74] : memref<1x32xf32, #tpu.memory_space<vmem>>, vector<1x32xf32>
      %156 = vector.broadcast %155 : vector<1x32xf32> to vector<32x32xf32>
      %157 = arith.mulf %154, %156 : vector<32x32xf32>
      %c0_75 = arith.constant 0 : index
      %c0_76 = arith.constant 0 : index
      %158 = vector.load %arg6[%c0_75, %c0_76] : memref<1x32xf32, #tpu.memory_space<vmem>>, vector<1x32xf32>
      %159 = vector.broadcast %158 : vector<1x32xf32> to vector<32x32xf32>
      %160 = arith.addf %157, %159 : vector<32x32xf32>
      %c0_77 = arith.constant 0 : index
      %c0_78 = arith.constant 0 : index
      %161 = vector.load %arg19[%c0_77, %c0_78] : memref<32x32xf32, #tpu.memory_space<vmem>>, vector<32x32xf32>
      tpu.vector_store %arg19[%c0_77, %c0_78], %160 {strides = array<i32>} : memref<32x32xf32, #tpu.memory_space<vmem>>, vector<32x32xf32>,
      %c0_79 = arith.constant 0 : index
      %c0_80 = arith.constant 0 : index
      %162 = vector.load %arg1[%c0_79, %c0_80] : memref<32x32xf32, #tpu.memory_space<vmem>>, vector<32x32xf32>
      %c0_81 = arith.constant 0 : index
      %c0_82 = arith.constant 0 : index
      %163 = vector.load %arg16[%c0_81, %c0_82] : memref<1x32xf32, #tpu.memory_space<vmem>>, vector<1x32xf32>
      %164 = vector.broadcast %163 : vector<1x32xf32> to vector<32x32xf32>
      %165 = arith.addf %162, %164 : vector<32x32xf32>
      %c0_83 = arith.constant 0 : index
      %c0_84 = arith.constant 0 : index
      %166 = vector.load %arg17[%c0_83, %c0_84] : memref<32x32xf32, #tpu.memory_space<vmem>>, vector<32x32xf32>
      tpu.vector_store %arg17[%c0_83, %c0_84], %165 {strides = array<i32>} : memref<32x32xf32, #tpu.memory_space<vmem>>, vector<32x32xf32>,
    } else {
    }
    %c0 = arith.constant 0 : index
    %c0_1 = arith.constant 0 : index
    %3 = vector.load %arg18[%c0, %c0_1] : memref<32x32xf32, #tpu.memory_space<vmem>>, vector<32x32xf32>
    %c0_2 = arith.constant 0 : index
    %c0_3 = arith.constant 0 : index
    %4 = vector.load %arg19[%c0_2, %c0_3] : memref<32x32xf32, #tpu.memory_space<vmem>>, vector<32x32xf32>
    %c0_4 = arith.constant 0 : index
    %c0_5 = arith.constant 0 : index
    %c0_6 = arith.constant 0 : index
    %5 = vector.load %arg7[%c0_4, %c0_5, %c0_6] : memref<1x32x8xf32, #tpu.memory_space<vmem>>, vector<1x32x8xf32>
    %6 = vector.shape_cast %5 : vector<1x32x8xf32> to vector<32x8xf32>
    %cst = arith.constant dense<0.000000e+00> : vector<32x8xf32>
    %7 = tpu.matmul %3, %6, %cst {dimension_numbers = #tpu.dot_dimension_numbers<[1], [0], [0], [1], [0, 0, 1, 1], [], []>} : vector<32x32xf32>, vector<32x8xf32>, vector<32x8xf32> -> vector<32x8xf32>
    %c0_7 = arith.constant 0 : index
    %c0_8 = arith.constant 0 : index
    %c0_9 = arith.constant 0 : index
    %8 = vector.load %arg8[%c0_7, %c0_8, %c0_9] : memref<1x1x8xf32, #tpu.memory_space<vmem>>, vector<1x1x8xf32>
    %9 = vector.shape_cast %8 : vector<1x1x8xf32> to vector<1x8xf32>
    %10 = vector.broadcast %9 : vector<1x8xf32> to vector<32x8xf32>
    %11 = arith.addf %7, %10 : vector<32x8xf32>
    %c0_10 = arith.constant 0 : index
    %c0_11 = arith.constant 0 : index
    %c0_12 = arith.constant 0 : index
    %12 = vector.load %arg9[%c0_10, %c0_11, %c0_12] : memref<1x32x8xf32, #tpu.memory_space<vmem>>, vector<1x32x8xf32>
    %13 = vector.shape_cast %12 : vector<1x32x8xf32> to vector<32x8xf32>
    %cst_13 = arith.constant dense<0.000000e+00> : vector<32x8xf32>
    %14 = tpu.matmul %4, %13, %cst_13 {dimension_numbers = #tpu.dot_dimension_numbers<[1], [0], [0], [1], [0, 0, 1, 1], [], []>} : vector<32x32xf32>, vector<32x8xf32>, vector<32x8xf32> -> vector<32x8xf32>
    %c0_14 = arith.constant 0 : index
    %c0_15 = arith.constant 0 : index
    %c0_16 = arith.constant 0 : index
    %15 = vector.load %arg10[%c0_14, %c0_15, %c0_16] : memref<1x1x8xf32, #tpu.memory_space<vmem>>, vector<1x1x8xf32>
    %16 = vector.shape_cast %15 : vector<1x1x8xf32> to vector<1x8xf32>
    %17 = vector.broadcast %16 : vector<1x8xf32> to vector<32x8xf32>
    %18 = arith.addf %14, %17 : vector<32x8xf32>
    %c0_17 = arith.constant 0 : index
    %c0_18 = arith.constant 0 : index
    %c0_19 = arith.constant 0 : index
    %19 = vector.load %arg11[%c0_17, %c0_18, %c0_19] : memref<1x32x8xf32, #tpu.memory_space<vmem>>, vector<1x32x8xf32>
    %20 = vector.shape_cast %19 : vector<1x32x8xf32> to vector<32x8xf32>
    %cst_20 = arith.constant dense<0.000000e+00> : vector<32x8xf32>
    %21 = tpu.matmul %4, %20, %cst_20 {dimension_numbers = #tpu.dot_dimension_numbers<[1], [0], [0], [1], [0, 0, 1, 1], [], []>} : vector<32x32xf32>, vector<32x8xf32>, vector<32x8xf32> -> vector<32x8xf32>
    %c0_21 = arith.constant 0 : index
    %c0_22 = arith.constant 0 : index
    %c0_23 = arith.constant 0 : index
    %22 = vector.load %arg12[%c0_21, %c0_22, %c0_23] : memref<1x1x8xf32, #tpu.memory_space<vmem>>, vector<1x1x8xf32>
    %23 = vector.shape_cast %22 : vector<1x1x8xf32> to vector<1x8xf32>
    %24 = vector.broadcast %23 : vector<1x8xf32> to vector<32x8xf32>
    %25 = arith.addf %21, %24 : vector<32x8xf32>
    %26 = vector.shape_cast %11 : vector<32x8xf32> to vector<4x8x8xf32>
    %27 = vector.shape_cast %18 : vector<32x8xf32> to vector<4x8x8xf32>
    %28 = vector.shape_cast %25 : vector<32x8xf32> to vector<4x8x8xf32>
    %c0_24 = arith.constant 0 : index
    %c0_25 = arith.constant 0 : index
    %c0_26 = arith.constant 0 : index
    %c0_27 = arith.constant 0 : index
    %29 = vector.load %arg13[%c0_24, %c0_25, %c0_26, %c0_27] : memref<1x8x8x8xf32, #tpu.memory_space<vmem>>, vector<1x8x8x8xf32>
    %30 = vector.shape_cast %29 : vector<1x8x8x8xf32> to vector<8x8x8xf32>
    %c0_28 = arith.constant 0 : index
    %c0_29 = arith.constant 0 : index
    %c0_30 = arith.constant 0 : index
    %c0_31 = arith.constant 0 : index
    %31 = vector.load %arg14[%c0_28, %c0_29, %c0_30, %c0_31] : memref<1x8x8x8xf32, #tpu.memory_space<vmem>>, vector<1x8x8x8xf32>
    %32 = vector.shape_cast %31 : vector<1x8x8x8xf32> to vector<8x8x8xf32>
    %cst_32 = arith.constant dense<0.000000e+00> : vector<4x8x8xf32>
    %33 = tpu.matmul %26, %27, %cst_32 {dimension_numbers = #tpu.dot_dimension_numbers<[2], [2], [1], [1], [0, 0, 0, 1, 1, 1], [0], [0]>} : vector<4x8x8xf32>, vector<4x8x8xf32>, vector<4x8x8xf32> -> vector<4x8x8xf32>
    %34 = vector.extract_strided_slice %26 {offsets = [0, 0, 0], sizes = [1, 8, 8], strides = [1, 1, 1]} : vector<4x8x8xf32> to vector<1x8x8xf32>
    %35 = vector.shape_cast %34 : vector<1x8x8xf32> to vector<8x8xf32>
    %36 = vector.extract_strided_slice %27 {offsets = [0, 0, 0], sizes = [1, 8, 8], strides = [1, 1, 1]} : vector<4x8x8xf32> to vector<1x8x8xf32>
    %37 = vector.shape_cast %36 : vector<1x8x8xf32> to vector<8x8xf32>
    %38 = vector.shape_cast %35 : vector<8x8xf32> to vector<8x1x8xf32>
    %cst_33 = arith.constant dense<0.000000e+00> : vector<8x1x8xf32>
    %39 = tpu.matmul %38, %30, %cst_33 {dimension_numbers = #tpu.dot_dimension_numbers<[2], [2], [1], [1], [0, 0, 0, 1, 1, 1], [0], [0]>} : vector<8x1x8xf32>, vector<8x8x8xf32>, vector<8x1x8xf32> -> vector<8x1x8xf32>
    %40 = vector.shape_cast %37 : vector<8x8xf32> to vector<8x1x8xf32>
    %cst_34 = arith.constant dense<0.000000e+00> : vector<8x1x8xf32>
    %41 = tpu.matmul %40, %32, %cst_34 {dimension_numbers = #tpu.dot_dimension_numbers<[2], [2], [1], [1], [0, 0, 0, 1, 1, 1], [0], [0]>} : vector<8x1x8xf32>, vector<8x8x8xf32>, vector<8x1x8xf32> -> vector<8x1x8xf32>
    %42 = vector.shape_cast %39 : vector<8x1x8xf32> to vector<8x8xf32>
    %43 = vector.shape_cast %42 : vector<8x8xf32> to vector<1x8x8xf32>
    %44 = vector.shape_cast %41 : vector<8x1x8xf32> to vector<8x8xf32>
    %45 = tpu.transpose %44, [1, 0] : vector<8x8xf32> -> vector<8x8xf32>
    %46 = vector.shape_cast %45 : vector<8x8xf32> to vector<1x8x8xf32>
    %47 = vector.extract_strided_slice %26 {offsets = [1, 0, 0], sizes = [1, 8, 8], strides = [1, 1, 1]} : vector<4x8x8xf32> to vector<1x8x8xf32>
    %48 = vector.shape_cast %47 : vector<1x8x8xf32> to vector<8x8xf32>
    %49 = vector.extract_strided_slice %27 {offsets = [1, 0, 0], sizes = [1, 8, 8], strides = [1, 1, 1]} : vector<4x8x8xf32> to vector<1x8x8xf32>
    %50 = vector.shape_cast %49 : vector<1x8x8xf32> to vector<8x8xf32>
    %51 = vector.shape_cast %48 : vector<8x8xf32> to vector<8x1x8xf32>
    %cst_35 = arith.constant dense<0.000000e+00> : vector<8x1x8xf32>
    %52 = tpu.matmul %51, %30, %cst_35 {dimension_numbers = #tpu.dot_dimension_numbers<[2], [2], [1], [1], [0, 0, 0, 1, 1, 1], [0], [0]>} : vector<8x1x8xf32>, vector<8x8x8xf32>, vector<8x1x8xf32> -> vector<8x1x8xf32>
    %53 = vector.shape_cast %50 : vector<8x8xf32> to vector<8x1x8xf32>
    %cst_36 = arith.constant dense<0.000000e+00> : vector<8x1x8xf32>
    %54 = tpu.matmul %53, %32, %cst_36 {dimension_numbers = #tpu.dot_dimension_numbers<[2], [2], [1], [1], [0, 0, 0, 1, 1, 1], [0], [0]>} : vector<8x1x8xf32>, vector<8x8x8xf32>, vector<8x1x8xf32> -> vector<8x1x8xf32>
    %55 = vector.shape_cast %52 : vector<8x1x8xf32> to vector<8x8xf32>
    %56 = vector.shape_cast %55 : vector<8x8xf32> to vector<1x8x8xf32>
    %57 = vector.shape_cast %54 : vector<8x1x8xf32> to vector<8x8xf32>
    %58 = tpu.transpose %57, [1, 0] : vector<8x8xf32> -> vector<8x8xf32>
    %59 = vector.shape_cast %58 : vector<8x8xf32> to vector<1x8x8xf32>
    %60 = vector.extract_strided_slice %26 {offsets = [2, 0, 0], sizes = [1, 8, 8], strides = [1, 1, 1]} : vector<4x8x8xf32> to vector<1x8x8xf32>
    %61 = vector.shape_cast %60 : vector<1x8x8xf32> to vector<8x8xf32>
    %62 = vector.extract_strided_slice %27 {offsets = [2, 0, 0], sizes = [1, 8, 8], strides = [1, 1, 1]} : vector<4x8x8xf32> to vector<1x8x8xf32>
    %63 = vector.shape_cast %62 : vector<1x8x8xf32> to vector<8x8xf32>
    %64 = vector.shape_cast %61 : vector<8x8xf32> to vector<8x1x8xf32>
    %cst_37 = arith.constant dense<0.000000e+00> : vector<8x1x8xf32>
    %65 = tpu.matmul %64, %30, %cst_37 {dimension_numbers = #tpu.dot_dimension_numbers<[2], [2], [1], [1], [0, 0, 0, 1, 1, 1], [0], [0]>} : vector<8x1x8xf32>, vector<8x8x8xf32>, vector<8x1x8xf32> -> vector<8x1x8xf32>
    %66 = vector.shape_cast %63 : vector<8x8xf32> to vector<8x1x8xf32>
    %cst_38 = arith.constant dense<0.000000e+00> : vector<8x1x8xf32>
    %67 = tpu.matmul %66, %32, %cst_38 {dimension_numbers = #tpu.dot_dimension_numbers<[2], [2], [1], [1], [0, 0, 0, 1, 1, 1], [0], [0]>} : vector<8x1x8xf32>, vector<8x8x8xf32>, vector<8x1x8xf32> -> vector<8x1x8xf32>
    %68 = vector.shape_cast %65 : vector<8x1x8xf32> to vector<8x8xf32>
    %69 = vector.shape_cast %68 : vector<8x8xf32> to vector<1x8x8xf32>
    %70 = vector.shape_cast %67 : vector<8x1x8xf32> to vector<8x8xf32>
    %71 = tpu.transpose %70, [1, 0] : vector<8x8xf32> -> vector<8x8xf32>
    %72 = vector.shape_cast %71 : vector<8x8xf32> to vector<1x8x8xf32>
    %73 = vector.extract_strided_slice %26 {offsets = [3, 0, 0], sizes = [1, 8, 8], strides = [1, 1, 1]} : vector<4x8x8xf32> to vector<1x8x8xf32>
    %74 = vector.shape_cast %73 : vector<1x8x8xf32> to vector<8x8xf32>
    %75 = vector.extract_strided_slice %27 {offsets = [3, 0, 0], sizes = [1, 8, 8], strides = [1, 1, 1]} : vector<4x8x8xf32> to vector<1x8x8xf32>
    %76 = vector.shape_cast %75 : vector<1x8x8xf32> to vector<8x8xf32>
    %77 = vector.shape_cast %74 : vector<8x8xf32> to vector<8x1x8xf32>
    %cst_39 = arith.constant dense<0.000000e+00> : vector<8x1x8xf32>
    %78 = tpu.matmul %77, %30, %cst_39 {dimension_numbers = #tpu.dot_dimension_numbers<[2], [2], [1], [1], [0, 0, 0, 1, 1, 1], [0], [0]>} : vector<8x1x8xf32>, vector<8x8x8xf32>, vector<8x1x8xf32> -> vector<8x1x8xf32>
    %79 = vector.shape_cast %76 : vector<8x8xf32> to vector<8x1x8xf32>
    %cst_40 = arith.constant dense<0.000000e+00> : vector<8x1x8xf32>
    %80 = tpu.matmul %79, %32, %cst_40 {dimension_numbers = #tpu.dot_dimension_numbers<[2], [2], [1], [1], [0, 0, 0, 1, 1, 1], [0], [0]>} : vector<8x1x8xf32>, vector<8x8x8xf32>, vector<8x1x8xf32> -> vector<8x1x8xf32>
    %81 = vector.shape_cast %78 : vector<8x1x8xf32> to vector<8x8xf32>
    %82 = vector.shape_cast %81 : vector<8x8xf32> to vector<1x8x8xf32>
    %83 = vector.shape_cast %80 : vector<8x1x8xf32> to vector<8x8xf32>
    %84 = tpu.transpose %83, [1, 0] : vector<8x8xf32> -> vector<8x8xf32>
    %85 = vector.shape_cast %84 : vector<8x8xf32> to vector<1x8x8xf32>
    %86 = tpu.concatenate %43, %56, %69, %82 in 0 : vector<1x8x8xf32>, vector<1x8x8xf32>, vector<1x8x8xf32>, vector<1x8x8xf32> -> vector<4x8x8xf32>
    %87 = arith.addf %33, %86 : vector<4x8x8xf32>
    %88 = tpu.concatenate %46, %59, %72, %85 in 0 : vector<1x8x8xf32>, vector<1x8x8xf32>, vector<1x8x8xf32>, vector<1x8x8xf32> -> vector<4x8x8xf32>
    %89 = arith.addf %87, %88 : vector<4x8x8xf32>
    %cst_41 = arith.constant 0.353553385 : f32
    %90 = vector.broadcast %cst_41 : f32 to vector<4x8x8xf32>
    %91 = arith.mulf %89, %90 : vector<4x8x8xf32>
    %cst_42 = arith.constant dense<0xFF800000> : vector<4x8xf32>
    %92 = vector.multi_reduction <maximumf>, %91, %cst_42 [2] : vector<4x8x8xf32> to vector<4x8xf32>
    %93 = vector.shape_cast %92 : vector<4x8xf32> to vector<4x8x1xf32>
    %94 = vector.broadcast %93 : vector<4x8x1xf32> to vector<4x8x8xf32>
    %95 = arith.subf %91, %94 : vector<4x8x8xf32>
    %96 = math.exp %95 : vector<4x8x8xf32>
    %cst_43 = arith.constant dense<0.000000e+00> : vector<4x8xf32>
    %97 = vector.multi_reduction <add>, %96, %cst_43 [2] : vector<4x8x8xf32> to vector<4x8xf32>
    %98 = vector.shape_cast %97 : vector<4x8xf32> to vector<4x8x1xf32>
    %99 = tpu.reciprocal %98 {approx = true} : vector<4x8x1xf32> -> vector<4x8x1xf32>
    %100 = vector.broadcast %99 : vector<4x8x1xf32> to vector<4x8x8xf32>
    %101 = arith.mulf %96, %100 : vector<4x8x8xf32>
    %cst_44 = arith.constant dense<0.000000e+00> : vector<4x8x8xf32>
    %102 = tpu.matmul %101, %28, %cst_44 {dimension_numbers = #tpu.dot_dimension_numbers<[2], [1], [1], [2], [0, 0, 0, 1, 1, 2], [0], [0]>} : vector<4x8x8xf32>, vector<4x8x8xf32>, vector<4x8x8xf32> -> vector<4x8x8xf32>
    %103 = vector.shape_cast %102 : vector<4x8x8xf32> to vector<32x8xf32>
    %c0_45 = arith.constant 0 : index
    %c0_46 = arith.constant 0 : index
    %c0_47 = arith.constant 0 : index
    %104 = vector.load %arg15[%c0_45, %c0_46, %c0_47] : memref<1x8x32xf32, #tpu.memory_space<vmem>>, vector<1x8x32xf32>
    %105 = vector.shape_cast %104 : vector<1x8x32xf32> to vector<8x32xf32>
    %cst_48 = arith.constant dense<0.000000e+00> : vector<32x32xf32>
    %106 = tpu.matmul %103, %105, %cst_48 {dimension_numbers = #tpu.dot_dimension_numbers<[1], [0], [0], [1], [0, 0, 1, 1], [], []>} : vector<32x8xf32>, vector<8x32xf32>, vector<32x32xf32> -> vector<32x32xf32>
    %c0_49 = arith.constant 0 : index
    %c0_50 = arith.constant 0 : index
    %107 = vector.load %arg17[%c0_49, %c0_50] : memref<32x32xf32, #tpu.memory_space<vmem>>, vector<32x32xf32>
    %108 = arith.addf %107, %106 : vector<32x32xf32>
    %c0_51 = arith.constant 0 : index
    %c0_52 = arith.constant 0 : index
    %109 = vector.load %arg17[%c0_51, %c0_52] : memref<32x32xf32, #tpu.memory_space<vmem>>, vector<32x32xf32>
    tpu.vector_store %arg17[%c0_51, %c0_52], %108 {strides = array<i32>} : memref<32x32xf32, #tpu.memory_space<vmem>>, vector<32x32xf32>,
    return
  }
  func.func @transform_0(%arg0: i32) -> (i32, i32) {
    %c0_i32 = arith.constant 0 : i32
    %c0_i32_0 = arith.constant 0 : i32
    %c0_i32_1 = arith.constant 0 : i32
    return %c0_i32, %c0_i32_0 : i32, i32
  }
  func.func @transform_1(%arg0: i32) -> (i32, i32) {
    %c0_i32 = arith.constant 0 : i32
    %c0_i32_0 = arith.constant 0 : i32
    %c0_i32_1 = arith.constant 0 : i32
    return %c0_i32, %c0_i32_0 : i32, i32
  }
  func.func @transform_2(%arg0: i32) -> (i32, i32) {
    %c0_i32 = arith.constant 0 : i32
    %c0_i32_0 = arith.constant 0 : i32
    %c0_i32_1 = arith.constant 0 : i32
    return %c0_i32, %c0_i32_0 : i32, i32
  }
  func.func @transform_3(%arg0: i32) -> (i32, i32) {
    %c0_i32 = arith.constant 0 : i32
    %c0_i32_0 = arith.constant 0 : i32
    %c0_i32_1 = arith.constant 0 : i32
    return %c0_i32, %c0_i32_0 : i32, i32
  }
  func.func @transform_4(%arg0: i32) -> (i32, i32) {
    %c0_i32 = arith.constant 0 : i32
    %c0_i32_0 = arith.constant 0 : i32
    %c0_i32_1 = arith.constant 0 : i32
    return %c0_i32, %c0_i32_0 : i32, i32
  }
  func.func @transform_5(%arg0: i32) -> (i32, i32) {
    %c0_i32 = arith.constant 0 : i32
    %c0_i32_0 = arith.constant 0 : i32
    %c0_i32_1 = arith.constant 0 : i32
    return %c0_i32, %c0_i32_0 : i32, i32
  }
  func.func @transform_6(%arg0: i32) -> (i32, i32, i32) {
    %c0_i32 = arith.constant 0 : i32
    %c0_i32_0 = arith.constant 0 : i32
    %c0_i32_1 = arith.constant 0 : i32
    return %arg0, %c0_i32, %c0_i32_0 : i32, i32, i32
  }
  func.func @transform_7(%arg0: i32) -> (i32, i32, i32) {
    %c0_i32 = arith.constant 0 : i32
    %c0_i32_0 = arith.constant 0 : i32
    %c0_i32_1 = arith.constant 0 : i32
    return %arg0, %c0_i32, %c0_i32_0 : i32, i32, i32
  }
  func.func @transform_8(%arg0: i32) -> (i32, i32, i32) {
    %c0_i32 = arith.constant 0 : i32
    %c0_i32_0 = arith.constant 0 : i32
    %c0_i32_1 = arith.constant 0 : i32
    return %arg0, %c0_i32, %c0_i32_0 : i32, i32, i32
  }
  func.func @transform_9(%arg0: i32) -> (i32, i32, i32) {
    %c0_i32 = arith.constant 0 : i32
    %c0_i32_0 = arith.constant 0 : i32
    %c0_i32_1 = arith.constant 0 : i32
    return %arg0, %c0_i32, %c0_i32_0 : i32, i32, i32
  }
  func.func @transform_10(%arg0: i32) -> (i32, i32, i32) {
    %c0_i32 = arith.constant 0 : i32
    %c0_i32_0 = arith.constant 0 : i32
    %c0_i32_1 = arith.constant 0 : i32
    return %arg0, %c0_i32, %c0_i32_0 : i32, i32, i32
  }
  func.func @transform_11(%arg0: i32) -> (i32, i32, i32) {
    %c0_i32 = arith.constant 0 : i32
    %c0_i32_0 = arith.constant 0 : i32
    %c0_i32_1 = arith.constant 0 : i32
    return %arg0, %c0_i32, %c0_i32_0 : i32, i32, i32
  }
  func.func @transform_12(%arg0: i32) -> (i32, i32, i32, i32) {
    %c0_i32 = arith.constant 0 : i32
    %c0_i32_0 = arith.constant 0 : i32
    %c0_i32_1 = arith.constant 0 : i32
    %c0_i32_2 = arith.constant 0 : i32
    return %arg0, %c0_i32, %c0_i32_0, %c0_i32_1 : i32, i32, i32, i32
  }
  func.func @transform_13(%arg0: i32) -> (i32, i32, i32, i32) {
    %c0_i32 = arith.constant 0 : i32
    %c0_i32_0 = arith.constant 0 : i32
    %c0_i32_1 = arith.constant 0 : i32
    %c0_i32_2 = arith.constant 0 : i32
    return %arg0, %c0_i32, %c0_i32_0, %c0_i32_1 : i32, i32, i32, i32
  }
  func.func @transform_14(%arg0: i32) -> (i32, i32, i32) {
    %c0_i32 = arith.constant 0 : i32
    %c0_i32_0 = arith.constant 0 : i32
    %c0_i32_1 = arith.constant 0 : i32
    return %arg0, %c0_i32, %c0_i32_0 : i32, i32, i32
  }
  func.func @transform_15(%arg0: i32) -> (i32, i32) {
    %c0_i32 = arith.constant 0 : i32
    %c0_i32_0 = arith.constant 0 : i32
    %c0_i32_1 = arith.constant 0 : i32
    return %c0_i32, %c0_i32_0 : i32, i32
  }
  func.func @transform_16(%arg0: i32) -> (i32, i32) {
    %c0_i32 = arith.constant 0 : i32
    %c0_i32_0 = arith.constant 0 : i32
    %c0_i32_1 = arith.constant 0 : i32
    return %c0_i32, %c0_i32_0 : i32, i32
  }
}

</mosaic_0001>

<bundles_post_ra>
// kernel: sttm_complex_forward.11
= control target key start
LH: loop header
LB: loop body
LE: loop exit
PB: predicated region body
PF: predicated region fallthrough
CT: control target
= control target key end

     0   :  { %vm33_vm0 = vcmask 261120   ;;  %vm163_vm1 = vcmask 523264   ;;  %s328_s1 = inlined_call_operand.vmem [shape: f32[32,64], index: 1, kind: input, shape index: {}]   ;;  %s329_s0 = inlined_call_operand.vmem [shape: f32[64,32], index: 0, kind: input, shape index: {}]   ;;  %s330_s2 = inlined_call_operand.vmem [shape: f32[1,64], index: 2, kind: input, shape index: {}]   ;;  %s331_s3 = inlined_call_operand.vmem [shape: f32[64,64], index: 3, kind: output, shape index: {}]  }
   0x1   :  { %v22_v0 = vld [vmem:[%s328_s1] sm:$0xff]  ;;  %v23_v1 = vld [vmem:[%s328_s1 + $0x8] sm:$0xff]  ;;  %v24_v2 = vld [vmem:[%s328_s1 + $0x10] sm:$0xff] }
   0x2   :  { %v217_v3 = vpack.c.bf16 %v23_v1, %v22_v0  ;;  %v25_v4 = vld [vmem:[%s328_s1 + $0x18] sm:$0xff]  ;;  %v14_v5 = vld [vmem:[%s329_s0] sm:$0xff]  ;;  %v15_v8 = vld [vmem:[%s329_s0 + $0x8] sm:$0xff] }
   0x3   :  { %v18_v6 = vld [vmem:[%s329_s0 + $0x20] sm:$0xff]  ;;  %v221_v7 = vpack.c.bf16 %v25_v4, %v24_v2  ;;  %205 = vmatprep.mubr.msk.f32.mxu0 %vm33_vm0, %v14_v5  ;;  %v19_v9 = vld [vmem:[%s329_s0 + $0x28] sm:$0xff]  ;;  %v16_v10 = vld [vmem:[%s329_s0 + $0x10] sm:$0xff] }
   0x4   :  { %211 = vmatprep.mubr.msk.f32.mxu1 %vm33_vm0, %v18_v6  ;;  %218 = vmatprep.subr.bf16.mxu0 %v217_v3  ;;  %v20_v11 = vld [vmem:[%s329_s0 + $0x30] sm:$0xff]  ;;  %v17_v12 = vld [vmem:[%s329_s0 + $0x18] sm:$0xff]  ;;  %v176_v14 = vld [vmem:[%s330_s2] ss:$0 sm:$0xff] }
   0x5   :  { %225 = vmatprep.subr.bf16.mxu1 %v217_v3  ;;  %220 = vmatpush3.bf16.msra.mxu0 %v217_v3  ;;  %v21_v13 = vld [vmem:[%s329_s0 + $0x38] sm:$0xff] }
   0x6   :  { %227 = vmatpush3.bf16.msra.mxu1 %v217_v3  ;;  %222 = vmatprep.subr.bf16.mxu0 %v221_v7 }
   0x7   :  { %226 = vmatprep.subr.bf16.mxu1 %v221_v7 }
   0x9   :  { %224 = vmatpush3.bf16.msra.mxu0 %v221_v7 }
   0xa   :  { %228 = vmatpush3.bf16.msra.mxu1 %v221_v7 }
   0xc   :  { %206 = vmatmul.mubr.msk.f32.vlgmr.msra.gmra.mrb[0].mxu0 %vm33_vm0, %v15_v8 }
   0xd   :  { %212 = vmatmul.mubr.msk.f32.vlgmr.msra.gmra.mrb[0].mxu1 %vm33_vm0, %v19_v9  ;;  %208 = vmatprep.mubr.msk.f32.mxu0 %vm33_vm0, %v16_v10 }
   0xe   :  { %214 = vmatprep.mubr.msk.f32.mxu1 %vm33_vm0, %v20_v11 }
  0x10   :  { %209 = vmatmul.mubr.msk.f32.gmra.mrb[2].mxu0 %vm33_vm0, %v17_v12 }
  0x11   :  { %215 = vmatmul.mubr.msk.f32.gmra.mrb[2].mxu1 %vm33_vm0, %v21_v13 }
  0xdf   :  { %v207_v15 = vpop.f32.mrb[0].mxu0 }
  0xe0   :  { %v213_v16 = vpop.f32.mrb[0].mxu1  ;;  %v130_v17 = vadd.f32 %v207_v15, %v176_v14  ;;  %v124_v19 = vpop.f32.mrb[1].mxu0 }
  0xe1   :  { %v150_v18 = vadd.f32 %v213_v16, %v176_v14  ;;  %v144_v20 = vpop.f32.mrb[1].mxu1  ;;  %v125_v21 = vadd.f32 %v176_v14, %v124_v19 }
  0xe2   :  { %v145_v22 = vadd.f32 %v176_v14, %v144_v20  ;;  %165 = vst.msk [vmem:[%s331_s3 + $0x8] sm:$0xff] %vm163_vm1, %v130_v17 }
  0xe3   :  { %169 = vst.msk [vmem:[%s331_s3 + $0x28] sm:$0xff] %vm163_vm1, %v150_v18  ;;  %164 = vst.msk [vmem:[%s331_s3] sm:$0xff] %vm163_vm1, %v125_v21  ;;  %v210_v23 = vpop.f32.mrb[2].mxu0 }
  0xe4   :  { %168 = vst.msk [vmem:[%s331_s3 + $0x20] sm:$0xff] %vm163_vm1, %v145_v22  ;;  %v216_v24 = vpop.f32.mrb[2].mxu1  ;;  %v140_v25 = vadd.f32 %v210_v23, %v176_v14  ;;  %v134_v27 = vpop.f32.mrb[3].mxu0 }
  0xe5   :  { %v160_v26 = vadd.f32 %v216_v24, %v176_v14  ;;  %v154_v28 = vpop.f32.mrb[3].mxu1  ;;  %v135_v29 = vadd.f32 %v176_v14, %v134_v27 }
  0xe6   :  { %v155_v30 = vadd.f32 %v176_v14, %v154_v28  ;;  %167 = vst.msk [vmem:[%s331_s3 + $0x18] sm:$0xff] %vm163_vm1, %v140_v25 }
  0xe7   :  { %171 = vst.msk [vmem:[%s331_s3 + $0x38] sm:$0xff] %vm163_vm1, %v160_v26  ;;  %166 = vst.msk [vmem:[%s331_s3 + $0x10] sm:$0xff] %vm163_vm1, %v135_v29 }
  0xe8   :  { %170 = vst.msk [vmem:[%s331_s3 + $0x30] sm:$0xff] %vm163_vm1, %v155_v30 }

// kernel: sttm_complex_forward.13
= control target key start
LH: loop header
LB: loop body
LE: loop exit
PB: predicated region body
PF: predicated region fallthrough
CT: control target
= control target key end

     0   :  { %s8350_s21 = smov 0   ;;  %s9359_s0 = inlined_call_operand.vmem [shape: f32[32,32], index: 0, kind: input, shape index: {}]   ;;  %s9360_s1 = inlined_call_operand.vmem [shape: f32[32,32], index: 1, kind: input, shape index: {}]   ;;  %s9361_s2 = inlined_call_operand.vmem [shape: f32[1,32], index: 2, kind: input, shape index: {}, may-alias: {2,4}]   ;;  %s9362_s3 = inlined_call_operand.vmem [shape: f32[1,32], index: 3, kind: input, shape index: {}, may-alias: {3,5}]   ;;  %s9363_s4 = inlined_call_operand.vmem [shape: f32[1,32], index: 4, kind: input, shape index: {}, may-alias: {2,4}]   ;;  %s9364_s5 = inlined_call_operand.vmem [shape: f32[1,32], index: 5, kind: input, shape index: {}, may-alias: {3,5}]   ;;  %s9365_s6 = inlined_call_operand.vmem [shape: f32[4,32,8], index: 6, kind: input, shape index: {}]   ;;  %s9366_s7 = inlined_call_operand.vmem [shape: f32[4,1,8], index: 7, kind: input, shape index: {}]   ;;  %s9367_s8 = inlined_call_operand.vmem [shape: f32[4,32,8], index: 8, kind: input, shape index: {}]   ;;  %s9368_s9 = inlined_call_operand.vmem [shape: f32[4,1,8], index: 9, kind: input, shape index: {}]   ;;  %s9369_s10 = inlined_call_operand.vmem [shape: f32[4,32,8], index: 10, kind: input, shape index: {}]   ;;  %s9370_s11 = inlined_call_operand.vmem [shape: f32[4,1,8], index: 11, kind: input, shape index: {}]   ;;  %s9371_s12 = inlined_call_operand.vmem [shape: f32[4,8,8,8], index: 12, kind: input, shape index: {}]   ;;  %s9372_s13 = inlined_call_operand.vmem [shape: f32[4,8,8,8], index: 13, kind: input, shape index: {}]   ;;  %s9373_s14 = inlined_call_operand.vmem [shape: f32[4,8,32], index: 14, kind: input, shape index: {}]   ;;  %s9374_s15 = inlined_call_operand.vmem [shape: f32[1,32], index: 15, kind: input, shape index: {}]   ;;  %s9375_s16 = inlined_call_operand.vmem [shape: f32[32,32], index: 16, kind: output, shape index: {}]  }
   0x1   :  { %9378 = sst [smem:[#allocation5_spill]] %s9359_s0 }
   0x2   :  { %9379 = sst [smem:[#allocation6_spill]] %s9362_s3 }
   0x3   :  { %9380 = sst [smem:[#allocation7_spill]] %s9363_s4 }
   0x4   :  { %9381 = sst [smem:[#allocation8_spill]] %s9364_s5 }
   0x5   :  { %9382 = sst [smem:[#allocation9_spill]] %s9365_s6 }
   0x6   :  { %9383 = sst [smem:[#allocation10_spill]] %s9367_s8 }
   0x7 LB: > { %9384 = sst [smem:[#allocation4_spill]] %s8260_s21  ;;  %s7413_s22 = sadd.s32 4294967295, %s8260_s21   ;;  %s8260_s21 = sphi %s8350_s21, %s26_s21  }
   0x8   : > { %p7416_p0 = scmp.ge.s32.totalorder %s8260_s21, 1  ;;  %p530_p1 = scmp.lt.s32.totalorder %s8260_s21, 5 }
   0xa   : > { %p531_p2 = pnand %p7416_p0, %p530_p1 }
   0xb   : > { %p608_p3 = scmp.lt.s32.totalorder (!%p531_p2), %s7413_s22, 3  ;;  %s9385_s6 = sld [smem:[#allocation9_spill]] (!%p531_p2) }
   0xc   : > { %534 = sbr.rel (%p531_p2) target bundleno = 1805 (0x70d), region = 84  ;;  %s9386_s8 = sld [smem:[#allocation10_spill]] (!%p531_p2) }
   0xd   : > { %p7428_p4 = scmp.ne.s32.totalorder (!%p531_p2), %s7413_s22, 0 }
  0x13   : > { %s8358_s23 = scalar_select %p608_p3, %s7413_s22, 3 }
  0x14   : > { %649 = sbr.rel (%p7428_p4) target bundleno = 357 (0x165), region = 88  ;;  %s9387_s26 = sld [smem:[#allocation5_spill]] (!%p7428_p4)  ;;  %vm654_vm0 = vcmask (!%p7428_p4), 261120   ;;  %v7433_v5 = vld [vmem:[%s9374_s15] ss:$0 sm:$0xff] (!%p7428_p4)  ;;  %v735_v14 = vld [vmem:[%s9360_s1 + $0x8] sm:$0xff] (!%p7428_p4) }
  0x15   : > { %s7595_s24 = sshll.u32 %s8358_s23, 5  ;;  %s631_s28 = scalar_lea.vmem %s9370_s11, %s8358_s23  ;;  %v734_v13 = vld [vmem:[%s9360_s1] sm:$0xff] (!%p7428_p4)  ;;  %v741_v16 = vsel (!%p7428_p4), %vm654_vm0, %v735_v14, 0.0  ;;  %v736_v17 = vld [vmem:[%s9360_s1 + $0x10] sm:$0xff] (!%p7428_p4)  ;;  %v737_v18 = vld [vmem:[%s9360_s1 + $0x18] sm:$0xff] (!%p7428_p4) }
  0x16   : > { %s8368_s30 = scalar_lea.vmem %s9385_s6, %s7595_s24  ;;  %s8373_s18 = scalar_lea.vmem %s9386_s8, %s7595_s24  ;;  %v738_v15 = vsel (!%p7428_p4), %vm654_vm0, %v734_v13, 0.0  ;;  %v744_v19 = vsel (!%p7428_p4), %vm654_vm0, %v736_v17, 0.0  ;;  %v747_v20 = vsel (!%p7428_p4), %vm654_vm0, %v737_v18, 0.0 }
  0x17   : > { %s8382_s3 = scalar_lea.vmem %s9369_s10, %s7595_s24  ;;  %s7598_s29 = sshll.u32 %s8358_s23, 6 }
  0x18   : > { %s8392_s0 = scalar_lea.vmem %s9371_s12, %s7598_s29  ;;  %s8397_s19 = scalar_lea.vmem %s9372_s13, %s7598_s29 }
  0x19   : > { %s7427_s20 = sshll.u32 %s8358_s23, 3  ;;  %s9388_s22 = sld [smem:[#allocation6_spill]] (!%p7428_p4) }
  0x1a   : > { %s8403_s5 = scalar_lea.vmem %s9373_s14, %s7427_s20  ;;  %v650_v0 = vld [vmem:[%s9387_s26] sm:$0xff] (!%p7428_p4)  ;;  %v817_v1 = vld [vmem:[%s9387_s26 + $0x8] sm:$0xff] (!%p7428_p4)  ;;  %v818_v2 = vld [vmem:[%s9387_s26 + $0x10] sm:$0xff] (!%p7428_p4)  ;;  %s9389_s24 = sld [smem:[#allocation7_spill]] (!%p7428_p4) }
  0x1b   : > { %v655_v3 = vsel %vm654_vm0, %v650_v0, 0.0  ;;  %v819_v4 = vld [vmem:[%s9387_s26 + $0x18] sm:$0xff]  ;;  %v661_v6 = vsel %vm654_vm0, %v818_v2, 0.0  ;;  %v827_v7 = vadd.f32 %v7433_v5, %v650_v0  ;;  %v828_v8 = vadd.f32 %v7433_v5, %v817_v1  ;;  %s9390_s27 = sld [smem:[#allocation8_spill]] }
  0x1c   : > { %v829_v9 = vadd.f32 %v7433_v5, %v818_v2  ;;  %v830_v10 = vadd.f32 %v7433_v5, %v819_v4  ;;  %656 = vadd.xlane.f32.xlu0 %v655_v3  ;;  %662 = vadd.xlane.f32.xlu1 %v661_v6  ;;  %v658_v11 = vsel %vm654_vm0, %v817_v1, 0.0  ;;  %v664_v12 = vsel %vm654_vm0, %v819_v4, 0.0 }
  0x1d   : > { %831 = vst.msk [vmem:[%s9375_s16] sm:$0xff] %vm654_vm0, %v827_v7  ;;  %832 = vst.msk [vmem:[%s9375_s16 + $0x8] sm:$0xff] %vm654_vm0, %v828_v8 }
  0x1e   : > { %833 = vst.msk [vmem:[%s9375_s16 + $0x10] sm:$0xff] %vm654_vm0, %v829_v9  ;;  %834 = vst.msk [vmem:[%s9375_s16 + $0x18] sm:$0xff] %vm654_vm0, %v830_v10 }
  0x20   : > { %659 = vadd.xlane.f32.xlu0 %v658_v11  ;;  %665 = vadd.xlane.f32.xlu1 %v664_v12 }
  0x24   : > { %739 = vadd.xlane.f32.xlu0 %v738_v15  ;;  %742 = vadd.xlane.f32.xlu1 %v741_v16 }
  0x28   : > { %745 = vadd.xlane.f32.xlu0 %v744_v19  ;;  %748 = vadd.xlane.f32.xlu1 %v747_v20 }
  0xa9   : > { %v657_v21 = vpop.xlane.xlu0 %656  ;;  %v663_v23 = vpop.xlane.xlu1 %662 }
  0xaa   : > { %v668_v22 = vmul.f32 0.03125, %v657_v21  ;;  %v670_v24 = vmul.f32 0.03125, %v663_v23 }
  0xac   : > { %v8456_v25 = vsub.f32 %v650_v0, %v668_v22  ;;  %v8458_v26 = vsub.f32 %v818_v2, %v670_v24  ;;  %v7430_v22 = vld [vmem:[%s9388_s22] ss:$0 sm:$0xff] }
  0xad   : > { %v660_v27 = vpop.xlane.xlu0 %659  ;;  %v666_v29 = vpop.xlane.xlu1 %665 }
  0xae   : > { %v669_v28 = vmul.f32 0.03125, %v660_v27  ;;  %v676_v30 = vmul.f32 %v8456_v25, %v8456_v25  ;;  %v671_v31 = vmul.f32 0.03125, %v666_v29  ;;  %v678_v32 = vmul.f32 %v8458_v26, %v8458_v26 }
  0xb0   : > { %v8464_v33 = vsub.f32 %v817_v1, %v669_v28  ;;  %v680_v34 = vsel %vm654_vm0, %v676_v30, 0.0  ;;  %v8467_v35 = vsub.f32 %v819_v4, %v671_v31  ;;  %v686_v39 = vsel %vm654_vm0, %v678_v32, 0.0 }
  0xb1   : > { %681 = vadd.xlane.f32.xlu0 %v680_v34  ;;  %v740_v36 = vpop.xlane.xlu0 %739  ;;  %v743_v38 = vpop.xlane.xlu1 %742 }
  0xb2   : > { %v750_v37 = vmul.f32 0.03125, %v740_v36  ;;  %v677_v40 = vmul.f32 %v8464_v33, %v8464_v33  ;;  %v751_v41 = vmul.f32 0.03125, %v743_v38  ;;  %v679_v42 = vmul.f32 %v8467_v35, %v8467_v35 }
  0xb4   : > { %v8474_v43 = vsub.f32 %v734_v13, %v750_v37  ;;  %v683_v44 = vsel %vm654_vm0, %v677_v40, 0.0  ;;  %v8477_v45 = vsub.f32 %v735_v14, %v751_v41  ;;  %v689_v49 = vsel %vm654_vm0, %v679_v42, 0.0  ;;  %v7431_v40 = vld [vmem:[%s9389_s24] ss:$0 sm:$0xff] }
  0xb5   : > { %687 = vadd.xlane.f32.xlu0 %v686_v39  ;;  %684 = vadd.xlane.f32.xlu1 %v683_v44  ;;  %v746_v46 = vpop.xlane.xlu0 %745  ;;  %v749_v48 = vpop.xlane.xlu1 %748 }
  0xb6   : > { %v752_v47 = vmul.f32 0.03125, %v746_v46  ;;  %v758_v50 = vmul.f32 %v8474_v43, %v8474_v43  ;;  %v753_v51 = vmul.f32 0.03125, %v749_v48  ;;  %v759_v52 = vmul.f32 %v8477_v45, %v8477_v45 }
  0xb8   : > { %v8484_v53 = vsub.f32 %v736_v17, %v752_v47  ;;  %v762_v54 = vsel %vm654_vm0, %v758_v50, 0.0  ;;  %v8487_v55 = vsub.f32 %v737_v18, %v753_v51  ;;  %v765_v56 = vsel %vm654_vm0, %v759_v52, 0.0  ;;  %v7429_v17 = vld [vmem:[%s9361_s2] ss:$0 sm:$0xff] }
  0xb9   : > { %690 = vadd.xlane.f32.xlu1 %v689_v49  ;;  %763 = vadd.xlane.f32.xlu0 %v762_v54 }
  0xba   : > { %v760_v57 = vmul.f32 %v8484_v53, %v8484_v53  ;;  %v761_v58 = vmul.f32 %v8487_v55, %v8487_v55 }
  0xbc   : > { %v768_v59 = vsel %vm654_vm0, %v760_v57, 0.0  ;;  %v771_v60 = vsel %vm654_vm0, %v761_v58, 0.0 }
  0xbd   : > { %766 = vadd.xlane.f32.xlu1 %v765_v56  ;;  %769 = vadd.xlane.f32.xlu0 %v768_v59 }
  0xc1   : > { %772 = vadd.xlane.f32.xlu1 %v771_v60 }
 0x13e   : > { %v682_v61 = vpop.xlane.xlu0 %681 }
 0x13f   : > { %v692_v62 = vmul.f32 0.03125, %v682_v61 }
 0x141   : > { %v696_v63 = vadd.f32 1e-05, %v692_v62 }
 0x142   : > { %v685_v0 = vpop.xlane.xlu1 %684  ;;  %v688_v1 = vpop.xlane.xlu0 %687 }
 0x143   : > { %8222 = vrsqrt.f32 %v696_v63  ;;  %v693_v2 = vmul.f32 0.03125, %v685_v0  ;;  %v694_v3 = vmul.f32 0.03125, %v688_v1 }
 0x145   : > { %v697_v4 = vadd.f32 1e-05, %v693_v2  ;;  %v698_v5 = vadd.f32 1e-05, %v694_v3 }
 0x146   : > { %v691_v6 = vpop.xlane.xlu1 %690  ;;  %v764_v7 = vpop.xlane.xlu0 %763 }
 0x147   : > { %8224 = vrsqrt.f32 %v697_v4  ;;  %v695_v8 = vmul.f32 0.03125, %v691_v6  ;;  %v774_v9 = vmul.f32 0.03125, %v764_v7 }
 0x148   : > { %8226 = vrsqrt.f32 %v698_v5 }
 0x149   : > { %v699_v10 = vadd.f32 1e-05, %v695_v8  ;;  %v778_v11 = vadd.f32 1e-05, %v774_v9 }
 0x14a   : > { %v767_v12 = vpop.xlane.xlu1 %766  ;;  %v770_v13 = vpop.xlane.xlu0 %769 }
 0x14b   : > { %8228 = vrsqrt.f32 %v699_v10  ;;  %v775_v14 = vmul.f32 0.03125, %v767_v12  ;;  %v776_v15 = vmul.f32 0.03125, %v770_v13 }
 0x14c   : > { %8230 = vrsqrt.f32 %v778_v11 }
 0x14d   : > { %v8223_v16 = vpop.eup %8222  ;;  %v779_v18 = vadd.f32 1e-05, %v775_v14  ;;  %v780_v19 = vadd.f32 1e-05, %v776_v15 }
 0x14e   : > { %v704_v20 = vmul.f32 %v8223_v16, %v8456_v25  ;;  %v773_v21 = vpop.xlane.xlu1 %772 }
 0x14f   : > { %8232 = vrsqrt.f32 %v779_v18  ;;  %v777_v23 = vmul.f32 0.03125, %v773_v21 }
 0x150   : > { %v715_v24 = vmul.f32 %v7429_v17, %v704_v20  ;;  %8234 = vrsqrt.f32 %v780_v19 }
 0x151   : > { %v8225_v27 = vpop.eup %8224  ;;  %v781_v28 = vadd.f32 1e-05, %v777_v23 }
 0x152   : > { %v8227_v29 = vpop.eup %8226  ;;  %v726_v30 = vadd.f32 %v7430_v22, %v715_v24  ;;  %v705_v31 = vmul.f32 %v8225_v27, %v8464_v33  ;;  %v7432_v33 = vld [vmem:[%s9390_s27] ss:$0 sm:$0xff] }
 0x153   : > { %v706_v32 = vmul.f32 %v8227_v29, %v8458_v26  ;;  %8236 = vrsqrt.f32 %v781_v28 }
 0x154   : > { %730 = vst.msk [vmem:[#allocation2] sm:$0xff] %vm654_vm0, %v726_v30  ;;  %v716_v25 = vmul.f32 %v7429_v17, %v705_v31 }
 0x155   : > { %v8229_v34 = vpop.eup %8228  ;;  %v717_v36 = vmul.f32 %v7429_v17, %v706_v32 }
 0x156   : > { %v8231_v37 = vpop.eup %8230  ;;  %v727_v38 = vadd.f32 %v7430_v22, %v716_v25  ;;  %v707_v39 = vmul.f32 %v8229_v34, %v8467_v35 }
 0x157   : > { %v728_v41 = vadd.f32 %v7430_v22, %v717_v36  ;;  %v786_v42 = vmul.f32 %v8231_v37, %v8474_v43 }
 0x158   : > { %731 = vst.msk [vmem:[#allocation2 + $0x8] sm:$0xff] %vm654_vm0, %v727_v38  ;;  %v718_v26 = vmul.f32 %v7429_v17, %v707_v39 }
 0x159   : > { %v8233_v44 = vpop.eup %8232  ;;  %732 = vst.msk [vmem:[#allocation2 + $0x10] sm:$0xff] %vm654_vm0, %v728_v41  ;;  %v797_v46 = vmul.f32 %v7431_v40, %v786_v42 }
 0x15a   : > { %v8235_v47 = vpop.eup %8234  ;;  %v729_v35 = vadd.f32 %v7430_v22, %v718_v26  ;;  %v787_v48 = vmul.f32 %v8233_v44, %v8477_v45 }
 0x15b   : > { %v808_v49 = vadd.f32 %v7432_v33, %v797_v46  ;;  %v788_v50 = vmul.f32 %v8235_v47, %v8484_v53 }
 0x15c   : > { %733 = vst.msk [vmem:[#allocation2 + $0x18] sm:$0xff] %vm654_vm0, %v729_v35  ;;  %v798_v43 = vmul.f32 %v7431_v40, %v787_v48 }
 0x15d   : > { %v8237_v51 = vpop.eup %8236  ;;  %812 = vst.msk [vmem:[#allocation3] sm:$0xff] %vm654_vm0, %v808_v49  ;;  %v799_v52 = vmul.f32 %v7431_v40, %v788_v50 }
 0x15e   : > { %v809_v54 = vadd.f32 %v7432_v33, %v798_v43  ;;  %v789_v56 = vmul.f32 %v8237_v51, %v8487_v55 }
 0x15f   : > { %v810_v57 = vadd.f32 %v7432_v33, %v799_v52 }
 0x160   : > { %813 = vst.msk [vmem:[#allocation3 + $0x8] sm:$0xff] %vm654_vm0, %v809_v54  ;;  %v800_v58 = vmul.f32 %v7431_v40, %v789_v56 }
 0x161   : > { %814 = vst.msk [vmem:[#allocation3 + $0x10] sm:$0xff] %vm654_vm0, %v810_v57 }
 0x162   : > { %v811_v45 = vadd.f32 %v7432_v33, %v800_v58 }
 0x164   : > { %815 = vst.msk [vmem:[#allocation3 + $0x18] sm:$0xff] %vm654_vm0, %v811_v45 }
 0x165 PF: > { %v843_v53 = vld [vmem:[%s8368_s30] sm:$0xff]  ;;  %v844_v55 = vld [vmem:[%s8368_s30 + $0x8] sm:$0xff]  ;;  %v845_v59 = vld [vmem:[%s8368_s30 + $0x10] sm:$0xff]  ;;  %vm854_vm1 = vcmask 261120   ;;  %v8262_v19 = vmov 0.0   ;;  %vm1222_vm2 = vcmask 64512   ;;  %v1177_v24 = vlaneseq  ;;  %s9392_s21 = scalar_lea.vmem %s9368_s9, %s8358_s23 }
 0x166   : > { %v8183_v60 = vpack.c.bf16 %v844_v55, %v843_v53  ;;  %v846_v61 = vld [vmem:[%s8368_s30 + $0x18] sm:$0xff]  ;;  %v835_v62 = vld [vmem:[#allocation2] sm:$0xff]  ;;  %v953_v1 = vld [vmem:[%s8373_s18 + $0x8] sm:$0xff]  ;;  %vm8263_vm3 = vmmov 0   ;;  %v8264_v22 = vmov 1966171168  }
 0x167   : > { %v8187_v63 = vpack.c.bf16 %v846_v61, %v845_v59  ;;  %7781 = vmatprep.mubr.msk.f32.mxu0 %vm854_vm1, %v835_v62  ;;  %v952_v0 = vld [vmem:[%s8373_s18] sm:$0xff]  ;;  %v954_v2 = vld [vmem:[%s8373_s18 + $0x10] sm:$0xff]  ;;  %v955_v4 = vld [vmem:[%s8373_s18 + $0x18] sm:$0xff]  ;;  %v1175_v23 = vunpack.c.l.s4 %v8264_v22  ;;  %v1178_v28 = vshrl.u32 %v1177_v24, 7  ;;  %s9391_s18 = scalar_lea.vmem %s9366_s7, %s8358_s23  ;;  %vm2482_vm4 = vcmask 1041409  }
 0x168   : > { %8184 = vmatprep.subr.bf16.mxu0 %v8183_v60  ;;  %v8191_v3 = vpack.c.bf16 %v953_v1, %v952_v0  ;;  %v839_v5 = vld [vmem:[#allocation3] sm:$0xff]  ;;  %v8195_v6 = vpack.c.bf16 %v955_v4, %v954_v2  ;;  %v1061_v8 = vld [vmem:[%s8382_s3 + $0x8] sm:$0xff]  ;;  %v1062_v11 = vld [vmem:[%s8382_s3 + $0x10] sm:$0xff]  ;;  %vm2485_vm5 = vcmask 1042434   ;;  %vm2488_vm6 = vcmask 1043459  }
 0x169   : > { %8186 = vmatpush3.bf16.msra.mxu0 %v8183_v60  ;;  %7795 = vmatprep.mubr.msk.f32.mxu1 %vm854_vm1, %v839_v5  ;;  %v1060_v7 = vld [vmem:[%s8382_s3] sm:$0xff]  ;;  %v836_v10 = vld [vmem:[#allocation2 + $0x8] sm:$0xff]  ;;  %v1063_v12 = vld [vmem:[%s8382_s3 + $0x18] sm:$0xff]  ;;  %v1176_v27 = vunpack.c.0.s8 %v1175_v23  ;;  %vm2491_vm7 = vcmask 1044484   ;;  %vm2494_vm8 = vcmask 1045509   ;;  %vm2497_vm9 = vcmask 1046534  }
 0x16a   : > { %8188 = vmatprep.subr.bf16.mxu0 %v8187_v63  ;;  %8192 = vmatprep.subr.bf16.mxu1 %v8191_v3  ;;  %v8199_v9 = vpack.c.bf16 %v1061_v8, %v1060_v7  ;;  %v837_v13 = vld [vmem:[#allocation2 + $0x10] sm:$0xff]  ;;  %v840_v14 = vld [vmem:[#allocation3 + $0x8] sm:$0xff]  ;;  %v8203_v16 = vpack.c.bf16 %v1063_v12, %v1062_v11  ;;  %v838_v17 = vld [vmem:[#allocation2 + $0x18] sm:$0xff]  ;;  %vm2500_vm10 = vcmask 1047559  }
 0x16b   : > { %8194 = vmatpush3.bf16.msra.mxu1 %v8191_v3  ;;  %v841_v15 = vld [vmem:[#allocation3 + $0x10] sm:$0xff]  ;;  %v842_v18 = vld [vmem:[#allocation3 + $0x18] sm:$0xff]  ;;  %v8550_v20 = vld [vmem:[%s8392_s0] sm:$0xff]  ;;  %v8575_v31 = vsub.s32 %v1176_v27, %v1178_v28 }
 0x16c   : > { %8196 = vmatprep.subr.bf16.mxu1 %v8195_v6  ;;  %v8556_v21 = vld [vmem:[%s8392_s0 + $0x10] sm:$0xff]  ;;  %v8571_v29 = vld [vmem:[%s9391_s18] ss:$0 sm:$0xff]  ;;  %v8590_v26 = vld [vmem:[%s8392_s0 + $0x8] sm:$0xff] }
 0x16d   : > { %8190 = vmatpush3.bf16.msra.mxu0 %v8187_v63  ;;  %v8599_v44 = vld [vmem:[%s9392_s21] ss:$0 sm:$0xff]  ;;  %v8616_v50 = vld [vmem:[%s8392_s0 + $0x18] sm:$0xff]  ;;  %v8629_v52 = vld [vmem:[%s8392_s0 + $0x30] sm:$0xff] }
 0x16e   : > { %8200 = vmatprep.subr.bf16.mxu0 %v8199_v9  ;;  %v8606_v48 = vld [vmem:[%s8392_s0 + $0x20] sm:$0xff]  ;;  %v8639_v58 = vld [vmem:[%s8392_s0 + $0x28] sm:$0xff]  ;;  %v8668_v1 = vld [vmem:[%s8392_s0 + $0x38] sm:$0xff] }
 0x16f   : > { %8198 = vmatpush3.bf16.msra.mxu1 %v8195_v6  ;;  %v8648_v55 = vld [vmem:[%s8397_s19] sm:$0xff]  ;;  %v8684_v6 = vld [vmem:[%s8397_s19 + $0x10] sm:$0xff]  ;;  %v8731_v24 = vld [vmem:[%s8397_s19 + $0x18] sm:$0xff] }
 0x170   : > { %7782 = vmatmul.mubr.msk.f32.vlgmr.msra.gmra.mrb[0].mxu0 %vm854_vm1, %v836_v10  ;;  %8207 = vmatprep.subr.bf16.mxu1 %v8199_v9  ;;  %v8719_v22 = vld [vmem:[%s8397_s19 + $0x20] sm:$0xff] }
 0x171   : > { %7784 = vmatprep.mubr.msk.f32.mxu0 %vm854_vm1, %v837_v13  ;;  %8202 = vmatpush3.bf16.msra.mxu0 %v8199_v9  ;;  %v8701_v13 = vld [vmem:[%s8397_s19 + $0x8] sm:$0xff] }
 0x172   : > { %7796 = vmatmul.mubr.msk.f32.vlgmr.msra.gmra.mrb[0].mxu1 %vm854_vm1, %v840_v14  ;;  %8204 = vmatprep.subr.bf16.mxu0 %v8203_v16 }
 0x173   : > { %7798 = vmatprep.mubr.msk.f32.mxu1 %vm854_vm1, %v841_v15  ;;  %8209 = vmatpush3.bf16.msra.mxu1 %v8199_v9 }
 0x174   : > { %7785 = vmatmul.mubr.msk.f32.gmra.mrb[2].mxu0 %vm854_vm1, %v838_v17  ;;  %8208 = vmatprep.subr.bf16.mxu1 %v8203_v16 }
 0x175   : > { %8206 = vmatpush3.bf16.msra.mxu0 %v8203_v16  ;;  %7809 = vmatprep.mubr.msk.f32.mxu0 %vm854_vm1, %v839_v5 }
 0x176   : > { %7799 = vmatmul.mubr.msk.f32.gmra.mrb[2].mxu1 %vm854_vm1, %v842_v18  ;;  %7825 = vmatprep.subr.mxu0 %v8262_v19 }
 0x177   : > { %8210 = vmatpush3.bf16.msra.mxu1 %v8203_v16  ;;  %7812 = vmatprep.mubr.msk.f32.mxu1 %vm854_vm1, %v841_v15 }
 0x178   : > { %7810 = vmatmul.mubr.msk.f32.vlgmr.msra.gmra.mrb[4].mxu0 %vm854_vm1, %v840_v14  ;;  %7815 = vmatprep.subr.mxu1 %v8262_v19 }
 0x179   : > { %7827 = vmatprep.mubr.msk.f32.mxu0 %vm8263_vm3, %v8262_v19 }
 0x17a   : > { %7813 = vmatmul.mubr.msk.f32.vlgmr.msra.gmra.mrb[4].mxu1 %vm854_vm1, %v842_v18 }
 0x17b   : > { %7817 = vmatprep.mubr.msk.f32.mxu1 %vm8263_vm3, %v8262_v19 }
 0x17e   : > { %7826 = vmatpush3.xpose.msk.msra.mxu0 %vm1222_vm2, %v8556_v21 }
 0x17f   : > { %7835 = vmatprep.subr.mxu0 %v8262_v19 }
 0x180   : > { %7816 = vmatpush3.xpose.msk.msra.mxu1 %vm1222_vm2, %v8550_v20 }
 0x181   : > { %7820 = vmatprep.subr.mxu1 %v8262_v19 }
 0x243   : > { %v8573_v30 = vpop.f32.mrb[0].mxu0 }
 0x244   : > { %v933_v32 = vpop.f32.mrb[1].mxu0  ;;  %v8696_v10 = vadd.f32 %v8573_v30, %v8571_v29 }
 0x245   : > { %v8578_v25 = vadd.f32 %v8571_v29, %v933_v32  ;;  %v8580_v34 = vpop.f32.mrb[0].mxu1  ;;  %v8754_v32 = vld [vmem:[%s631_s28] ss:$0 sm:$0xff] }
 0x246   : > { %v1041_v36 = vpop.f32.mrb[1].mxu1  ;;  %v8735_v27 = vrot.slane %v8696_v10, %v8575_v31 }
 0x247   : > { %v1173_v37 = vcombine.high %v8578_v25, %v8578_v25  ;;  %v1180_v38 = vrot.slane %v8578_v25, %v8575_v31  ;;  %v7786_v39 = vpop.f32.mrb[2].mxu0  ;;  %v8619_v43 = vadd.f32 %v8599_v44, %v1041_v36 }
 0x248   : > { %v8586_v40 = vpop.f32.mrb[3].mxu0  ;;  %v8659_v61 = vadd.f32 %v7786_v39, %v8571_v29  ;;  %v8761_v39 = vld [vmem:[%s8397_s19 + $0x30] sm:$0xff] }
 0x249   : > { %v1188_v41 = vcombine.high %v1180_v38, %v1180_v38  ;;  %v1196_v42 = vrot.slane %v1180_v38, %v8575_v31  ;;  %v8592_v33 = vpop.f32.mrb[2].mxu1  ;;  %v1187_v47 = vrot.slane %v1173_v37, %v8575_v31  ;;  %v1831_v57 = vrot.slane %v8619_v43, %v8575_v31 }
 0x24a   : > { %v8601_v46 = vpop.f32.mrb[3].mxu1  ;;  %v1824_v53 = vcombine.high %v8619_v43, %v8619_v43  ;;  %v5150_v2 = vcombine.high %v8659_v61, %v8659_v61  ;;  %v5157_v3 = vrot.slane %v8659_v61, %v8575_v31  ;;  %v8743_v28 = vadd.f32 %v8592_v33, %v8599_v44 }
 0x24b   : > { %v1218_v35 = vcombine.high %v1196_v42, %v1196_v42  ;;  %7818 = vmatmul.mubr.msk.f32.vlgmr.msra.gmra.mrb[6].mxu1 %vm1222_vm2, %v1196_v42  ;;  %v1210_v49 = vrot.slane %v1188_v41, %v8575_v31  ;;  %v1203_v51 = vrot.slane %v1187_v47, %v8575_v31  ;;  %v1189_v54 = vcombine.high %v1187_v47, %v1187_v47  ;;  %v8652_v60 = vpop.f32.mrb[4].mxu0 }
 0x24c   : > { %7821 = vmatpush3.xpose.msk.msra.mxu1 %vm1222_vm2, %v8590_v26  ;;  %7822 = vmatprep.mubr.msk.f32.mxu1 %vm8263_vm3, %v8262_v19  ;;  %v1847_v0 = vrot.slane %v1831_v57, %v8575_v31  ;;  %v8679_v4 = vrot.slane %v1824_v53, %v8575_v31  ;;  %v1839_v5 = vcombine.high %v1831_v57, %v1831_v57 }
 0x24d   : > { %7828 = vmatmul.mubr.msk.f32.vlgmr.msra.gmra.mrb[6].mxu0 %vm1222_vm2, %v1218_v35  ;;  %7830 = vmatprep.subr.mxu1 %v8262_v19  ;;  %v1220_v56 = vcombine.high %v1210_v49, %v1210_v49  ;;  %v1219_v45 = vcombine.high %v1203_v51, %v1203_v51  ;;  %v8650_v59 = vpop.f32.mrb[4].mxu1  ;;  %v1217_v63 = vrot.slane %v1189_v54, %v8575_v31 }
 0x24e   : > { %7836 = vmatpush3.xpose.msk.msra.mxu0 %vm1222_vm2, %v8606_v48  ;;  %7837 = vmatprep.mubr.msk.f32.mxu0 %vm8263_vm3, %v8262_v19  ;;  %v8661_v62 = vpop.f32.mrb[5].mxu1  ;;  %v5164_v7 = vrot.slane %v5150_v2, %v8575_v31  ;;  %v5165_v8 = vcombine.high %v5157_v3, %v5157_v3  ;;  %v8692_v9 = vrot.slane %v5157_v3, %v8575_v31  ;;  %v8816_v2 = vld [vmem:[%s8397_s19 + $0x38] sm:$0xff] }
 0x24f   : > { %7823 = vmatmul.mubr.msk.f32.vlgmr.msra.gmra.mrb[8].mxu1 %vm1222_vm2, %v1210_v49  ;;  %7845 = vmatprep.subr.mxu0 %v8262_v19  ;;  %v1869_v11 = vcombine.high %v1847_v0, %v1847_v0  ;;  %v1221_v12 = vcombine.high %v1217_v63, %v1217_v63  ;;  %v1854_v17 = vrot.slane %v8679_v4, %v8575_v31 }
 0x250   : > { %7831 = vmatpush3.xpose.msk.msra.mxu1 %vm1222_vm2, %v8616_v50  ;;  %7832 = vmatprep.mubr.msk.f32.mxu1 %vm8263_vm3, %v8262_v19  ;;  %v5166_v14 = vcombine.high %v5164_v7, %v5164_v7  ;;  %v8708_v15 = vrot.slane %v5164_v7, %v8575_v31  ;;  %v8711_v16 = vrot.slane %v5165_v8, %v8575_v31 }
 0x251   : > { %7838 = vmatmul.mubr.msk.f32.vlgmr.msra.gmra.mrb[8].mxu0 %vm1222_vm2, %v1203_v51  ;;  %7840 = vmatprep.subr.mxu1 %v8262_v19  ;;  %v1861_v18 = vrot.slane %v1839_v5, %v8575_v31  ;;  %v8747_v30 = vadd.f32 %v8599_v44, %v8601_v46  ;;  %v1840_v36 = vcombine.high %v8679_v4, %v8679_v4  ;;  %v8776_v46 = vld [vmem:[%s8397_s19 + $0x28] sm:$0xff] }
 0x252   : > { %7846 = vmatpush3.xpose.msk.msra.mxu0 %vm1222_vm2, %v8629_v52  ;;  %7847 = vmatprep.mubr.msk.f32.mxu0 %vm8263_vm3, %v8262_v19  ;;  %v8726_v23 = vrot.slane %v5166_v14, %v8575_v31  ;;  %v1870_v37 = vcombine.high %v1854_v17, %v1854_v17  ;;  %v5776_v41 = vcombine.high %v8743_v28, %v8743_v28 }
 0x253   : > { %7833 = vmatmul.mubr.msk.f32.vlgmr.msra.gmra.mrb[10].mxu1 %vm1222_vm2, %v1220_v56  ;;  %7855 = vmatprep.subr.mxu0 %v8262_v19  ;;  %v1871_v38 = vcombine.high %v1861_v18, %v1861_v18  ;;  %v5783_v42 = vrot.slane %v8743_v28, %v8575_v31  ;;  %v4469_v33 = vcombine.high %v8747_v30, %v8747_v30 }
 0x254   : > { %7841 = vmatpush3.xpose.msk.msra.mxu1 %vm1222_vm2, %v8639_v58  ;;  %7842 = vmatprep.mubr.msk.f32.mxu1 %vm8263_vm3, %v8262_v19  ;;  %v4476_v47 = vrot.slane %v8747_v30, %v8575_v31  ;;  %v8782_v35 = vadd.f32 %v8650_v59, %v8754_v32  ;;  %v8786_v49 = vadd.f32 %v8754_v32, %v8661_v62 }
 0x255   : > { %7848 = vmatmul.mubr.msk.f32.vlgmr.msra.gmra.mrb[10].mxu0 %vm1222_vm2, %v1219_v45  ;;  %7850 = vmatprep.subr.mxu1 %v8262_v19  ;;  %v5790_v51 = vrot.slane %v5776_v41, %v8575_v31  ;;  %v5791_v54 = vcombine.high %v5783_v42, %v5783_v42  ;;  %v8794_v56 = vrot.slane %v5783_v42, %v8575_v31 }
 0x256   : > { %7856 = vmatpush3.xpose.msk.msra.mxu0 %vm1222_vm2, %v8648_v55  ;;  %7857 = vmatprep.mubr.msk.f32.mxu0 %vm8263_vm3, %v8262_v19  ;;  %v4483_v57 = vrot.slane %v4469_v33, %v8575_v31  ;;  %v4484_v45 = vcombine.high %v4476_v47, %v4476_v47  ;;  %v8800_v53 = vrot.slane %v4476_v47, %v8575_v31 }
 0x257   : > { %7843 = vmatmul.mubr.msk.f32.vlgmr.msra.gmra.mrb[12].mxu1 %vm1222_vm2, %v1217_v63  ;;  %7865 = vmatprep.subr.mxu0 %v8262_v19  ;;  %v5792_v59 = vcombine.high %v5790_v51, %v5790_v51  ;;  %v8807_v62 = vrot.slane %v5790_v51, %v8575_v31  ;;  %v8810_v63 = vrot.slane %v5791_v54, %v8575_v31 }
 0x258   : > { %7851 = vmatpush3.xpose.msk.msra.mxu1 %vm1222_vm2, %v8668_v1  ;;  %7852 = vmatprep.mubr.msk.f32.mxu1 %vm8263_vm3, %v8262_v19  ;;  %v4485_v3 = vcombine.high %v4483_v57, %v4483_v57  ;;  %v8819_v4 = vrot.slane %v4483_v57, %v8575_v31  ;;  %v2536_v5 = vcombine.high %v8696_v10, %v8696_v10 }
 0x259   : > { %7858 = vmatmul.mubr.msk.f32.vlgmr.msra.gmra.mrb[12].mxu0 %vm1222_vm2, %v1847_v0  ;;  %7860 = vmatprep.subr.mxu1 %v8262_v19  ;;  %v1868_v0 = vrot.slane %v1840_v36, %v8575_v31  ;;  %v8828_v7 = vrot.slane %v5792_v59, %v8575_v31  ;;  %v2559_v8 = vrot.slane %v8735_v27, %v8575_v31 }
 0x25a   : > { %7866 = vmatpush3.xpose.msk.msra.mxu0 %vm1222_vm2, %v8684_v6  ;;  %7867 = vmatprep.mubr.msk.f32.mxu0 %vm8263_vm3, %v8262_v19  ;;  %v2551_v14 = vcombine.high %v8735_v27, %v8735_v27 }
 0x25b   : > { %7853 = vmatmul.mubr.msk.f32.vlgmr.msra.gmra.mrb[14].mxu1 %vm1222_vm2, %v1221_v12  ;;  %7875 = vmatprep.subr.mxu0 %v8262_v19  ;;  %v8838_v12 = vrot.slane %v4485_v3, %v8575_v31  ;;  %v2581_v36 = vcombine.high %v2559_v8, %v2559_v8  ;;  %v8925_v3 = vadd.f32 %v8571_v29, %v8586_v40 }
 0x25c   : > { %7861 = vmatpush3.xpose.msk.msra.mxu1 %vm1222_vm2, %v8701_v13  ;;  %7862 = vmatprep.mubr.msk.f32.mxu1 %vm8263_vm3, %v8262_v19  ;;  %v2573_v27 = vrot.slane %v2551_v14, %v8575_v31 }
 0x25d   : > { %7868 = vmatmul.mubr.msk.f32.vlgmr.msra.gmra.mrb[14].mxu0 %vm1222_vm2, %v1869_v11  ;;  %7870 = vmatprep.subr.mxu1 %v8262_v19  ;;  %v8835_v11 = vrot.slane %v4484_v45, %v8575_v31 }
 0x25e   : > { %7876 = vmatpush3.xpose.msk.msra.mxu0 %vm1222_vm2, %v8719_v22  ;;  %7877 = vmatprep.mubr.msk.f32.mxu0 %vm8263_vm3, %v8262_v19  ;;  %v2583_v42 = vcombine.high %v2573_v27, %v2573_v27 }
 0x25f   : > { %7863 = vmatmul.mubr.msk.f32.vlgmr.msra.gmra.mrb[16].mxu1 %vm1222_vm2, %v1861_v18  ;;  %7885 = vmatprep.subr.mxu0 %v8262_v19  ;;  %v2550_v18 = vrot.slane %v2536_v5, %v8575_v31 }
 0x260   : > { %7871 = vmatpush3.xpose.msk.msra.mxu1 %vm1222_vm2, %v8731_v24  ;;  %7872 = vmatprep.mubr.msk.f32.mxu1 %vm8263_vm3, %v8262_v19 }
 0x261   : > { %7878 = vmatmul.mubr.msk.f32.vlgmr.msra.gmra.mrb[16].mxu0 %vm1222_vm2, %v1854_v17  ;;  %7880 = vmatprep.subr.mxu1 %v8262_v19  ;;  %v1872_v17 = vcombine.high %v1868_v0, %v1868_v0  ;;  %v2552_v41 = vcombine.high %v2550_v18, %v2550_v18 }
 0x262   : > { %7886 = vmatpush3.xpose.msk.msra.mxu0 %vm1222_vm2, %v8761_v39  ;;  %7887 = vmatprep.mubr.msk.f32.mxu0 %vm8263_vm3, %v8262_v19 }
 0x263   : > { %7873 = vmatmul.mubr.msk.f32.vlgmr.msra.gmra.mrb[18].mxu1 %vm1222_vm2, %v1871_v38  ;;  %7895 = vmatprep.subr.mxu0 %v8262_v19  ;;  %v8869_v38 = vadd.f32 %v8580_v34, %v8599_v44  ;;  %v2580_v33 = vrot.slane %v2552_v41, %v8575_v31 }
 0x264   : > { %7881 = vmatpush3.xpose.msk.msra.mxu1 %vm1222_vm2, %v8776_v46  ;;  %7882 = vmatprep.mubr.msk.f32.mxu1 %vm8263_vm3, %v8262_v19 }
 0x265   : > { %7888 = vmatmul.mubr.msk.f32.vlgmr.msra.gmra.mrb[18].mxu0 %vm1222_vm2, %v1870_v37  ;;  %7890 = vmatprep.subr.mxu1 %v8262_v19  ;;  %v2566_v37 = vrot.slane %v2550_v18, %v8575_v31  ;;  %v3169_v44 = vrot.slane %v8869_v38, %v8575_v31  ;;  %v3162_v47 = vcombine.high %v8869_v38, %v8869_v38 }
 0x266   : > { %7896 = vmatpush3.xpose.msk.msra.mxu0 %vm1222_vm2, %v8550_v20  ;;  %7897 = vmatprep.mubr.msk.f32.mxu0 %vm8263_vm3, %v8262_v19  ;;  %v2584_v57 = vcombine.high %v2580_v33, %v2580_v33 }
 0x267   : > { %7883 = vmatmul.mubr.msk.f32.vlgmr.msra.gmra.mrb[20].mxu1 %vm1222_vm2, %v1868_v0  ;;  %7905 = vmatprep.subr.mxu0 %v8262_v19  ;;  %v2582_v34 = vcombine.high %v2566_v37, %v2566_v37  ;;  %v3185_v51 = vrot.slane %v3169_v44, %v8575_v31  ;;  %v3177_v54 = vcombine.high %v3169_v44, %v3169_v44 }
 0x268   : > { %7891 = vmatpush3.xpose.msk.msra.mxu1 %vm1222_vm2, %v8816_v2  ;;  %7892 = vmatprep.mubr.msk.f32.mxu1 %vm8263_vm3, %v8262_v19  ;;  %v3176_v45 = vrot.slane %v3162_v47, %v8575_v31 }
 0x269   : > { %7898 = vmatmul.mubr.msk.f32.vlgmr.msra.gmra.mrb[20].mxu0 %vm1222_vm2, %v2559_v8  ;;  %7900 = vmatprep.subr.mxu1 %v8262_v19  ;;  %v3207_v59 = vcombine.high %v3185_v51, %v3185_v51  ;;  %v3199_v0 = vrot.slane %v3177_v54, %v8575_v31  ;;  %v3850_v8 = vrot.slane %v8925_v3, %v8575_v31 }
 0x26a   : > { %7906 = vmatpush3.xpose.msk.msra.mxu0 %vm1222_vm2, %v8556_v21  ;;  %7907 = vmatprep.mubr.msk.f32.mxu0 %vm8263_vm3, %v8262_v19  ;;  %v3192_v5 = vrot.slane %v3176_v45, %v8575_v31  ;;  %v3178_v29 = vcombine.high %v3176_v45, %v3176_v45  ;;  %v4516_v45 = vcombine.high %v8835_v11, %v8835_v11 }
 0x26b   : > { %7893 = vmatmul.mubr.msk.f32.vlgmr.msra.gmra.mrb[22].mxu1 %vm1222_vm2, %v1872_v17  ;;  %7915 = vmatprep.subr.mxu0 %v8262_v19  ;;  %v3209_v40 = vcombine.high %v3199_v0, %v3199_v0  ;;  %v3866_v18 = vrot.slane %v3850_v8, %v8575_v31 }
 0x26c   : > { %7901 = vmatpush3.xpose.msk.msra.mxu1 %vm1222_vm2, %v8590_v26  ;;  %7902 = vmatprep.mubr.msk.f32.mxu1 %vm8263_vm3, %v8262_v19  ;;  %v3208_v14 = vcombine.high %v3192_v5, %v3192_v5  ;;  %v3206_v17 = vrot.slane %v3178_v29, %v8575_v31 }
 0x26d   : > { %7908 = vmatmul.mubr.msk.f32.vlgmr.msra.gmra.mrb[22].mxu0 %vm1222_vm2, %v2581_v36  ;;  %7910 = vmatprep.subr.mxu1 %v8262_v19  ;;  %v3843_v36 = vcombine.high %v8925_v3, %v8925_v3 }
 0x26e   : > { %7916 = vmatpush3.xpose.msk.msra.mxu0 %vm1222_vm2, %v8606_v48  ;;  %7917 = vmatprep.mubr.msk.f32.mxu0 %vm8263_vm3, %v8262_v19  ;;  %v3210_v41 = vcombine.high %v3206_v17, %v3206_v17 }
 0x26f   : > { %7903 = vmatmul.mubr.msk.f32.vlgmr.msra.gmra.mrb[24].mxu1 %vm1222_vm2, %v2573_v27  ;;  %7925 = vmatprep.subr.mxu0 %v8262_v19  ;;  %v3858_v27 = vcombine.high %v3850_v8, %v3850_v8 }
 0x270   : > { %7911 = vmatpush3.xpose.msk.msra.mxu1 %vm1222_vm2, %v8616_v50  ;;  %7912 = vmatprep.mubr.msk.f32.mxu1 %vm8263_vm3, %v8262_v19 }
 0x271   : > { %7918 = vmatmul.mubr.msk.f32.vlgmr.msra.gmra.mrb[24].mxu0 %vm1222_vm2, %v2566_v37  ;;  %7920 = vmatprep.subr.mxu1 %v8262_v19  ;;  %v3888_v37 = vcombine.high %v3866_v18, %v3866_v18 }
 0x272   : > { %7926 = vmatpush3.xpose.msk.msra.mxu0 %vm1222_vm2, %v8629_v52  ;;  %7927 = vmatprep.mubr.msk.f32.mxu0 %vm8263_vm3, %v8262_v19 }
 0x273   : > { %7913 = vmatmul.mubr.msk.f32.vlgmr.msra.gmra.mrb[26].mxu1 %vm1222_vm2, %v2583_v42  ;;  %7935 = vmatprep.subr.mxu0 %v8262_v19  ;;  %v3857_v42 = vrot.slane %v3843_v36, %v8575_v31 }
 0x274   : > { %7921 = vmatpush3.xpose.msk.msra.mxu1 %vm1222_vm2, %v8639_v58  ;;  %7922 = vmatprep.mubr.msk.f32.mxu1 %vm8263_vm3, %v8262_v19 }
 0x275   : > { %7928 = vmatmul.mubr.msk.f32.vlgmr.msra.gmra.mrb[26].mxu0 %vm1222_vm2, %v2582_v34  ;;  %7930 = vmatprep.subr.mxu1 %v8262_v19  ;;  %v3880_v34 = vrot.slane %v3858_v27, %v8575_v31  ;;  %v3873_v44 = vrot.slane %v3857_v42, %v8575_v31 }
 0x276   : > { %7936 = vmatpush3.xpose.msk.msra.mxu0 %vm1222_vm2, %v8648_v55  ;;  %7937 = vmatprep.mubr.msk.f32.mxu0 %vm8263_vm3, %v8262_v19 }
 0x277   : > { %7923 = vmatmul.mubr.msk.f32.vlgmr.msra.gmra.mrb[28].mxu1 %vm1222_vm2, %v2580_v33  ;;  %7945 = vmatprep.subr.mxu0 %v8262_v19  ;;  %v3859_v33 = vcombine.high %v3857_v42, %v3857_v42  ;;  %v3890_v47 = vcombine.high %v3880_v34, %v3880_v34 }
 0x278   : > { %7931 = vmatpush3.xpose.msk.msra.mxu1 %vm1222_vm2, %v8668_v1  ;;  %7932 = vmatprep.mubr.msk.f32.mxu1 %vm8263_vm3, %v8262_v19 }
 0x279   : > { %7938 = vmatmul.mubr.msk.f32.vlgmr.msra.gmra.mrb[28].mxu0 %vm1222_vm2, %v3185_v51  ;;  %7940 = vmatprep.subr.mxu1 %v8262_v19  ;;  %v3889_v51 = vcombine.high %v3873_v44, %v3873_v44  ;;  %v3887_v54 = vrot.slane %v3859_v33, %v8575_v31  ;;  %v4514_v31 = vcombine.high %v8800_v53, %v8800_v53 }
 0x27a   : > { %7946 = vmatpush3.xpose.msk.msra.mxu0 %vm1222_vm2, %v8684_v6  ;;  %7947 = vmatprep.mubr.msk.f32.mxu0 %vm8263_vm3, %v8262_v19 }
 0x27b   : > { %7933 = vmatmul.mubr.msk.f32.vlgmr.msra.gmra.mrb[30].mxu1 %vm1222_vm2, %v2584_v57  ;;  %7955 = vmatprep.subr.mxu0 %v8262_v19  ;;  %v3891_v57 = vcombine.high %v3887_v54, %v3887_v54 }
 0x27c   : > { %7941 = vmatpush3.xpose.msk.msra.mxu1 %vm1222_vm2, %v8701_v13  ;;  %7942 = vmatprep.mubr.msk.f32.mxu1 %vm8263_vm3, %v8262_v19 }
 0x27d   : > { %7948 = vmatmul.mubr.msk.f32.vlgmr.msra.gmra.mrb[30].mxu0 %vm1222_vm2, %v3207_v59  ;;  %7950 = vmatprep.subr.mxu1 %v8262_v19  ;;  %v4515_v59 = vcombine.high %v8819_v4, %v8819_v4 }
 0x27e   : > { %7956 = vmatpush3.xpose.msk.msra.mxu0 %vm1222_vm2, %v8719_v22  ;;  %7957 = vmatprep.mubr.msk.f32.mxu0 %vm8263_vm3, %v8262_v19 }
 0x27f   : > { %7943 = vmatmul.mubr.msk.f32.vlgmr.msra.gmra.mrb[32].mxu1 %vm1222_vm2, %v3199_v0  ;;  %7965 = vmatprep.subr.mxu0 %v8262_v19 }
 0x280   : > { %7951 = vmatpush3.xpose.msk.msra.mxu1 %vm1222_vm2, %v8731_v24  ;;  %7952 = vmatprep.mubr.msk.f32.mxu1 %vm8263_vm3, %v8262_v19 }
 0x281   : > { %7958 = vmatmul.mubr.msk.f32.vlgmr.msra.gmra.mrb[32].mxu0 %vm1222_vm2, %v3192_v5  ;;  %7960 = vmatprep.subr.mxu1 %v8262_v19 }
 0x282   : > { %7966 = vmatpush3.xpose.msk.msra.mxu0 %vm1222_vm2, %v8761_v39  ;;  %7967 = vmatprep.mubr.msk.f32.mxu0 %vm8263_vm3, %v8262_v19 }
 0x283   : > { %7953 = vmatmul.mubr.msk.f32.vlgmr.msra.gmra.mrb[34].mxu1 %vm1222_vm2, %v3209_v40  ;;  %7975 = vmatprep.subr.mxu0 %v8262_v19 }
 0x284   : > { %7961 = vmatpush3.xpose.msk.msra.mxu1 %vm1222_vm2, %v8776_v46  ;;  %7962 = vmatprep.mubr.msk.f32.mxu1 %vm8263_vm3, %v8262_v19 }
 0x285   : > { %7968 = vmatmul.mubr.msk.f32.vlgmr.msra.gmra.mrb[34].mxu0 %vm1222_vm2, %v3208_v14  ;;  %7970 = vmatprep.subr.mxu1 %v8262_v19 }
 0x286   : > { %7976 = vmatpush3.xpose.msk.msra.mxu0 %vm1222_vm2, %v8550_v20  ;;  %7977 = vmatprep.mubr.msk.f32.mxu0 %vm8263_vm3, %v8262_v19 }
 0x287   : > { %7963 = vmatmul.mubr.msk.f32.vlgmr.msra.gmra.mrb[36].mxu1 %vm1222_vm2, %v3206_v17  ;;  %7985 = vmatprep.subr.mxu0 %v8262_v19 }
 0x288   : > { %7971 = vmatpush3.xpose.msk.msra.mxu1 %vm1222_vm2, %v8816_v2  ;;  %7972 = vmatprep.mubr.msk.f32.mxu1 %vm8263_vm3, %v8262_v19 }
 0x289   : > { %7978 = vmatmul.mubr.msk.f32.vlgmr.msra.gmra.mrb[36].mxu0 %vm1222_vm2, %v3866_v18  ;;  %7980 = vmatprep.subr.mxu1 %v8262_v19 }
 0x28a   : > { %7986 = vmatpush3.xpose.msk.msra.mxu0 %vm1222_vm2, %v8556_v21  ;;  %7987 = vmatprep.mubr.msk.f32.mxu0 %vm8263_vm3, %v8262_v19 }
 0x28b   : > { %7973 = vmatmul.mubr.msk.f32.vlgmr.msra.gmra.mrb[38].mxu1 %vm1222_vm2, %v3210_v41  ;;  %7995 = vmatprep.subr.mxu0 %v8262_v19 }
 0x28c   : > { %7981 = vmatpush3.xpose.msk.msra.mxu1 %vm1222_vm2, %v8590_v26  ;;  %7982 = vmatprep.mubr.msk.f32.mxu1 %vm8263_vm3, %v8262_v19 }
 0x28d   : > { %7988 = vmatmul.mubr.msk.f32.vlgmr.msra.gmra.mrb[38].mxu0 %vm1222_vm2, %v3888_v37  ;;  %7990 = vmatprep.subr.mxu1 %v8262_v19 }
 0x28e   : > { %7996 = vmatpush3.xpose.msk.msra.mxu0 %vm1222_vm2, %v8606_v48  ;;  %7997 = vmatprep.mubr.msk.f32.mxu0 %vm8263_vm3, %v8262_v19 }
 0x28f   : > { %7983 = vmatmul.mubr.msk.f32.vlgmr.msra.gmra.mrb[40].mxu1 %vm1222_vm2, %v3880_v34  ;;  %8005 = vmatprep.subr.mxu0 %v8262_v19 }
 0x290   : > { %7991 = vmatpush3.xpose.msk.msra.mxu1 %vm1222_vm2, %v8616_v50  ;;  %7992 = vmatprep.mubr.msk.f32.mxu1 %vm8263_vm3, %v8262_v19 }
 0x291   : > { %7998 = vmatmul.mubr.msk.f32.vlgmr.msra.gmra.mrb[40].mxu0 %vm1222_vm2, %v3873_v44  ;;  %8000 = vmatprep.subr.mxu1 %v8262_v19 }
 0x292   : > { %8006 = vmatpush3.xpose.msk.msra.mxu0 %vm1222_vm2, %v8629_v52  ;;  %8007 = vmatprep.mubr.msk.f32.mxu0 %vm8263_vm3, %v8262_v19 }
 0x293   : > { %7993 = vmatmul.mubr.msk.f32.vlgmr.msra.gmra.mrb[42].mxu1 %vm1222_vm2, %v3890_v47  ;;  %8015 = vmatprep.subr.mxu0 %v8262_v19 }
 0x294   : > { %8001 = vmatpush3.xpose.msk.msra.mxu1 %vm1222_vm2, %v8639_v58  ;;  %8002 = vmatprep.mubr.msk.f32.mxu1 %vm8263_vm3, %v8262_v19 }
 0x295   : > { %8008 = vmatmul.mubr.msk.f32.vlgmr.msra.gmra.mrb[42].mxu0 %vm1222_vm2, %v3889_v51  ;;  %8010 = vmatprep.subr.mxu1 %v8262_v19 }
 0x296   : > { %8016 = vmatpush3.xpose.msk.msra.mxu0 %vm1222_vm2, %v8648_v55  ;;  %8017 = vmatprep.mubr.msk.f32.mxu0 %vm8263_vm3, %v8262_v19 }
 0x297   : > { %8003 = vmatmul.mubr.msk.f32.vlgmr.msra.gmra.mrb[44].mxu1 %vm1222_vm2, %v3887_v54  ;;  %8025 = vmatprep.subr.mxu0 %v8262_v19 }
 0x298   : > { %8011 = vmatpush3.xpose.msk.msra.mxu1 %vm1222_vm2, %v8668_v1  ;;  %8012 = vmatprep.mubr.msk.f32.mxu1 %vm8263_vm3, %v8262_v19 }
 0x299   : > { %8018 = vmatmul.mubr.msk.f32.vlgmr.msra.gmra.mrb[44].mxu0 %vm1222_vm2, %v8800_v53  ;;  %8020 = vmatprep.subr.mxu1 %v8262_v19  ;;  %v9041_v53 = vpop.f32.mrb[5].mxu0 }
 0x29a   : > { %8026 = vmatpush3.xpose.msk.msra.mxu0 %vm1222_vm2, %v8684_v6  ;;  %8027 = vmatprep.mubr.msk.f32.mxu0 %vm8263_vm3, %v8262_v19 }
 0x29b   : > { %8013 = vmatmul.mubr.msk.f32.vlgmr.msra.gmra.mrb[46].mxu1 %vm1222_vm2, %v3891_v57  ;;  %8035 = vmatprep.subr.mxu0 %v8262_v19 }
 0x29c   : > { %8021 = vmatpush3.xpose.msk.msra.mxu1 %vm1222_vm2, %v8701_v13  ;;  %8022 = vmatprep.mubr.msk.f32.mxu1 %vm8263_vm3, %v8262_v19 }
 0x29d   : > { %8028 = vmatmul.mubr.msk.f32.vlgmr.msra.gmra.mrb[46].mxu0 %vm1222_vm2, %v4514_v31  ;;  %8030 = vmatprep.subr.mxu1 %v8262_v19 }
 0x29e   : > { %8036 = vmatpush3.xpose.msk.msra.mxu0 %vm1222_vm2, %v8719_v22  ;;  %8037 = vmatprep.mubr.msk.f32.mxu0 %vm8263_vm3, %v8262_v19 }
 0x29f   : > { %8023 = vmatmul.mubr.msk.f32.vlgmr.msra.gmra.mrb[48].mxu1 %vm1222_vm2, %v8835_v11  ;;  %8045 = vmatprep.subr.mxu0 %v8262_v19 }
 0x2a0   : > { %8031 = vmatpush3.xpose.msk.msra.mxu1 %vm1222_vm2, %v8731_v24  ;;  %8032 = vmatprep.mubr.msk.f32.mxu1 %vm8263_vm3, %v8262_v19 }
 0x2a1   : > { %8038 = vmatmul.mubr.msk.f32.vlgmr.msra.gmra.mrb[48].mxu0 %vm1222_vm2, %v8819_v4  ;;  %8040 = vmatprep.subr.mxu1 %v8262_v19  ;;  %v5195_v4 = vcombine.high %v8692_v9, %v8692_v9 }
 0x2a2   : > { %8046 = vmatpush3.xpose.msk.msra.mxu0 %vm1222_vm2, %v8761_v39  ;;  %8047 = vmatprep.mubr.msk.f32.mxu0 %vm8263_vm3, %v8262_v19 }
 0x2a3   : > { %8033 = vmatmul.mubr.msk.f32.vlgmr.msra.gmra.mrb[50].mxu1 %vm1222_vm2, %v4516_v45  ;;  %8055 = vmatprep.subr.mxu0 %v8262_v19 }
 0x2a4   : > { %8041 = vmatpush3.xpose.msk.msra.mxu1 %vm1222_vm2, %v8776_v46  ;;  %8042 = vmatprep.mubr.msk.f32.mxu1 %vm8263_vm3, %v8262_v19 }
 0x2a5   : > { %8048 = vmatmul.mubr.msk.f32.vlgmr.msra.gmra.mrb[50].mxu0 %vm1222_vm2, %v4515_v59  ;;  %8050 = vmatprep.subr.mxu1 %v8262_v19 }
 0x2a6   : > { %8056 = vmatpush3.xpose.msk.msra.mxu0 %vm1222_vm2, %v8550_v20  ;;  %8057 = vmatprep.mubr.msk.f32.mxu0 %vm8263_vm3, %v8262_v19  ;;  %v4517_v20 = vcombine.high %v8838_v12, %v8838_v12 }
 0x2a7   : > { %8043 = vmatmul.mubr.msk.f32.vlgmr.msra.gmra.mrb[52].mxu1 %vm1222_vm2, %v8838_v12  ;;  %8065 = vmatprep.subr.mxu0 %v8262_v19 }
 0x2a8   : > { %8051 = vmatpush3.xpose.msk.msra.mxu1 %vm1222_vm2, %v8816_v2  ;;  %8052 = vmatprep.mubr.msk.f32.mxu1 %vm8263_vm3, %v8262_v19 }
 0x2a9   : > { %8058 = vmatmul.mubr.msk.f32.vlgmr.msra.gmra.mrb[52].mxu0 %vm1222_vm2, %v8692_v9  ;;  %8060 = vmatprep.subr.mxu1 %v8262_v19 }
 0x2aa   : > { %8066 = vmatpush3.xpose.msk.msra.mxu0 %vm1222_vm2, %v8556_v21  ;;  %8067 = vmatprep.mubr.msk.f32.mxu0 %vm8263_vm3, %v8262_v19  ;;  %v5197_v21 = vcombine.high %v8711_v16, %v8711_v16 }
 0x2ab   : > { %8053 = vmatmul.mubr.msk.f32.vlgmr.msra.gmra.mrb[54].mxu1 %vm1222_vm2, %v4517_v20  ;;  %8075 = vmatprep.subr.mxu0 %v8262_v19 }
 0x2ac   : > { %8061 = vmatpush3.xpose.msk.msra.mxu1 %vm1222_vm2, %v8590_v26  ;;  %8062 = vmatprep.mubr.msk.f32.mxu1 %vm8263_vm3, %v8262_v19  ;;  %v5196_v26 = vcombine.high %v8708_v15, %v8708_v15 }
 0x2ad   : > { %8068 = vmatmul.mubr.msk.f32.vlgmr.msra.gmra.mrb[54].mxu0 %vm1222_vm2, %v5195_v4  ;;  %8070 = vmatprep.subr.mxu1 %v8262_v19 }
 0x2ae   : > { %8076 = vmatpush3.xpose.msk.msra.mxu0 %vm1222_vm2, %v8606_v48  ;;  %8077 = vmatprep.mubr.msk.f32.mxu0 %vm8263_vm3, %v8262_v19  ;;  %v5198_v48 = vcombine.high %v8726_v23, %v8726_v23 }
 0x2af   : > { %8063 = vmatmul.mubr.msk.f32.vlgmr.msra.gmra.mrb[56].mxu1 %vm1222_vm2, %v8711_v16  ;;  %8085 = vmatprep.subr.mxu0 %v8262_v19 }
 0x2b0   : > { %8071 = vmatpush3.xpose.msk.msra.mxu1 %vm1222_vm2, %v8616_v50  ;;  %8072 = vmatprep.mubr.msk.f32.mxu1 %vm8263_vm3, %v8262_v19  ;;  %v5821_v50 = vcombine.high %v8794_v56, %v8794_v56 }
 0x2b1   : > { %8078 = vmatmul.mubr.msk.f32.vlgmr.msra.gmra.mrb[56].mxu0 %vm1222_vm2, %v8708_v15  ;;  %8080 = vmatprep.subr.mxu1 %v8262_v19 }
 0x2b2   : > { %8086 = vmatpush3.xpose.msk.msra.mxu0 %vm1222_vm2, %v8629_v52  ;;  %8087 = vmatprep.mubr.msk.f32.mxu0 %vm8263_vm3, %v8262_v19  ;;  %v5823_v52 = vcombine.high %v8810_v63, %v8810_v63 }
 0x2b3   : > { %8073 = vmatmul.mubr.msk.f32.vlgmr.msra.gmra.mrb[58].mxu1 %vm1222_vm2, %v5197_v21  ;;  %8095 = vmatprep.subr.mxu0 %v8262_v19 }
 0x2b4   : > { %8081 = vmatpush3.xpose.msk.msra.mxu1 %vm1222_vm2, %v8639_v58  ;;  %8082 = vmatprep.mubr.msk.f32.mxu1 %vm8263_vm3, %v8262_v19  ;;  %v5822_v58 = vcombine.high %v8807_v62, %v8807_v62 }
 0x2b5   : > { %8088 = vmatmul.mubr.msk.f32.vlgmr.msra.gmra.mrb[58].mxu0 %vm1222_vm2, %v5196_v26  ;;  %8090 = vmatprep.subr.mxu1 %v8262_v19 }
 0x2b6   : > { %8096 = vmatpush3.xpose.msk.msra.mxu0 %vm1222_vm2, %v8648_v55  ;;  %8097 = vmatprep.mubr.msk.f32.mxu0 %vm8263_vm3, %v8262_v19  ;;  %v1138_v55 = vadd.f32 %v8754_v32, %v9041_v53 }
 0x2b7   : > { %8083 = vmatmul.mubr.msk.f32.vlgmr.msra.gmra.mrb[60].mxu1 %vm1222_vm2, %v8726_v23  ;;  %8105 = vmatprep.subr.mxu0 %v8262_v19 }
 0x2b8   : > { %8091 = vmatpush3.xpose.msk.msra.mxu1 %vm1222_vm2, %v8668_v1  ;;  %8092 = vmatprep.mubr.msk.f32.mxu1 %vm8263_vm3, %v8262_v19 }
 0x2b9   : > { %8098 = vmatmul.mubr.msk.f32.vlgmr.msra.gmra.mrb[60].mxu0 %vm1222_vm2, %v8794_v56  ;;  %8100 = vmatprep.subr.mxu1 %v8262_v19 }
 0x2ba   : > { %8106 = vmatpush3.xpose.msk.msra.mxu0 %vm1222_vm2, %v8684_v6  ;;  %8107 = vmatprep.mubr.msk.f32.mxu0 %vm8263_vm3, %v8262_v19 }
 0x2bb   : > { %8093 = vmatmul.mubr.msk.f32.vlgmr.msra.gmra.mrb[62].mxu1 %vm1222_vm2, %v5198_v48  ;;  %8115 = vmatprep.subr.mxu0 %v8262_v19 }
 0x2bc   : > { %8101 = vmatpush3.xpose.msk.msra.mxu1 %vm1222_vm2, %v8701_v13  ;;  %8102 = vmatprep.mubr.msk.f32.mxu1 %vm8263_vm3, %v8262_v19 }
 0x2bd   : > { %8108 = vmatmul.mubr.msk.f32.vlgmr.msra.gmra.mrb[62].mxu0 %vm1222_vm2, %v5821_v50  ;;  %8110 = vmatprep.subr.mxu1 %v8262_v19 }
 0x2be   : > { %8116 = vmatpush3.xpose.msk.msra.mxu0 %vm1222_vm2, %v8719_v22  ;;  %8117 = vmatprep.mubr.msk.f32.mxu0 %vm8263_vm3, %v8262_v19 }
 0x2bf   : > { %8103 = vmatmul.mubr.msk.f32.vlgmr.msra.gmra.mrb[64].mxu1 %vm1222_vm2, %v8810_v63  ;;  %8125 = vmatprep.subr.mxu0 %v8262_v19 }
 0x2c0   : > { %8111 = vmatpush3.xpose.msk.msra.mxu1 %vm1222_vm2, %v8731_v24  ;;  %8112 = vmatprep.mubr.msk.f32.mxu1 %vm8263_vm3, %v8262_v19 }
 0x2c1   : > { %8118 = vmatmul.mubr.msk.f32.vlgmr.msra.gmra.mrb[64].mxu0 %vm1222_vm2, %v8807_v62  ;;  %8120 = vmatprep.subr.mxu1 %v8262_v19 }
 0x2c2   : > { %8126 = vmatpush3.xpose.msk.msra.mxu0 %vm1222_vm2, %v8761_v39  ;;  %8127 = vmatprep.mubr.msk.f32.mxu0 %vm8263_vm3, %v8262_v19 }
 0x2c3   : > { %8113 = vmatmul.mubr.msk.f32.vlgmr.msra.gmra.mrb[66].mxu1 %vm1222_vm2, %v5823_v52  ;;  %8135 = vmatprep.subr.mxu0 %v8262_v19 }
 0x2c4   : > { %8121 = vmatpush3.xpose.msk.msra.mxu1 %vm1222_vm2, %v8776_v46  ;;  %8122 = vmatprep.mubr.msk.f32.mxu1 %vm8263_vm3, %v8262_v19 }
 0x2c5   : > { %8128 = vmatmul.mubr.msk.f32.vlgmr.msra.gmra.mrb[66].mxu0 %vm1222_vm2, %v5822_v58  ;;  %8130 = vmatprep.subr.mxu1 %v8262_v19 }
 0x2c6   : > { %8136 = vmatpush3.xpose.msk.msra.mxu0 %vm1222_vm2, %v8619_v43  ;;  %8137 = vmatprep.mubr.msk.f32.mxu0 %vm8263_vm3, %v8262_v19  ;;  %v5824_v43 = vcombine.high %v8828_v7, %v8828_v7 }
 0x2c7   : > { %8123 = vmatmul.mubr.msk.f32.vlgmr.msra.gmra.mrb[68].mxu1 %vm1222_vm2, %v8828_v7  ;;  %8145 = vmatprep.subr.mxu0 %v8262_v19 }
 0x2c8   : > { %8131 = vmatpush3.xpose.msk.msra.mxu1 %vm1222_vm2, %v8816_v2  ;;  %8132 = vmatprep.mubr.msk.f32.mxu1 %vm8263_vm3, %v8262_v19 }
 0x2c9   : > { %8138 = vmatmul.mubr.msk.f32.vlgmr.msra.gmra.mrb[68].mxu0 %vm1222_vm2, %v8578_v25  ;;  %8140 = vmatprep.subr.mxu1 %v8262_v19  ;;  %v1143_v25 = vadd.f32 %v8652_v60, %v8754_v32 }
 0x2ca   : > { %8146 = vmatpush3.xpose.msk.msra.mxu0 %vm1222_vm2, %v8747_v30  ;;  %8147 = vmatprep.mubr.msk.f32.mxu0 %vm8263_vm3, %v8262_v19 }
 0x2cb   : > { %8133 = vmatmul.mubr.msk.f32.vlgmr.msra.gmra.mrb[70].mxu1 %vm1222_vm2, %v5824_v43  ;;  %8155 = vmatprep.subr.mxu0 %v8262_v19 }
 0x2cc   : > { %8141 = vmatpush3.xpose.msk.msra.mxu1 %vm1222_vm2, %v8869_v38  ;;  %8142 = vmatprep.mubr.msk.f32.mxu1 %vm8263_vm3, %v8262_v19 }
 0x2cd   : > { %8148 = vmatmul.mubr.msk.f32.vlgmr.msra.gmra.mrb[70].mxu0 %vm1222_vm2, %v8925_v3  ;;  %8150 = vmatprep.subr.mxu1 %v8262_v19 }
 0x2ce   : > { %8156 = vmatpush3.msra.mxu0 %v1138_v55  ;;  %8157 = vmatprep.mubr.msk.f32.mxu0 %vm8263_vm3, %v8262_v19 }
 0x2cf   : > { %8143 = vmatmul.mubr.msk.f32.vlgmr.msra.gmra.mrb[72].mxu1 %vm1222_vm2, %v8696_v10  ;;  %8165 = vmatprep.subr.mxu0 %v8262_v19 }
 0x2d0   : > { %8151 = vmatpush3.xpose.msk.msra.mxu1 %vm1222_vm2, %v8743_v28  ;;  %8152 = vmatprep.mubr.msk.f32.mxu1 %vm8263_vm3, %v8262_v19 }
 0x2d1   : > { %8160 = vmatprep.subr.mxu1 %v8262_v19 }
 0x2d3   : > { %8153 = vmatmul.mubr.msk.f32.vlgmr.msra.gmra.mrb[74].mxu1 %vm1222_vm2, %v8659_v61 }
 0x2d4   : > { %8161 = vmatpush3.msra.mxu1 %v1143_v25  ;;  %8162 = vmatprep.mubr.msk.f32.mxu1 %vm8263_vm3, %v8262_v19 }
 0x2d5   : > { %8170 = vmatprep.subr.mxu1 %v8262_v19 }
 0x31e   : > { %v1294_v1 = vpop.f32.mrb[6].mxu1 }
 0x31f   : > { %v7819_v6 = vpop.f32.mrb[7].mxu1 }
 0x320   : > { %v1444_v9 = vpop.f32.mrb[6].mxu0 }
 0x321   : > { %v7829_v60 = vpop.f32.mrb[7].mxu0  ;;  %v6466_v16 = vrot.slane %v1444_v9, 6 }
 0x322   : > { %v1369_v10 = vpop.f32.mrb[8].mxu1 }
 0x323   : > { %v6464_v13 = vrot.slane %v1369_v10, 7  ;;  %v7824_v15 = vpop.f32.mrb[9].mxu1 }
 0x324   : > { %v1594_v22 = vpop.f32.mrb[8].mxu0 }
 0x325   : > { %v6465_v23 = vsel %vm2482_vm4, %v6464_v13, %v1294_v1  ;;  %v7839_v61 = vpop.f32.mrb[9].mxu0  ;;  %v6470_v39 = vrot.slane %v1594_v22, 4 }
 0x326   : > { %v1519_v24 = vpop.f32.mrb[10].mxu1  ;;  %v6467_v28 = vsel %vm2485_vm5, %v6466_v16, %v6465_v23 }
 0x327   : > { %v6468_v30 = vrot.slane %v1519_v24, 5  ;;  %v7834_v32 = vpop.f32.mrb[11].mxu1 }
 0x328   : > { %v1744_v46 = vpop.f32.mrb[10].mxu0 }
 0x329   : > { %v6469_v56 = vsel %vm2488_vm6, %v6468_v30, %v6467_v28  ;;  %v7849_v62 = vpop.f32.mrb[11].mxu0  ;;  %v6474_v12 = vrot.slane %v1744_v46, 2 }
 0x32a   : > { %v1669_v63 = vpop.f32.mrb[12].mxu1  ;;  %v6471_v2 = vsel %vm2491_vm7, %v6470_v39, %v6469_v56 }
 0x32b   : > { %v6472_v7 = vrot.slane %v1669_v63, 3  ;;  %v7844_v11 = vpop.f32.mrb[13].mxu1 }
 0x32c   : > { %v1944_v38 = vpop.f32.mrb[12].mxu0 }
 0x32d   : > { %v6473_v0 = vsel %vm2494_vm8, %v6472_v7, %v6471_v2  ;;  %v7859_v3 = vpop.f32.mrb[13].mxu0 }
 0x32e   : > { %v1819_v5 = vpop.f32.mrb[14].mxu1  ;;  %v6475_v29 = vsel %vm2497_vm9, %v6474_v12, %v6473_v0 }
 0x32f   : > { %v6476_v40 = vrot.slane %v1819_v5, 1  ;;  %v7854_v8 = vpop.f32.mrb[15].mxu1 }
 0x330   : > { %v2094_v14 = vpop.f32.mrb[14].mxu0 }
 0x331   : > { %v7869_v17 = vpop.f32.mrb[15].mxu0  ;;  %v9247_v18 = vsel %vm2500_vm10, %v6476_v40, %v6475_v29  ;;  %v2484_v41 = vrot.slane %v2094_v14, 6 }
 0x332   : > { %v2019_v36 = vpop.f32.mrb[16].mxu1 }
 0x333   : > { %v2481_v27 = vrot.slane %v2019_v36, 7  ;;  %v7864_v37 = vpop.f32.mrb[17].mxu1 }
 0x334   : > { %v2244_v42 = vpop.f32.mrb[16].mxu0 }
 0x335   : > { %v2483_v34 = vsel %vm2482_vm4, %v2481_v27, %v1944_v38  ;;  %v7879_v44 = vpop.f32.mrb[17].mxu0  ;;  %v2490_v31 = vrot.slane %v2244_v42, 4 }
 0x336   : > { %v2169_v33 = vpop.f32.mrb[18].mxu1  ;;  %v2486_v47 = vsel %vm2485_vm5, %v2484_v41, %v2483_v34 }
 0x337   : > { %v2487_v51 = vrot.slane %v2169_v33, 5  ;;  %v7874_v54 = vpop.f32.mrb[19].mxu1 }
 0x338   : > { %v2394_v57 = vpop.f32.mrb[18].mxu0 }
 0x339   : > { %v2489_v53 = vsel %vm2488_vm6, %v2487_v51, %v2486_v47  ;;  %v7889_v45 = vpop.f32.mrb[19].mxu0  ;;  %v2496_v26 = vrot.slane %v2394_v57, 2 }
 0x33a   : > { %v2319_v59 = vpop.f32.mrb[20].mxu1  ;;  %v2492_v20 = vsel %vm2491_vm7, %v2490_v31, %v2489_v53 }
 0x33b   : > { %v2493_v4 = vrot.slane %v2319_v59, 3  ;;  %v7884_v21 = vpop.f32.mrb[21].mxu1 }
 0x33c   : > { %v2653_v48 = vpop.f32.mrb[20].mxu0 }
 0x33d   : > { %v7899_v50 = vpop.f32.mrb[21].mxu0  ;;  %v2495_v52 = vsel %vm2494_vm8, %v2493_v4, %v2492_v20 }
 0x33e   : > { %v2469_v58 = vpop.f32.mrb[22].mxu1  ;;  %v2498_v43 = vsel %vm2497_vm9, %v2496_v26, %v2495_v52 }
 0x33f   : > { %v2499_v55 = vrot.slane %v2469_v58, 1  ;;  %v7894_v25 = vpop.f32.mrb[23].mxu1 }
 0x340   : > { %v2797_v1 = vpop.f32.mrb[22].mxu0 }
 0x341   : > { %v7909_v6 = vpop.f32.mrb[23].mxu0  ;;  %v2501_v9 = vsel %vm2500_vm10, %v2499_v55, %v2498_v43  ;;  %v6563_v15 = vrot.slane %v2797_v1, 6 }
 0x342   : > { %2503 = vxpose.xlu0.b32.start.end [1/1] (short) (narrow) %v2501_v9, 8  ;;  %v2725_v60 = vpop.f32.mrb[24].mxu1 }
 0x343   : > { %v6561_v10 = vrot.slane %v2725_v60, 7  ;;  %v7904_v13 = vpop.f32.mrb[25].mxu1 }
 0x344   : > { %v2941_v16 = vpop.f32.mrb[24].mxu0 }
 0x345   : > { %v6562_v22 = vsel %vm2482_vm4, %v6561_v10, %v2653_v48  ;;  %v7919_v23 = vpop.f32.mrb[25].mxu0  ;;  %v6567_v32 = vrot.slane %v2941_v16, 4 }
 0x346   : > { %v2869_v61 = vpop.f32.mrb[26].mxu1  ;;  %v6564_v24 = vsel %vm2485_vm5, %v6563_v15, %v6562_v22 }
 0x347   : > { %v6565_v28 = vrot.slane %v2869_v61, 5  ;;  %v7914_v30 = vpop.f32.mrb[27].mxu1 }
 0x348   : > { %v3085_v39 = vpop.f32.mrb[26].mxu0 }
 0x349   : > { %v6566_v46 = vsel %vm2488_vm6, %v6565_v28, %v6564_v24  ;;  %v7929_v56 = vpop.f32.mrb[27].mxu0  ;;  %v6571_v11 = vrot.slane %v3085_v39, 2 }
 0x34a   : > { %v3013_v62 = vpop.f32.mrb[28].mxu1  ;;  %v6568_v63 = vsel %vm2491_vm7, %v6567_v32, %v6566_v46 }
 0x34b   : > { %v6569_v2 = vrot.slane %v3013_v62, 3  ;;  %v7924_v7 = vpop.f32.mrb[29].mxu1 }
 0x34c   : > { %v3279_v12 = vpop.f32.mrb[28].mxu0 }
 0x34d   : > { %v6570_v38 = vsel %vm2494_vm8, %v6569_v2, %v6568_v63  ;;  %v7939_v0 = vpop.f32.mrb[29].mxu0 }
 0x34e   : > { %v3157_v3 = vpop.f32.mrb[30].mxu1  ;;  %v6572_v5 = vsel %vm2497_vm9, %v6571_v11, %v6570_v38 }
 0x34f   : > { %v6573_v29 = vrot.slane %v3157_v3, 1  ;;  %v7934_v40 = vpop.f32.mrb[31].mxu1 }
 0x350   : > { %v3423_v8 = vpop.f32.mrb[30].mxu0 }
 0x351   : > { %v7949_v14 = vpop.f32.mrb[31].mxu0  ;;  %v9263_v17 = vsel %vm2500_vm10, %v6573_v29, %v6572_v5  ;;  %v3797_v41 = vrot.slane %v3423_v8, 6 }
 0x352   : > { %v3351_v36 = vpop.f32.mrb[32].mxu1 }
 0x353   : > { %v3795_v27 = vrot.slane %v3351_v36, 7  ;;  %v7944_v37 = vpop.f32.mrb[33].mxu1 }
 0x354   : > { %v3567_v42 = vpop.f32.mrb[32].mxu0 }
 0x355   : > { %v3796_v34 = vsel %vm2482_vm4, %v3795_v27, %v3279_v12  ;;  %v7959_v44 = vpop.f32.mrb[33].mxu0  ;;  %v3801_v31 = vrot.slane %v3567_v42, 4 }
 0x356   : > { %v3495_v33 = vpop.f32.mrb[34].mxu1  ;;  %v3798_v47 = vsel %vm2485_vm5, %v3797_v41, %v3796_v34 }
 0x357   : > { %v3799_v51 = vrot.slane %v3495_v33, 5  ;;  %v7954_v54 = vpop.f32.mrb[35].mxu1 }
 0x358   : > { %v3711_v57 = vpop.f32.mrb[34].mxu0 }
 0x359   : > { %v3800_v53 = vsel %vm2488_vm6, %v3799_v51, %v3798_v47  ;;  %v7969_v45 = vpop.f32.mrb[35].mxu0  ;;  %v3805_v26 = vrot.slane %v3711_v57, 2 }
 0x35a   : > { %v3639_v59 = vpop.f32.mrb[36].mxu1  ;;  %v3802_v20 = vsel %vm2491_vm7, %v3801_v31, %v3800_v53 }
 0x35b   : > { %v3803_v4 = vrot.slane %v3639_v59, 3  ;;  %v7964_v21 = vpop.f32.mrb[37].mxu1 }
 0x35c   : > { %v3960_v48 = vpop.f32.mrb[36].mxu0 }
 0x35d   : > { %v7979_v50 = vpop.f32.mrb[37].mxu0  ;;  %v3804_v52 = vsel %vm2494_vm8, %v3803_v4, %v3802_v20 }
 0x35e   : > { %v3783_v58 = vpop.f32.mrb[38].mxu1  ;;  %v3806_v43 = vsel %vm2497_vm9, %v3805_v26, %v3804_v52 }
 0x35f   : > { %v3807_v55 = vrot.slane %v3783_v58, 1  ;;  %v7974_v25 = vpop.f32.mrb[39].mxu1 }
 0x360   : > { %v4104_v1 = vpop.f32.mrb[38].mxu0 }
 0x361   : > { %v7989_v6 = vpop.f32.mrb[39].mxu0  ;;  %v3808_v9 = vsel %vm2500_vm10, %v3807_v55, %v3806_v43  ;;  %v6660_v15 = vrot.slane %v4104_v1, 6 }
 0x362   : > { %3810 = vxpose.xlu0.b32.start.end [1/1] (short) (narrow) %v3808_v9, 8  ;;  %v4032_v60 = vpop.f32.mrb[40].mxu1 }
 0x363   : > { %v6658_v10 = vrot.slane %v4032_v60, 7  ;;  %v7984_v13 = vpop.f32.mrb[41].mxu1 }
 0x364   : > { %v4248_v16 = vpop.f32.mrb[40].mxu0 }
 0x365   : > { %v6659_v22 = vsel %vm2482_vm4, %v6658_v10, %v3960_v48  ;;  %v7999_v23 = vpop.f32.mrb[41].mxu0  ;;  %v6664_v32 = vrot.slane %v4248_v16, 4 }
 0x366   : > { %v4176_v61 = vpop.f32.mrb[42].mxu1  ;;  %v6661_v24 = vsel %vm2485_vm5, %v6660_v15, %v6659_v22 }
 0x367   : > { %v6662_v28 = vrot.slane %v4176_v61, 5  ;;  %v7994_v30 = vpop.f32.mrb[43].mxu1 }
 0x368   : > { %v4392_v39 = vpop.f32.mrb[42].mxu0 }
 0x369   : > { %v6663_v46 = vsel %vm2488_vm6, %v6662_v28, %v6661_v24  ;;  %v8009_v56 = vpop.f32.mrb[43].mxu0  ;;  %v6668_v11 = vrot.slane %v4392_v39, 2 }
 0x36a   : > { %v4320_v62 = vpop.f32.mrb[44].mxu1  ;;  %v6665_v63 = vsel %vm2491_vm7, %v6664_v32, %v6663_v46 }
 0x36b   : > { %v6666_v2 = vrot.slane %v4320_v62, 3  ;;  %v8004_v7 = vpop.f32.mrb[45].mxu1 }
 0x36c   : > { %v4586_v12 = vpop.f32.mrb[44].mxu0 }
 0x36d   : > { %v6667_v38 = vsel %vm2494_vm8, %v6666_v2, %v6665_v63  ;;  %v8019_v0 = vpop.f32.mrb[45].mxu0 }
 0x36e   : > { %v4464_v3 = vpop.f32.mrb[46].mxu1  ;;  %v6669_v5 = vsel %vm2497_vm9, %v6668_v11, %v6667_v38 }
 0x36f   : > { %v6670_v29 = vrot.slane %v4464_v3, 1  ;;  %v8014_v40 = vpop.f32.mrb[47].mxu1 }
 0x370   : > { %v4730_v8 = vpop.f32.mrb[46].mxu0 }
 0x371   : > { %v8029_v14 = vpop.f32.mrb[47].mxu0  ;;  %v9279_v36 = vsel %vm2500_vm10, %v6670_v29, %v6669_v5  ;;  %v5104_v42 = vrot.slane %v4730_v8, 6 }
 0x372   : > { %v4658_v27 = vpop.f32.mrb[48].mxu1 }
 0x373   : > { %v5102_v37 = vrot.slane %v4658_v27, 7  ;;  %v8024_v41 = vpop.f32.mrb[49].mxu1 }
 0x374   : > { %v4874_v34 = vpop.f32.mrb[48].mxu0 }
 0x375   : > { %v5103_v44 = vsel %vm2482_vm4, %v5102_v37, %v4586_v12  ;;  %v8039_v33 = vpop.f32.mrb[49].mxu0  ;;  %v5108_v57 = vrot.slane %v4874_v34, 4 }
 0x376   : > { %v4802_v47 = vpop.f32.mrb[50].mxu1  ;;  %v5105_v51 = vsel %vm2485_vm5, %v5104_v42, %v5103_v44 }
 0x377   : > { %v5106_v54 = vrot.slane %v4802_v47, 5  ;;  %v8034_v31 = vpop.f32.mrb[51].mxu1 }
 0x378   : > { %v5018_v53 = vpop.f32.mrb[50].mxu0 }
 0x379   : > { %v5107_v45 = vsel %vm2488_vm6, %v5106_v54, %v5105_v51  ;;  %v8049_v59 = vpop.f32.mrb[51].mxu0  ;;  %v5112_v48 = vrot.slane %v5018_v53, 2 }
 0x37a   : > { %v4946_v20 = vpop.f32.mrb[52].mxu1  ;;  %v5109_v4 = vsel %vm2491_vm7, %v5108_v57, %v5107_v45 }
 0x37b   : > { %v5110_v21 = vrot.slane %v4946_v20, 3  ;;  %v8044_v26 = vpop.f32.mrb[53].mxu1 }
 0x37c   : > { %v5267_v50 = vpop.f32.mrb[52].mxu0 }
 0x37d   : > { %v8059_v52 = vpop.f32.mrb[53].mxu0  ;;  %v5111_v58 = vsel %vm2494_vm8, %v5110_v21, %v5109_v4 }
 0x37e   : > { %v5090_v43 = vpop.f32.mrb[54].mxu1  ;;  %v5113_v55 = vsel %vm2497_vm9, %v5112_v48, %v5111_v58 }
 0x37f   : > { %v5114_v25 = vrot.slane %v5090_v43, 1  ;;  %v8054_v1 = vpop.f32.mrb[55].mxu1 }
 0x380   : > { %v5411_v6 = vpop.f32.mrb[54].mxu0 }
 0x381   : > { %v8069_v9 = vpop.f32.mrb[55].mxu0  ;;  %v5115_v60 = vsel %vm2500_vm10, %v5114_v25, %v5113_v55  ;;  %v6757_v16 = vrot.slane %v5411_v6, 6 }
 0x382   : > { %5117 = vxpose.xlu1.b32.start.end [1/1] (short) (narrow) %v5115_v60, 8  ;;  %v5339_v10 = vpop.f32.mrb[56].mxu1 }
 0x383   : > { %v6755_v13 = vrot.slane %v5339_v10, 7  ;;  %v8064_v15 = vpop.f32.mrb[57].mxu1 }
 0x384   : > { %v5555_v22 = vpop.f32.mrb[56].mxu0 }
 0x385   : > { %v6756_v23 = vsel %vm2482_vm4, %v6755_v13, %v5267_v50  ;;  %v8079_v61 = vpop.f32.mrb[57].mxu0  ;;  %v6761_v39 = vrot.slane %v5555_v22, 4 }
 0x386   : > { %v5483_v24 = vpop.f32.mrb[58].mxu1  ;;  %v6758_v28 = vsel %vm2485_vm5, %v6757_v16, %v6756_v23 }
 0x387   : > { %v6759_v30 = vrot.slane %v5483_v24, 5  ;;  %v8074_v32 = vpop.f32.mrb[59].mxu1 }
 0x388   : > { %v5699_v46 = vpop.f32.mrb[58].mxu0 }
 0x389   : > { %v6760_v56 = vsel %vm2488_vm6, %v6759_v30, %v6758_v28  ;;  %v8089_v62 = vpop.f32.mrb[59].mxu0  ;;  %v6765_v12 = vrot.slane %v5699_v46, 2 }
 0x38a   : > { %v5627_v63 = vpop.f32.mrb[60].mxu1  ;;  %v6762_v2 = vsel %vm2491_vm7, %v6761_v39, %v6760_v56 }
 0x38b   : > { %v6763_v7 = vrot.slane %v5627_v63, 3  ;;  %v8084_v11 = vpop.f32.mrb[61].mxu1 }
 0x38c   : > { %v5893_v38 = vpop.f32.mrb[60].mxu0 }
 0x38d   : > { %v6764_v0 = vsel %vm2494_vm8, %v6763_v7, %v6762_v2  ;;  %v8099_v3 = vpop.f32.mrb[61].mxu0 }
 0x38e   : > { %v5771_v5 = vpop.f32.mrb[62].mxu1  ;;  %v6766_v29 = vsel %vm2497_vm9, %v6765_v12, %v6764_v0 }
 0x38f   : > { %v6767_v40 = vrot.slane %v5771_v5, 1  ;;  %v8094_v8 = vpop.f32.mrb[63].mxu1 }
 0x390   : > { %v6037_v14 = vpop.f32.mrb[62].mxu0 }
 0x391   : > { %v8109_v27 = vpop.f32.mrb[63].mxu0  ;;  %v6768_v37 = vsel %vm2500_vm10, %v6767_v40, %v6766_v29  ;;  %v6411_v44 = vrot.slane %v6037_v14, 6 }
 0x392   : > { %v5965_v41 = vpop.f32.mrb[64].mxu1 }
 0x393   : > { %v6409_v42 = vrot.slane %v5965_v41, 7  ;;  %v8104_v34 = vpop.f32.mrb[65].mxu1 }
 0x394   : > { %v6181_v33 = vpop.f32.mrb[64].mxu0 }
 0x395   : > { %v6410_v47 = vsel %vm2482_vm4, %v6409_v42, %v5893_v38  ;;  %v8119_v51 = vpop.f32.mrb[65].mxu0  ;;  %v6415_v45 = vrot.slane %v6181_v33, 4 }
 0x396   : > { %v6109_v54 = vpop.f32.mrb[66].mxu1  ;;  %v6412_v31 = vsel %vm2485_vm5, %v6411_v44, %v6410_v47 }
 0x397   : > { %v6413_v57 = vrot.slane %v6109_v54, 5  ;;  %v8114_v53 = vpop.f32.mrb[67].mxu1 }
 0x398   : > { %v6325_v59 = vpop.f32.mrb[66].mxu0 }
 0x399   : > { %v6414_v20 = vsel %vm2488_vm6, %v6413_v57, %v6412_v31  ;;  %v8129_v4 = vpop.f32.mrb[67].mxu0  ;;  %v6419_v52 = vrot.slane %v6325_v59, 2 }
 0x39a   : > { %v6253_v21 = vpop.f32.mrb[68].mxu1  ;;  %v6416_v26 = vsel %vm2491_vm7, %v6415_v45, %v6414_v20 }
 0x39b   : > { %v6417_v48 = vrot.slane %v6253_v21, 3  ;;  %v8124_v50 = vpop.f32.mrb[69].mxu1 }
 0x39c   : > { %v6549_v58 = vpop.f32.mrb[68].mxu0 }
 0x39d   : > { %v6550_v43 = vadd.f32 %v6549_v58, %v9247_v18  ;;  %v8139_v55 = vpop.f32.mrb[69].mxu0  ;;  %v6418_v25 = vsel %vm2494_vm8, %v6417_v48, %v6416_v26 }
 0x39e   : > { %v6397_v1 = vpop.f32.mrb[70].mxu1  ;;  %v6420_v6 = vsel %vm2497_vm9, %v6419_v52, %v6418_v25  ;;  %v7188_v55 = vld [vmem:[%s8403_s5] sm:$0xff] }
 0x39f   : > { %v6421_v9 = vrot.slane %v6397_v1, 1  ;;  %v8134_v60 = vpop.f32.mrb[71].mxu1 }
 0x3a0   : > { %v6743_v10 = vpop.f32.mrb[70].mxu0 }
 0x3a1   : > { %v6744_v13 = vadd.f32 %v6743_v10, %v9279_v36  ;;  %v8149_v15 = vpop.f32.mrb[71].mxu0  ;;  %v6422_v16 = vsel %vm2500_vm10, %v6421_v9, %v6420_v6 }
 0x3a2   : > { %6424 = vxpose.xlu1.b32.start.end [1/1] (short) (narrow) %v6422_v16, 8  ;;  %v6646_v22 = vpop.f32.mrb[72].mxu1  ;;  %v7287_v16 = vld [vmem:[%s9375_s16 + $0x8] sm:$0xff] }
 0x3a3   : > { %v6647_v23 = vadd.f32 %v6646_v22, %v9263_v17  ;;  %v8144_v61 = vpop.f32.mrb[73].mxu1  ;;  %v7286_v22 = vld [vmem:[%s9375_s16] sm:$0xff] }
 0x3a6   : > { %v6840_v18 = vpop.f32.mrb[74].mxu1 }
 0x3a7   : > { %v6841_v24 = vadd.f32 %v6840_v18, %v6768_v37  ;;  %v8154_v28 = vpop.f32.mrb[75].mxu1 }
 0x3a8   : > { %v7289_v28 = vld [vmem:[%s9375_s16 + $0x18] sm:$0xff] }
 0x3c2   : > { %v2519_v30 = vpop.trf.xlu0 }
 0x3c3   : > { %v6844_v32 = vadd.f32 %v6550_v43, %v2519_v30  ;;  %v7288_v30 = vld [vmem:[%s9375_s16 + $0x10] sm:$0xff] }
 0x3c5   : > { %v6848_v39 = vmul.f32 0.35355338, %v6844_v32 }
 0x3c7   : > { %v6852_v46 = vsel %vm1222_vm2, %v6848_v39, -inf }
 0x3c8   : > { %6853 = vmax.xlane.f32.xlu0 %v6852_v46 }
 0x3e2   : > { %v3826_v56 = vpop.trf.xlu0 }
 0x3e3   : > { %v6845_v62 = vadd.f32 %v6647_v23, %v3826_v56 }
 0x3e5   : > { %v6849_v36 = vmul.f32 0.35355338, %v6845_v62 }
 0x3e7   : > { %v6855_v63 = vsel %vm1222_vm2, %v6849_v36, -inf }
 0x3e8   : > { %6856 = vmax.xlane.f32.xlu1 %v6855_v63 }
 0x402   : > { %v5133_v2 = vpop.trf.xlu1 }
 0x403   : > { %v6846_v7 = vadd.f32 %v6744_v13, %v5133_v2 }
 0x405   : > { %v6850_v11 = vmul.f32 0.35355338, %v6846_v7 }
 0x407   : > { %v6858_v17 = vsel %vm1222_vm2, %v6850_v11, -inf }
 0x408   : > { %6859 = vmax.xlane.f32.xlu1 %v6858_v17 }
 0x422   : > { %v6440_v12 = vpop.trf.xlu1 }
 0x423   : > { %v6847_v38 = vadd.f32 %v6841_v24, %v6440_v12 }
 0x425   : > { %v6851_v0 = vmul.f32 0.35355338, %v6847_v38 }
 0x427   : > { %v6861_v3 = vsel %vm1222_vm2, %v6851_v0, -inf }
 0x428   : > { %6862 = vmax.xlane.f32.xlu1 %v6861_v3 }
 0x455   : > { %v6854_v5 = vpop.xlane.xlu0 %6853 }
 0x456   : > { %v6864_v29 = vsub.f32 %v6848_v39, %v6854_v5 }
 0x458   : > { %v6868_v40 = vmul.f32 1.442695, %v6864_v29 }
 0x45a   : > { %8238 = vpow2.f32 %v6868_v40 }
 0x464   : > { %v8239_v8 = vpop.eup %8238 }
 0x465   : > { %v6876_v14 = vsel %vm1222_vm2, %v8239_v8, 0.0 }
 0x466   : > { %6877 = vadd.xlane.f32.xlu0 %v6876_v14 }
 0x475   : > { %v6857_v27 = vpop.xlane.xlu1 %6856 }
 0x476   : > { %v6865_v37 = vsub.f32 %v6849_v36, %v6857_v27 }
 0x478   : > { %v6870_v41 = vmul.f32 1.442695, %v6865_v37 }
 0x47a   : > { %8240 = vpow2.f32 %v6870_v41 }
 0x484   : > { %v8241_v42 = vpop.eup %8240 }
 0x485   : > { %v6879_v34 = vsel %vm1222_vm2, %v8241_v42, 0.0 }
 0x486   : > { %6880 = vadd.xlane.f32.xlu1 %v6879_v34 }
 0x495   : > { %v6860_v44 = vpop.xlane.xlu1 %6859 }
 0x496   : > { %v6866_v33 = vsub.f32 %v6850_v11, %v6860_v44 }
 0x498   : > { %v6872_v47 = vmul.f32 1.442695, %v6866_v33 }
 0x49a   : > { %8242 = vpow2.f32 %v6872_v47 }
 0x4a4   : > { %v8243_v51 = vpop.eup %8242 }
 0x4a5   : > { %v6882_v54 = vsel %vm1222_vm2, %v8243_v51, 0.0 }
 0x4a6   : > { %6883 = vadd.xlane.f32.xlu0 %v6882_v54 }
 0x4b5   : > { %v6863_v31 = vpop.xlane.xlu1 %6862 }
 0x4b6   : > { %v6867_v57 = vsub.f32 %v6851_v0, %v6863_v31 }
 0x4b8   : > { %v6874_v53 = vmul.f32 1.442695, %v6867_v57 }
 0x4ba   : > { %8244 = vpow2.f32 %v6874_v53 }
 0x4c4   : > { %v8245_v45 = vpop.eup %8244 }
 0x4c5   : > { %v6885_v59 = vsel %vm1222_vm2, %v8245_v45, 0.0 }
 0x4c6   : > { %6886 = vadd.xlane.f32.xlu1 %v6885_v59 }
 0x4f3   : > { %v6878_v20 = vpop.xlane.xlu0 %6877 }
 0x4f4   : > { %8246 = vrcp.f32 %v6878_v20 }
 0x4fe   : > { %v8247_v4 = vpop.eup %8246 }
 0x4ff   : > { %v6892_v21 = vmul.f32 %v8247_v4, %v8239_v8 }
 0x501   : > { %8158 = vmatmul.mubr.msk.f32.vlgmr.msra.gmra.mrb[72].mxu0 %vm1222_vm2, %v6892_v21 }
 0x502   : > { %8166 = vmatpush3.msra.mxu0 %v8786_v49  ;;  %8167 = vmatprep.mubr.msk.f32.mxu0 %vm8263_vm3, %v8262_v19 }
 0x503   : > { %8175 = vmatprep.subr.mxu0 %v7188_v55 }
 0x513   : > { %v6881_v26 = vpop.xlane.xlu1 %6880 }
 0x514   : > { %8248 = vrcp.f32 %v6881_v26 }
 0x51e   : > { %v8249_v48 = vpop.eup %8248 }
 0x51f   : > { %v6893_v50 = vmul.f32 %v8249_v48, %v8241_v42 }
 0x521   : > { %8163 = vmatmul.mubr.msk.f32.vlgmr.msra.gmra.mrb[76].mxu1 %vm1222_vm2, %v6893_v50 }
 0x522   : > { %8171 = vmatpush3.msra.mxu1 %v8782_v35  ;;  %8172 = vmatprep.mubr.msk.f32.mxu1 %vm8263_vm3, %v8262_v19 }
 0x533   : > { %v6884_v52 = vpop.xlane.xlu0 %6883 }
 0x534   : > { %8250 = vrcp.f32 %v6884_v52 }
 0x53e   : > { %v8251_v58 = vpop.eup %8250 }
 0x53f   : > { %v6894_v43 = vmul.f32 %v8251_v58, %v8243_v51 }
 0x541   : > { %8168 = vmatmul.mubr.msk.f32.vlgmr.msra.gmra.mrb[74].mxu0 %vm1222_vm2, %v6894_v43 }
 0x542   : > { %8176 = vmatpush3.msra.mxu0 %v7188_v55 }
 0x553   : > { %v6887_v49 = vpop.xlane.xlu1 %6886 }
 0x554   : > { %8252 = vrcp.f32 %v6887_v49 }
 0x55e   : > { %v8253_v25 = vpop.eup %8252 }
 0x55f   : > { %v6895_v1 = vmul.f32 %v8253_v25, %v8245_v45 }
 0x561   : > { %8173 = vmatmul.mubr.msk.f32.vlgmr.msra.gmra.mrb[78].mxu1 %vm1222_vm2, %v6895_v1 }
 0x5d4   : > { %v6965_v6 = vpop.f32.mrb[72].mxu0 }
 0x5d5   : > { %v8159_v35 = vpop.f32.mrb[73].mxu0  ;;  %8177 = vmatprep.mubr.msk.f32.mxu0 %vm1222_vm2, %v6965_v6 }
 0x5f4   : > { %v7038_v19 = vpop.f32.mrb[76].mxu1 }
 0x5f5   : > { %v8164_v9 = vpop.f32.mrb[77].mxu1  ;;  %8178 = vmatmul.mubr.msk.f32.vlgmr.msra.gmra.mrb[76].mxu0 %vm1222_vm2, %v7038_v19 }
 0x614   : > { %v7111_v60 = vpop.f32.mrb[74].mxu0 }
 0x615   : > { %v8169_v10 = vpop.f32.mrb[75].mxu0  ;;  %8180 = vmatprep.mubr.msk.f32.mxu0 %vm1222_vm2, %v7111_v60 }
 0x634   : > { %v7184_v13 = vpop.f32.mrb[78].mxu1 }
 0x635   : > { %v8174_v15 = vpop.f32.mrb[79].mxu1  ;;  %8181 = vmatmul.mubr.msk.f32.gmra.mrb[78].mxu0 %vm1222_vm2, %v7184_v13 }
 0x6c8   : > { %v8179_v23 = vpop.f32.mrb[76].mxu0 }
 0x6c9   : > { %v7291_v61 = vadd.f32 %v8179_v23, %v7287_v16  ;;  %v7267_v18 = vpop.f32.mrb[77].mxu0 }
 0x6ca   : > { %v7290_v24 = vadd.f32 %v7286_v22, %v7267_v18 }
 0x6cb   : > { %7295 = vst.msk [vmem:[%s9375_s16 + $0x8] sm:$0xff] %vm854_vm1, %v7291_v61 }
 0x6cc   : > { %7294 = vst.msk [vmem:[%s9375_s16] sm:$0xff] %vm854_vm1, %v7290_v24 }
 0x708   : > { %v8182_v32 = vpop.f32.mrb[78].mxu0 }
 0x709   : > { %v7293_v39 = vadd.f32 %v8182_v32, %v7289_v28  ;;  %v7277_v46 = vpop.f32.mrb[79].mxu0 }
 0x70a   : > { %v7292_v56 = vadd.f32 %v7288_v30, %v7277_v46 }
 0x70b   : > { %7297 = vst.msk [vmem:[%s9375_s16 + $0x18] sm:$0xff] %vm854_vm1, %v7293_v39 }
 0x70c   : > { %7296 = vst.msk [vmem:[%s9375_s16 + $0x10] sm:$0xff] %vm854_vm1, %v7292_v56 }
 0x70d PF: > { %s9393_s21 = sld [smem:[#allocation4_spill]] }
 0x713   : > { %s26_s21 = sadd.s32 1, %s9393_s21  }
 0x714   : > { %p23_p5 = scmp.ge.s32.totalorder %s26_s21, 6  }
 0x716   :  { %25 = sbr.rel (!%p23_p5) target bundleno = 7 (0x7), region = 138 }

// kernel: sttm_complex_forward.12
= control target key start
LH: loop header
LB: loop body
LE: loop exit
PB: predicated region body
PF: predicated region fallthrough
CT: control target
= control target key end

     0   :  { %s15344_s21 = smov 0   ;;  %s17209_s0 = inlined_call_operand.vmem [shape: f32[64,32], index: 0, kind: input, shape index: {}, may-alias: {0,1}]   ;;  %s17210_s1 = inlined_call_operand.vmem [shape: f32[64,32], index: 1, kind: input, shape index: {}, may-alias: {0,1}]   ;;  %s17211_s2 = inlined_call_operand.vmem [shape: f32[1,32], index: 2, kind: input, shape index: {}, may-alias: {2,4}]   ;;  %s17212_s3 = inlined_call_operand.vmem [shape: f32[1,32], index: 3, kind: input, shape index: {}, may-alias: {3,5}]   ;;  %s17213_s4 = inlined_call_operand.vmem [shape: f32[1,32], index: 4, kind: input, shape index: {}, may-alias: {2,4}]   ;;  %s17214_s5 = inlined_call_operand.vmem [shape: f32[1,32], index: 5, kind: input, shape index: {}, may-alias: {3,5}]   ;;  %s17215_s6 = inlined_call_operand.vmem [shape: f32[4,32,8], index: 6, kind: input, shape index: {}]   ;;  %s17216_s7 = inlined_call_operand.vmem [shape: f32[4,1,8], index: 7, kind: input, shape index: {}]   ;;  %s17217_s8 = inlined_call_operand.vmem [shape: f32[4,32,8], index: 8, kind: input, shape index: {}]   ;;  %s17218_s9 = inlined_call_operand.vmem [shape: f32[4,1,8], index: 9, kind: input, shape index: {}]   ;;  %s17219_s10 = inlined_call_operand.vmem [shape: f32[4,32,8], index: 10, kind: input, shape index: {}]   ;;  %s17220_s11 = inlined_call_operand.vmem [shape: f32[4,1,8], index: 11, kind: input, shape index: {}]   ;;  %s17221_s12 = inlined_call_operand.vmem [shape: f32[4,8,8,8], index: 12, kind: input, shape index: {}]   ;;  %s17222_s13 = inlined_call_operand.vmem [shape: f32[4,8,8,8], index: 13, kind: input, shape index: {}]   ;;  %s17223_s14 = inlined_call_operand.vmem [shape: f32[4,8,32], index: 14, kind: input, shape index: {}]   ;;  %s17224_s15 = inlined_call_operand.vmem [shape: f32[1,32], index: 15, kind: input, shape index: {}]   ;;  %s17225_s16 = inlined_call_operand.vmem [shape: f32[64,32], index: 16, kind: output, shape index: {}]  }
   0x1   :  { %17228 = sst [smem:[#allocation5_spill]] %s17209_s0 }
   0x2   :  { %17229 = sst [smem:[#allocation6_spill]] %s17213_s4 }
   0x3   :  { %17230 = sst [smem:[#allocation7_spill]] %s17214_s5 }
   0x4   :  { %17231 = sst [smem:[#allocation8_spill]] %s17215_s6 }
   0x5   :  { %17232 = sst [smem:[#allocation9_spill]] %s17217_s8 }
   0x6   :  { %17233 = sst [smem:[#allocation10_spill]] %s17218_s9 }
   0x7   :  { %17234 = sst [smem:[#allocation11_spill]] %s17219_s10 }
   0x8 LB: > { %17235 = sst [smem:[#allocation4_spill]] %s15254_s21  ;;  %s13657_s22 = sadd.s32 4294967295, %s15254_s21   ;;  %s15254_s21 = sphi %s15344_s21, %s26_s21  }
   0x9   : > { %p13660_p0 = scmp.ge.s32.totalorder %s15254_s21, 1  ;;  %p530_p1 = scmp.lt.s32.totalorder %s15254_s21, 5 }
   0xb   : > { %p531_p2 = pnand %p13660_p0, %p530_p1 }
   0xc   : > { %p608_p3 = scmp.lt.s32.totalorder (!%p531_p2), %s13657_s22, 3  ;;  %s17236_s6 = sld [smem:[#allocation8_spill]] (!%p531_p2) }
   0xd   : > { %534 = sbr.rel (%p531_p2) target bundleno = 2011 (0x7db), region = 84  ;;  %s17237_s8 = sld [smem:[#allocation9_spill]] (!%p531_p2) }
   0xe   : > { %s17238_s9 = sld [smem:[#allocation10_spill]] (!%p531_p2)  ;;  %s17239_s10 = sld [smem:[#allocation11_spill]] (!%p531_p2) }
   0xf   : > { %p13672_p4 = scmp.ne.s32.totalorder (!%p531_p2), %s13657_s22, 0 }
  0x14   : > { %s15352_s23 = scalar_select %p608_p3, %s13657_s22, 3 }
  0x15   : > { %649 = sbr.rel (%p13672_p4) target bundleno = 380 (0x17c), region = 88  ;;  %vm658_vm0 = vcmask (!%p13672_p4), 261120   ;;  %v15462_v16 = vld [vmem:[%s17210_s1] sm:$0xff] (!%p13672_p4)  ;;  %v15467_v17 = vld [vmem:[%s17210_s1 + $0x8] sm:$0xff] (!%p13672_p4)  ;;  %v15476_v20 = vld [vmem:[%s17210_s1 + $0x10] sm:$0xff] (!%p13672_p4)  ;;  %s17241_s26 = sld [smem:[#allocation6_spill]] (!%p13672_p4) }
  0x16   : > { %s13995_s24 = sshll.u32 %s15352_s23, 5  ;;  %s15373_s21 = scalar_lea.vmem %s17238_s9, %s15352_s23  ;;  %v810_v18 = vsel (!%p13672_p4), %vm658_vm0, %v15462_v16, 0.0  ;;  %v813_v19 = vsel (!%p13672_p4), %vm658_vm0, %v15467_v17, 0.0  ;;  %v15481_v21 = vld [vmem:[%s17210_s1 + $0x18] sm:$0xff] (!%p13672_p4)  ;;  %v816_v22 = vsel (!%p13672_p4), %vm658_vm0, %v15476_v20, 0.0  ;;  %v15490_v24 = vld [vmem:[%s17210_s1 + $0x20] sm:$0xff] (!%p13672_p4) }
  0x17   : > { %s15362_s30 = scalar_lea.vmem %s17236_s6, %s13995_s24  ;;  %s15367_s18 = scalar_lea.vmem %s17237_s8, %s13995_s24  ;;  %v819_v23 = vsel (!%p13672_p4), %vm658_vm0, %v15481_v21, 0.0  ;;  %v15495_v25 = vld [vmem:[%s17210_s1 + $0x28] sm:$0xff] (!%p13672_p4)  ;;  %v822_v26 = vsel (!%p13672_p4), %vm658_vm0, %v15490_v24, 0.0  ;;  %v15504_v28 = vld [vmem:[%s17210_s1 + $0x30] sm:$0xff] (!%p13672_p4)  ;;  %v15509_v29 = vld [vmem:[%s17210_s1 + $0x38] sm:$0xff] (!%p13672_p4) }
  0x18   : > { %s15378_s25 = scalar_lea.vmem %s17239_s10, %s13995_s24  ;;  %s15384_s28 = scalar_lea.vmem %s17220_s11, %s15352_s23  ;;  %v825_v27 = vsel (!%p13672_p4), %vm658_vm0, %v15495_v25, 0.0  ;;  %v828_v30 = vsel (!%p13672_p4), %vm658_vm0, %v15504_v28, 0.0  ;;  %v831_v31 = vsel (!%p13672_p4), %vm658_vm0, %v15509_v29, 0.0 }
  0x19   : > { %s13998_s29 = sshll.u32 %s15352_s23, 6  ;;  %s13671_s9 = sshll.u32 %s15352_s23, 3 }
  0x1a   : > { %s15390_s17 = scalar_lea.vmem %s17221_s12, %s13998_s29  ;;  %s15395_s20 = scalar_lea.vmem %s17222_s13, %s13998_s29 }
  0x1b   : > { %s15401_s24 = scalar_lea.vmem %s17223_s14, %s13671_s9  ;;  %s17240_s10 = sld [smem:[#allocation5_spill]] (!%p13672_p4) }
  0x1c   : > { %s17242_s8 = sld [smem:[#allocation7_spill]] }
  0x21   : > { %v15406_v0 = vld [vmem:[%s17240_s10] sm:$0xff]  ;;  %v15411_v1 = vld [vmem:[%s17240_s10 + $0x10] sm:$0xff]  ;;  %v15416_v2 = vld [vmem:[%s17240_s10 + $0x8] sm:$0xff] }
  0x22   : > { %v659_v3 = vsel %vm658_vm0, %v15406_v0, 0.0  ;;  %v665_v4 = vsel %vm658_vm0, %v15411_v1, 0.0  ;;  %v15425_v5 = vld [vmem:[%s17240_s10 + $0x18] sm:$0xff]  ;;  %v662_v6 = vsel %vm658_vm0, %v15416_v2, 0.0  ;;  %v15434_v8 = vld [vmem:[%s17240_s10 + $0x20] sm:$0xff]  ;;  %v15439_v9 = vld [vmem:[%s17240_s10 + $0x28] sm:$0xff] }
  0x23   : > { %660 = vadd.xlane.f32.xlu0 %v659_v3  ;;  %666 = vadd.xlane.f32.xlu1 %v665_v4  ;;  %v668_v7 = vsel %vm658_vm0, %v15425_v5, 0.0  ;;  %v671_v10 = vsel %vm658_vm0, %v15434_v8, 0.0  ;;  %v674_v11 = vsel %vm658_vm0, %v15439_v9, 0.0  ;;  %v15448_v12 = vld [vmem:[%s17240_s10 + $0x30] sm:$0xff]  ;;  %v15453_v13 = vld [vmem:[%s17240_s10 + $0x38] sm:$0xff] }
  0x24   : > { %v677_v14 = vsel %vm658_vm0, %v15448_v12, 0.0  ;;  %v680_v15 = vsel %vm658_vm0, %v15453_v13, 0.0 }
  0x27   : > { %663 = vadd.xlane.f32.xlu0 %v662_v6  ;;  %669 = vadd.xlane.f32.xlu1 %v668_v7 }
  0x2b   : > { %672 = vadd.xlane.f32.xlu0 %v671_v10  ;;  %675 = vadd.xlane.f32.xlu1 %v674_v11 }
  0x2f   : > { %678 = vadd.xlane.f32.xlu0 %v677_v14  ;;  %681 = vadd.xlane.f32.xlu1 %v680_v15 }
  0x33   : > { %811 = vadd.xlane.f32.xlu0 %v810_v18  ;;  %814 = vadd.xlane.f32.xlu1 %v813_v19 }
  0x37   : > { %817 = vadd.xlane.f32.xlu0 %v816_v22  ;;  %820 = vadd.xlane.f32.xlu1 %v819_v23 }
  0x3b   : > { %823 = vadd.xlane.f32.xlu0 %v822_v26  ;;  %826 = vadd.xlane.f32.xlu1 %v825_v27 }
  0x3f   : > { %829 = vadd.xlane.f32.xlu0 %v828_v30  ;;  %832 = vadd.xlane.f32.xlu1 %v831_v31 }
  0xb0   : > { %v661_v32 = vpop.xlane.xlu0 %660  ;;  %v667_v33 = vpop.xlane.xlu1 %666 }
  0xb1   : > { %v684_v34 = vmul.f32 0.03125, %v661_v32  ;;  %v686_v35 = vmul.f32 0.03125, %v667_v33 }
  0xb3   : > { %v15516_v36 = vsub.f32 %v15406_v0, %v684_v34  ;;  %v15519_v37 = vsub.f32 %v15411_v1, %v686_v35 }
  0xb4   : > { %v664_v38 = vpop.xlane.xlu0 %663  ;;  %v670_v39 = vpop.xlane.xlu1 %669 }
  0xb5   : > { %v685_v40 = vmul.f32 0.03125, %v664_v38  ;;  %v687_v41 = vmul.f32 0.03125, %v670_v39  ;;  %v700_v42 = vmul.f32 %v15516_v36, %v15516_v36  ;;  %v702_v43 = vmul.f32 %v15519_v37, %v15519_v37 }
  0xb7   : > { %v15526_v44 = vsub.f32 %v15416_v2, %v685_v40  ;;  %v15529_v45 = vsub.f32 %v15425_v5, %v687_v41  ;;  %v708_v46 = vsel %vm658_vm0, %v700_v42, 0.0  ;;  %v714_v49 = vsel %vm658_vm0, %v702_v43, 0.0 }
  0xb8   : > { %709 = vadd.xlane.f32.xlu0 %v708_v46  ;;  %v673_v47 = vpop.xlane.xlu0 %672  ;;  %v676_v48 = vpop.xlane.xlu1 %675 }
  0xb9   : > { %v688_v50 = vmul.f32 0.03125, %v673_v47  ;;  %v689_v51 = vmul.f32 0.03125, %v676_v48  ;;  %v701_v52 = vmul.f32 %v15526_v44, %v15526_v44  ;;  %v703_v53 = vmul.f32 %v15529_v45, %v15529_v45 }
  0xbb   : > { %v15538_v54 = vsub.f32 %v15434_v8, %v688_v50  ;;  %v15541_v55 = vsub.f32 %v15439_v9, %v689_v51  ;;  %v711_v56 = vsel %vm658_vm0, %v701_v52, 0.0  ;;  %v717_v59 = vsel %vm658_vm0, %v703_v53, 0.0 }
  0xbc   : > { %715 = vadd.xlane.f32.xlu0 %v714_v49  ;;  %712 = vadd.xlane.f32.xlu1 %v711_v56  ;;  %v679_v57 = vpop.xlane.xlu0 %678  ;;  %v682_v58 = vpop.xlane.xlu1 %681 }
  0xbd   : > { %v690_v60 = vmul.f32 0.03125, %v679_v57  ;;  %v691_v61 = vmul.f32 0.03125, %v682_v58  ;;  %v704_v62 = vmul.f32 %v15538_v54, %v15538_v54  ;;  %v705_v63 = vmul.f32 %v15541_v55, %v15541_v55 }
  0xbf   : > { %v15550_v3 = vsub.f32 %v15448_v12, %v690_v60  ;;  %v15553_v4 = vsub.f32 %v15453_v13, %v691_v61  ;;  %v720_v6 = vsel %vm658_vm0, %v704_v62, 0.0  ;;  %v723_v11 = vsel %vm658_vm0, %v705_v63, 0.0 }
  0xc0   : > { %718 = vadd.xlane.f32.xlu1 %v717_v59  ;;  %721 = vadd.xlane.f32.xlu0 %v720_v6  ;;  %v812_v7 = vpop.xlane.xlu0 %811  ;;  %v815_v10 = vpop.xlane.xlu1 %814 }
  0xc1   : > { %v834_v14 = vmul.f32 0.03125, %v812_v7  ;;  %v835_v15 = vmul.f32 0.03125, %v815_v10  ;;  %v706_v18 = vmul.f32 %v15550_v3, %v15550_v3  ;;  %v707_v19 = vmul.f32 %v15553_v4, %v15553_v4 }
  0xc3   : > { %v15562_v22 = vsub.f32 %v15462_v16, %v834_v14  ;;  %v15565_v23 = vsub.f32 %v15467_v17, %v835_v15  ;;  %v726_v26 = vsel %vm658_vm0, %v706_v18, 0.0  ;;  %v729_v31 = vsel %vm658_vm0, %v707_v19, 0.0 }
  0xc4   : > { %724 = vadd.xlane.f32.xlu1 %v723_v11  ;;  %727 = vadd.xlane.f32.xlu0 %v726_v26  ;;  %v818_v27 = vpop.xlane.xlu0 %817  ;;  %v821_v30 = vpop.xlane.xlu1 %820 }
  0xc5   : > { %v836_v32 = vmul.f32 0.03125, %v818_v27  ;;  %v837_v33 = vmul.f32 0.03125, %v821_v30  ;;  %v850_v34 = vmul.f32 %v15562_v22, %v15562_v22  ;;  %v851_v16 = vmul.f32 %v15565_v23, %v15565_v23 }
  0xc7   : > { %v15574_v35 = vsub.f32 %v15476_v20, %v836_v32  ;;  %v15577_v17 = vsub.f32 %v15481_v21, %v837_v33  ;;  %v858_v38 = vsel %vm658_vm0, %v850_v34, 0.0  ;;  %v861_v41 = vsel %vm658_vm0, %v851_v16, 0.0 }
  0xc8   : > { %730 = vadd.xlane.f32.xlu1 %v729_v31  ;;  %859 = vadd.xlane.f32.xlu0 %v858_v38  ;;  %v824_v39 = vpop.xlane.xlu0 %823  ;;  %v827_v40 = vpop.xlane.xlu1 %826 }
  0xc9   : > { %v838_v42 = vmul.f32 0.03125, %v824_v39  ;;  %v839_v43 = vmul.f32 0.03125, %v827_v40  ;;  %v852_v46 = vmul.f32 %v15574_v35, %v15574_v35  ;;  %v853_v20 = vmul.f32 %v15577_v17, %v15577_v17 }
  0xcb   : > { %v15586_v47 = vsub.f32 %v15490_v24, %v838_v42  ;;  %v15589_v21 = vsub.f32 %v15495_v25, %v839_v43  ;;  %v864_v48 = vsel %vm658_vm0, %v852_v46, 0.0  ;;  %v867_v51 = vsel %vm658_vm0, %v853_v20, 0.0 }
  0xcc   : > { %862 = vadd.xlane.f32.xlu1 %v861_v41  ;;  %865 = vadd.xlane.f32.xlu0 %v864_v48  ;;  %v830_v49 = vpop.xlane.xlu0 %829  ;;  %v833_v50 = vpop.xlane.xlu1 %832  ;;  %v15657_v41 = vld [vmem:[%s17211_s2] ss:$0 sm:$0xff] }
  0xcd   : > { %v840_v52 = vmul.f32 0.03125, %v830_v49  ;;  %v841_v53 = vmul.f32 0.03125, %v833_v50  ;;  %v854_v56 = vmul.f32 %v15586_v47, %v15586_v47  ;;  %v855_v24 = vmul.f32 %v15589_v21, %v15589_v21  ;;  %v15663_v49 = vld [vmem:[%s17212_s3] ss:$0 sm:$0xff] }
  0xcf   : > { %v15598_v57 = vsub.f32 %v15504_v28, %v840_v52  ;;  %v15601_v25 = vsub.f32 %v15509_v29, %v841_v53  ;;  %v870_v58 = vsel %vm658_vm0, %v854_v56, 0.0  ;;  %v873_v59 = vsel %vm658_vm0, %v855_v24, 0.0  ;;  %v13677_v29 = vld [vmem:[%s17224_s15] ss:$0 sm:$0xff] }
  0xd0   : > { %868 = vadd.xlane.f32.xlu1 %v867_v51  ;;  %871 = vadd.xlane.f32.xlu0 %v870_v58  ;;  %v967_v63 = vadd.f32 %v13677_v29, %v15406_v0  ;;  %v968_v6 = vadd.f32 %v13677_v29, %v15416_v2  ;;  %v969_v7 = vadd.f32 %v13677_v29, %v15411_v1 }
  0xd1   : > { %v856_v60 = vmul.f32 %v15598_v57, %v15598_v57  ;;  %v857_v61 = vmul.f32 %v15601_v25, %v15601_v25  ;;  %v970_v10 = vadd.f32 %v13677_v29, %v15425_v5  ;;  %v971_v11 = vadd.f32 %v13677_v29, %v15434_v8 }
  0xd2   : > { %v972_v14 = vadd.f32 %v13677_v29, %v15439_v9  ;;  %v973_v15 = vadd.f32 %v13677_v29, %v15448_v12  ;;  %v974_v18 = vadd.f32 %v13677_v29, %v15453_v13  ;;  %975 = vst.msk [vmem:[%s17225_s16] sm:$0xff] %vm658_vm0, %v967_v63  ;;  %976 = vst.msk [vmem:[%s17225_s16 + $0x8] sm:$0xff] %vm658_vm0, %v968_v6 }
  0xd3   : > { %v876_v62 = vsel %vm658_vm0, %v856_v60, 0.0  ;;  %v879_v28 = vsel %vm658_vm0, %v857_v61, 0.0  ;;  %977 = vst.msk [vmem:[%s17225_s16 + $0x10] sm:$0xff] %vm658_vm0, %v969_v7  ;;  %978 = vst.msk [vmem:[%s17225_s16 + $0x18] sm:$0xff] %vm658_vm0, %v970_v10 }
  0xd4   : > { %874 = vadd.xlane.f32.xlu1 %v873_v59  ;;  %877 = vadd.xlane.f32.xlu0 %v876_v62  ;;  %979 = vst.msk [vmem:[%s17225_s16 + $0x20] sm:$0xff] %vm658_vm0, %v971_v11  ;;  %980 = vst.msk [vmem:[%s17225_s16 + $0x28] sm:$0xff] %vm658_vm0, %v972_v14 }
  0xd5   : > { %981 = vst.msk [vmem:[%s17225_s16 + $0x30] sm:$0xff] %vm658_vm0, %v973_v15  ;;  %982 = vst.msk [vmem:[%s17225_s16 + $0x38] sm:$0xff] %vm658_vm0, %v974_v18 }
  0xd8   : > { %880 = vadd.xlane.f32.xlu1 %v879_v28 }
 0x145   : > { %v710_v0 = vpop.xlane.xlu0 %709 }
 0x146   : > { %v732_v1 = vmul.f32 0.03125, %v710_v0 }
 0x148   : > { %v740_v2 = vadd.f32 1e-05, %v732_v1 }
 0x149   : > { %v713_v5 = vpop.xlane.xlu1 %712  ;;  %v716_v8 = vpop.xlane.xlu0 %715 }
 0x14a   : > { %15166 = vrsqrt.f32 %v740_v2  ;;  %v733_v9 = vmul.f32 0.03125, %v713_v5  ;;  %v734_v12 = vmul.f32 0.03125, %v716_v8 }
 0x14c   : > { %v741_v13 = vadd.f32 1e-05, %v733_v9  ;;  %v742_v19 = vadd.f32 1e-05, %v734_v12 }
 0x14d   : > { %v719_v26 = vpop.xlane.xlu1 %718  ;;  %v722_v27 = vpop.xlane.xlu0 %721 }
 0x14e   : > { %15168 = vrsqrt.f32 %v741_v13  ;;  %v735_v30 = vmul.f32 0.03125, %v719_v26  ;;  %v736_v31 = vmul.f32 0.03125, %v722_v27 }
 0x14f   : > { %15170 = vrsqrt.f32 %v742_v19 }
 0x150   : > { %v743_v32 = vadd.f32 1e-05, %v735_v30  ;;  %v744_v33 = vadd.f32 1e-05, %v736_v31 }
 0x151   : > { %v725_v34 = vpop.xlane.xlu1 %724  ;;  %v728_v16 = vpop.xlane.xlu0 %727 }
 0x152   : > { %15172 = vrsqrt.f32 %v743_v32  ;;  %v737_v38 = vmul.f32 0.03125, %v725_v34  ;;  %v738_v39 = vmul.f32 0.03125, %v728_v16 }
 0x153   : > { %15174 = vrsqrt.f32 %v744_v33 }
 0x154   : > { %v15167_v40 = vpop.eup %15166  ;;  %v745_v42 = vadd.f32 1e-05, %v737_v38  ;;  %v746_v43 = vadd.f32 1e-05, %v738_v39 }
 0x155   : > { %v756_v46 = vmul.f32 %v15167_v40, %v15516_v36  ;;  %v731_v20 = vpop.xlane.xlu1 %730  ;;  %v860_v48 = vpop.xlane.xlu0 %859 }
 0x156   : > { %15176 = vrsqrt.f32 %v745_v42  ;;  %v739_v50 = vmul.f32 0.03125, %v731_v20  ;;  %v882_v51 = vmul.f32 0.03125, %v860_v48 }
 0x157   : > { %v771_v52 = vmul.f32 %v15657_v41, %v756_v46  ;;  %15178 = vrsqrt.f32 %v746_v43 }
 0x158   : > { %v15169_v53 = vpop.eup %15168  ;;  %v747_v56 = vadd.f32 1e-05, %v739_v50  ;;  %v890_v24 = vadd.f32 1e-05, %v882_v51 }
 0x159   : > { %v15171_v58 = vpop.eup %15170  ;;  %v786_v59 = vadd.f32 %v15663_v49, %v771_v52  ;;  %v757_v36 = vmul.f32 %v15169_v53, %v15526_v44  ;;  %v863_v60 = vpop.xlane.xlu1 %862 }
 0x15a   : > { %v866_v61 = vpop.xlane.xlu0 %865  ;;  %v758_v62 = vmul.f32 %v15171_v58, %v15519_v37  ;;  %15180 = vrsqrt.f32 %v747_v56  ;;  %v883_v28 = vmul.f32 0.03125, %v863_v60 }
 0x15b   : > { %v884_v29 = vmul.f32 0.03125, %v866_v61  ;;  %794 = vst.msk [vmem:[#allocation2] sm:$0xff] %vm658_vm0, %v786_v59  ;;  %v772_v63 = vmul.f32 %v15657_v41, %v757_v36  ;;  %15182 = vrsqrt.f32 %v890_v24 }
 0x15c   : > { %v15173_v6 = vpop.eup %15172  ;;  %v773_v7 = vmul.f32 %v15657_v41, %v758_v62  ;;  %v891_v10 = vadd.f32 1e-05, %v883_v28 }
 0x15d   : > { %v892_v11 = vadd.f32 1e-05, %v884_v29  ;;  %v15175_v14 = vpop.eup %15174  ;;  %v787_v44 = vadd.f32 %v15663_v49, %v772_v63  ;;  %v759_v15 = vmul.f32 %v15173_v6, %v15529_v45  ;;  %v869_v18 = vpop.xlane.xlu1 %868 }
 0x15e   : > { %v872_v37 = vpop.xlane.xlu0 %871  ;;  %v788_v0 = vadd.f32 %v15663_v49, %v773_v7  ;;  %v760_v1 = vmul.f32 %v15175_v14, %v15538_v54  ;;  %15184 = vrsqrt.f32 %v891_v10  ;;  %v885_v2 = vmul.f32 0.03125, %v869_v18 }
 0x15f   : > { %795 = vst.msk [vmem:[#allocation2 + $0x8] sm:$0xff] %vm658_vm0, %v787_v44  ;;  %v774_v5 = vmul.f32 %v15657_v41, %v759_v15  ;;  %15186 = vrsqrt.f32 %v892_v11  ;;  %v886_v8 = vmul.f32 0.03125, %v872_v37 }
 0x160   : > { %v15177_v9 = vpop.eup %15176  ;;  %796 = vst.msk [vmem:[#allocation2 + $0x10] sm:$0xff] %vm658_vm0, %v788_v0  ;;  %v775_v12 = vmul.f32 %v15657_v41, %v760_v1  ;;  %v893_v45 = vadd.f32 1e-05, %v885_v2 }
 0x161   : > { %v15179_v13 = vpop.eup %15178  ;;  %v789_v19 = vadd.f32 %v15663_v49, %v774_v5  ;;  %v761_v26 = vmul.f32 %v15177_v9, %v15541_v55  ;;  %v894_v54 = vadd.f32 1e-05, %v886_v8  ;;  %v875_v27 = vpop.xlane.xlu1 %874 }
 0x162   : > { %v878_v30 = vpop.xlane.xlu0 %877  ;;  %v790_v31 = vadd.f32 %v15663_v49, %v775_v12  ;;  %v762_v32 = vmul.f32 %v15179_v13, %v15550_v3  ;;  %15188 = vrsqrt.f32 %v893_v45  ;;  %v887_v33 = vmul.f32 0.03125, %v875_v27  ;;  %v13675_v3 = vld [vmem:[%s17241_s26] ss:$0 sm:$0xff] }
 0x163   : > { %797 = vst.msk [vmem:[#allocation2 + $0x18] sm:$0xff] %vm658_vm0, %v789_v19  ;;  %v776_v34 = vmul.f32 %v15657_v41, %v761_v26  ;;  %15190 = vrsqrt.f32 %v894_v54  ;;  %v888_v16 = vmul.f32 0.03125, %v878_v30 }
 0x164   : > { %v15181_v38 = vpop.eup %15180  ;;  %798 = vst.msk [vmem:[#allocation2 + $0x20] sm:$0xff] %vm658_vm0, %v790_v31  ;;  %v777_v55 = vmul.f32 %v15657_v41, %v762_v32  ;;  %v895_v39 = vadd.f32 1e-05, %v887_v33 }
 0x165   : > { %v15183_v40 = vpop.eup %15182  ;;  %v791_v42 = vadd.f32 %v15663_v49, %v776_v34  ;;  %v763_v43 = vmul.f32 %v15181_v38, %v15553_v4  ;;  %v896_v46 = vadd.f32 1e-05, %v888_v16  ;;  %v881_v20 = vpop.xlane.xlu1 %880  ;;  %v13676_v4 = vld [vmem:[%s17242_s8] ss:$0 sm:$0xff] }
 0x166   : > { %v792_v48 = vadd.f32 %v15663_v49, %v777_v55  ;;  %v906_v50 = vmul.f32 %v15183_v40, %v15562_v22  ;;  %15192 = vrsqrt.f32 %v895_v39  ;;  %v889_v51 = vmul.f32 0.03125, %v881_v20 }
 0x167   : > { %799 = vst.msk [vmem:[#allocation2 + $0x28] sm:$0xff] %vm658_vm0, %v791_v42  ;;  %v778_v52 = vmul.f32 %v15657_v41, %v763_v43  ;;  %15194 = vrsqrt.f32 %v896_v46 }
 0x168   : > { %v15185_v53 = vpop.eup %15184  ;;  %800 = vst.msk [vmem:[#allocation2 + $0x30] sm:$0xff] %vm658_vm0, %v792_v48  ;;  %v921_v56 = vmul.f32 %v13675_v3, %v906_v50  ;;  %v897_v24 = vadd.f32 1e-05, %v889_v51 }
 0x169   : > { %v15187_v58 = vpop.eup %15186  ;;  %v793_v59 = vadd.f32 %v15663_v49, %v778_v52  ;;  %v907_v22 = vmul.f32 %v15185_v53, %v15565_v23 }
 0x16a   : > { %v936_v36 = vadd.f32 %v13676_v4, %v921_v56  ;;  %v908_v60 = vmul.f32 %v15187_v58, %v15574_v35  ;;  %15196 = vrsqrt.f32 %v897_v24 }
 0x16b   : > { %801 = vst.msk [vmem:[#allocation2 + $0x38] sm:$0xff] %vm658_vm0, %v793_v59  ;;  %v922_v41 = vmul.f32 %v13675_v3, %v907_v22 }
 0x16c   : > { %v15189_v61 = vpop.eup %15188  ;;  %944 = vst.msk [vmem:[#allocation3] sm:$0xff] %vm658_vm0, %v936_v36  ;;  %v923_v62 = vmul.f32 %v13675_v3, %v908_v60 }
 0x16d   : > { %v15191_v28 = vpop.eup %15190  ;;  %v937_v29 = vadd.f32 %v13676_v4, %v922_v41  ;;  %v909_v63 = vmul.f32 %v15189_v61, %v15577_v17 }
 0x16e   : > { %v938_v6 = vadd.f32 %v13676_v4, %v923_v62  ;;  %v910_v49 = vmul.f32 %v15191_v28, %v15586_v47 }
 0x16f   : > { %945 = vst.msk [vmem:[#allocation3 + $0x8] sm:$0xff] %vm658_vm0, %v937_v29  ;;  %v924_v23 = vmul.f32 %v13675_v3, %v909_v63 }
 0x170   : > { %v15193_v7 = vpop.eup %15192  ;;  %946 = vst.msk [vmem:[#allocation3 + $0x10] sm:$0xff] %vm658_vm0, %v938_v6  ;;  %v925_v35 = vmul.f32 %v13675_v3, %v910_v49 }
 0x171   : > { %v15195_v10 = vpop.eup %15194  ;;  %v939_v11 = vadd.f32 %v13676_v4, %v924_v23  ;;  %v911_v14 = vmul.f32 %v15193_v7, %v15589_v21 }
 0x172   : > { %v940_v44 = vadd.f32 %v13676_v4, %v925_v35  ;;  %v912_v15 = vmul.f32 %v15195_v10, %v15598_v57 }
 0x173   : > { %947 = vst.msk [vmem:[#allocation3 + $0x18] sm:$0xff] %vm658_vm0, %v939_v11  ;;  %v926_v17 = vmul.f32 %v13675_v3, %v911_v14 }
 0x174   : > { %v15197_v18 = vpop.eup %15196  ;;  %948 = vst.msk [vmem:[#allocation3 + $0x20] sm:$0xff] %vm658_vm0, %v940_v44  ;;  %v927_v47 = vmul.f32 %v13675_v3, %v912_v15 }
 0x175   : > { %v941_v37 = vadd.f32 %v13676_v4, %v926_v17  ;;  %v913_v0 = vmul.f32 %v15197_v18, %v15601_v25 }
 0x176   : > { %v942_v1 = vadd.f32 %v13676_v4, %v927_v47 }
 0x177   : > { %949 = vst.msk [vmem:[#allocation3 + $0x28] sm:$0xff] %vm658_vm0, %v941_v37  ;;  %v928_v2 = vmul.f32 %v13675_v3, %v913_v0 }
 0x178   : > { %950 = vst.msk [vmem:[#allocation3 + $0x30] sm:$0xff] %vm658_vm0, %v942_v1 }
 0x179   : > { %v943_v21 = vadd.f32 %v13676_v4, %v928_v2 }
 0x17b   : > { %951 = vst.msk [vmem:[#allocation3 + $0x38] sm:$0xff] %vm658_vm0, %v943_v21 }
 0x17c PF: > { %v999_v57 = vld [vmem:[%s15362_s30] sm:$0xff]  ;;  %v1000_v5 = vld [vmem:[%s15362_s30 + $0x8] sm:$0xff]  ;;  %v1001_v8 = vld [vmem:[%s15362_s30 + $0x10] sm:$0xff]  ;;  %vm1010_vm1 = vcmask 261120   ;;  %v15256_v51 = vmov 0.0   ;;  %vm1462_vm2 = vcmask 64512   ;;  %v1417_v60 = vlaneseq }
 0x17d   : > { %v15127_v25 = vpack.c.bf16 %v1000_v5, %v999_v57  ;;  %v1002_v9 = vld [vmem:[%s15362_s30 + $0x18] sm:$0xff]  ;;  %v983_v12 = vld [vmem:[#allocation2] sm:$0xff]  ;;  %v1141_v26 = vld [vmem:[%s15367_s18 + $0x8] sm:$0xff]  ;;  %vm15257_vm3 = vmmov 0   ;;  %v15258_v22 = vmov 1966171168  }
 0x17e   : > { %v15131_v45 = vpack.c.bf16 %v1002_v9, %v1001_v8  ;;  %14341 = vmatprep.mubr.msk.f32.mxu0 %vm1010_vm1, %v983_v12  ;;  %v1140_v13 = vld [vmem:[%s15367_s18] sm:$0xff]  ;;  %v1142_v27 = vld [vmem:[%s15367_s18 + $0x10] sm:$0xff]  ;;  %v1143_v30 = vld [vmem:[%s15367_s18 + $0x18] sm:$0xff]  ;;  %v1415_v36 = vunpack.c.l.s4 %v15258_v22  ;;  %v1418_v61 = vshrl.u32 %v1417_v60, 7  ;;  %vm2722_vm4 = vcmask 1041409  }
 0x17f   : > { %15128 = vmatprep.subr.bf16.mxu0 %v15127_v25  ;;  %15151 = vmatprep.subr.bf16.mxu1 %v15127_v25  ;;  %v987_v19 = vld [vmem:[#allocation2 + $0x20] sm:$0xff]  ;;  %v15135_v54 = vpack.c.bf16 %v1141_v26, %v1140_v13  ;;  %v1281_v32 = vld [vmem:[%s15378_s25 + $0x8] sm:$0xff]  ;;  %v989_v38 = vld [vmem:[#allocation2 + $0x30] sm:$0xff]  ;;  %v15139_v55 = vpack.c.bf16 %v1143_v30, %v1142_v27  ;;  %vm2725_vm5 = vcmask 1042434   ;;  %vm2728_vm6 = vcmask 1043459  }
 0x180   : > { %15130 = vmatpush3.bf16.msra.mxu0 %v15127_v25  ;;  %15153 = vmatpush3.bf16.msra.mxu1 %v15127_v25  ;;  %v1280_v31 = vld [vmem:[%s15378_s25] sm:$0xff]  ;;  %v984_v33 = vld [vmem:[#allocation2 + $0x8] sm:$0xff]  ;;  %v985_v39 = vld [vmem:[#allocation2 + $0x10] sm:$0xff]  ;;  %v1416_v41 = vunpack.c.0.s8 %v1415_v36  ;;  %vm2731_vm7 = vcmask 1044484   ;;  %vm2734_vm8 = vcmask 1045509   ;;  %vm2737_vm9 = vcmask 1046534  }
 0x181   : > { %15132 = vmatprep.subr.bf16.mxu0 %v15131_v45  ;;  %15152 = vmatprep.subr.bf16.mxu1 %v15131_v45  ;;  %v988_v34 = vld [vmem:[#allocation2 + $0x28] sm:$0xff]  ;;  %v15143_v16 = vpack.c.bf16 %v1281_v32, %v1280_v31  ;;  %v1282_v40 = vld [vmem:[%s15378_s25 + $0x10] sm:$0xff]  ;;  %v1283_v42 = vld [vmem:[%s15378_s25 + $0x18] sm:$0xff]  ;;  %s17243_s25 = scalar_lea.vmem %s17216_s7, %s15352_s23  ;;  %vm2740_vm10 = vcmask 1047559  }
 0x182   : > { %14347 = vmatprep.mubr.msk.f32.mxu1 %vm1010_vm1, %v987_v19  ;;  %v990_v43 = vld [vmem:[#allocation2 + $0x38] sm:$0xff]  ;;  %v991_v46 = vld [vmem:[#allocation3] sm:$0xff]  ;;  %v15147_v20 = vpack.c.bf16 %v1283_v42, %v1282_v40  ;;  %v992_v48 = vld [vmem:[#allocation3 + $0x8] sm:$0xff]  ;;  %v15781_v29 = vsub.s32 %v1416_v41, %v1418_v61 }
 0x183   : > { %v986_v3 = vld [vmem:[#allocation2 + $0x18] sm:$0xff]  ;;  %v993_v50 = vld [vmem:[#allocation3 + $0x10] sm:$0xff]  ;;  %v995_v4 = vld [vmem:[#allocation3 + $0x20] sm:$0xff] }
 0x184   : > { %15134 = vmatpush3.bf16.msra.mxu0 %v15131_v45  ;;  %15154 = vmatpush3.bf16.msra.mxu1 %v15131_v45  ;;  %v994_v52 = vld [vmem:[#allocation3 + $0x18] sm:$0xff]  ;;  %v996_v53 = vld [vmem:[#allocation3 + $0x28] sm:$0xff]  ;;  %v15749_v56 = vld [vmem:[%s15390_s17 + $0x20] sm:$0xff] }
 0x185   : > { %15136 = vmatprep.subr.bf16.mxu1 %v15135_v54  ;;  %15144 = vmatprep.subr.bf16.mxu0 %v15143_v16  ;;  %v997_v24 = vld [vmem:[#allocation3 + $0x30] sm:$0xff]  ;;  %v998_v58 = vld [vmem:[#allocation3 + $0x38] sm:$0xff]  ;;  %v15763_v59 = vld [vmem:[%s15390_s17] sm:$0xff] }
 0x186   : > { %v15777_v62 = vld [vmem:[%s17243_s25] ss:$0 sm:$0xff]  ;;  %v15799_v37 = vld [vmem:[%s15390_s17 + $0x8] sm:$0xff]  ;;  %v15806_v21 = vld [vmem:[%s15390_s17 + $0x30] sm:$0xff] }
 0x187   : > { %14342 = vmatmul.mubr.msk.f32.vlgmr.msra.gmra.mrb[0].mxu0 %vm1010_vm1, %v984_v33  ;;  %14348 = vmatmul.mubr.msk.f32.vlgmr.msra.gmra.mrb[0].mxu1 %vm1010_vm1, %v988_v34  ;;  %v15820_v25 = vld [vmem:[%s15390_s17 + $0x10] sm:$0xff]  ;;  %v15836_v19 = vld [vmem:[%s15395_s20] sm:$0xff]  ;;  %v15852_v31 = vld [vmem:[%s15390_s17 + $0x18] sm:$0xff] }
 0x188   : > { %15138 = vmatpush3.bf16.msra.mxu1 %v15135_v54  ;;  %14350 = vmatprep.mubr.msk.f32.mxu1 %vm1010_vm1, %v989_v38  ;;  %v15847_v30 = vld [vmem:[%s15373_s21] ss:$0 sm:$0xff]  ;;  %v15864_v34 = vld [vmem:[%s15390_s17 + $0x28] sm:$0xff]  ;;  %v15925_v22 = vld [vmem:[%s15395_s20 + $0x30] sm:$0xff] }
 0x189   : > { %15140 = vmatprep.subr.bf16.mxu1 %v15139_v55  ;;  %14344 = vmatprep.mubr.msk.f32.mxu0 %vm1010_vm1, %v985_v39  ;;  %v15936_v60 = vld [vmem:[%s15395_s20 + $0x18] sm:$0xff] }
 0x18a   : > { %15146 = vmatpush3.bf16.msra.mxu0 %v15143_v16 }
 0x18b   : > { %14351 = vmatmul.mubr.msk.f32.gmra.mrb[2].mxu1 %vm1010_vm1, %v990_v43  ;;  %14345 = vmatmul.mubr.msk.f32.gmra.mrb[2].mxu0 %vm1010_vm1, %v986_v3  ;;  %v15883_v43 = vld [vmem:[%s15395_s20 + $0x10] sm:$0xff] }
 0x18c   : > { %15142 = vmatpush3.bf16.msra.mxu1 %v15139_v55  ;;  %14361 = vmatprep.mubr.msk.f32.mxu1 %vm1010_vm1, %v991_v46 }
 0x18d   : > { %15148 = vmatprep.subr.bf16.mxu0 %v15147_v20  ;;  %14381 = vmatprep.mubr.msk.f32.mxu0 %vm1010_vm1, %v991_v46  ;;  %v15893_v46 = vld [vmem:[%s15390_s17 + $0x38] sm:$0xff] }
 0x18e   : > { %15150 = vmatpush3.bf16.msra.mxu0 %v15147_v20  ;;  %14393 = vmatprep.subr.mxu1 %v15256_v51 }
 0x18f   : > { %14362 = vmatmul.mubr.msk.f32.vlgmr.msra.gmra.mrb[4].mxu1 %vm1010_vm1, %v992_v48  ;;  %14413 = vmatprep.subr.mxu0 %v15256_v51 }
 0x190   : > { %14364 = vmatprep.mubr.msk.f32.mxu1 %vm1010_vm1, %v993_v50 }
 0x191   : > { %14382 = vmatmul.mubr.msk.f32.vlgmr.msra.gmra.mrb[4].mxu0 %vm1010_vm1, %v992_v48 }
 0x192   : > { %14384 = vmatprep.mubr.msk.f32.mxu0 %vm1010_vm1, %v993_v50  ;;  %v15902_v50 = vld [vmem:[%s15395_s20 + $0x20] sm:$0xff] }
 0x193   : > { %14365 = vmatmul.mubr.msk.f32.gmra.mrb[6].mxu1 %vm1010_vm1, %v994_v52 }
 0x194   : > { %14367 = vmatprep.mubr.msk.f32.mxu1 %vm1010_vm1, %v995_v4 }
 0x195   : > { %14385 = vmatmul.mubr.msk.f32.gmra.mrb[6].mxu0 %vm1010_vm1, %v994_v52  ;;  %14394 = vmatpush3.xpose.msk.msra.mxu1 %vm1462_vm2, %v15763_v59 }
 0x196   : > { %14387 = vmatprep.mubr.msk.f32.mxu0 %vm1010_vm1, %v995_v4  ;;  %14398 = vmatprep.subr.mxu1 %v15256_v51 }
 0x197   : > { %14368 = vmatmul.mubr.msk.f32.gmra.mrb[8].mxu1 %vm1010_vm1, %v996_v53  ;;  %14414 = vmatpush3.xpose.msk.msra.mxu0 %vm1462_vm2, %v15749_v56 }
 0x198   : > { %14370 = vmatprep.mubr.msk.f32.mxu1 %vm1010_vm1, %v997_v24  ;;  %14423 = vmatprep.subr.mxu0 %v15256_v51 }
 0x199   : > { %14388 = vmatmul.mubr.msk.f32.gmra.mrb[8].mxu0 %vm1010_vm1, %v996_v53  ;;  %v15912_v53 = vld [vmem:[%s15395_s20 + $0x8] sm:$0xff] }
 0x19a   : > { %14390 = vmatprep.mubr.msk.f32.mxu0 %vm1010_vm1, %v997_v24 }
 0x19b   : > { %14371 = vmatmul.mubr.msk.f32.gmra.mrb[10].mxu1 %vm1010_vm1, %v998_v58 }
 0x19c   : > { %14395 = vmatprep.mubr.msk.f32.mxu1 %vm15257_vm3, %v15256_v51 }
 0x19d   : > { %14391 = vmatmul.mubr.msk.f32.gmra.mrb[10].mxu0 %vm1010_vm1, %v998_v58 }
 0x19e   : > { %14415 = vmatprep.mubr.msk.f32.mxu0 %vm15257_vm3, %v15256_v51 }
 0x25a   : > { %v15779_v28 = vpop.f32.mrb[0].mxu0  ;;  %v14349_v63 = vpop.f32.mrb[0].mxu1 }
 0x25b   : > { %v1101_v6 = vpop.f32.mrb[1].mxu0  ;;  %v15784_v49 = vadd.f32 %v14349_v63, %v15777_v62  ;;  %v1121_v23 = vpop.f32.mrb[1].mxu1  ;;  %v15920_v24 = vadd.f32 %v15779_v28, %v15777_v62  ;;  %v15953_v63 = vld [vmem:[%s15395_s20 + $0x28] sm:$0xff] }
 0x25c   : > { %v15787_v7 = vadd.f32 %v15777_v62, %v1101_v6  ;;  %v15790_v35 = vadd.f32 %v15777_v62, %v1121_v23 }
 0x25d   : > { %v2783_v41 = vrot.slane %v15920_v24, %v15781_v29  ;;  %v2776_v6 = vcombine.high %v15920_v24, %v15920_v24 }
 0x25e   : > { %v1413_v10 = vcombine.high %v15787_v7, %v15787_v7  ;;  %v1420_v11 = vrot.slane %v15787_v7, %v15781_v29  ;;  %v14352_v14 = vpop.f32.mrb[2].mxu1  ;;  %v14346_v44 = vpop.f32.mrb[2].mxu0 }
 0x25f   : > { %v1131_v15 = vpop.f32.mrb[3].mxu1  ;;  %v1111_v17 = vpop.f32.mrb[3].mxu0  ;;  %v15815_v8 = vadd.f32 %v14352_v14, %v15777_v62  ;;  %v15874_v55 = vadd.f32 %v14346_v44, %v15777_v62  ;;  %v2799_v23 = vrot.slane %v2783_v41, %v15781_v29  ;;  %v2790_v14 = vrot.slane %v2776_v6, %v15781_v29 }
 0x260   : > { %v1427_v18 = vrot.slane %v1413_v10, %v15781_v29  ;;  %v1436_v47 = vrot.slane %v1420_v11, %v15781_v29  ;;  %v1428_v0 = vcombine.high %v1420_v11, %v1420_v11  ;;  %v15829_v45 = vadd.f32 %v15777_v62, %v1131_v15  ;;  %v15972_v11 = vld [vmem:[%s15395_s20 + $0x38] sm:$0xff] }
 0x261   : > { %v15877_v39 = vadd.f32 %v15777_v62, %v1111_v17  ;;  %v2821_v44 = vcombine.high %v2799_v23, %v2799_v23  ;;  %v2791_v15 = vcombine.high %v2783_v41, %v2783_v41 }
 0x262   : > { %v1443_v1 = vrot.slane %v1427_v18, %v15781_v29  ;;  %14396 = vmatmul.mubr.msk.f32.vlgmr.msra.gmra.mrb[12].mxu1 %vm1462_vm2, %v1436_v47  ;;  %v15803_v2 = vpop.f32.mrb[4].mxu1  ;;  %v1450_v5 = vrot.slane %v1428_v0, %v15781_v29  ;;  %v1458_v27 = vcombine.high %v1436_v47, %v1436_v47  ;;  %v1429_v16 = vcombine.high %v1427_v18, %v1427_v18 }
 0x263   : > { %14399 = vmatpush3.xpose.msk.msra.mxu1 %vm1462_vm2, %v15799_v37  ;;  %v1241_v57 = vpop.f32.mrb[5].mxu1  ;;  %14400 = vmatprep.mubr.msk.f32.mxu1 %vm15257_vm3, %v15256_v51  ;;  %v2806_v18 = vrot.slane %v2790_v14, %v15781_v29  ;;  %v15994_v47 = vadd.f32 %v15803_v2, %v15847_v30  ;;  %v2813_v0 = vrot.slane %v2791_v15, %v15781_v29 }
 0x264   : > { %14416 = vmatmul.mubr.msk.f32.vlgmr.msra.gmra.mrb[12].mxu0 %vm1462_vm2, %v1443_v1  ;;  %14403 = vmatprep.subr.mxu1 %v15256_v51  ;;  %v1459_v13 = vcombine.high %v1443_v1, %v1443_v1  ;;  %v15857_v32 = vadd.f32 %v15847_v30, %v1241_v57  ;;  %v1460_v33 = vcombine.high %v1450_v5, %v1450_v5 }
 0x265   : > { %14424 = vmatpush3.xpose.msk.msra.mxu0 %vm1462_vm2, %v15806_v21  ;;  %14425 = vmatprep.mubr.msk.f32.mxu0 %vm15257_vm3, %v15256_v51  ;;  %v1457_v3 = vrot.slane %v1429_v16, %v15781_v29  ;;  %v2822_v1 = vcombine.high %v2806_v18, %v2806_v18  ;;  %v3409_v2 = vrot.slane %v15994_v47, %v15781_v29 }
 0x266   : > { %v15822_v9 = vpop.f32.mrb[6].mxu1  ;;  %14401 = vmatmul.mubr.msk.f32.vlgmr.msra.gmra.mrb[14].mxu1 %vm1462_vm2, %v1450_v5  ;;  %14433 = vmatprep.subr.mxu0 %v15256_v51  ;;  %v2071_v38 = vrot.slane %v15857_v32, %v15781_v29  ;;  %v2064_v40 = vcombine.high %v15857_v32, %v15857_v32  ;;  %v2792_v57 = vcombine.high %v2790_v14, %v2790_v14 }
 0x267   : > { %v15825_v12 = vpop.f32.mrb[7].mxu1  ;;  %14404 = vmatpush3.xpose.msk.msra.mxu1 %vm1462_vm2, %v15820_v25  ;;  %14405 = vmatprep.mubr.msk.f32.mxu1 %vm15257_vm3, %v15256_v51  ;;  %v1461_v4 = vcombine.high %v1457_v3, %v1457_v3  ;;  %v2823_v5 = vcombine.high %v2813_v0, %v2813_v0  ;;  %v4083_v41 = vcombine.high %v15877_v39, %v15877_v39 }
 0x268   : > { %14426 = vmatmul.mubr.msk.f32.vlgmr.msra.gmra.mrb[14].mxu0 %vm1462_vm2, %v1459_v13  ;;  %14408 = vmatprep.subr.mxu1 %v15256_v51  ;;  %v2087_v42 = vrot.slane %v2071_v38, %v15781_v29  ;;  %v2078_v20 = vrot.slane %v2064_v40, %v15781_v29  ;;  %v2079_v52 = vcombine.high %v2071_v38, %v2071_v38 }
 0x269   : > { %14434 = vmatpush3.xpose.msk.msra.mxu0 %vm1462_vm2, %v15836_v19  ;;  %14435 = vmatprep.mubr.msk.f32.mxu0 %vm15257_vm3, %v15256_v51  ;;  %v3402_v13 = vcombine.high %v15994_v47, %v15994_v47  ;;  %v3417_v40 = vcombine.high %v3409_v2, %v3409_v2 }
 0x26a   : > { %v15840_v26 = vpop.f32.mrb[8].mxu1  ;;  %14406 = vmatmul.mubr.msk.f32.vlgmr.msra.gmra.mrb[16].mxu1 %vm1462_vm2, %v1458_v27  ;;  %14443 = vmatprep.subr.mxu0 %v15256_v51  ;;  %v2109_v48 = vcombine.high %v2087_v42, %v2087_v42  ;;  %v2094_v58 = vrot.slane %v2078_v20, %v15781_v29  ;;  %v2101_v36 = vrot.slane %v2079_v52, %v15781_v29 }
 0x26b   : > { %v15844_v54 = vpop.f32.mrb[9].mxu1  ;;  %14409 = vmatpush3.xpose.msk.msra.mxu1 %vm1462_vm2, %v15852_v31  ;;  %14410 = vmatprep.mubr.msk.f32.mxu1 %vm15257_vm3, %v15256_v51  ;;  %v2080_v62 = vcombine.high %v2078_v20, %v2078_v20  ;;  %v3425_v27 = vrot.slane %v3409_v2, %v15781_v29  ;;  %v3416_v16 = vrot.slane %v3402_v13, %v15781_v29 }
 0x26c   : > { %14418 = vmatprep.subr.mxu1 %v15256_v51  ;;  %14436 = vmatmul.mubr.msk.f32.vlgmr.msra.gmra.mrb[16].mxu0 %vm1462_vm2, %v2087_v42  ;;  %v2110_v61 = vcombine.high %v2094_v58, %v2094_v58  ;;  %v2111_v28 = vcombine.high %v2101_v36, %v2101_v36  ;;  %v3439_v20 = vrot.slane %v3417_v40, %v15781_v29 }
 0x26d   : > { %14444 = vmatpush3.xpose.msk.msra.mxu0 %vm1462_vm2, %v15883_v43  ;;  %14445 = vmatprep.mubr.msk.f32.mxu0 %vm15257_vm3, %v15256_v51  ;;  %v2108_v10 = vrot.slane %v2080_v62, %v15781_v29  ;;  %v3447_v38 = vcombine.high %v3425_v27, %v3425_v27  ;;  %v4097_v62 = vrot.slane %v4083_v41, %v15781_v29 }
 0x26e   : > { %14411 = vmatmul.mubr.msk.f32.vlgmr.msra.gmra.mrb[18].mxu1 %vm1462_vm2, %v1460_v33  ;;  %14453 = vmatprep.subr.mxu0 %v15256_v51  ;;  %v2820_v33 = vrot.slane %v2792_v57, %v15781_v29  ;;  %v16113_v14 = vpop.f32.mrb[10].mxu1 }
 0x26f   : > { %14419 = vmatpush3.xpose.msk.msra.mxu1 %vm1462_vm2, %v15864_v34  ;;  %14420 = vmatprep.mubr.msk.f32.mxu1 %vm15257_vm3, %v15256_v51  ;;  %v2112_v17 = vcombine.high %v2108_v10, %v2108_v10  ;;  %v16118_v15 = vpop.f32.mrb[11].mxu1  ;;  %v4099_v2 = vcombine.high %v4097_v62, %v4097_v62 }
 0x270   : > { %14428 = vmatprep.subr.mxu1 %v15256_v51  ;;  %14446 = vmatmul.mubr.msk.f32.vlgmr.msra.gmra.mrb[18].mxu0 %vm1462_vm2, %v2109_v48  ;;  %v2824_v42 = vcombine.high %v2820_v33, %v2820_v33  ;;  %v4090_v48 = vrot.slane %v15877_v39, %v15781_v29 }
 0x271   : > { %14454 = vmatpush3.xpose.msk.msra.mxu0 %vm1462_vm2, %v15902_v50  ;;  %14455 = vmatprep.mubr.msk.f32.mxu0 %vm15257_vm3, %v15256_v51 }
 0x272   : > { %14421 = vmatmul.mubr.msk.f32.vlgmr.msra.gmra.mrb[20].mxu1 %vm1462_vm2, %v1457_v3  ;;  %14463 = vmatprep.subr.mxu0 %v15256_v51  ;;  %v3432_v3 = vrot.slane %v3416_v16, %v15781_v29  ;;  %v4098_v6 = vcombine.high %v4090_v48, %v4090_v48 }
 0x273   : > { %14429 = vmatpush3.xpose.msk.msra.mxu1 %vm1462_vm2, %v15893_v46  ;;  %14430 = vmatprep.mubr.msk.f32.mxu1 %vm15257_vm3, %v15256_v51 }
 0x274   : > { %14438 = vmatprep.subr.mxu1 %v15256_v51  ;;  %14456 = vmatmul.mubr.msk.f32.vlgmr.msra.gmra.mrb[20].mxu0 %vm1462_vm2, %v2094_v58  ;;  %v3448_v52 = vcombine.high %v3432_v3, %v3432_v3  ;;  %v3449_v58 = vcombine.high %v3439_v20, %v3439_v20 }
 0x275   : > { %14464 = vmatpush3.xpose.msk.msra.mxu0 %vm1462_vm2, %v15925_v22  ;;  %14465 = vmatprep.mubr.msk.f32.mxu0 %vm15257_vm3, %v15256_v51 }
 0x276   : > { %14431 = vmatmul.mubr.msk.f32.vlgmr.msra.gmra.mrb[22].mxu1 %vm1462_vm2, %v1461_v4  ;;  %14473 = vmatprep.subr.mxu0 %v15256_v51  ;;  %v3418_v4 = vcombine.high %v3416_v16, %v3416_v16  ;;  %v4127_v16 = vrot.slane %v4099_v2, %v15781_v29 }
 0x277   : > { %14439 = vmatpush3.xpose.msk.msra.mxu1 %vm1462_vm2, %v15912_v53  ;;  %14440 = vmatprep.mubr.msk.f32.mxu1 %vm15257_vm3, %v15256_v51 }
 0x278   : > { %14448 = vmatprep.subr.mxu1 %v15256_v51  ;;  %14466 = vmatmul.mubr.msk.f32.vlgmr.msra.gmra.mrb[22].mxu0 %vm1462_vm2, %v2110_v61  ;;  %v3446_v61 = vrot.slane %v3418_v4, %v15781_v29  ;;  %v4131_v41 = vcombine.high %v4127_v16, %v4127_v16 }
 0x279   : > { %14474 = vmatpush3.xpose.msk.msra.mxu0 %vm1462_vm2, %v15763_v59  ;;  %14475 = vmatprep.mubr.msk.f32.mxu0 %vm15257_vm3, %v15256_v51 }
 0x27a   : > { %14441 = vmatmul.mubr.msk.f32.vlgmr.msra.gmra.mrb[24].mxu1 %vm1462_vm2, %v2101_v36  ;;  %14483 = vmatprep.subr.mxu0 %v15256_v51  ;;  %v4106_v36 = vrot.slane %v4090_v48, %v15781_v29 }
 0x27b   : > { %14449 = vmatpush3.xpose.msk.msra.mxu1 %vm1462_vm2, %v15936_v60  ;;  %14450 = vmatprep.mubr.msk.f32.mxu1 %vm15257_vm3, %v15256_v51 }
 0x27c   : > { %14458 = vmatprep.subr.mxu1 %v15256_v51  ;;  %14476 = vmatmul.mubr.msk.f32.vlgmr.msra.gmra.mrb[24].mxu0 %vm1462_vm2, %v2799_v23  ;;  %v16106_v23 = vadd.f32 %v15847_v30, %v15825_v12  ;;  %v4120_v12 = vrot.slane %v4098_v6, %v15781_v29 }
 0x27d   : > { %14484 = vmatpush3.xpose.msk.msra.mxu0 %vm1462_vm2, %v15820_v25  ;;  %14485 = vmatprep.mubr.msk.f32.mxu0 %vm15257_vm3, %v15256_v51 }
 0x27e   : > { %14451 = vmatmul.mubr.msk.f32.vlgmr.msra.gmra.mrb[26].mxu1 %vm1462_vm2, %v2111_v28  ;;  %14493 = vmatprep.subr.mxu0 %v15256_v51  ;;  %v4128_v28 = vcombine.high %v4106_v36, %v4106_v36  ;;  %v4130_v57 = vcombine.high %v4120_v12, %v4120_v12 }
 0x27f   : > { %14459 = vmatpush3.xpose.msk.msra.mxu1 %vm1462_vm2, %v15953_v63  ;;  %14460 = vmatprep.mubr.msk.f32.mxu1 %vm15257_vm3, %v15256_v51 }
 0x280   : > { %14468 = vmatprep.subr.mxu1 %v15256_v51  ;;  %14486 = vmatmul.mubr.msk.f32.vlgmr.msra.gmra.mrb[26].mxu0 %vm1462_vm2, %v2821_v44  ;;  %v4113_v44 = vrot.slane %v4097_v62, %v15781_v29 }
 0x281   : > { %14494 = vmatpush3.xpose.msk.msra.mxu0 %vm1462_vm2, %v15749_v56  ;;  %14495 = vmatprep.mubr.msk.f32.mxu0 %vm15257_vm3, %v15256_v51 }
 0x282   : > { %14461 = vmatmul.mubr.msk.f32.vlgmr.msra.gmra.mrb[28].mxu1 %vm1462_vm2, %v2108_v10  ;;  %14503 = vmatprep.subr.mxu0 %v15256_v51  ;;  %v3450_v10 = vcombine.high %v3446_v61, %v3446_v61 }
 0x283   : > { %14469 = vmatpush3.xpose.msk.msra.mxu1 %vm1462_vm2, %v15972_v11  ;;  %14470 = vmatprep.mubr.msk.f32.mxu1 %vm15257_vm3, %v15256_v51 }
 0x284   : > { %14478 = vmatprep.subr.mxu1 %v15256_v51  ;;  %14496 = vmatmul.mubr.msk.f32.vlgmr.msra.gmra.mrb[28].mxu0 %vm1462_vm2, %v2806_v18  ;;  %v16133_v18 = vpop.f32.mrb[4].mxu0 }
 0x285   : > { %14504 = vmatpush3.xpose.msk.msra.mxu0 %vm1462_vm2, %v15806_v21  ;;  %14505 = vmatprep.mubr.msk.f32.mxu0 %vm15257_vm3, %v15256_v51 }
 0x286   : > { %14471 = vmatmul.mubr.msk.f32.vlgmr.msra.gmra.mrb[30].mxu1 %vm1462_vm2, %v2112_v17  ;;  %14513 = vmatprep.subr.mxu0 %v15256_v51  ;;  %v4716_v17 = vrot.slane %v16106_v23, %v15781_v29 }
 0x287   : > { %14479 = vmatpush3.xpose.msk.msra.mxu1 %vm1462_vm2, %v15799_v37  ;;  %14480 = vmatprep.mubr.msk.f32.mxu1 %vm15257_vm3, %v15256_v51 }
 0x288   : > { %14488 = vmatprep.subr.mxu1 %v15256_v51  ;;  %14506 = vmatmul.mubr.msk.f32.vlgmr.msra.gmra.mrb[30].mxu0 %vm1462_vm2, %v2822_v1  ;;  %v16137_v1 = vpop.f32.mrb[5].mxu0 }
 0x289   : > { %14514 = vmatpush3.xpose.msk.msra.mxu0 %vm1462_vm2, %v15836_v19  ;;  %14515 = vmatprep.mubr.msk.f32.mxu0 %vm15257_vm3, %v15256_v51  ;;  %v14386_v13 = vpop.f32.mrb[6].mxu0 }
 0x28a   : > { %14481 = vmatmul.mubr.msk.f32.vlgmr.msra.gmra.mrb[32].mxu1 %vm1462_vm2, %v2813_v0  ;;  %14523 = vmatprep.subr.mxu0 %v15256_v51  ;;  %v4129_v0 = vcombine.high %v4113_v44, %v4113_v44 }
 0x28b   : > { %14489 = vmatpush3.xpose.msk.msra.mxu1 %vm1462_vm2, %v15852_v31  ;;  %14490 = vmatprep.mubr.msk.f32.mxu1 %vm15257_vm3, %v15256_v51 }
 0x28c   : > { %14498 = vmatprep.subr.mxu1 %v15256_v51  ;;  %14516 = vmatmul.mubr.msk.f32.vlgmr.msra.gmra.mrb[32].mxu0 %vm1462_vm2, %v3425_v27  ;;  %v4709_v27 = vcombine.high %v16106_v23, %v16106_v23 }
 0x28d   : > { %14524 = vmatpush3.xpose.msk.msra.mxu0 %vm1462_vm2, %v15883_v43  ;;  %14525 = vmatprep.mubr.msk.f32.mxu0 %vm15257_vm3, %v15256_v51 }
 0x28e   : > { %14491 = vmatmul.mubr.msk.f32.vlgmr.msra.gmra.mrb[34].mxu1 %vm1462_vm2, %v2823_v5  ;;  %14533 = vmatprep.subr.mxu0 %v15256_v51  ;;  %v4732_v5 = vrot.slane %v4716_v17, %v15781_v29 }
 0x28f   : > { %14499 = vmatpush3.xpose.msk.msra.mxu1 %vm1462_vm2, %v15864_v34  ;;  %14500 = vmatprep.mubr.msk.f32.mxu1 %vm15257_vm3, %v15256_v51 }
 0x290   : > { %14508 = vmatprep.subr.mxu1 %v15256_v51  ;;  %14526 = vmatmul.mubr.msk.f32.vlgmr.msra.gmra.mrb[34].mxu0 %vm1462_vm2, %v3447_v38  ;;  %v13696_v38 = vld [vmem:[%s15384_s28] ss:$0 sm:$0xff]  ;;  %v4754_v48 = vcombine.high %v4732_v5, %v4732_v5 }
 0x291   : > { %14534 = vmatpush3.xpose.msk.msra.mxu0 %vm1462_vm2, %v15902_v50  ;;  %14535 = vmatprep.mubr.msk.f32.mxu0 %vm15257_vm3, %v15256_v51  ;;  %v16166_v40 = vadd.f32 %v14386_v13, %v13696_v38 }
 0x292   : > { %14501 = vmatmul.mubr.msk.f32.vlgmr.msra.gmra.mrb[36].mxu1 %vm1462_vm2, %v2820_v33  ;;  %14543 = vmatprep.subr.mxu0 %v15256_v51  ;;  %v1367_v33 = vpop.f32.mrb[7].mxu0 }
 0x293   : > { %14509 = vmatpush3.xpose.msk.msra.mxu1 %vm1462_vm2, %v15893_v46  ;;  %14510 = vmatprep.mubr.msk.f32.mxu1 %vm15257_vm3, %v15256_v51 }
 0x294   : > { %14518 = vmatprep.subr.mxu1 %v15256_v51  ;;  %14536 = vmatmul.mubr.msk.f32.vlgmr.msra.gmra.mrb[36].mxu0 %vm1462_vm2, %v3432_v3  ;;  %v14389_v3 = vpop.f32.mrb[8].mxu0 }
 0x295   : > { %14544 = vmatpush3.xpose.msk.msra.mxu0 %vm1462_vm2, %v15925_v22  ;;  %14545 = vmatprep.mubr.msk.f32.mxu0 %vm15257_vm3, %v15256_v51  ;;  %v1377_v4 = vpop.f32.mrb[9].mxu0 }
 0x296   : > { %14511 = vmatmul.mubr.msk.f32.vlgmr.msra.gmra.mrb[38].mxu1 %vm1462_vm2, %v2824_v42  ;;  %14553 = vmatprep.subr.mxu0 %v15256_v51  ;;  %v16168_v42 = vadd.f32 %v13696_v38, %v1367_v33 }
 0x297   : > { %14519 = vmatpush3.xpose.msk.msra.mxu1 %vm1462_vm2, %v15912_v53  ;;  %14520 = vmatprep.mubr.msk.f32.mxu1 %vm15257_vm3, %v15256_v51 }
 0x298   : > { %14528 = vmatprep.subr.mxu1 %v15256_v51  ;;  %14546 = vmatmul.mubr.msk.f32.vlgmr.msra.gmra.mrb[38].mxu0 %vm1462_vm2, %v3448_v52  ;;  %v16173_v52 = vadd.f32 %v14389_v3, %v13696_v38 }
 0x299   : > { %14554 = vmatpush3.xpose.msk.msra.mxu0 %vm1462_vm2, %v15763_v59  ;;  %14555 = vmatprep.mubr.msk.f32.mxu0 %vm15257_vm3, %v15256_v51 }
 0x29a   : > { %14521 = vmatmul.mubr.msk.f32.vlgmr.msra.gmra.mrb[40].mxu1 %vm1462_vm2, %v3439_v20  ;;  %14563 = vmatprep.subr.mxu0 %v15256_v51  ;;  %v4723_v20 = vrot.slane %v4709_v27, %v15781_v29 }
 0x29b   : > { %14529 = vmatpush3.xpose.msk.msra.mxu1 %vm1462_vm2, %v15936_v60  ;;  %14530 = vmatprep.mubr.msk.f32.mxu1 %vm15257_vm3, %v15256_v51 }
 0x29c   : > { %14538 = vmatprep.subr.mxu1 %v15256_v51  ;;  %14556 = vmatmul.mubr.msk.f32.vlgmr.msra.gmra.mrb[40].mxu0 %vm1462_vm2, %v4106_v36  ;;  %v4724_v36 = vcombine.high %v4716_v17, %v4716_v17  ;;  %v4739_v62 = vrot.slane %v4723_v20, %v15781_v29 }
 0x29d   : > { %14564 = vmatpush3.xpose.msk.msra.mxu0 %vm1462_vm2, %v15820_v25  ;;  %14565 = vmatprep.mubr.msk.f32.mxu0 %vm15257_vm3, %v15256_v51 }
 0x29e   : > { %14531 = vmatmul.mubr.msk.f32.vlgmr.msra.gmra.mrb[42].mxu1 %vm1462_vm2, %v3449_v58  ;;  %14573 = vmatprep.subr.mxu0 %v15256_v51  ;;  %v16179_v58 = vadd.f32 %v13696_v38, %v1377_v4  ;;  %v4755_v17 = vcombine.high %v4739_v62, %v4739_v62 }
 0x29f   : > { %14539 = vmatpush3.xpose.msk.msra.mxu1 %vm1462_vm2, %v15953_v63  ;;  %14540 = vmatprep.mubr.msk.f32.mxu1 %vm15257_vm3, %v15256_v51 }
 0x2a0   : > { %14548 = vmatprep.subr.mxu1 %v15256_v51  ;;  %14566 = vmatmul.mubr.msk.f32.vlgmr.msra.gmra.mrb[42].mxu0 %vm1462_vm2, %v4128_v28 }
 0x2a1   : > { %14574 = vmatpush3.xpose.msk.msra.mxu0 %vm1462_vm2, %v15749_v56  ;;  %14575 = vmatprep.mubr.msk.f32.mxu0 %vm15257_vm3, %v15256_v51 }
 0x2a2   : > { %14541 = vmatmul.mubr.msk.f32.vlgmr.msra.gmra.mrb[44].mxu1 %vm1462_vm2, %v3446_v61  ;;  %14583 = vmatprep.subr.mxu0 %v15256_v51  ;;  %v14392_v61 = vpop.f32.mrb[10].mxu0 }
 0x2a3   : > { %14549 = vmatpush3.xpose.msk.msra.mxu1 %vm1462_vm2, %v15972_v11  ;;  %14550 = vmatprep.mubr.msk.f32.mxu1 %vm15257_vm3, %v15256_v51  ;;  %v16190_v28 = vadd.f32 %v14392_v61, %v13696_v38  ;;  %v1387_v6 = vpop.f32.mrb[11].mxu0 }
 0x2a4   : > { %14558 = vmatprep.subr.mxu1 %v15256_v51  ;;  %14576 = vmatmul.mubr.msk.f32.vlgmr.msra.gmra.mrb[44].mxu0 %vm1462_vm2, %v4113_v44  ;;  %v4746_v44 = vrot.slane %v4724_v36, %v15781_v29 }
 0x2a5   : > { %14584 = vmatpush3.xpose.msk.msra.mxu0 %vm1462_vm2, %v15806_v21  ;;  %14585 = vmatprep.mubr.msk.f32.mxu0 %vm15257_vm3, %v15256_v51 }
 0x2a6   : > { %14551 = vmatmul.mubr.msk.f32.vlgmr.msra.gmra.mrb[46].mxu1 %vm1462_vm2, %v3450_v10  ;;  %14593 = vmatprep.subr.mxu0 %v15256_v51  ;;  %v16196_v10 = vadd.f32 %v13696_v38, %v1387_v6  ;;  %v4756_v2 = vcombine.high %v4746_v44, %v4746_v44 }
 0x2a7   : > { %14559 = vmatpush3.xpose.msk.msra.mxu1 %vm1462_vm2, %v15799_v37  ;;  %14560 = vmatprep.mubr.msk.f32.mxu1 %vm15257_vm3, %v15256_v51 }
 0x2a8   : > { %14568 = vmatprep.subr.mxu1 %v15256_v51  ;;  %14586 = vmatmul.mubr.msk.f32.vlgmr.msra.gmra.mrb[46].mxu0 %vm1462_vm2, %v4129_v0  ;;  %v4725_v0 = vcombine.high %v4723_v20, %v4723_v20  ;;  %v16251_v20 = vadd.f32 %v15822_v9, %v15847_v30 }
 0x2a9   : > { %14594 = vmatpush3.xpose.msk.msra.mxu0 %vm1462_vm2, %v15836_v19  ;;  %14595 = vmatprep.mubr.msk.f32.mxu0 %vm15257_vm3, %v15256_v51 }
 0x2aa   : > { %14561 = vmatmul.mubr.msk.f32.vlgmr.msra.gmra.mrb[48].mxu1 %vm1462_vm2, %v4120_v12  ;;  %14603 = vmatprep.subr.mxu0 %v15256_v51  ;;  %v5397_v12 = vrot.slane %v15874_v55, %v15781_v29  ;;  %v4753_v13 = vrot.slane %v4725_v0, %v15781_v29  ;;  %v6023_v4 = vrot.slane %v16251_v20, %v15781_v29 }
 0x2ab   : > { %14569 = vmatpush3.xpose.msk.msra.mxu1 %vm1462_vm2, %v15852_v31  ;;  %14570 = vmatprep.mubr.msk.f32.mxu1 %vm15257_vm3, %v15256_v51  ;;  %v6016_v61 = vcombine.high %v16251_v20, %v16251_v20 }
 0x2ac   : > { %14578 = vmatprep.subr.mxu1 %v15256_v51  ;;  %14596 = vmatmul.mubr.msk.f32.vlgmr.msra.gmra.mrb[48].mxu0 %vm1462_vm2, %v4732_v5  ;;  %v5413_v5 = vrot.slane %v5397_v12, %v15781_v29  ;;  %v4757_v38 = vcombine.high %v4753_v13, %v4753_v13 }
 0x2ad   : > { %14604 = vmatpush3.xpose.msk.msra.mxu0 %vm1462_vm2, %v15883_v43  ;;  %14605 = vmatprep.mubr.msk.f32.mxu0 %vm15257_vm3, %v15256_v51 }
 0x2ae   : > { %14571 = vmatmul.mubr.msk.f32.vlgmr.msra.gmra.mrb[50].mxu1 %vm1462_vm2, %v4130_v57  ;;  %14613 = vmatprep.subr.mxu0 %v15256_v51  ;;  %v5390_v57 = vcombine.high %v15874_v55, %v15874_v55  ;;  %v5435_v33 = vcombine.high %v5413_v5, %v5413_v5 }
 0x2af   : > { %14579 = vmatpush3.xpose.msk.msra.mxu1 %vm1462_vm2, %v15864_v34  ;;  %14580 = vmatprep.mubr.msk.f32.mxu1 %vm15257_vm3, %v15256_v51 }
 0x2b0   : > { %14588 = vmatprep.subr.mxu1 %v15256_v51  ;;  %14606 = vmatmul.mubr.msk.f32.vlgmr.msra.gmra.mrb[50].mxu0 %vm1462_vm2, %v4754_v48  ;;  %v5404_v27 = vrot.slane %v5390_v57, %v15781_v29 }
 0x2b1   : > { %14614 = vmatpush3.xpose.msk.msra.mxu0 %vm1462_vm2, %v15902_v50  ;;  %14615 = vmatprep.mubr.msk.f32.mxu0 %vm15257_vm3, %v15256_v51 }
 0x2b2   : > { %14581 = vmatmul.mubr.msk.f32.vlgmr.msra.gmra.mrb[52].mxu1 %vm1462_vm2, %v4127_v16  ;;  %14623 = vmatprep.subr.mxu0 %v15256_v51  ;;  %v5405_v16 = vcombine.high %v5397_v12, %v5397_v12  ;;  %v5420_v3 = vrot.slane %v5404_v27, %v15781_v29  ;;  %v5406_v36 = vcombine.high %v5404_v27, %v5404_v27 }
 0x2b3   : > { %14589 = vmatpush3.xpose.msk.msra.mxu1 %vm1462_vm2, %v15893_v46  ;;  %14590 = vmatprep.mubr.msk.f32.mxu1 %vm15257_vm3, %v15256_v51 }
 0x2b4   : > { %14598 = vmatprep.subr.mxu1 %v15256_v51  ;;  %14616 = vmatmul.mubr.msk.f32.vlgmr.msra.gmra.mrb[52].mxu0 %vm1462_vm2, %v4739_v62  ;;  %v5427_v48 = vrot.slane %v5405_v16, %v15781_v29  ;;  %v5436_v9 = vcombine.high %v5420_v3, %v5420_v3  ;;  %v6039_v62 = vrot.slane %v6023_v4, %v15781_v29 }
 0x2b5   : > { %14624 = vmatpush3.xpose.msk.msra.mxu0 %vm1462_vm2, %v15925_v22  ;;  %14625 = vmatprep.mubr.msk.f32.mxu0 %vm15257_vm3, %v15256_v51  ;;  %v5434_v6 = vrot.slane %v5406_v36, %v15781_v29  ;;  %v6697_v16 = vcombine.high %v15790_v35, %v15790_v35  ;;  %v16363_v36 = vadd.f32 %v15847_v30, %v15844_v54 }
 0x2b6   : > { %14591 = vmatmul.mubr.msk.f32.vlgmr.msra.gmra.mrb[54].mxu1 %vm1462_vm2, %v4131_v41  ;;  %14633 = vmatprep.subr.mxu0 %v15256_v51  ;;  %v5437_v41 = vcombine.high %v5427_v48, %v5427_v48  ;;  %v6061_v12 = vcombine.high %v6039_v62, %v6039_v62 }
 0x2b7   : > { %14599 = vmatpush3.xpose.msk.msra.mxu1 %vm1462_vm2, %v15912_v53  ;;  %14600 = vmatprep.mubr.msk.f32.mxu1 %vm15257_vm3, %v15256_v51  ;;  %v5438_v0 = vcombine.high %v5434_v6, %v5434_v6 }
 0x2b8   : > { %14608 = vmatprep.subr.mxu1 %v15256_v51  ;;  %14626 = vmatmul.mubr.msk.f32.vlgmr.msra.gmra.mrb[54].mxu0 %vm1462_vm2, %v4755_v17  ;;  %v6031_v17 = vcombine.high %v6023_v4, %v6023_v4 }
 0x2b9   : > { %14634 = vmatpush3.xpose.msk.msra.mxu0 %vm1462_vm2, %v15763_v59  ;;  %14635 = vmatprep.mubr.msk.f32.mxu0 %vm15257_vm3, %v15256_v51 }
 0x2ba   : > { %14601 = vmatmul.mubr.msk.f32.vlgmr.msra.gmra.mrb[56].mxu1 %vm1462_vm2, %v4746_v44  ;;  %14643 = vmatprep.subr.mxu0 %v15256_v51  ;;  %v6030_v44 = vrot.slane %v6016_v61, %v15781_v29  ;;  %v6053_v57 = vrot.slane %v6031_v17, %v15781_v29  ;;  %v7323_v17 = vcombine.high %v16363_v36, %v16363_v36 }
 0x2bb   : > { %14609 = vmatpush3.xpose.msk.msra.mxu1 %vm1462_vm2, %v15936_v60  ;;  %14610 = vmatprep.mubr.msk.f32.mxu1 %vm15257_vm3, %v15256_v51 }
 0x2bc   : > { %14618 = vmatprep.subr.mxu1 %v15256_v51  ;;  %14636 = vmatmul.mubr.msk.f32.vlgmr.msra.gmra.mrb[56].mxu0 %vm1462_vm2, %v5413_v5  ;;  %v6704_v5 = vrot.slane %v15790_v35, %v15781_v29  ;;  %v6032_v27 = vcombine.high %v6030_v44, %v6030_v44 }
 0x2bd   : > { %14644 = vmatpush3.xpose.msk.msra.mxu0 %vm1462_vm2, %v15820_v25  ;;  %14645 = vmatprep.mubr.msk.f32.mxu0 %vm15257_vm3, %v15256_v51 }
 0x2be   : > { %14611 = vmatmul.mubr.msk.f32.vlgmr.msra.gmra.mrb[58].mxu1 %vm1462_vm2, %v4756_v2  ;;  %14653 = vmatprep.subr.mxu0 %v15256_v51  ;;  %v6046_v2 = vrot.slane %v6030_v44, %v15781_v29  ;;  %v6712_v4 = vcombine.high %v6704_v5, %v6704_v5 }
 0x2bf   : > { %14619 = vmatpush3.xpose.msk.msra.mxu1 %vm1462_vm2, %v15953_v63  ;;  %14620 = vmatprep.mubr.msk.f32.mxu1 %vm15257_vm3, %v15256_v51 }
 0x2c0   : > { %14628 = vmatprep.subr.mxu1 %v15256_v51  ;;  %14646 = vmatmul.mubr.msk.f32.vlgmr.msra.gmra.mrb[58].mxu0 %vm1462_vm2, %v5435_v33  ;;  %v6063_v33 = vcombine.high %v6053_v57, %v6053_v57  ;;  %v6734_v54 = vrot.slane %v6712_v4, %v15781_v29 }
 0x2c1   : > { %14654 = vmatpush3.xpose.msk.msra.mxu0 %vm1462_vm2, %v15749_v56  ;;  %14655 = vmatprep.mubr.msk.f32.mxu0 %vm15257_vm3, %v15256_v51 }
 0x2c2   : > { %14621 = vmatmul.mubr.msk.f32.vlgmr.msra.gmra.mrb[60].mxu1 %vm1462_vm2, %v4753_v13  ;;  %14663 = vmatprep.subr.mxu0 %v15256_v51  ;;  %v6062_v13 = vcombine.high %v6046_v2, %v6046_v2  ;;  %v6744_v44 = vcombine.high %v6734_v54, %v6734_v54 }
 0x2c3   : > { %14629 = vmatpush3.xpose.msk.msra.mxu1 %vm1462_vm2, %v15972_v11  ;;  %14630 = vmatprep.mubr.msk.f32.mxu1 %vm15257_vm3, %v15256_v51 }
 0x2c4   : > { %14638 = vmatprep.subr.mxu1 %v15256_v51  ;;  %14656 = vmatmul.mubr.msk.f32.vlgmr.msra.gmra.mrb[60].mxu0 %vm1462_vm2, %v5420_v3  ;;  %v6060_v3 = vrot.slane %v6032_v27, %v15781_v29 }
 0x2c5   : > { %14664 = vmatpush3.xpose.msk.msra.mxu0 %vm1462_vm2, %v15806_v21  ;;  %14665 = vmatprep.mubr.msk.f32.mxu0 %vm15257_vm3, %v15256_v51 }
 0x2c6   : > { %14631 = vmatmul.mubr.msk.f32.vlgmr.msra.gmra.mrb[62].mxu1 %vm1462_vm2, %v4757_v38  ;;  %14673 = vmatprep.subr.mxu0 %v15256_v51  ;;  %v6720_v38 = vrot.slane %v6704_v5, %v15781_v29 }
 0x2c7   : > { %14639 = vmatpush3.xpose.msk.msra.mxu1 %vm1462_vm2, %v15799_v37  ;;  %14640 = vmatprep.mubr.msk.f32.mxu1 %vm15257_vm3, %v15256_v51 }
 0x2c8   : > { %14648 = vmatprep.subr.mxu1 %v15256_v51  ;;  %14666 = vmatmul.mubr.msk.f32.vlgmr.msra.gmra.mrb[62].mxu0 %vm1462_vm2, %v5436_v9  ;;  %v6742_v9 = vcombine.high %v6720_v38, %v6720_v38 }
 0x2c9   : > { %14674 = vmatpush3.xpose.msk.msra.mxu0 %vm1462_vm2, %v15836_v19  ;;  %14675 = vmatprep.mubr.msk.f32.mxu0 %vm15257_vm3, %v15256_v51 }
 0x2ca   : > { %14641 = vmatmul.mubr.msk.f32.vlgmr.msra.gmra.mrb[64].mxu1 %vm1462_vm2, %v5427_v48  ;;  %14683 = vmatprep.subr.mxu0 %v15256_v51  ;;  %v6711_v48 = vrot.slane %v6697_v16, %v15781_v29  ;;  %v8011_v16 = vrot.slane %v15784_v49, %v15781_v29 }
 0x2cb   : > { %14649 = vmatpush3.xpose.msk.msra.mxu1 %vm1462_vm2, %v15852_v31  ;;  %14650 = vmatprep.mubr.msk.f32.mxu1 %vm15257_vm3, %v15256_v51 }
 0x2cc   : > { %14658 = vmatprep.subr.mxu1 %v15256_v51  ;;  %14676 = vmatmul.mubr.msk.f32.vlgmr.msra.gmra.mrb[64].mxu0 %vm1462_vm2, %v6039_v62  ;;  %v6727_v61 = vrot.slane %v6711_v48, %v15781_v29  ;;  %v8027_v4 = vrot.slane %v8011_v16, %v15781_v29 }
 0x2cd   : > { %14684 = vmatpush3.xpose.msk.msra.mxu0 %vm1462_vm2, %v15883_v43  ;;  %14685 = vmatprep.mubr.msk.f32.mxu0 %vm15257_vm3, %v15256_v51 }
 0x2ce   : > { %14651 = vmatmul.mubr.msk.f32.vlgmr.msra.gmra.mrb[66].mxu1 %vm1462_vm2, %v5437_v41  ;;  %14693 = vmatprep.subr.mxu0 %v15256_v51  ;;  %v6064_v41 = vcombine.high %v6060_v3, %v6060_v3  ;;  %v6743_v62 = vcombine.high %v6727_v61, %v6727_v61 }
 0x2cf   : > { %14659 = vmatpush3.xpose.msk.msra.mxu1 %vm1462_vm2, %v15864_v34  ;;  %14660 = vmatprep.mubr.msk.f32.mxu1 %vm15257_vm3, %v15256_v51 }
 0x2d0   : > { %14668 = vmatprep.subr.mxu1 %v15256_v51  ;;  %14686 = vmatmul.mubr.msk.f32.vlgmr.msra.gmra.mrb[66].mxu0 %vm1462_vm2, %v6061_v12 }
 0x2d1   : > { %14694 = vmatpush3.xpose.msk.msra.mxu0 %vm1462_vm2, %v15902_v50  ;;  %14695 = vmatprep.mubr.msk.f32.mxu0 %vm15257_vm3, %v15256_v51 }
 0x2d2   : > { %14661 = vmatmul.mubr.msk.f32.vlgmr.msra.gmra.mrb[68].mxu1 %vm1462_vm2, %v5434_v6  ;;  %14703 = vmatprep.subr.mxu0 %v15256_v51  ;;  %v6713_v6 = vcombine.high %v6711_v48, %v6711_v48 }
 0x2d3   : > { %14669 = vmatpush3.xpose.msk.msra.mxu1 %vm1462_vm2, %v15893_v46  ;;  %14670 = vmatprep.mubr.msk.f32.mxu1 %vm15257_vm3, %v15256_v51 }
 0x2d4   : > { %14678 = vmatprep.subr.mxu1 %v15256_v51  ;;  %14696 = vmatmul.mubr.msk.f32.vlgmr.msra.gmra.mrb[68].mxu0 %vm1462_vm2, %v6046_v2  ;;  %v7337_v2 = vrot.slane %v7323_v17, %v15781_v29 }
 0x2d5   : > { %14704 = vmatpush3.xpose.msk.msra.mxu0 %vm1462_vm2, %v15925_v22  ;;  %14705 = vmatprep.mubr.msk.f32.mxu0 %vm15257_vm3, %v15256_v51 }
 0x2d6   : > { %14671 = vmatmul.mubr.msk.f32.vlgmr.msra.gmra.mrb[70].mxu1 %vm1462_vm2, %v5438_v0  ;;  %14713 = vmatprep.subr.mxu0 %v15256_v51  ;;  %v6741_v0 = vrot.slane %v6713_v6, %v15781_v29  ;;  %v7353_v27 = vrot.slane %v7337_v2, %v15781_v29  ;;  %v16490_v6 = vadd.f32 %v15840_v26, %v15847_v30 }
 0x2d7   : > { %14679 = vmatpush3.xpose.msk.msra.mxu1 %vm1462_vm2, %v15912_v53  ;;  %14680 = vmatprep.mubr.msk.f32.mxu1 %vm15257_vm3, %v15256_v51 }
 0x2d8   : > { %14688 = vmatprep.subr.mxu1 %v15256_v51  ;;  %14706 = vmatmul.mubr.msk.f32.vlgmr.msra.gmra.mrb[70].mxu0 %vm1462_vm2, %v6062_v13  ;;  %v6745_v13 = vcombine.high %v6741_v0, %v6741_v0  ;;  %v8637_v30 = vrot.slane %v16490_v6, %v15781_v29 }
 0x2d9   : > { %14714 = vmatpush3.xpose.msk.msra.mxu0 %vm1462_vm2, %v15763_v59  ;;  %14715 = vmatprep.mubr.msk.f32.mxu0 %vm15257_vm3, %v15256_v51 }
 0x2da   : > { %14681 = vmatmul.mubr.msk.f32.vlgmr.msra.gmra.mrb[72].mxu1 %vm1462_vm2, %v6053_v57  ;;  %14723 = vmatprep.subr.mxu0 %v15256_v51 }
 0x2db   : > { %14689 = vmatpush3.xpose.msk.msra.mxu1 %vm1462_vm2, %v15936_v60  ;;  %14690 = vmatprep.mubr.msk.f32.mxu1 %vm15257_vm3, %v15256_v51 }
 0x2dc   : > { %14698 = vmatprep.subr.mxu1 %v15256_v51  ;;  %14716 = vmatmul.mubr.msk.f32.vlgmr.msra.gmra.mrb[72].mxu0 %vm1462_vm2, %v6720_v38  ;;  %v7369_v38 = vcombine.high %v7353_v27, %v7353_v27 }
 0x2dd   : > { %14724 = vmatpush3.xpose.msk.msra.mxu0 %vm1462_vm2, %v15820_v25  ;;  %14725 = vmatprep.mubr.msk.f32.mxu0 %vm15257_vm3, %v15256_v51 }
 0x2de   : > { %14691 = vmatmul.mubr.msk.f32.vlgmr.msra.gmra.mrb[74].mxu1 %vm1462_vm2, %v6063_v33  ;;  %14733 = vmatprep.subr.mxu0 %v15256_v51 }
 0x2df   : > { %14699 = vmatpush3.xpose.msk.msra.mxu1 %vm1462_vm2, %v15953_v63  ;;  %14700 = vmatprep.mubr.msk.f32.mxu1 %vm15257_vm3, %v15256_v51 }
 0x2e0   : > { %14708 = vmatprep.subr.mxu1 %v15256_v51  ;;  %14726 = vmatmul.mubr.msk.f32.vlgmr.msra.gmra.mrb[74].mxu0 %vm1462_vm2, %v6742_v9  ;;  %v8004_v9 = vcombine.high %v15784_v49, %v15784_v49 }
 0x2e1   : > { %14734 = vmatpush3.xpose.msk.msra.mxu0 %vm1462_vm2, %v15749_v56  ;;  %14735 = vmatprep.mubr.msk.f32.mxu0 %vm15257_vm3, %v15256_v51  ;;  %v7330_v56 = vrot.slane %v16363_v36, %v15781_v29 }
 0x2e2   : > { %14701 = vmatmul.mubr.msk.f32.vlgmr.msra.gmra.mrb[76].mxu1 %vm1462_vm2, %v6060_v3  ;;  %14743 = vmatprep.subr.mxu0 %v15256_v51  ;;  %v7339_v3 = vcombine.high %v7337_v2, %v7337_v2 }
 0x2e3   : > { %14709 = vmatpush3.xpose.msk.msra.mxu1 %vm1462_vm2, %v15972_v11  ;;  %14710 = vmatprep.mubr.msk.f32.mxu1 %vm15257_vm3, %v15256_v51  ;;  %v7346_v12 = vrot.slane %v7330_v56, %v15781_v29  ;;  %v7338_v5 = vcombine.high %v7330_v56, %v7330_v56  ;;  %v16481_v56 = vld [vmem:[%s15390_s17 + $0x20] sm:$0xff] }
 0x2e4   : > { %14718 = vmatprep.subr.mxu1 %v15256_v51  ;;  %14736 = vmatmul.mubr.msk.f32.vlgmr.msra.gmra.mrb[76].mxu0 %vm1462_vm2, %v6727_v61  ;;  %v8049_v61 = vcombine.high %v8027_v4, %v8027_v4 }
 0x2e5   : > { %14744 = vmatpush3.xpose.msk.msra.mxu0 %vm1462_vm2, %v15806_v21  ;;  %14745 = vmatprep.mubr.msk.f32.mxu0 %vm15257_vm3, %v15256_v51  ;;  %v7368_v57 = vcombine.high %v7346_v12, %v7346_v12  ;;  %v7360_v33 = vrot.slane %v7338_v5, %v15781_v29  ;;  %v16573_v5 = vld [vmem:[%s15390_s17] sm:$0xff] }
 0x2e6   : > { %14711 = vmatmul.mubr.msk.f32.vlgmr.msra.gmra.mrb[78].mxu1 %vm1462_vm2, %v6064_v41  ;;  %14753 = vmatprep.subr.mxu0 %v15256_v51  ;;  %v8018_v41 = vrot.slane %v8004_v9, %v15781_v29 }
 0x2e7   : > { %14719 = vmatpush3.xpose.msk.msra.mxu1 %vm1462_vm2, %v15799_v37  ;;  %14720 = vmatprep.mubr.msk.f32.mxu1 %vm15257_vm3, %v15256_v51  ;;  %v7370_v48 = vcombine.high %v7360_v33, %v7360_v33 }
 0x2e8   : > { %14728 = vmatprep.subr.mxu1 %v15256_v51  ;;  %14746 = vmatmul.mubr.msk.f32.vlgmr.msra.gmra.mrb[78].mxu0 %vm1462_vm2, %v6743_v62  ;;  %v8034_v62 = vrot.slane %v8018_v41, %v15781_v29 }
 0x2e9   : > { %14754 = vmatpush3.xpose.msk.msra.mxu0 %vm1462_vm2, %v15836_v19  ;;  %14755 = vmatprep.mubr.msk.f32.mxu0 %vm15257_vm3, %v15256_v51 }
 0x2ea   : > { %14721 = vmatmul.mubr.msk.f32.vlgmr.msra.gmra.mrb[80].mxu1 %vm1462_vm2, %v6734_v54  ;;  %14763 = vmatprep.subr.mxu0 %v15256_v51  ;;  %v8019_v54 = vcombine.high %v8011_v16, %v8011_v16  ;;  %v8050_v26 = vcombine.high %v8034_v62, %v8034_v62 }
 0x2eb   : > { %14729 = vmatpush3.xpose.msk.msra.mxu1 %vm1462_vm2, %v15852_v31  ;;  %14730 = vmatprep.mubr.msk.f32.mxu1 %vm15257_vm3, %v15256_v51 }
 0x2ec   : > { %14738 = vmatprep.subr.mxu1 %v15256_v51  ;;  %14756 = vmatmul.mubr.msk.f32.vlgmr.msra.gmra.mrb[80].mxu0 %vm1462_vm2, %v7346_v12 }
 0x2ed   : > { %14764 = vmatpush3.xpose.msk.msra.mxu0 %vm1462_vm2, %v15883_v43  ;;  %14765 = vmatprep.mubr.msk.f32.mxu0 %vm15257_vm3, %v15256_v51 }
 0x2ee   : > { %14731 = vmatmul.mubr.msk.f32.vlgmr.msra.gmra.mrb[82].mxu1 %vm1462_vm2, %v6744_v44  ;;  %14773 = vmatprep.subr.mxu0 %v15256_v51  ;;  %v8041_v44 = vrot.slane %v8019_v54, %v15781_v29  ;;  %v16643_v54 = vld [vmem:[%s15390_s17 + $0x18] sm:$0xff] }
 0x2ef   : > { %14739 = vmatpush3.xpose.msk.msra.mxu1 %vm1462_vm2, %v15864_v34  ;;  %14740 = vmatprep.mubr.msk.f32.mxu1 %vm15257_vm3, %v15256_v51 }
 0x2f0   : > { %14748 = vmatprep.subr.mxu1 %v15256_v51  ;;  %14766 = vmatmul.mubr.msk.f32.vlgmr.msra.gmra.mrb[82].mxu0 %vm1462_vm2, %v7368_v57  ;;  %v8051_v12 = vcombine.high %v8041_v44, %v8041_v44 }
 0x2f1   : > { %14774 = vmatpush3.xpose.msk.msra.mxu0 %vm1462_vm2, %v15902_v50  ;;  %14775 = vmatprep.mubr.msk.f32.mxu0 %vm15257_vm3, %v15256_v51 }
 0x2f2   : > { %14741 = vmatmul.mubr.msk.f32.vlgmr.msra.gmra.mrb[84].mxu1 %vm1462_vm2, %v6741_v0  ;;  %14783 = vmatprep.subr.mxu0 %v15256_v51 }
 0x2f3   : > { %14749 = vmatpush3.xpose.msk.msra.mxu1 %vm1462_vm2, %v15893_v46  ;;  %14750 = vmatprep.mubr.msk.f32.mxu1 %vm15257_vm3, %v15256_v51 }
 0x2f4   : > { %14758 = vmatprep.subr.mxu1 %v15256_v51  ;;  %14776 = vmatmul.mubr.msk.f32.vlgmr.msra.gmra.mrb[84].mxu0 %vm1462_vm2, %v7353_v27 }
 0x2f5   : > { %14784 = vmatpush3.xpose.msk.msra.mxu0 %vm1462_vm2, %v15925_v22  ;;  %14785 = vmatprep.mubr.msk.f32.mxu0 %vm15257_vm3, %v15256_v51 }
 0x2f6   : > { %14751 = vmatmul.mubr.msk.f32.vlgmr.msra.gmra.mrb[86].mxu1 %vm1462_vm2, %v6745_v13  ;;  %14793 = vmatprep.subr.mxu0 %v15256_v51 }
 0x2f7   : > { %14759 = vmatpush3.xpose.msk.msra.mxu1 %vm1462_vm2, %v15912_v53  ;;  %14760 = vmatprep.mubr.msk.f32.mxu1 %vm15257_vm3, %v15256_v51 }
 0x2f8   : > { %14768 = vmatprep.subr.mxu1 %v15256_v51  ;;  %14786 = vmatmul.mubr.msk.f32.vlgmr.msra.gmra.mrb[86].mxu0 %vm1462_vm2, %v7369_v38 }
 0x2f9   : > { %14794 = vmatpush3.xpose.msk.msra.mxu0 %vm1462_vm2, %v15763_v59  ;;  %14795 = vmatprep.mubr.msk.f32.mxu0 %vm15257_vm3, %v15256_v51  ;;  %v7367_v59 = vrot.slane %v7339_v3, %v15781_v29  ;;  %v16607_v3 = vld [vmem:[%s15373_s21] ss:$0 sm:$0xff] }
 0x2fa   : > { %14761 = vmatmul.mubr.msk.f32.vlgmr.msra.gmra.mrb[88].mxu1 %vm1462_vm2, %v7360_v33  ;;  %14803 = vmatprep.subr.mxu0 %v15256_v51  ;;  %v16592_v33 = vld [vmem:[%s15390_s17 + $0x10] sm:$0xff] }
 0x2fb   : > { %14769 = vmatpush3.xpose.msk.msra.mxu1 %vm1462_vm2, %v15936_v60  ;;  %14770 = vmatprep.mubr.msk.f32.mxu1 %vm15257_vm3, %v15256_v51 }
 0x2fc   : > { %14778 = vmatprep.subr.mxu1 %v15256_v51  ;;  %14796 = vmatmul.mubr.msk.f32.vlgmr.msra.gmra.mrb[88].mxu0 %vm1462_vm2, %v8027_v4  ;;  %v16622_v4 = vld [vmem:[%s15390_s17 + $0x8] sm:$0xff] }
 0x2fd   : > { %14804 = vmatpush3.xpose.msk.msra.mxu0 %vm1462_vm2, %v15820_v25  ;;  %14805 = vmatprep.mubr.msk.f32.mxu0 %vm15257_vm3, %v15256_v51  ;;  %v7371_v25 = vcombine.high %v7367_v59, %v7367_v59 }
 0x2fe   : > { %14771 = vmatmul.mubr.msk.f32.vlgmr.msra.gmra.mrb[90].mxu1 %vm1462_vm2, %v7370_v48  ;;  %14813 = vmatprep.subr.mxu0 %v15256_v51  ;;  %v16611_v48 = vadd.f32 %v16607_v3, %v16118_v15 }
 0x2ff   : > { %14779 = vmatpush3.xpose.msk.msra.mxu1 %vm1462_vm2, %v15953_v63  ;;  %14780 = vmatprep.mubr.msk.f32.mxu1 %vm15257_vm3, %v15256_v51 }
 0x300   : > { %14788 = vmatprep.subr.mxu1 %v15256_v51  ;;  %14806 = vmatmul.mubr.msk.f32.vlgmr.msra.gmra.mrb[90].mxu0 %vm1462_vm2, %v8049_v61 }
 0x301   : > { %14814 = vmatpush3.xpose.msk.msra.mxu0 %vm1462_vm2, %v16481_v56  ;;  %14815 = vmatprep.mubr.msk.f32.mxu0 %vm15257_vm3, %v15256_v51 }
 0x302   : > { %14781 = vmatmul.mubr.msk.f32.vlgmr.msra.gmra.mrb[92].mxu1 %vm1462_vm2, %v7367_v59  ;;  %14823 = vmatprep.subr.mxu0 %v15256_v51  ;;  %v9944_v59 = vrot.slane %v16611_v48, %v15781_v29 }
 0x303   : > { %14789 = vmatpush3.xpose.msk.msra.mxu1 %vm1462_vm2, %v15972_v11  ;;  %14790 = vmatprep.mubr.msk.f32.mxu1 %vm15257_vm3, %v15256_v51 }
 0x304   : > { %14798 = vmatprep.subr.mxu1 %v15256_v51  ;;  %14816 = vmatmul.mubr.msk.f32.vlgmr.msra.gmra.mrb[92].mxu0 %vm1462_vm2, %v8034_v62 }
 0x305   : > { %14824 = vmatpush3.xpose.msk.msra.mxu0 %vm1462_vm2, %v15806_v21  ;;  %14825 = vmatprep.mubr.msk.f32.mxu0 %vm15257_vm3, %v15256_v51  ;;  %v8630_v21 = vcombine.high %v16490_v6, %v16490_v6 }
 0x306   : > { %14791 = vmatmul.mubr.msk.f32.vlgmr.msra.gmra.mrb[94].mxu1 %vm1462_vm2, %v7371_v25  ;;  %14833 = vmatprep.subr.mxu0 %v15256_v51 }
 0x307   : > { %14799 = vmatpush3.xpose.msk.msra.mxu1 %vm1462_vm2, %v15799_v37  ;;  %14800 = vmatprep.mubr.msk.f32.mxu1 %vm15257_vm3, %v15256_v51  ;;  %v8020_v37 = vcombine.high %v8018_v41, %v8018_v41  ;;  %v8644_v17 = vrot.slane %v8630_v21, %v15781_v29  ;;  %v16634_v41 = vld [vmem:[%s15390_s17 + $0x30] sm:$0xff] }
 0x308   : > { %14808 = vmatprep.subr.mxu1 %v15256_v51  ;;  %14826 = vmatmul.mubr.msk.f32.vlgmr.msra.gmra.mrb[94].mxu0 %vm1462_vm2, %v8050_v26  ;;  %v16653_v26 = vld [vmem:[%s15395_s20] sm:$0xff] }
 0x309   : > { %14834 = vmatpush3.xpose.msk.msra.mxu0 %vm1462_vm2, %v15836_v19  ;;  %14835 = vmatprep.mubr.msk.f32.mxu0 %vm15257_vm3, %v15256_v51  ;;  %v8048_v19 = vrot.slane %v8020_v37, %v15781_v29  ;;  %v8660_v2 = vrot.slane %v8644_v17, %v15781_v29  ;;  %v8646_v57 = vcombine.high %v8644_v17, %v8644_v17  ;;  %v16676_v17 = vld [vmem:[%s15395_s20 + $0x10] sm:$0xff] }
 0x30a   : > { %14801 = vmatmul.mubr.msk.f32.vlgmr.msra.gmra.mrb[96].mxu1 %vm1462_vm2, %v8041_v44  ;;  %14843 = vmatprep.subr.mxu0 %v15256_v51  ;;  %v9960_v44 = vrot.slane %v9944_v59, %v15781_v29 }
 0x30b   : > { %14809 = vmatpush3.xpose.msk.msra.mxu1 %vm1462_vm2, %v15852_v31  ;;  %14810 = vmatprep.mubr.msk.f32.mxu1 %vm15257_vm3, %v15256_v51  ;;  %v8653_v31 = vrot.slane %v8637_v30, %v15781_v29  ;;  %v8674_v27 = vrot.slane %v8646_v57, %v15781_v29  ;;  %v16695_v57 = vld [vmem:[%s15395_s20 + $0x20] sm:$0xff] }
 0x30c   : > { %14818 = vmatprep.subr.mxu1 %v15256_v51 }
 0x30d   : > { %14836 = vmatmul.mubr.msk.f32.vlgmr.msra.gmra.mrb[96].mxu0 %vm1462_vm2, %v8653_v31  ;;  %v8675_v0 = vcombine.high %v8653_v31, %v8653_v31  ;;  %v8678_v9 = vcombine.high %v8674_v27, %v8674_v27 }
 0x30e   : > { %14811 = vmatmul.mubr.msk.f32.vlgmr.msra.gmra.mrb[98].mxu1 %vm1462_vm2, %v8051_v12  ;;  %14844 = vmatpush3.xpose.msk.msra.mxu0 %vm1462_vm2, %v15883_v43  ;;  %v8052_v43 = vcombine.high %v8048_v19, %v8048_v19  ;;  %v16664_v12 = vld [vmem:[%s15390_s17 + $0x28] sm:$0xff] }
 0x30f   : > { %14819 = vmatpush3.xpose.msk.msra.mxu1 %vm1462_vm2, %v15864_v34  ;;  %14820 = vmatprep.mubr.msk.f32.mxu1 %vm15257_vm3, %v15256_v51  ;;  %v8645_v34 = vcombine.high %v8637_v30, %v8637_v30  ;;  %v9937_v30 = vcombine.high %v16611_v48, %v16611_v48 }
 0x310   : > { %14828 = vmatprep.subr.mxu1 %v15256_v51  ;;  %14845 = vmatprep.mubr.msk.f32.mxu0 %vm15257_vm3, %v15256_v51 }
 0x311   : > { %14853 = vmatprep.subr.mxu0 %v15256_v51  ;;  %14846 = vmatmul.mubr.msk.f32.vlgmr.msra.gmra.mrb[98].mxu0 %vm1462_vm2, %v8675_v0 }
 0x312   : > { %14821 = vmatmul.mubr.msk.f32.vlgmr.msra.gmra.mrb[100].mxu1 %vm1462_vm2, %v8048_v19  ;;  %14854 = vmatpush3.xpose.msk.msra.mxu0 %vm1462_vm2, %v15902_v50  ;;  %v9318_v50 = vrot.slane %v15829_v45, %v15781_v29 }
 0x313   : > { %14829 = vmatpush3.xpose.msk.msra.mxu1 %vm1462_vm2, %v15893_v46  ;;  %14830 = vmatprep.mubr.msk.f32.mxu1 %vm15257_vm3, %v15256_v51  ;;  %v8667_v46 = vrot.slane %v8645_v34, %v15781_v29  ;;  %v9951_v34 = vrot.slane %v9937_v30, %v15781_v29 }
 0x314   : > { %14838 = vmatprep.subr.mxu1 %v15256_v51  ;;  %14855 = vmatprep.mubr.msk.f32.mxu0 %vm15257_vm3, %v15256_v51  ;;  %v9334_v13 = vrot.slane %v9318_v50, %v15781_v29  ;;  %v9326_v38 = vcombine.high %v9318_v50, %v9318_v50 }
 0x315   : > { %14863 = vmatprep.subr.mxu0 %v15256_v51  ;;  %14856 = vmatmul.mubr.msk.f32.vlgmr.msra.gmra.mrb[100].mxu0 %vm1462_vm2, %v8660_v2 }
 0x316   : > { %14831 = vmatmul.mubr.msk.f32.vlgmr.msra.gmra.mrb[102].mxu1 %vm1462_vm2, %v8052_v43  ;;  %14864 = vmatpush3.xpose.msk.msra.mxu0 %vm1462_vm2, %v15925_v22  ;;  %v8677_v22 = vcombine.high %v8667_v46, %v8667_v46  ;;  %v9356_v16 = vcombine.high %v9334_v13, %v9334_v13  ;;  %v9348_v15 = vrot.slane %v9326_v38, %v15781_v29 }
 0x317   : > { %14839 = vmatpush3.xpose.msk.msra.mxu1 %vm1462_vm2, %v15912_v53  ;;  %14840 = vmatprep.mubr.msk.f32.mxu1 %vm15257_vm3, %v15256_v51  ;;  %v8676_v53 = vcombine.high %v8660_v2, %v8660_v2  ;;  %v9982_v43 = vcombine.high %v9960_v44, %v9960_v44  ;;  %v16686_v2 = vld [vmem:[%s15390_s17 + $0x38] sm:$0xff] }
 0x318   : > { %14848 = vmatprep.subr.mxu1 %v15256_v51  ;;  %14865 = vmatprep.mubr.msk.f32.mxu0 %vm15257_vm3, %v15256_v51  ;;  %v9358_v62 = vcombine.high %v9348_v15, %v9348_v15 }
 0x319   : > { %14873 = vmatprep.subr.mxu0 %v15256_v51  ;;  %14866 = vmatmul.mubr.msk.f32.vlgmr.msra.gmra.mrb[102].mxu0 %vm1462_vm2, %v8676_v53 }
 0x31a   : > { %14841 = vmatmul.mubr.msk.f32.vlgmr.msra.gmra.mrb[104].mxu1 %vm1462_vm2, %v8667_v46  ;;  %14874 = vmatpush3.xpose.msk.msra.mxu0 %vm1462_vm2, %v16573_v5  ;;  %v9952_v46 = vcombine.high %v9944_v59, %v9944_v59 }
 0x31b   : > { %14849 = vmatpush3.xpose.msk.msra.mxu1 %vm1462_vm2, %v15936_v60  ;;  %14850 = vmatprep.mubr.msk.f32.mxu1 %vm15257_vm3, %v15256_v51  ;;  %v9311_v60 = vcombine.high %v15829_v45, %v15829_v45 }
 0x31c   : > { %14858 = vmatprep.subr.mxu1 %v15256_v51  ;;  %14875 = vmatprep.mubr.msk.f32.mxu0 %vm15257_vm3, %v15256_v51 }
 0x31d   : > { %14883 = vmatprep.subr.mxu0 %v15256_v51  ;;  %14876 = vmatmul.mubr.msk.f32.vlgmr.msra.gmra.mrb[104].mxu0 %vm1462_vm2, %v9334_v13  ;;  %v9967_v13 = vrot.slane %v9951_v34, %v15781_v29 }
 0x31e   : > { %14851 = vmatmul.mubr.msk.f32.vlgmr.msra.gmra.mrb[106].mxu1 %vm1462_vm2, %v8677_v22  ;;  %14884 = vmatpush3.xpose.msk.msra.mxu0 %vm1462_vm2, %v16592_v33 }
 0x31f   : > { %14859 = vmatpush3.xpose.msk.msra.mxu1 %vm1462_vm2, %v15953_v63  ;;  %14860 = vmatprep.mubr.msk.f32.mxu1 %vm15257_vm3, %v15256_v51  ;;  %v9325_v63 = vrot.slane %v9311_v60, %v15781_v29  ;;  %v9983_v59 = vcombine.high %v9967_v13, %v9967_v13 }
 0x320   : > { %14868 = vmatprep.subr.mxu1 %v15256_v51  ;;  %14885 = vmatprep.mubr.msk.f32.mxu0 %vm15257_vm3, %v15256_v51 }
 0x321   : > { %14893 = vmatprep.subr.mxu0 %v15256_v51  ;;  %14886 = vmatmul.mubr.msk.f32.vlgmr.msra.gmra.mrb[106].mxu0 %vm1462_vm2, %v9356_v16  ;;  %v9327_v25 = vcombine.high %v9325_v63, %v9325_v63  ;;  %v9974_v16 = vrot.slane %v9952_v46, %v15781_v29 }
 0x322   : > { %14861 = vmatmul.mubr.msk.f32.vlgmr.msra.gmra.mrb[108].mxu1 %vm1462_vm2, %v8674_v27  ;;  %14894 = vmatpush3.xpose.msk.msra.mxu0 %vm1462_vm2, %v16481_v56  ;;  %v16705_v27 = vld [vmem:[%s15395_s20 + $0x8] sm:$0xff] }
 0x323   : > { %14869 = vmatpush3.xpose.msk.msra.mxu1 %vm1462_vm2, %v15972_v11  ;;  %14870 = vmatprep.mubr.msk.f32.mxu1 %vm15257_vm3, %v15256_v51  ;;  %v9341_v11 = vrot.slane %v9325_v63, %v15781_v29  ;;  %v9355_v31 = vrot.slane %v9327_v25, %v15781_v29  ;;  %v9953_v25 = vcombine.high %v9951_v34, %v9951_v34  ;;  %v16751_v34 = vld [vmem:[%s15395_s20 + $0x28] sm:$0xff] }
 0x324   : > { %14878 = vmatprep.subr.mxu1 %v15256_v51  ;;  %14895 = vmatprep.mubr.msk.f32.mxu0 %vm15257_vm3, %v15256_v51 }
 0x325   : > { %14903 = vmatprep.subr.mxu0 %v15256_v51  ;;  %14896 = vmatmul.mubr.msk.f32.vlgmr.msra.gmra.mrb[108].mxu0 %vm1462_vm2, %v9341_v11  ;;  %v9357_v61 = vcombine.high %v9341_v11, %v9341_v11  ;;  %v9359_v50 = vcombine.high %v9355_v31, %v9355_v31 }
 0x326   : > { %14871 = vmatmul.mubr.msk.f32.vlgmr.msra.gmra.mrb[110].mxu1 %vm1462_vm2, %v8678_v9  ;;  %14904 = vmatpush3.xpose.msk.msra.mxu0 %vm1462_vm2, %v16634_v41  ;;  %v16718_v9 = vld [vmem:[%s15395_s20 + $0x30] sm:$0xff] }
 0x327   : > { %14879 = vmatpush3.xpose.msk.msra.mxu1 %vm1462_vm2, %v16622_v4  ;;  %14880 = vmatprep.mubr.msk.f32.mxu1 %vm15257_vm3, %v15256_v51 }
 0x328   : > { %14888 = vmatprep.subr.mxu1 %v15256_v51  ;;  %14905 = vmatprep.mubr.msk.f32.mxu0 %vm15257_vm3, %v15256_v51 }
 0x329   : > { %14913 = vmatprep.subr.mxu0 %v15256_v51  ;;  %14906 = vmatmul.mubr.msk.f32.vlgmr.msra.gmra.mrb[110].mxu0 %vm1462_vm2, %v9357_v61  ;;  %v16731_v61 = vld [vmem:[%s15395_s20 + $0x18] sm:$0xff] }
 0x32a   : > { %14881 = vmatmul.mubr.msk.f32.vlgmr.msra.gmra.mrb[112].mxu1 %vm1462_vm2, %v9348_v15  ;;  %14914 = vmatpush3.xpose.msk.msra.mxu0 %vm1462_vm2, %v16653_v26  ;;  %v16726_v15 = vrot.slane %v15815_v8, %v15781_v29 }
 0x32b   : > { %14889 = vmatpush3.xpose.msk.msra.mxu1 %vm1462_vm2, %v16643_v54  ;;  %14890 = vmatprep.mubr.msk.f32.mxu1 %vm15257_vm3, %v15256_v51 }
 0x32c   : > { %14898 = vmatprep.subr.mxu1 %v15256_v51  ;;  %14915 = vmatprep.mubr.msk.f32.mxu0 %vm15257_vm3, %v15256_v51 }
 0x32d   : > { %14923 = vmatprep.subr.mxu0 %v15256_v51  ;;  %14916 = vmatmul.mubr.msk.f32.vlgmr.msra.gmra.mrb[112].mxu0 %vm1462_vm2, %v9960_v44 }
 0x32e   : > { %14891 = vmatmul.mubr.msk.f32.vlgmr.msra.gmra.mrb[114].mxu1 %vm1462_vm2, %v9358_v62  ;;  %14924 = vmatpush3.xpose.msk.msra.mxu0 %vm1462_vm2, %v16676_v17  ;;  %v9984_v62 = vcombine.high %v9974_v16, %v9974_v16 }
 0x32f   : > { %14899 = vmatpush3.xpose.msk.msra.mxu1 %vm1462_vm2, %v16664_v12  ;;  %14900 = vmatprep.mubr.msk.f32.mxu1 %vm15257_vm3, %v15256_v51 }
 0x330   : > { %14908 = vmatprep.subr.mxu1 %v15256_v51  ;;  %14925 = vmatprep.mubr.msk.f32.mxu0 %vm15257_vm3, %v15256_v51 }
 0x331   : > { %14933 = vmatprep.subr.mxu0 %v15256_v51  ;;  %14926 = vmatmul.mubr.msk.f32.vlgmr.msra.gmra.mrb[114].mxu0 %vm1462_vm2, %v9982_v43 }
 0x332   : > { %14901 = vmatmul.mubr.msk.f32.vlgmr.msra.gmra.mrb[116].mxu1 %vm1462_vm2, %v9355_v31  ;;  %14934 = vmatpush3.xpose.msk.msra.mxu0 %vm1462_vm2, %v16695_v57  ;;  %v10641_v31 = vrot.slane %v16726_v15, %v15781_v29 }
 0x333   : > { %14909 = vmatpush3.xpose.msk.msra.mxu1 %vm1462_vm2, %v16686_v2  ;;  %14910 = vmatprep.mubr.msk.f32.mxu1 %vm15257_vm3, %v15256_v51 }
 0x334   : > { %14918 = vmatprep.subr.mxu1 %v15256_v51  ;;  %14935 = vmatprep.mubr.msk.f32.mxu0 %vm15257_vm3, %v15256_v51 }
 0x335   : > { %v1534_v37 = vpop.f32.mrb[12].mxu1  ;;  %14943 = vmatprep.subr.mxu0 %v15256_v51  ;;  %14936 = vmatmul.mubr.msk.f32.vlgmr.msra.gmra.mrb[116].mxu0 %vm1462_vm2, %v9967_v13 }
 0x336   : > { %v14397_v21 = vpop.f32.mrb[13].mxu1  ;;  %14911 = vmatmul.mubr.msk.f32.vlgmr.msra.gmra.mrb[118].mxu1 %vm1462_vm2, %v9359_v50  ;;  %14944 = vmatpush3.xpose.msk.msra.mxu0 %vm1462_vm2, %v16718_v9 }
 0x337   : > { %v16673_v19 = vpop.f32.mrb[12].mxu0  ;;  %14919 = vmatpush3.xpose.msk.msra.mxu1 %vm1462_vm2, %v16705_v27  ;;  %14920 = vmatprep.mubr.msk.f32.mxu1 %vm15257_vm3, %v15256_v51  ;;  %v10618_v21 = vcombine.high %v15815_v8, %v15815_v8 }
 0x338   : > { %v14417_v0 = vpop.f32.mrb[13].mxu0  ;;  %14928 = vmatprep.subr.mxu1 %v15256_v51  ;;  %14945 = vmatprep.mubr.msk.f32.mxu0 %vm15257_vm3, %v15256_v51 }
 0x339   : > { %v1609_v53 = vpop.f32.mrb[14].mxu1  ;;  %14953 = vmatprep.subr.mxu0 %v15256_v51  ;;  %14946 = vmatmul.mubr.msk.f32.vlgmr.msra.gmra.mrb[118].mxu0 %vm1462_vm2, %v9983_v59 }
 0x33a   : > { %v11932_v22 = vrot.slane %v1609_v53, 7  ;;  %v14402_v60 = vpop.f32.mrb[15].mxu1  ;;  %14921 = vmatmul.mubr.msk.f32.vlgmr.msra.gmra.mrb[120].mxu1 %vm1462_vm2, %v9974_v16  ;;  %14954 = vmatpush3.xpose.msk.msra.mxu0 %vm1462_vm2, %v16573_v5  ;;  %v9981_v5 = vrot.slane %v9953_v25, %v15781_v29  ;;  %v16765_v53 = vrot.slane %v10618_v21, %v15781_v29  ;;  %v10633_v16 = vcombine.high %v16726_v15, %v16726_v15 }
 0x33b   : > { %v16715_v38 = vpop.f32.mrb[14].mxu0  ;;  %14929 = vmatpush3.xpose.msk.msra.mxu1 %vm1462_vm2, %v16731_v61  ;;  %14930 = vmatprep.mubr.msk.f32.mxu1 %vm15257_vm3, %v15256_v51  ;;  %v11938_v60 = vrot.slane %v16673_v19, 4  ;;  %v16793_v15 = vadd.f32 %v16607_v3, %v16113_v14 }
 0x33c   : > { %v11933_v63 = vsel %vm2722_vm4, %v11932_v22, %v1534_v37  ;;  %v14427_v11 = vpop.f32.mrb[15].mxu0  ;;  %14938 = vmatprep.subr.mxu1 %v15256_v51  ;;  %14955 = vmatprep.mubr.msk.f32.mxu0 %vm15257_vm3, %v15256_v51  ;;  %v10663_v22 = vcombine.high %v10641_v31, %v10641_v31  ;;  %v9985_v59 = vcombine.high %v9981_v5, %v9981_v5 }
 0x33d   : > { %v1684_v44 = vpop.f32.mrb[16].mxu1  ;;  %14963 = vmatprep.subr.mxu0 %v15256_v51  ;;  %14956 = vmatmul.mubr.msk.f32.vlgmr.msra.gmra.mrb[120].mxu0 %vm1462_vm2, %v10641_v31  ;;  %v10655_v21 = vrot.slane %v10633_v16, %v15781_v29 }
 0x33e   : > { %v11934_v30 = vrot.slane %v1684_v44, 6  ;;  %v14407_v37 = vpop.f32.mrb[17].mxu1  ;;  %14931 = vmatmul.mubr.msk.f32.vlgmr.msra.gmra.mrb[122].mxu1 %vm1462_vm2, %v9984_v62  ;;  %14964 = vmatpush3.xpose.msk.msra.mxu0 %vm1462_vm2, %v16592_v33  ;;  %v10648_v62 = vrot.slane %v16765_v53, %v15781_v29 }
 0x33f   : > { %14939 = vmatpush3.xpose.msk.msra.mxu1 %vm1462_vm2, %v16751_v34  ;;  %14940 = vmatprep.mubr.msk.f32.mxu1 %vm15257_vm3, %v15256_v51  ;;  %v16770_v13 = vpop.f32.mrb[16].mxu0 }
 0x340   : > { %v11935_v0 = vsel %vm2725_vm5, %v11934_v30, %v11933_v63  ;;  %14948 = vmatprep.subr.mxu1 %v15256_v51  ;;  %14965 = vmatprep.mubr.msk.f32.mxu0 %vm15257_vm3, %v15256_v51  ;;  %v16774_v63 = vld [vmem:[%s15395_s20 + $0x38] sm:$0xff]  ;;  %v14437_v19 = vpop.f32.mrb[17].mxu0  ;;  %v10664_v31 = vcombine.high %v10648_v62, %v10648_v62 }
 0x341   : > { %v1759_v43 = vpop.f32.mrb[18].mxu1  ;;  %14973 = vmatprep.subr.mxu0 %v15256_v51  ;;  %14966 = vmatmul.mubr.msk.f32.vlgmr.msra.gmra.mrb[122].mxu0 %vm1462_vm2, %v10663_v22 }
 0x342   : > { %v11936_v46 = vrot.slane %v1759_v43, 5  ;;  %v14412_v50 = vpop.f32.mrb[19].mxu1  ;;  %14941 = vmatmul.mubr.msk.f32.vlgmr.msra.gmra.mrb[124].mxu1 %vm1462_vm2, %v9981_v5  ;;  %14974 = vmatpush3.xpose.msk.msra.mxu0 %vm1462_vm2, %v16481_v56  ;;  %v11942_v56 = vrot.slane %v16715_v38, 2 }
 0x343   : > { %14949 = vmatpush3.xpose.msk.msra.mxu1 %vm1462_vm2, %v16774_v63  ;;  %14950 = vmatprep.mubr.msk.f32.mxu1 %vm15257_vm3, %v15256_v51  ;;  %v2334_v37 = vpop.f32.mrb[18].mxu0  ;;  %v10665_v50 = vcombine.high %v10655_v21, %v10655_v21 }
 0x344   : > { %v11937_v33 = vsel %vm2728_vm6, %v11936_v46, %v11935_v0  ;;  %14958 = vmatprep.subr.mxu1 %v15256_v51  ;;  %14975 = vmatprep.mubr.msk.f32.mxu0 %vm15257_vm3, %v15256_v51  ;;  %v14447_v14 = vpop.f32.mrb[19].mxu0  ;;  %v16813_v0 = vrot.slane %v16793_v15, %v15781_v29 }
 0x345   : > { %v11939_v11 = vsel %vm2731_vm7, %v11938_v60, %v11937_v33  ;;  %v1909_v25 = vpop.f32.mrb[20].mxu1  ;;  %14983 = vmatprep.subr.mxu0 %v15256_v51  ;;  %14976 = vmatmul.mubr.msk.f32.vlgmr.msra.gmra.mrb[124].mxu0 %vm1462_vm2, %v10648_v62  ;;  %v11244_v33 = vcombine.high %v16793_v15, %v16793_v15 }
 0x346   : > { %v11940_v44 = vrot.slane %v1909_v25, 3  ;;  %v14422_v30 = vpop.f32.mrb[21].mxu1  ;;  %14951 = vmatmul.mubr.msk.f32.vlgmr.msra.gmra.mrb[126].mxu1 %vm1462_vm2, %v9985_v59  ;;  %14984 = vmatpush3.xpose.msk.msra.mxu0 %vm1462_vm2, %v16634_v41  ;;  %v10634_v41 = vcombine.high %v16765_v53, %v16765_v53  ;;  %v11267_v53 = vrot.slane %v16813_v0, %v15781_v29 }
 0x347   : > { %14959 = vmatpush3.xpose.msk.msra.mxu1 %vm1462_vm2, %v16622_v4  ;;  %14960 = vmatprep.mubr.msk.f32.mxu1 %vm15257_vm3, %v15256_v51  ;;  %v2484_v46 = vpop.f32.mrb[20].mxu0  ;;  %v16853_v30 = vrot.slane %v11244_v33, %v15781_v29 }
 0x348   : > { %v11941_v3 = vsel %vm2734_vm8, %v11940_v44, %v11939_v11  ;;  %14968 = vmatprep.subr.mxu1 %v15256_v51  ;;  %14985 = vmatprep.mubr.msk.f32.mxu0 %vm15257_vm3, %v15256_v51  ;;  %v14457_v22 = vpop.f32.mrb[21].mxu0  ;;  %v2724_v11 = vrot.slane %v2334_v37, 6 }
 0x349   : > { %v2059_v38 = vpop.f32.mrb[22].mxu1  ;;  %v11943_v4 = vsel %vm2737_vm9, %v11942_v56, %v11941_v3  ;;  %14993 = vmatprep.subr.mxu0 %v15256_v51  ;;  %14986 = vmatmul.mubr.msk.f32.vlgmr.msra.gmra.mrb[126].mxu0 %vm1462_vm2, %v10664_v31  ;;  %v11289_v56 = vcombine.high %v11267_v53, %v11267_v53 }
 0x34a   : > { %v11944_v5 = vrot.slane %v2059_v38, 1  ;;  %v14432_v43 = vpop.f32.mrb[23].mxu1  ;;  %14961 = vmatmul.mubr.msk.f32.vlgmr.msra.gmra.mrb[128].mxu1 %vm1462_vm2, %v10655_v21  ;;  %14994 = vmatpush3.xpose.msk.msra.mxu0 %vm1462_vm2, %v16653_v26  ;;  %v10662_v26 = vrot.slane %v10634_v41, %v15781_v29 }
 0x34b   : > { %14969 = vmatpush3.xpose.msk.msra.mxu1 %vm1462_vm2, %v16643_v54  ;;  %14970 = vmatprep.mubr.msk.f32.mxu1 %vm15257_vm3, %v15256_v51  ;;  %v2634_v59 = vpop.f32.mrb[22].mxu0 }
 0x34c   : > { %14978 = vmatprep.subr.mxu1 %v15256_v51  ;;  %v16826_v60 = vsel %vm2740_vm10, %v11944_v5, %v11943_v4  ;;  %14995 = vmatprep.mubr.msk.f32.mxu0 %vm15257_vm3, %v15256_v51  ;;  %v14467_v25 = vpop.f32.mrb[23].mxu0  ;;  %v10666_v4 = vcombine.high %v10662_v26, %v10662_v26 }
 0x34d   : > { %v2259_v54 = vpop.f32.mrb[24].mxu1  ;;  %15003 = vmatprep.subr.mxu0 %v15256_v51  ;;  %14996 = vmatmul.mubr.msk.f32.vlgmr.msra.gmra.mrb[128].mxu0 %vm1462_vm2, %v11267_v53 }
 0x34e   : > { %v2721_v16 = vrot.slane %v2259_v54, 7  ;;  %v14442_v19 = vpop.f32.mrb[25].mxu1  ;;  %14971 = vmatmul.mubr.msk.f32.vlgmr.msra.gmra.mrb[130].mxu1 %vm1462_vm2, %v10665_v50  ;;  %15004 = vmatpush3.xpose.msk.msra.mxu0 %vm1462_vm2, %v16676_v17  ;;  %v11259_v17 = vcombine.high %v16813_v0, %v16813_v0  ;;  %v11274_v0 = vrot.slane %v16853_v30, %v15781_v29 }
 0x34f   : > { %14979 = vmatpush3.xpose.msk.msra.mxu1 %vm1462_vm2, %v16664_v12  ;;  %14980 = vmatprep.mubr.msk.f32.mxu1 %vm15257_vm3, %v15256_v51  ;;  %v2893_v14 = vpop.f32.mrb[24].mxu0 }
 0x350   : > { %v2723_v62 = vsel %vm2722_vm4, %v2721_v16, %v16770_v13  ;;  %14988 = vmatprep.subr.mxu1 %v15256_v51  ;;  %15005 = vmatprep.mubr.msk.f32.mxu0 %vm15257_vm3, %v15256_v51  ;;  %v2730_v13 = vrot.slane %v2484_v46, 4  ;;  %v14477_v3 = vpop.f32.mrb[25].mxu0  ;;  %v2736_v46 = vrot.slane %v2634_v59, 2  ;;  %v11290_v33 = vcombine.high %v11274_v0, %v11274_v0 }
 0x351   : > { %v2409_v12 = vpop.f32.mrb[26].mxu1  ;;  %v2726_v44 = vsel %vm2725_vm5, %v2724_v11, %v2723_v62  ;;  %15013 = vmatprep.subr.mxu0 %v15256_v51  ;;  %15006 = vmatmul.mubr.msk.f32.vlgmr.msra.gmra.mrb[130].mxu0 %vm1462_vm2, %v11289_v56  ;;  %v11260_v59 = vcombine.high %v16853_v30, %v16853_v30 }
 0x352   : > { %v2727_v37 = vrot.slane %v2409_v12, 5  ;;  %v14452_v21 = vpop.f32.mrb[27].mxu1  ;;  %14981 = vmatmul.mubr.msk.f32.vlgmr.msra.gmra.mrb[132].mxu1 %vm1462_vm2, %v10662_v26  ;;  %15014 = vmatpush3.xpose.msk.msra.mxu0 %vm1462_vm2, %v16695_v57  ;;  %v11281_v57 = vrot.slane %v11259_v17, %v15781_v29 }
 0x353   : > { %14989 = vmatpush3.xpose.msk.msra.mxu1 %vm1462_vm2, %v16686_v2  ;;  %14990 = vmatprep.mubr.msk.f32.mxu1 %vm15257_vm3, %v15256_v51  ;;  %v3037_v41 = vpop.f32.mrb[26].mxu0 }
 0x354   : > { %v2729_v38 = vsel %vm2728_vm6, %v2727_v37, %v2726_v44  ;;  %14998 = vmatprep.subr.mxu1 %v15256_v51  ;;  %15015 = vmatprep.mubr.msk.f32.mxu0 %vm15257_vm3, %v15256_v51  ;;  %v14487_v50 = vpop.f32.mrb[27].mxu0  ;;  %v11291_v26 = vcombine.high %v11281_v57, %v11281_v57  ;;  %v12031_v12 = vrot.slane %v3037_v41, 6 }
 0x355   : > { %v2559_v2 = vpop.f32.mrb[28].mxu1  ;;  %v2732_v31 = vsel %vm2731_vm7, %v2730_v13, %v2729_v38  ;;  %15023 = vmatprep.subr.mxu0 %v15256_v51  ;;  %15016 = vmatmul.mubr.msk.f32.vlgmr.msra.gmra.mrb[132].mxu0 %vm1462_vm2, %v11274_v0 }
 0x356   : > { %v2733_v5 = vrot.slane %v2559_v2, 3  ;;  %v14462_v43 = vpop.f32.mrb[29].mxu1  ;;  %14991 = vmatmul.mubr.msk.f32.vlgmr.msra.gmra.mrb[134].mxu1 %vm1462_vm2, %v10666_v4  ;;  %15024 = vmatpush3.xpose.msk.msra.mxu0 %vm1462_vm2, %v16718_v9 }
 0x357   : > { %14999 = vmatpush3.xpose.msk.msra.mxu1 %vm1462_vm2, %v16705_v27  ;;  %15000 = vmatprep.mubr.msk.f32.mxu1 %vm15257_vm3, %v15256_v51  ;;  %v3181_v19 = vpop.f32.mrb[28].mxu0 }
 0x358   : > { %15008 = vmatprep.subr.mxu1 %v15256_v51  ;;  %v2735_v22 = vsel %vm2734_vm8, %v2733_v5, %v2732_v31  ;;  %15025 = vmatprep.mubr.msk.f32.mxu0 %vm15257_vm3, %v15256_v51  ;;  %v14497_v9 = vpop.f32.mrb[29].mxu0 }
 0x359   : > { %v2709_v54 = vpop.f32.mrb[30].mxu1  ;;  %v2738_v27 = vsel %vm2737_vm9, %v2736_v46, %v2735_v22  ;;  %15033 = vmatprep.subr.mxu0 %v15256_v51  ;;  %15026 = vmatmul.mubr.msk.f32.vlgmr.msra.gmra.mrb[134].mxu0 %vm1462_vm2, %v11290_v33  ;;  %v15247_v46 = vld [vmem:[%s15384_s28] ss:$0 sm:$0xff] }
 0x35a   : > { %v2739_v53 = vrot.slane %v2709_v54, 1  ;;  %v14472_v16 = vpop.f32.mrb[31].mxu1  ;;  %15001 = vmatmul.mubr.msk.f32.vlgmr.msra.gmra.mrb[136].mxu1 %vm1462_vm2, %v11281_v57  ;;  %15034 = vmatpush3.xpose.msk.msra.mxu0 %vm1462_vm2, %v15857_v32  ;;  %v11288_v32 = vrot.slane %v11260_v59, %v15781_v29  ;;  %v1358_v41 = vadd.f32 %v15247_v46, %v16137_v1 }
 0x35b   : > { %15009 = vmatpush3.xpose.msk.msra.mxu1 %vm1462_vm2, %v16731_v61  ;;  %15010 = vmatprep.mubr.msk.f32.mxu1 %vm15257_vm3, %v15256_v51  ;;  %v3325_v44 = vpop.f32.mrb[30].mxu0 }
 0x35c   : > { %15018 = vmatprep.subr.mxu1 %v15256_v51  ;;  %v2741_v11 = vsel %vm2740_vm10, %v2739_v53, %v2738_v27  ;;  %15035 = vmatprep.mubr.msk.f32.mxu0 %vm15257_vm3, %v15256_v51  ;;  %v14507_v56 = vpop.f32.mrb[31].mxu0  ;;  %v11292_v38 = vcombine.high %v11288_v32, %v11288_v32  ;;  %v12039_v2 = vrot.slane %v3325_v44, 2 }
 0x35d   : > { %v2965_v61 = vpop.f32.mrb[32].mxu1  ;;  %15043 = vmatprep.subr.mxu0 %v15256_v51  ;;  %2743 = vxpose.xlu0.b32.start.end [1/1] (short) (narrow) %v2741_v11, 8 }
 0x35e   : > { %v12029_v25 = vrot.slane %v2965_v61, 7  ;;  %v14482_v62 = vpop.f32.mrb[33].mxu1  ;;  %15011 = vmatmul.mubr.msk.f32.vlgmr.msra.gmra.mrb[138].mxu1 %vm1462_vm2, %v11291_v26  ;;  %15036 = vmatmul.mubr.msk.f32.vlgmr.msra.gmra.mrb[136].mxu0 %vm1462_vm2, %v15787_v7  ;;  %v1363_v26 = vadd.f32 %v15247_v46, %v16133_v18 }
 0x35f   : > { %15019 = vmatpush3.xpose.msk.msra.mxu1 %vm1462_vm2, %v16751_v34  ;;  %15044 = vmatpush3.xpose.msk.msra.mxu0 %vm1462_vm2, %v16106_v23  ;;  %v3519_v34 = vpop.f32.mrb[32].mxu0 }
 0x360   : > { %v12030_v30 = vsel %vm2722_vm4, %v12029_v25, %v2893_v14  ;;  %15045 = vmatprep.mubr.msk.f32.mxu0 %vm15257_vm3, %v15256_v51  ;;  %15053 = vmatprep.subr.mxu0 %v15256_v51  ;;  %v12035_v14 = vrot.slane %v3181_v19, 4  ;;  %v14517_v29 = vpop.f32.mrb[33].mxu0 }
 0x361   : > { %v3109_v37 = vpop.f32.mrb[34].mxu1  ;;  %v12032_v21 = vsel %vm2725_vm5, %v12031_v12, %v12030_v30  ;;  %15020 = vmatprep.mubr.msk.f32.mxu1 %vm15257_vm3, %v15256_v51  ;;  %15028 = vmatprep.subr.mxu1 %v15256_v51 }
 0x362   : > { %v12033_v13 = vrot.slane %v3109_v37, 5  ;;  %v14492_v7 = vpop.f32.mrb[35].mxu1  ;;  %15021 = vmatmul.mubr.msk.f32.vlgmr.msra.gmra.mrb[140].mxu1 %vm1462_vm2, %v11288_v32  ;;  %15046 = vmatmul.mubr.msk.f32.vlgmr.msra.gmra.mrb[138].mxu0 %vm1462_vm2, %v15877_v39 }
 0x363   : > { %15029 = vmatpush3.xpose.msk.msra.mxu1 %vm1462_vm2, %v16774_v63  ;;  %15054 = vmatpush3.xpose.msk.msra.mxu0 %vm1462_vm2, %v16363_v36  ;;  %v3663_v63 = vpop.f32.mrb[34].mxu0 }
 0x364   : > { %v12034_v23 = vsel %vm2728_vm6, %v12033_v13, %v12032_v21  ;;  %15055 = vmatprep.mubr.msk.f32.mxu0 %vm15257_vm3, %v15256_v51  ;;  %15063 = vmatprep.subr.mxu0 %v15256_v51  ;;  %v14527_v36 = vpop.f32.mrb[35].mxu0 }
 0x365   : > { %v3253_v17 = vpop.f32.mrb[36].mxu1  ;;  %v12036_v3 = vsel %vm2731_vm7, %v12035_v14, %v12034_v23  ;;  %15030 = vmatprep.mubr.msk.f32.mxu1 %vm15257_vm3, %v15256_v51  ;;  %15038 = vmatprep.subr.mxu1 %v15256_v51 }
 0x366   : > { %v12037_v4 = vrot.slane %v3253_v17, 3  ;;  %v14502_v39 = vpop.f32.mrb[37].mxu1  ;;  %15031 = vmatmul.mubr.msk.f32.vlgmr.msra.gmra.mrb[142].mxu1 %vm1462_vm2, %v11292_v38  ;;  %15056 = vmatmul.mubr.msk.f32.vlgmr.msra.gmra.mrb[140].mxu0 %vm1462_vm2, %v15790_v35 }
 0x367   : > { %15039 = vmatpush3.xpose.msk.msra.mxu1 %vm1462_vm2, %v15994_v47  ;;  %15064 = vmatpush3.xpose.msk.msra.mxu0 %vm1462_vm2, %v16611_v48  ;;  %v3807_v47 = vpop.f32.mrb[36].mxu0 }
 0x368   : > { %v12038_v31 = vsel %vm2734_vm8, %v12037_v4, %v12036_v3  ;;  %15065 = vmatprep.mubr.msk.f32.mxu0 %vm15257_vm3, %v15256_v51  ;;  %15073 = vmatprep.subr.mxu0 %v15256_v51  ;;  %v14537_v48 = vpop.f32.mrb[37].mxu0  ;;  %v4041_v19 = vrot.slane %v3807_v47, 4 }
 0x369   : > { %v3397_v0 = vpop.f32.mrb[38].mxu1  ;;  %v12040_v5 = vsel %vm2737_vm9, %v12039_v2, %v12038_v31  ;;  %15040 = vmatprep.mubr.msk.f32.mxu1 %vm15257_vm3, %v15256_v51  ;;  %15048 = vmatprep.subr.mxu1 %v15256_v51 }
 0x36a   : > { %v12041_v43 = vrot.slane %v3397_v0, 1  ;;  %v14512_v35 = vpop.f32.mrb[39].mxu1  ;;  %15041 = vmatmul.mubr.msk.f32.vlgmr.msra.gmra.mrb[144].mxu1 %vm1462_vm2, %v15920_v24  ;;  %15066 = vmatmul.mubr.msk.f32.vlgmr.msra.gmra.mrb[142].mxu0 %vm1462_vm2, %v15829_v45  ;;  %v4037_v24 = vrot.slane %v3663_v63, 6 }
 0x36b   : > { %15049 = vmatpush3.xpose.msk.msra.mxu1 %vm1462_vm2, %v16251_v20  ;;  %15074 = vmatpush3.msra.mxu0 %v1358_v41  ;;  %v3951_v45 = vpop.f32.mrb[38].mxu0 }
 0x36c   : > { %v16959_v57 = vsel %vm2740_vm10, %v12041_v43, %v12040_v5  ;;  %15050 = vmatprep.mubr.msk.f32.mxu1 %vm15257_vm3, %v15256_v51  ;;  %15058 = vmatprep.subr.mxu1 %v15256_v51  ;;  %v14547_v20 = vpop.f32.mrb[39].mxu0  ;;  %v4045_v62 = vrot.slane %v3951_v45, 2 }
 0x36d   : > { %v3591_v50 = vpop.f32.mrb[40].mxu1  ;;  %15075 = vmatprep.mubr.msk.f32.mxu0 %vm15257_vm3, %v15256_v51  ;;  %15083 = vmatprep.subr.mxu0 %v15256_v51 }
 0x36e   : > { %v4035_v1 = vrot.slane %v3591_v50, 7  ;;  %v14522_v22 = vpop.f32.mrb[41].mxu1  ;;  %15051 = vmatmul.mubr.msk.f32.vlgmr.msra.gmra.mrb[146].mxu1 %vm1462_vm2, %v15874_v55 }
 0x36f   : > { %15059 = vmatpush3.xpose.msk.msra.mxu1 %vm1462_vm2, %v16490_v6  ;;  %15060 = vmatprep.mubr.msk.f32.mxu1 %vm15257_vm3, %v15256_v51  ;;  %v4200_v55 = vpop.f32.mrb[40].mxu0 }
 0x370   : > { %v4036_v54 = vsel %vm2722_vm4, %v4035_v1, %v3519_v34  ;;  %15068 = vmatprep.subr.mxu1 %v15256_v51  ;;  %v14557_v9 = vpop.f32.mrb[41].mxu0 }
 0x371   : > { %v3735_v27 = vpop.f32.mrb[42].mxu1  ;;  %v4038_v33 = vsel %vm2725_vm5, %v4037_v24, %v4036_v54 }
 0x372   : > { %v4039_v53 = vrot.slane %v3735_v27, 5  ;;  %v14532_v16 = vpop.f32.mrb[43].mxu1  ;;  %15061 = vmatmul.mubr.msk.f32.vlgmr.msra.gmra.mrb[148].mxu1 %vm1462_vm2, %v15784_v49 }
 0x373   : > { %15069 = vmatpush3.xpose.msk.msra.mxu1 %vm1462_vm2, %v16793_v15  ;;  %15070 = vmatprep.mubr.msk.f32.mxu1 %vm15257_vm3, %v15256_v51  ;;  %v4344_v49 = vpop.f32.mrb[42].mxu0 }
 0x374   : > { %v4040_v11 = vsel %vm2728_vm6, %v4039_v53, %v4038_v33  ;;  %15078 = vmatprep.subr.mxu1 %v15256_v51  ;;  %v14567_v12 = vpop.f32.mrb[43].mxu0  ;;  %v12128_v14 = vrot.slane %v4344_v49, 6 }
 0x375   : > { %v3879_v6 = vpop.f32.mrb[44].mxu1  ;;  %v4042_v59 = vsel %vm2731_vm7, %v4041_v19, %v4040_v11 }
 0x376   : > { %v4043_v61 = vrot.slane %v3879_v6, 3  ;;  %v14542_v25 = vpop.f32.mrb[45].mxu1  ;;  %15071 = vmatmul.mubr.msk.f32.vlgmr.msra.gmra.mrb[150].mxu1 %vm1462_vm2, %v15815_v8 }
 0x377   : > { %15079 = vmatpush3.msra.mxu1 %v1363_v26  ;;  %15080 = vmatprep.mubr.msk.f32.mxu1 %vm15257_vm3, %v15256_v51  ;;  %v4488_v32 = vpop.f32.mrb[44].mxu0 }
 0x378   : > { %v4044_v15 = vsel %vm2734_vm8, %v4043_v61, %v4042_v59  ;;  %15088 = vmatprep.subr.mxu1 %v15256_v51  ;;  %v14577_v37 = vpop.f32.mrb[45].mxu0  ;;  %v12132_v39 = vrot.slane %v4488_v32, 4 }
 0x379   : > { %v4023_v44 = vpop.f32.mrb[46].mxu1  ;;  %v4046_v56 = vsel %vm2737_vm9, %v4045_v62, %v4044_v15 }
 0x37a   : > { %v4047_v18 = vrot.slane %v4023_v44, 1  ;;  %v14552_v30 = vpop.f32.mrb[47].mxu1 }
 0x37b   : > { %v4632_v34 = vpop.f32.mrb[46].mxu0 }
 0x37c   : > { %v4048_v21 = vsel %vm2740_vm10, %v4047_v18, %v4046_v56  ;;  %v14587_v29 = vpop.f32.mrb[47].mxu0  ;;  %v12136_v35 = vrot.slane %v4632_v34, 2 }
 0x37d   : > { %4050 = vxpose.xlu0.b32.start.end [1/1] (short) (narrow) %v4048_v21, 8  ;;  %v4272_v8 = vpop.f32.mrb[48].mxu1 }
 0x37e   : > { %v12126_v13 = vrot.slane %v4272_v8, 7  ;;  %v14562_v7 = vpop.f32.mrb[49].mxu1 }
 0x37f   : > { %v4826_v2 = vpop.f32.mrb[48].mxu0 }
 0x380   : > { %v12127_v23 = vsel %vm2722_vm4, %v12126_v13, %v4200_v55  ;;  %v14597_v63 = vpop.f32.mrb[49].mxu0 }
 0x381   : > { %v4416_v17 = vpop.f32.mrb[50].mxu1  ;;  %v12129_v3 = vsel %vm2725_vm5, %v12128_v14, %v12127_v23 }
 0x382   : > { %v12130_v38 = vrot.slane %v4416_v17, 5  ;;  %v14572_v4 = vpop.f32.mrb[51].mxu1 }
 0x383   : > { %v4970_v46 = vpop.f32.mrb[50].mxu0 }
 0x384   : > { %v12131_v36 = vsel %vm2728_vm6, %v12130_v38, %v12129_v3  ;;  %v14607_v41 = vpop.f32.mrb[51].mxu0  ;;  %v5344_v53 = vrot.slane %v4970_v46, 6 }
 0x385   : > { %v4560_v31 = vpop.f32.mrb[52].mxu1  ;;  %v12133_v0 = vsel %vm2731_vm7, %v12132_v39, %v12131_v36 }
 0x386   : > { %v12134_v5 = vrot.slane %v4560_v31, 3  ;;  %v14582_v43 = vpop.f32.mrb[53].mxu1 }
 0x387   : > { %v5114_v24 = vpop.f32.mrb[52].mxu0 }
 0x388   : > { %v12135_v47 = vsel %vm2734_vm8, %v12134_v5, %v12133_v0  ;;  %v14617_v45 = vpop.f32.mrb[53].mxu0  ;;  %v5348_v26 = vrot.slane %v5114_v24, 4 }
 0x389   : > { %v4704_v48 = vpop.f32.mrb[54].mxu1  ;;  %v12137_v50 = vsel %vm2737_vm9, %v12136_v35, %v12135_v47 }
 0x38a   : > { %v12138_v1 = vrot.slane %v4704_v48, 1  ;;  %v14592_v22 = vpop.f32.mrb[55].mxu1 }
 0x38b   : > { %v5258_v16 = vpop.f32.mrb[54].mxu0 }
 0x38c   : > { %v17001_v20 = vsel %vm2740_vm10, %v12138_v1, %v12137_v50  ;;  %v14627_v19 = vpop.f32.mrb[55].mxu0  ;;  %v5352_v56 = vrot.slane %v5258_v16, 2 }
 0x38d   : > { %v4898_v54 = vpop.f32.mrb[56].mxu1 }
 0x38e   : > { %v5342_v27 = vrot.slane %v4898_v54, 7  ;;  %v14602_v33 = vpop.f32.mrb[57].mxu1 }
 0x38f   : > { %v5507_v61 = vpop.f32.mrb[56].mxu0 }
 0x390   : > { %v5343_v55 = vsel %vm2722_vm4, %v5342_v27, %v4826_v2  ;;  %v14637_v25 = vpop.f32.mrb[57].mxu0 }
 0x391   : > { %v5042_v9 = vpop.f32.mrb[58].mxu1  ;;  %v5345_v11 = vsel %vm2725_vm5, %v5344_v53, %v5343_v55 }
 0x392   : > { %v5346_v6 = vrot.slane %v5042_v9, 5  ;;  %v14612_v59 = vpop.f32.mrb[59].mxu1 }
 0x393   : > { %v5651_v18 = vpop.f32.mrb[58].mxu0 }
 0x394   : > { %v5347_v62 = vsel %vm2728_vm6, %v5346_v6, %v5345_v11  ;;  %v14647_v30 = vpop.f32.mrb[59].mxu0  ;;  %v12225_v3 = vrot.slane %v5651_v18, 6 }
 0x395   : > { %v5186_v49 = vpop.f32.mrb[60].mxu1  ;;  %v5349_v12 = vsel %vm2731_vm7, %v5348_v26, %v5347_v62 }
 0x396   : > { %v5350_v15 = vrot.slane %v5186_v49, 3  ;;  %v14622_v44 = vpop.f32.mrb[61].mxu1 }
 0x397   : > { %v5795_v7 = vpop.f32.mrb[60].mxu0 }
 0x398   : > { %v5351_v32 = vsel %vm2734_vm8, %v5350_v15, %v5349_v12  ;;  %v14657_v14 = vpop.f32.mrb[61].mxu0  ;;  %v12229_v0 = vrot.slane %v5795_v7, 4 }
 0x399   : > { %v5330_v37 = vpop.f32.mrb[62].mxu1  ;;  %v5353_v21 = vsel %vm2737_vm9, %v5352_v56, %v5351_v32 }
 0x39a   : > { %v5354_v8 = vrot.slane %v5330_v37, 1  ;;  %v14632_v13 = vpop.f32.mrb[63].mxu1 }
 0x39b   : > { %v5939_v38 = vpop.f32.mrb[62].mxu0 }
 0x39c   : > { %v5355_v34 = vsel %vm2740_vm10, %v5354_v8, %v5353_v21  ;;  %v14667_v4 = vpop.f32.mrb[63].mxu0  ;;  %v12233_v50 = vrot.slane %v5939_v38, 2 }
 0x39d   : > { %5357 = vxpose.xlu1.b32.start.end [1/1] (short) (narrow) %v5355_v34, 8  ;;  %v5579_v29 = vpop.f32.mrb[64].mxu1 }
 0x39e   : > { %v12223_v23 = vrot.slane %v5579_v29, 7  ;;  %v14642_v17 = vpop.f32.mrb[65].mxu1 }
 0x39f   : > { %v6133_v5 = vpop.f32.mrb[64].mxu0 }
 0x3a0   : > { %v12224_v39 = vsel %vm2722_vm4, %v12223_v23, %v5507_v61  ;;  %v14677_v43 = vpop.f32.mrb[65].mxu0 }
 0x3a1   : > { %v5723_v2 = vpop.f32.mrb[66].mxu1  ;;  %v12226_v63 = vsel %vm2725_vm5, %v12225_v3, %v12224_v39 }
 0x3a2   : > { %v12227_v36 = vrot.slane %v5723_v2, 5  ;;  %v14652_v31 = vpop.f32.mrb[67].mxu1 }
 0x3a3   : > { %v6277_v1 = vpop.f32.mrb[66].mxu0 }
 0x3a4   : > { %v12228_v35 = vsel %vm2728_vm6, %v12227_v36, %v12226_v63  ;;  %v14687_v22 = vpop.f32.mrb[67].mxu0  ;;  %v6651_v6 = vrot.slane %v6277_v1, 6 }
 0x3a5   : > { %v5867_v46 = vpop.f32.mrb[68].mxu1  ;;  %v12230_v41 = vsel %vm2731_vm7, %v12229_v0, %v12228_v35 }
 0x3a6   : > { %v12231_v47 = vrot.slane %v5867_v46, 3  ;;  %v14662_v48 = vpop.f32.mrb[69].mxu1 }
 0x3a7   : > { %v6421_v53 = vpop.f32.mrb[68].mxu0 }
 0x3a8   : > { %v12232_v24 = vsel %vm2734_vm8, %v12231_v47, %v12230_v41  ;;  %v14697_v16 = vpop.f32.mrb[69].mxu0  ;;  %v6655_v15 = vrot.slane %v6421_v53, 4 }
 0x3a9   : > { %v6011_v45 = vpop.f32.mrb[70].mxu1  ;;  %v12234_v54 = vsel %vm2737_vm9, %v12233_v50, %v12232_v24 }
 0x3aa   : > { %v12235_v27 = vrot.slane %v6011_v45, 1  ;;  %v14672_v33 = vpop.f32.mrb[71].mxu1 }
 0x3ab   : > { %v6565_v59 = vpop.f32.mrb[70].mxu0 }
 0x3ac   : > { %v17017_v19 = vsel %vm2740_vm10, %v12235_v27, %v12234_v54  ;;  %v14707_v26 = vpop.f32.mrb[71].mxu0  ;;  %v6659_v8 = vrot.slane %v6565_v59, 2 }
 0x3ad   : > { %v6205_v55 = vpop.f32.mrb[72].mxu1 }
 0x3ae   : > { %v6649_v9 = vrot.slane %v6205_v55, 7  ;;  %v14682_v11 = vpop.f32.mrb[73].mxu1 }
 0x3af   : > { %v6814_v44 = vpop.f32.mrb[72].mxu0 }
 0x3b0   : > { %v6650_v61 = vsel %vm2722_vm4, %v6649_v9, %v6133_v5  ;;  %v14717_v56 = vpop.f32.mrb[73].mxu0 }
 0x3b1   : > { %v6349_v25 = vpop.f32.mrb[74].mxu1  ;;  %v6652_v62 = vsel %vm2725_vm5, %v6651_v6, %v6650_v61 }
 0x3b2   : > { %v6653_v49 = vrot.slane %v6349_v25, 5  ;;  %v14692_v12 = vpop.f32.mrb[75].mxu1 }
 0x3b3   : > { %v6958_v13 = vpop.f32.mrb[74].mxu0 }
 0x3b4   : > { %v6654_v18 = vsel %vm2728_vm6, %v6653_v49, %v6652_v62  ;;  %v14727_v7 = vpop.f32.mrb[75].mxu0  ;;  %v12322_v36 = vrot.slane %v6958_v13, 6 }
 0x3b5   : > { %v6493_v30 = vpop.f32.mrb[76].mxu1  ;;  %v6656_v32 = vsel %vm2731_vm7, %v6655_v15, %v6654_v18 }
 0x3b6   : > { %v6657_v37 = vrot.slane %v6493_v30, 3  ;;  %v14702_v21 = vpop.f32.mrb[77].mxu1 }
 0x3b7   : > { %v7102_v3 = vpop.f32.mrb[76].mxu0 }
 0x3b8   : > { %v6658_v14 = vsel %vm2734_vm8, %v6657_v37, %v6656_v32  ;;  %v14737_v38 = vpop.f32.mrb[77].mxu0  ;;  %v12326_v47 = vrot.slane %v7102_v3, 4 }
 0x3b9   : > { %v6637_v34 = vpop.f32.mrb[78].mxu1  ;;  %v6660_v29 = vsel %vm2737_vm9, %v6659_v8, %v6658_v14 }
 0x3ba   : > { %v6661_v23 = vrot.slane %v6637_v34, 1  ;;  %v14712_v17 = vpop.f32.mrb[79].mxu1 }
 0x3bb   : > { %v7246_v31 = vpop.f32.mrb[78].mxu0 }
 0x3bc   : > { %v6662_v4 = vsel %vm2740_vm10, %v6661_v23, %v6660_v29  ;;  %v14747_v0 = vpop.f32.mrb[79].mxu0  ;;  %v12330_v27 = vrot.slane %v7246_v31, 2 }
 0x3bd   : > { %6664 = vxpose.xlu1.b32.start.end [1/1] (short) (narrow) %v6662_v4, 8  ;;  %v6886_v39 = vpop.f32.mrb[80].mxu1 }
 0x3be   : > { %v12320_v2 = vrot.slane %v6886_v39, 7  ;;  %v14722_v63 = vpop.f32.mrb[81].mxu1 }
 0x3bf   : > { %v7440_v48 = vpop.f32.mrb[80].mxu0 }
 0x3c0   : > { %v12321_v5 = vsel %vm2722_vm4, %v12320_v2, %v6814_v44  ;;  %v14757_v50 = vpop.f32.mrb[81].mxu0 }
 0x3c1   : > { %v7030_v43 = vpop.f32.mrb[82].mxu1  ;;  %v12323_v35 = vsel %vm2725_vm5, %v12322_v36, %v12321_v5 }
 0x3c2   : > { %v12324_v46 = vrot.slane %v7030_v43, 5  ;;  %v14732_v41 = vpop.f32.mrb[83].mxu1 }
 0x3c3   : > { %v7584_v33 = vpop.f32.mrb[82].mxu0 }
 0x3c4   : > { %v12325_v1 = vsel %vm2728_vm6, %v12324_v46, %v12323_v35  ;;  %v14767_v53 = vpop.f32.mrb[83].mxu0  ;;  %v7958_v12 = vrot.slane %v7584_v33, 6 }
 0x3c5   : > { %v7174_v22 = vpop.f32.mrb[84].mxu1  ;;  %v12327_v24 = vsel %vm2731_vm7, %v12326_v47, %v12325_v1 }
 0x3c6   : > { %v12328_v45 = vrot.slane %v7174_v22, 3  ;;  %v14742_v54 = vpop.f32.mrb[85].mxu1 }
 0x3c7   : > { %v7728_v59 = vpop.f32.mrb[84].mxu0 }
 0x3c8   : > { %v12329_v16 = vsel %vm2734_vm8, %v12328_v45, %v12327_v24  ;;  %v14777_v26 = vpop.f32.mrb[85].mxu0  ;;  %v7962_v21 = vrot.slane %v7728_v59, 4 }
 0x3c9   : > { %v7318_v55 = vpop.f32.mrb[86].mxu1  ;;  %v12331_v9 = vsel %vm2737_vm9, %v12330_v27, %v12329_v16 }
 0x3ca   : > { %v12332_v11 = vrot.slane %v7318_v55, 1  ;;  %v14752_v6 = vpop.f32.mrb[87].mxu1 }
 0x3cb   : > { %v7872_v15 = vpop.f32.mrb[86].mxu0 }
 0x3cc   : > { %v17033_v61 = vsel %vm2740_vm10, %v12332_v11, %v12331_v9  ;;  %v14787_v44 = vpop.f32.mrb[87].mxu0  ;;  %v7966_v17 = vrot.slane %v7872_v15, 2 }
 0x3cd   : > { %v7512_v25 = vpop.f32.mrb[88].mxu1 }
 0x3ce   : > { %v7956_v62 = vrot.slane %v7512_v25, 7  ;;  %v14762_v49 = vpop.f32.mrb[89].mxu1 }
 0x3cf   : > { %v8121_v8 = vpop.f32.mrb[88].mxu0 }
 0x3d0   : > { %v7957_v56 = vsel %vm2722_vm4, %v7956_v62, %v7440_v48  ;;  %v14797_v13 = vpop.f32.mrb[89].mxu0 }
 0x3d1   : > { %v7656_v18 = vpop.f32.mrb[90].mxu1  ;;  %v7959_v30 = vsel %vm2725_vm5, %v7958_v12, %v7957_v56 }
 0x3d2   : > { %v7960_v32 = vrot.slane %v7656_v18, 5  ;;  %v14772_v37 = vpop.f32.mrb[91].mxu1 }
 0x3d3   : > { %v8265_v3 = vpop.f32.mrb[90].mxu0 }
 0x3d4   : > { %v7961_v7 = vsel %vm2728_vm6, %v7960_v32, %v7959_v30  ;;  %v14807_v38 = vpop.f32.mrb[91].mxu0  ;;  %v12419_v41 = vrot.slane %v8265_v3, 6 }
 0x3d5   : > { %v7800_v14 = vpop.f32.mrb[92].mxu1  ;;  %v7963_v34 = vsel %vm2731_vm7, %v7962_v21, %v7961_v7 }
 0x3d6   : > { %v7964_v29 = vrot.slane %v7800_v14, 3  ;;  %v14782_v23 = vpop.f32.mrb[93].mxu1 }
 0x3d7   : > { %v8409_v31 = vpop.f32.mrb[92].mxu0 }
 0x3d8   : > { %v7965_v4 = vsel %vm2734_vm8, %v7964_v29, %v7963_v34  ;;  %v14817_v0 = vpop.f32.mrb[93].mxu0  ;;  %v12423_v54 = vrot.slane %v8409_v31, 4 }
 0x3d9   : > { %v7944_v39 = vpop.f32.mrb[94].mxu1  ;;  %v7967_v2 = vsel %vm2737_vm9, %v7966_v17, %v7965_v4 }
 0x3da   : > { %v7968_v63 = vrot.slane %v7944_v39, 1  ;;  %v14792_v36 = vpop.f32.mrb[95].mxu1 }
 0x3db   : > { %v8553_v47 = vpop.f32.mrb[94].mxu0 }
 0x3dc   : > { %v7969_v5 = vsel %vm2740_vm10, %v7968_v63, %v7967_v2  ;;  %v14827_v48 = vpop.f32.mrb[95].mxu0  ;;  %v12427_v6 = vrot.slane %v8553_v47, 2 }
 0x3dd   : > { %7971 = vxpose.xlu0.b32.start.end [1/1] (short) (narrow) %v7969_v5, 8  ;;  %v8193_v43 = vpop.f32.mrb[96].mxu1 }
 0x3de   : > { %v12417_v35 = vrot.slane %v8193_v43, 7  ;;  %v14802_v46 = vpop.f32.mrb[97].mxu1 }
 0x3e0   : > { %v12418_v50 = vsel %vm2722_vm4, %v12417_v35, %v8121_v8  ;;  %v8747_v27 = vpop.f32.mrb[96].mxu0 }
 0x3e1   : > { %v8337_v1 = vpop.f32.mrb[98].mxu1  ;;  %v12420_v22 = vsel %vm2725_vm5, %v12419_v41, %v12418_v50  ;;  %v14837_v33 = vpop.f32.mrb[97].mxu0 }
 0x3e2   : > { %v12421_v24 = vrot.slane %v8337_v1, 5  ;;  %v14812_v45 = vpop.f32.mrb[99].mxu1 }
 0x3e4   : > { %v12422_v53 = vsel %vm2728_vm6, %v12421_v24, %v12420_v22  ;;  %v8891_v59 = vpop.f32.mrb[98].mxu0 }
 0x3e5   : > { %v8481_v16 = vpop.f32.mrb[100].mxu1  ;;  %v12424_v55 = vsel %vm2731_vm7, %v12423_v54, %v12422_v53  ;;  %v14847_v26 = vpop.f32.mrb[99].mxu0  ;;  %v9265_v21 = vrot.slane %v8891_v59, 6 }
 0x3e6   : > { %v12425_v9 = vrot.slane %v8481_v16, 3  ;;  %v14822_v11 = vpop.f32.mrb[101].mxu1 }
 0x3e8   : > { %v12426_v25 = vsel %vm2734_vm8, %v12425_v9, %v12424_v55  ;;  %v9035_v44 = vpop.f32.mrb[100].mxu0 }
 0x3e9   : > { %v8625_v62 = vpop.f32.mrb[102].mxu1  ;;  %v12428_v49 = vsel %vm2737_vm9, %v12427_v6, %v12426_v25  ;;  %v14857_v56 = vpop.f32.mrb[101].mxu0  ;;  %v9269_v17 = vrot.slane %v9035_v44, 4 }
 0x3ea   : > { %v12429_v12 = vrot.slane %v8625_v62, 1  ;;  %v14832_v15 = vpop.f32.mrb[103].mxu1 }
 0x3ec   : > { %v17049_v18 = vsel %vm2740_vm10, %v12429_v12, %v12428_v49  ;;  %v9179_v8 = vpop.f32.mrb[102].mxu0 }
 0x3ed   : > { %v8819_v30 = vpop.f32.mrb[104].mxu1  ;;  %v14867_v13 = vpop.f32.mrb[103].mxu0  ;;  %v9273_v31 = vrot.slane %v9179_v8, 2 }
 0x3ee   : > { %v9263_v32 = vrot.slane %v8819_v30, 7  ;;  %v14842_v37 = vpop.f32.mrb[105].mxu1 }
 0x3f0   : > { %v9264_v7 = vsel %vm2722_vm4, %v9263_v32, %v8747_v27  ;;  %v9428_v3 = vpop.f32.mrb[104].mxu0 }
 0x3f1   : > { %v8963_v14 = vpop.f32.mrb[106].mxu1  ;;  %v9266_v34 = vsel %vm2725_vm5, %v9265_v21, %v9264_v7  ;;  %v14877_v38 = vpop.f32.mrb[105].mxu0 }
 0x3f2   : > { %v9267_v29 = vrot.slane %v8963_v14, 5  ;;  %v14852_v23 = vpop.f32.mrb[107].mxu1 }
 0x3f4   : > { %v9268_v4 = vsel %vm2728_vm6, %v9267_v29, %v9266_v34  ;;  %v9572_v0 = vpop.f32.mrb[106].mxu0 }
 0x3f5   : > { %v9107_v39 = vpop.f32.mrb[108].mxu1  ;;  %v9270_v2 = vsel %vm2731_vm7, %v9269_v17, %v9268_v4  ;;  %v14887_v5 = vpop.f32.mrb[107].mxu0  ;;  %v12516_v54 = vrot.slane %v9572_v0, 6 }
 0x3f6   : > { %v9271_v63 = vrot.slane %v9107_v39, 3  ;;  %v14862_v36 = vpop.f32.mrb[109].mxu1 }
 0x3f8   : > { %v9272_v43 = vsel %vm2734_vm8, %v9271_v63, %v9270_v2  ;;  %v9716_v48 = vpop.f32.mrb[108].mxu0 }
 0x3f9   : > { %v9251_v35 = vpop.f32.mrb[110].mxu1  ;;  %v9274_v46 = vsel %vm2737_vm9, %v9273_v31, %v9272_v43  ;;  %v14897_v50 = vpop.f32.mrb[109].mxu0  ;;  %v12520_v6 = vrot.slane %v9716_v48, 4 }
 0x3fa   : > { %v9275_v41 = vrot.slane %v9251_v35, 1  ;;  %v14872_v47 = vpop.f32.mrb[111].mxu1 }
 0x3fc   : > { %v9276_v1 = vsel %vm2740_vm10, %v9275_v41, %v9274_v46  ;;  %v9860_v27 = vpop.f32.mrb[110].mxu0 }
 0x3fd   : > { %9278 = vxpose.xlu1.b32.start.end [1/1] (short) (narrow) %v9276_v1, 8  ;;  %v9500_v22 = vpop.f32.mrb[112].mxu1  ;;  %v14907_v33 = vpop.f32.mrb[111].mxu0  ;;  %v12524_v44 = vrot.slane %v9860_v27, 2 }
 0x3fe   : > { %v12514_v24 = vrot.slane %v9500_v22, 7  ;;  %v14882_v45 = vpop.f32.mrb[113].mxu1 }
 0x400   : > { %v12515_v53 = vsel %vm2722_vm4, %v12514_v24, %v9428_v3  ;;  %v10054_v59 = vpop.f32.mrb[112].mxu0 }
 0x401   : > { %v9644_v16 = vpop.f32.mrb[114].mxu1  ;;  %v12517_v55 = vsel %vm2725_vm5, %v12516_v54, %v12515_v53  ;;  %v14917_v26 = vpop.f32.mrb[113].mxu0 }
 0x402   : > { %v12518_v9 = vrot.slane %v9644_v16, 5  ;;  %v14892_v11 = vpop.f32.mrb[115].mxu1 }
 0x404   : > { %v12519_v25 = vsel %vm2728_vm6, %v12518_v9, %v12517_v55  ;;  %v10198_v56 = vpop.f32.mrb[114].mxu0 }
 0x405   : > { %v9788_v62 = vpop.f32.mrb[116].mxu1  ;;  %v12521_v49 = vsel %vm2731_vm7, %v12520_v6, %v12519_v25  ;;  %v14927_v30 = vpop.f32.mrb[115].mxu0  ;;  %v10572_v3 = vrot.slane %v10198_v56, 6 }
 0x406   : > { %v12522_v12 = vrot.slane %v9788_v62, 3  ;;  %v14902_v15 = vpop.f32.mrb[117].mxu1 }
 0x408   : > { %v12523_v32 = vsel %vm2734_vm8, %v12522_v12, %v12521_v49  ;;  %v10342_v7 = vpop.f32.mrb[116].mxu0 }
 0x409   : > { %v9932_v37 = vpop.f32.mrb[118].mxu1  ;;  %v12525_v21 = vsel %vm2737_vm9, %v12524_v44, %v12523_v32  ;;  %v14937_v14 = vpop.f32.mrb[117].mxu0  ;;  %v10576_v0 = vrot.slane %v10342_v7, 4 }
 0x40a   : > { %v12526_v8 = vrot.slane %v9932_v37, 1  ;;  %v14912_v13 = vpop.f32.mrb[119].mxu1 }
 0x40c   : > { %v17065_v34 = vsel %vm2740_vm10, %v12526_v8, %v12525_v21  ;;  %v10486_v38 = vpop.f32.mrb[118].mxu0 }
 0x40d   : > { %v10126_v29 = vpop.f32.mrb[120].mxu1  ;;  %v14947_v4 = vpop.f32.mrb[119].mxu0  ;;  %v10580_v50 = vrot.slane %v10486_v38, 2 }
 0x40e   : > { %v10570_v23 = vrot.slane %v10126_v29, 7  ;;  %v14922_v17 = vpop.f32.mrb[121].mxu1 }
 0x410   : > { %v10571_v39 = vsel %vm2722_vm4, %v10570_v23, %v10054_v59  ;;  %v10735_v5 = vpop.f32.mrb[120].mxu0 }
 0x411   : > { %v10270_v2 = vpop.f32.mrb[122].mxu1  ;;  %v10573_v63 = vsel %vm2725_vm5, %v10572_v3, %v10571_v39  ;;  %v14957_v43 = vpop.f32.mrb[121].mxu0 }
 0x412   : > { %v10574_v36 = vrot.slane %v10270_v2, 5  ;;  %v14932_v31 = vpop.f32.mrb[123].mxu1 }
 0x414   : > { %v10575_v35 = vsel %vm2728_vm6, %v10574_v36, %v10573_v63  ;;  %v10879_v1 = vpop.f32.mrb[122].mxu0 }
 0x415   : > { %v10414_v46 = vpop.f32.mrb[124].mxu1  ;;  %v10577_v41 = vsel %vm2731_vm7, %v10576_v0, %v10575_v35  ;;  %v14967_v22 = vpop.f32.mrb[123].mxu0  ;;  %v12613_v59 = vrot.slane %v10879_v1, 6 }
 0x416   : > { %v10578_v47 = vrot.slane %v10414_v46, 3  ;;  %v14942_v48 = vpop.f32.mrb[125].mxu1 }
 0x418   : > { %v10579_v24 = vsel %vm2734_vm8, %v10578_v47, %v10577_v41  ;;  %v11023_v53 = vpop.f32.mrb[124].mxu0 }
 0x419   : > { %v10558_v45 = vpop.f32.mrb[126].mxu1  ;;  %v10581_v54 = vsel %vm2737_vm9, %v10580_v50, %v10579_v24  ;;  %v14977_v16 = vpop.f32.mrb[125].mxu0  ;;  %v12617_v56 = vrot.slane %v11023_v53, 4 }
 0x41a   : > { %v10582_v27 = vrot.slane %v10558_v45, 1  ;;  %v14952_v33 = vpop.f32.mrb[127].mxu1 }
 0x41c   : > { %v10583_v55 = vsel %vm2740_vm10, %v10582_v27, %v10581_v54  ;;  %v11167_v26 = vpop.f32.mrb[126].mxu0 }
 0x41d   : > { %10585 = vxpose.xlu0.b32.start.end [1/1] (short) (narrow) %v10583_v55, 8  ;;  %v10807_v9 = vpop.f32.mrb[128].mxu1  ;;  %v14987_v25 = vpop.f32.mrb[127].mxu0  ;;  %v12621_v14 = vrot.slane %v11167_v26, 2 }
 0x41e   : > { %v12611_v11 = vrot.slane %v10807_v9, 7  ;;  %v14962_v6 = vpop.f32.mrb[129].mxu1  ;;  %v5373_v33 = vpop.trf.xlu1 }
 0x420   : > { %v12612_v62 = vsel %vm2722_vm4, %v12611_v11, %v10735_v5  ;;  %v11361_v30 = vpop.f32.mrb[128].mxu0 }
 0x421   : > { %v10951_v49 = vpop.f32.mrb[130].mxu1  ;;  %v12614_v12 = vsel %vm2725_vm5, %v12613_v59, %v12612_v62  ;;  %v14997_v32 = vpop.f32.mrb[129].mxu0 }
 0x422   : > { %v12615_v15 = vrot.slane %v10951_v49, 5  ;;  %v14972_v44 = vpop.f32.mrb[131].mxu1 }
 0x424   : > { %v12616_v37 = vsel %vm2728_vm6, %v12615_v15, %v12614_v12  ;;  %v11505_v29 = vpop.f32.mrb[130].mxu0 }
 0x425   : > { %v11095_v21 = vpop.f32.mrb[132].mxu1  ;;  %v12618_v8 = vsel %vm2731_vm7, %v12617_v56, %v12616_v37  ;;  %v15007_v23 = vpop.f32.mrb[131].mxu0  ;;  %v11879_v43 = vrot.slane %v11505_v29, 6 }
 0x426   : > { %v12619_v13 = vrot.slane %v11095_v21, 3  ;;  %v14982_v7 = vpop.f32.mrb[133].mxu1  ;;  %v2759_v21 = vpop.trf.xlu0 }
 0x428   : > { %v12620_v17 = vsel %vm2734_vm8, %v12619_v13, %v12618_v8  ;;  %v11649_v2 = vpop.f32.mrb[132].mxu0 }
 0x429   : > { %v11239_v3 = vpop.f32.mrb[134].mxu1  ;;  %v12622_v38 = vsel %vm2737_vm9, %v12621_v14, %v12620_v17  ;;  %v15017_v63 = vpop.f32.mrb[133].mxu0  ;;  %v11883_v24 = vrot.slane %v11649_v2, 4 }
 0x42a   : > { %v12623_v4 = vrot.slane %v11239_v3, 1  ;;  %v14992_v39 = vpop.f32.mrb[135].mxu1 }
 0x42c   : > { %v12624_v36 = vsel %vm2740_vm10, %v12623_v4, %v12622_v38  ;;  %v11793_v35 = vpop.f32.mrb[134].mxu0 }
 0x42d   : > { %v11433_v31 = vpop.f32.mrb[136].mxu1  ;;  %v15027_v46 = vpop.f32.mrb[135].mxu0  ;;  %v11887_v6 = vrot.slane %v11793_v35, 2 }
 0x42e   : > { %v11877_v0 = vrot.slane %v11433_v31, 7  ;;  %v15002_v5 = vpop.f32.mrb[137].mxu1 }
 0x430   : > { %v11878_v41 = vsel %vm2722_vm4, %v11877_v0, %v11361_v30 }
 0x431   : > { %v11880_v47 = vsel %vm2725_vm5, %v11879_v43, %v11878_v41  ;;  %v11577_v48 = vpop.f32.mrb[138].mxu1  ;;  %v12017_v50 = vpop.f32.mrb[136].mxu0 }
 0x432   : > { %v11881_v1 = vrot.slane %v11577_v48, 5  ;;  %v15012_v22 = vpop.f32.mrb[139].mxu1  ;;  %v12018_v45 = vadd.f32 %v12017_v50, %v16826_v60  ;;  %v15037_v54 = vpop.f32.mrb[137].mxu0 }
 0x433   : > { %v4066_v43 = vpop.trf.xlu0 }
 0x434   : > { %v11882_v27 = vsel %vm2728_vm6, %v11881_v1, %v11880_v47  ;;  %v12700_v17 = vadd.f32 %v12018_v45, %v2759_v21 }
 0x435   : > { %v11721_v53 = vpop.f32.mrb[140].mxu1  ;;  %v11884_v16 = vsel %vm2731_vm7, %v11883_v24, %v11882_v27  ;;  %v12211_v55 = vpop.f32.mrb[138].mxu0 }
 0x436   : > { %v11885_v9 = vrot.slane %v11721_v53, 3  ;;  %v15022_v11 = vpop.f32.mrb[141].mxu1  ;;  %v12212_v59 = vadd.f32 %v12211_v55, %v17001_v20  ;;  %v15047_v26 = vpop.f32.mrb[139].mxu0  ;;  %v12708_v4 = vmul.f32 0.35355338, %v12700_v17 }
 0x438   : > { %v11886_v25 = vsel %vm2734_vm8, %v11885_v9, %v11884_v16  ;;  %v12702_v62 = vadd.f32 %v12212_v59, %v5373_v33  ;;  %v12716_v31 = vsel %vm1462_vm2, %v12708_v4, -inf }
 0x439   : > { %v11865_v49 = vpop.f32.mrb[142].mxu1  ;;  %v11888_v60 = vsel %vm2737_vm9, %v11887_v6, %v11886_v25  ;;  %v12405_v12 = vpop.f32.mrb[140].mxu0 }
 0x43a   : > { %v11889_v15 = vrot.slane %v11865_v49, 1  ;;  %v15032_v44 = vpop.f32.mrb[143].mxu1  ;;  %v12710_v56 = vmul.f32 0.35355338, %v12702_v62  ;;  %v12406_v30 = vadd.f32 %v12405_v12, %v17033_v61  ;;  %v15057_v32 = vpop.f32.mrb[141].mxu0 }
 0x43c   : > { %v11890_v37 = vsel %vm2740_vm10, %v11889_v15, %v11888_v60  ;;  %v12722_v8 = vsel %vm1462_vm2, %v12710_v56, -inf }
 0x43d   : > { %v12114_v20 = vpop.f32.mrb[144].mxu1  ;;  %v12599_v13 = vpop.f32.mrb[142].mxu0  ;;  %12723 = vmax.xlane.f32.xlu1 %v12722_v8 }
 0x43e   : > { %v12115_v7 = vadd.f32 %v12114_v20, %v16959_v57  ;;  %v15042_v14 = vpop.f32.mrb[145].mxu1  ;;  %v12600_v29 = vadd.f32 %v12599_v13, %v17065_v34  ;;  %v15067_v23 = vpop.f32.mrb[143].mxu0 }
 0x43f   : > { %v6680_v47 = vpop.trf.xlu1 }
 0x441   : > { %v12308_v3 = vpop.f32.mrb[146].mxu1 }
 0x442   : > { %v12309_v38 = vadd.f32 %v12308_v3, %v17017_v19  ;;  %v15052_v61 = vpop.f32.mrb[147].mxu1  ;;  %v12701_v19 = vadd.f32 %v12115_v7, %v4066_v43 }
 0x444   : > { %v12709_v48 = vmul.f32 0.35355338, %v12701_v19  ;;  %v12703_v50 = vadd.f32 %v12309_v38, %v6680_v47 }
 0x445   : > { %v12502_v39 = vpop.f32.mrb[148].mxu1 }
 0x446   : > { %v12503_v2 = vadd.f32 %v12502_v39, %v17049_v18  ;;  %v15062_v63 = vpop.f32.mrb[149].mxu1  ;;  %v12711_v1 = vmul.f32 0.35355338, %v12703_v50  ;;  %v12719_v24 = vsel %vm1462_vm2, %v12709_v48, -inf }
 0x448   : > { %v12725_v45 = vsel %vm1462_vm2, %v12711_v1, -inf }
 0x449   : > { %v12696_v0 = vpop.f32.mrb[150].mxu1 }
 0x44a   : > { %12717 = vmax.xlane.f32.xlu0 %v12716_v31  ;;  %v12697_v5 = vadd.f32 %v12696_v0, %v12624_v36  ;;  %v15072_v57 = vpop.f32.mrb[151].mxu1 }
 0x45d   : > { %v7987_v35 = vpop.trf.xlu0 }
 0x45e   : > { %v12704_v34 = vadd.f32 %v12406_v30, %v7987_v35 }
 0x460   : > { %v12712_v46 = vmul.f32 0.35355338, %v12704_v34 }
 0x462   : > { %v12728_v41 = vsel %vm1462_vm2, %v12712_v46, -inf }
 0x463   : > { %12729 = vmax.xlane.f32.xlu0 %v12728_v41 }
 0x470   : > { %11892 = vxpose.xlu1.b32.start.end [1/1] (short) (narrow) %v11890_v37, 8 }
 0x47d   : > { %v9294_v18 = vpop.trf.xlu1 }
 0x47e   : > { %v12705_v22 = vadd.f32 %v12503_v2, %v9294_v18 }
 0x480   : > { %v12713_v36 = vmul.f32 0.35355338, %v12705_v22 }
 0x482   : > { %v12731_v53 = vsel %vm1462_vm2, %v12713_v36, -inf }
 0x497   : > { %12720 = vmax.xlane.f32.xlu1 %v12719_v24 }
 0x49b   : > { %12726 = vmax.xlane.f32.xlu1 %v12725_v45 }
 0x49d   : > { %v10601_v54 = vpop.trf.xlu0 }
 0x49e   : > { %v12706_v27 = vadd.f32 %v12600_v29, %v10601_v54 }
 0x49f   : > { %12732 = vmax.xlane.f32.xlu1 %v12731_v53 }
 0x4a0   : > { %v12714_v33 = vmul.f32 0.35355338, %v12706_v27 }
 0x4a2   : > { %v12734_v16 = vsel %vm1462_vm2, %v12714_v33, -inf }
 0x4a3   : > { %12735 = vmax.xlane.f32.xlu0 %v12734_v16 }
 0x4ca   : > { %v12724_v55 = vpop.xlane.xlu1 %12723 }
 0x4cb   : > { %v12742_v9 = vsub.f32 %v12710_v56, %v12724_v55 }
 0x4cd   : > { %v12752_v59 = vmul.f32 1.442695, %v12742_v9 }
 0x4d7   : > { %v12718_v11 = vpop.xlane.xlu0 %12717 }
 0x4d8   : > { %v12740_v6 = vsub.f32 %v12708_v4, %v12718_v11 }
 0x4da   : > { %v12748_v26 = vmul.f32 1.442695, %v12740_v6 }
 0x4dc   : > { %15198 = vpow2.f32 %v12748_v26 }
 0x4dd   : > { %15200 = vpow2.f32 %v12752_v59  ;;  %v13388_v59 = vld [vmem:[%s15401_s24] sm:$0xff] }
 0x4e6   : > { %v15199_v25 = vpop.eup %15198 }
 0x4e7   : > { %v12764_v62 = vsel %vm1462_vm2, %v15199_v25, 0.0  ;;  %v15201_v49 = vpop.eup %15200 }
 0x4e8   : > { %12765 = vadd.xlane.f32.xlu0 %v12764_v62  ;;  %v12770_v60 = vsel %vm1462_vm2, %v15201_v49, 0.0 }
 0x4ec   : > { %12771 = vadd.xlane.f32.xlu0 %v12770_v60 }
 0x4f0   : > { %v12730_v12 = vpop.xlane.xlu0 %12729  ;;  %v11908_v44 = vpop.trf.xlu1 }
 0x4f1   : > { %v12744_v15 = vsub.f32 %v12712_v46, %v12730_v12  ;;  %v12707_v30 = vadd.f32 %v12697_v5, %v11908_v44 }
 0x4f3   : > { %v12756_v32 = vmul.f32 1.442695, %v12744_v15  ;;  %v12715_v56 = vmul.f32 0.35355338, %v12707_v30 }
 0x4f5   : > { %15202 = vpow2.f32 %v12756_v32  ;;  %v12737_v37 = vsel %vm1462_vm2, %v12715_v56, -inf }
 0x4f6   : > { %12738 = vmax.xlane.f32.xlu1 %v12737_v37 }
 0x4ff   : > { %v15203_v21 = vpop.eup %15202 }
 0x500   : > { %v12776_v8 = vsel %vm1462_vm2, %v15203_v21, 0.0 }
 0x501   : > { %12777 = vadd.xlane.f32.xlu0 %v12776_v8 }
 0x524   : > { %v12721_v20 = vpop.xlane.xlu1 %12720 }
 0x525   : > { %v12741_v13 = vsub.f32 %v12709_v48, %v12721_v20 }
 0x527   : > { %v12750_v7 = vmul.f32 1.442695, %v12741_v13 }
 0x528   : > { %v12727_v14 = vpop.xlane.xlu1 %12726 }
 0x529   : > { %15204 = vpow2.f32 %v12750_v7  ;;  %v12743_v29 = vsub.f32 %v12711_v1, %v12727_v14  ;;  %v13519_v7 = vld [vmem:[%s17225_s16 + $0x8] sm:$0xff]  ;;  %v13518_v14 = vld [vmem:[%s17225_s16] sm:$0xff] }
 0x52b   : > { %v12754_v23 = vmul.f32 1.442695, %v12743_v29 }
 0x52c   : > { %v12733_v17 = vpop.xlane.xlu1 %12732 }
 0x52d   : > { %15206 = vpow2.f32 %v12754_v23  ;;  %v12745_v3 = vsub.f32 %v12713_v36, %v12733_v17 }
 0x52f   : > { %v12758_v61 = vmul.f32 1.442695, %v12745_v3 }
 0x530   : > { %v12736_v38 = vpop.xlane.xlu0 %12735 }
 0x531   : > { %v12746_v4 = vsub.f32 %v12714_v33, %v12736_v38  ;;  %15208 = vpow2.f32 %v12758_v61  ;;  %v13521_v38 = vld [vmem:[%s17225_s16 + $0x18] sm:$0xff]  ;;  %v13520_v61 = vld [vmem:[%s17225_s16 + $0x10] sm:$0xff] }
 0x533   : > { %v12760_v39 = vmul.f32 1.442695, %v12746_v4  ;;  %v15205_v2 = vpop.eup %15204 }
 0x534   : > { %v12767_v63 = vsel %vm1462_vm2, %v15205_v2, 0.0 }
 0x535   : > { %15210 = vpow2.f32 %v12760_v39  ;;  %12768 = vadd.xlane.f32.xlu1 %v12767_v63 }
 0x537   : > { %v15207_v31 = vpop.eup %15206 }
 0x538   : > { %v12773_v0 = vsel %vm1462_vm2, %v15207_v31, 0.0 }
 0x539   : > { %12774 = vadd.xlane.f32.xlu1 %v12773_v0  ;;  %v13522_v0 = vld [vmem:[%s17225_s16 + $0x20] sm:$0xff] }
 0x53b   : > { %v15209_v5 = vpop.eup %15208 }
 0x53c   : > { %v12779_v57 = vsel %vm1462_vm2, %v15209_v5, 0.0 }
 0x53d   : > { %12780 = vadd.xlane.f32.xlu1 %v12779_v57 }
 0x53f   : > { %v15211_v43 = vpop.eup %15210 }
 0x540   : > { %v12782_v35 = vsel %vm1462_vm2, %v15211_v43, 0.0 }
 0x541   : > { %12783 = vadd.xlane.f32.xlu0 %v12782_v35 }
 0x575   : > { %v12766_v34 = vpop.xlane.xlu0 %12765 }
 0x576   : > { %15212 = vrcp.f32 %v12766_v34  ;;  %v13525_v34 = vld [vmem:[%s17225_s16 + $0x38] sm:$0xff] }
 0x579   : > { %v12772_v46 = vpop.xlane.xlu0 %12771 }
 0x57a   : > { %15214 = vrcp.f32 %v12772_v46  ;;  %v13524_v46 = vld [vmem:[%s17225_s16 + $0x30] sm:$0xff] }
 0x580   : > { %v15213_v41 = vpop.eup %15212 }
 0x581   : > { %v12796_v19 = vmul.f32 %v15213_v41, %v15199_v25 }
 0x583   : > { %15076 = vmatmul.mubr.msk.f32.vlgmr.msra.gmra.mrb[144].mxu0 %vm1462_vm2, %v12796_v19  ;;  %v12739_v50 = vpop.xlane.xlu1 %12738 }
 0x584   : > { %v15215_v47 = vpop.eup %15214  ;;  %15084 = vmatpush3.msra.mxu0 %v16168_v42  ;;  %15085 = vmatprep.mubr.msk.f32.mxu0 %vm15257_vm3, %v15256_v51  ;;  %v12747_v18 = vsub.f32 %v12715_v56, %v12739_v50 }
 0x585   : > { %v12798_v48 = vmul.f32 %v15215_v47, %v15201_v49  ;;  %15093 = vmatprep.subr.mxu0 %v15256_v51 }
 0x586   : > { %v12762_v1 = vmul.f32 1.442695, %v12747_v18 }
 0x587   : > { %15086 = vmatmul.mubr.msk.f32.vlgmr.msra.gmra.mrb[146].mxu0 %vm1462_vm2, %v12798_v48 }
 0x588   : > { %15094 = vmatpush3.msra.mxu0 %v16179_v58  ;;  %15095 = vmatprep.mubr.msk.f32.mxu0 %vm15257_vm3, %v15256_v51  ;;  %15216 = vpow2.f32 %v12762_v1 }
 0x589   : > { %15103 = vmatprep.subr.mxu0 %v15256_v51 }
 0x58e   : > { %v12778_v42 = vpop.xlane.xlu0 %12777 }
 0x58f   : > { %15218 = vrcp.f32 %v12778_v42 }
 0x592   : > { %v15217_v22 = vpop.eup %15216 }
 0x593   : > { %v12785_v24 = vsel %vm1462_vm2, %v15217_v22, 0.0 }
 0x594   : > { %12786 = vadd.xlane.f32.xlu1 %v12785_v24 }
 0x599   : > { %v15219_v36 = vpop.eup %15218 }
 0x59a   : > { %v12800_v45 = vmul.f32 %v15219_v36, %v15203_v21 }
 0x59c   : > { %15096 = vmatmul.mubr.msk.f32.vlgmr.msra.gmra.mrb[148].mxu0 %vm1462_vm2, %v12800_v45 }
 0x59d   : > { %15104 = vmatpush3.msra.mxu0 %v16196_v10  ;;  %15105 = vmatprep.mubr.msk.f32.mxu0 %vm15257_vm3, %v15256_v51 }
 0x59e   : > { %15113 = vmatprep.subr.mxu0 %v13388_v59 }
 0x5c2   : > { %v12769_v58 = vpop.xlane.xlu1 %12768 }
 0x5c3   : > { %15220 = vrcp.f32 %v12769_v58 }
 0x5c6   : > { %v12775_v54 = vpop.xlane.xlu1 %12774 }
 0x5c7   : > { %15222 = vrcp.f32 %v12775_v54 }
 0x5ca   : > { %v12781_v27 = vpop.xlane.xlu1 %12780 }
 0x5cb   : > { %15224 = vrcp.f32 %v12781_v27 }
 0x5cd   : > { %v15221_v53 = vpop.eup %15220 }
 0x5ce   : > { %v12784_v33 = vpop.xlane.xlu0 %12783  ;;  %v12797_v16 = vmul.f32 %v15221_v53, %v15205_v2 }
 0x5cf   : > { %15226 = vrcp.f32 %v12784_v33 }
 0x5d0   : > { %15081 = vmatmul.mubr.msk.f32.vlgmr.msra.gmra.mrb[152].mxu1 %vm1462_vm2, %v12797_v16 }
 0x5d1   : > { %v15223_v55 = vpop.eup %15222  ;;  %15089 = vmatpush3.msra.mxu1 %v16166_v40  ;;  %15090 = vmatprep.mubr.msk.f32.mxu1 %vm15257_vm3, %v15256_v51 }
 0x5d2   : > { %v12799_v10 = vmul.f32 %v15223_v55, %v15207_v31  ;;  %15098 = vmatprep.subr.mxu1 %v15256_v51  ;;  %v13523_v31 = vld [vmem:[%s17225_s16 + $0x28] sm:$0xff] }
 0x5d4   : > { %15091 = vmatmul.mubr.msk.f32.vlgmr.msra.gmra.mrb[154].mxu1 %vm1462_vm2, %v12799_v10 }
 0x5d5   : > { %v15225_v9 = vpop.eup %15224  ;;  %15099 = vmatpush3.msra.mxu1 %v16173_v52  ;;  %15100 = vmatprep.mubr.msk.f32.mxu1 %vm15257_vm3, %v15256_v51 }
 0x5d6   : > { %v12801_v11 = vmul.f32 %v15225_v9, %v15209_v5  ;;  %15108 = vmatprep.subr.mxu1 %v15256_v51 }
 0x5d8   : > { %15101 = vmatmul.mubr.msk.f32.vlgmr.msra.gmra.mrb[156].mxu1 %vm1462_vm2, %v12801_v11 }
 0x5d9   : > { %v15227_v6 = vpop.eup %15226  ;;  %15109 = vmatpush3.msra.mxu1 %v16190_v28  ;;  %15110 = vmatprep.mubr.msk.f32.mxu1 %vm15257_vm3, %v15256_v51 }
 0x5da   : > { %v12802_v40 = vmul.f32 %v15227_v6, %v15211_v43 }
 0x5dc   : > { %15106 = vmatmul.mubr.msk.f32.vlgmr.msra.gmra.mrb[150].mxu0 %vm1462_vm2, %v12802_v40 }
 0x5dd   : > { %15114 = vmatpush3.msra.mxu0 %v13388_v59 }
 0x621   : > { %v12787_v52 = vpop.xlane.xlu1 %12786 }
 0x622   : > { %15228 = vrcp.f32 %v12787_v52 }
 0x62c   : > { %v15229_v26 = vpop.eup %15228 }
 0x62d   : > { %v12803_v25 = vmul.f32 %v15229_v26, %v15217_v22 }
 0x62f   : > { %15111 = vmatmul.mubr.msk.f32.vlgmr.msra.gmra.mrb[158].mxu1 %vm1462_vm2, %v12803_v25 }
 0x656   : > { %v12873_v62 = vpop.f32.mrb[144].mxu0 }
 0x657   : > { %v15077_v49 = vpop.f32.mrb[145].mxu0  ;;  %15115 = vmatprep.mubr.msk.f32.mxu0 %vm1462_vm2, %v12873_v62 }
 0x65a   : > { %v13019_v60 = vpop.f32.mrb[146].mxu0 }
 0x65b   : > { %v15087_v28 = vpop.f32.mrb[147].mxu0 }
 0x66f   : > { %v13165_v12 = vpop.f32.mrb[148].mxu0 }
 0x670   : > { %v15097_v15 = vpop.f32.mrb[149].mxu0 }
 0x6a3   : > { %v12946_v51 = vpop.f32.mrb[152].mxu1 }
 0x6a4   : > { %v15082_v44 = vpop.f32.mrb[153].mxu1  ;;  %15116 = vmatmul.mubr.msk.f32.vlgmr.msra.gmra.mrb[152].mxu0 %vm1462_vm2, %v12946_v51 }
 0x6a5   : > { %15118 = vmatprep.mubr.msk.f32.mxu0 %vm1462_vm2, %v13019_v60 }
 0x6a7   : > { %v13092_v30 = vpop.f32.mrb[154].mxu1 }
 0x6a8   : > { %v15092_v32 = vpop.f32.mrb[155].mxu1  ;;  %15119 = vmatmul.mubr.msk.f32.gmra.mrb[154].mxu0 %vm1462_vm2, %v13092_v30 }
 0x6a9   : > { %15121 = vmatprep.mubr.msk.f32.mxu0 %vm1462_vm2, %v13165_v12 }
 0x6ab   : > { %v13238_v56 = vpop.f32.mrb[156].mxu1 }
 0x6ac   : > { %v15102_v37 = vpop.f32.mrb[157].mxu1  ;;  %15122 = vmatmul.mubr.msk.f32.gmra.mrb[156].mxu0 %vm1462_vm2, %v13238_v56 }
 0x6af   : > { %v13311_v21 = vpop.f32.mrb[150].mxu0 }
 0x6b0   : > { %v15107_v8 = vpop.f32.mrb[151].mxu0  ;;  %15124 = vmatprep.mubr.msk.f32.mxu0 %vm1462_vm2, %v13311_v21 }
 0x702   : > { %v13384_v20 = vpop.f32.mrb[158].mxu1 }
 0x703   : > { %v15112_v13 = vpop.f32.mrb[159].mxu1  ;;  %15125 = vmatmul.mubr.msk.f32.gmra.mrb[158].mxu0 %vm1462_vm2, %v13384_v20 }
 0x777   : > { %v15117_v29 = vpop.f32.mrb[152].mxu0 }
 0x778   : > { %v13527_v23 = vadd.f32 %v15117_v29, %v13519_v7  ;;  %v13479_v17 = vpop.f32.mrb[153].mxu0 }
 0x779   : > { %v13526_v3 = vadd.f32 %v13518_v14, %v13479_v17 }
 0x77a   : > { %13535 = vst.msk [vmem:[%s17225_s16 + $0x8] sm:$0xff] %vm1010_vm1, %v13527_v23 }
 0x77b   : > { %13534 = vst.msk [vmem:[%s17225_s16] sm:$0xff] %vm1010_vm1, %v13526_v3  ;;  %v15120_v4 = vpop.f32.mrb[154].mxu0 }
 0x77c   : > { %v13529_v39 = vadd.f32 %v15120_v4, %v13521_v38  ;;  %v13489_v2 = vpop.f32.mrb[155].mxu0 }
 0x77d   : > { %v13528_v63 = vadd.f32 %v13520_v61, %v13489_v2 }
 0x77e   : > { %13537 = vst.msk [vmem:[%s17225_s16 + $0x18] sm:$0xff] %vm1010_vm1, %v13529_v39 }
 0x77f   : > { %13536 = vst.msk [vmem:[%s17225_s16 + $0x10] sm:$0xff] %vm1010_vm1, %v13528_v63  ;;  %v15123_v5 = vpop.f32.mrb[156].mxu0 }
 0x780   : > { %v13531_v57 = vadd.f32 %v15123_v5, %v13523_v31  ;;  %v13499_v43 = vpop.f32.mrb[157].mxu0 }
 0x781   : > { %v13530_v35 = vadd.f32 %v13522_v0, %v13499_v43 }
 0x782   : > { %13539 = vst.msk [vmem:[%s17225_s16 + $0x28] sm:$0xff] %vm1010_vm1, %v13531_v57 }
 0x783   : > { %13538 = vst.msk [vmem:[%s17225_s16 + $0x20] sm:$0xff] %vm1010_vm1, %v13530_v35 }
 0x7d6   : > { %v15126_v41 = vpop.f32.mrb[158].mxu0 }
 0x7d7   : > { %v13533_v19 = vadd.f32 %v15126_v41, %v13525_v34  ;;  %v13509_v47 = vpop.f32.mrb[159].mxu0 }
 0x7d8   : > { %v13532_v48 = vadd.f32 %v13524_v46, %v13509_v47 }
 0x7d9   : > { %13541 = vst.msk [vmem:[%s17225_s16 + $0x38] sm:$0xff] %vm1010_vm1, %v13533_v19 }
 0x7da   : > { %13540 = vst.msk [vmem:[%s17225_s16 + $0x30] sm:$0xff] %vm1010_vm1, %v13532_v48 }
 0x7db PF: > { %s17244_s27 = sld [smem:[#allocation4_spill]] }
 0x7e1   : > { %s26_s21 = sadd.s32 1, %s17244_s27  }
 0x7e2   : > { %p23_p5 = scmp.ge.s32.totalorder %s26_s21, 6  }
 0x7e4   :  { %25 = sbr.rel (!%p23_p5) target bundleno = 8 (0x8), region = 138 }

</bundles_post_ra>
